<compile_context>
chip_gen: v7x
topology: tpu7x:2x2x1
jax: 0.10.0
libtpu: 0.0.40
codegen_flags: <defaults>
</compile_context>

<pallas_src>
import math
import functools

import jax
import jax.numpy as jnp
from jax.experimental import pallas as pl
from jax.experimental.pallas import tpu as pltpu


ACT_DTYPE = jnp.bfloat16                      # intermediate activation dtype
_FUSED_BLOCK_BUDGET = 20 * 1024 * 1024        # per-grid-step VMEM budget (bytes)
_VMEM_LIMIT = 48 * 1024 * 1024                # explicit scoped-VMEM limit


def _round_up(x, m):
    return ((x + m - 1) // m) * m


# ---------------------------------------------------------------------------
# Fused direct-conv kernel:  conv (+bias) [+InstanceNorm (+residual) +ReLU | tanh]
# ---------------------------------------------------------------------------
def _fused_conv_kernel(*refs, kh, kw, oh, ow, mode):
    # refs: x_ref (1, Hp, Wp, Cin) bf16, w_ref (kh*kw, Cin, TCO) bf16,
    #       b_ref (1, TCO) f32, [res_ref (1, oh*ow, TCO)], o_ref (1, oh*ow, TCO)
    if mode == "norm_res":
        x_ref, w_ref, b_ref, res_ref, o_ref = refs
    else:
        x_ref, w_ref, b_ref, o_ref = refs
        res_ref = None

    cin = x_ref.shape[-1]
    cout = o_ref.shape[-1]
    acc = jnp.zeros((oh * ow, cout), jnp.float32)
    for di in range(kh):
        for dj in range(kw):
            patch = x_ref[0, di:di + oh, dj:dj + ow, :]          # (oh, ow, cin)
            a = patch.reshape(oh * ow, cin)                       # lane dim = cin
            acc = acc + jnp.dot(a, w_ref[di * kw + dj],
                                preferred_element_type=jnp.float32)
    acc = acc + b_ref[...]

    if mode in ("norm", "norm_res"):
        # One-pass stats: var = E[x^2] - E[x]^2 (per output channel, full image).
        inv_p = 1.0 / float(oh * ow)
        mean = jnp.sum(acc, axis=0, keepdims=True) * inv_p
        ex2 = jnp.sum(acc * acc, axis=0, keepdims=True) * inv_p
        var = jnp.maximum(ex2 - mean * mean, 0.0)
        y = (acc - mean) * jax.lax.rsqrt(var + 1e-5)
        if mode == "norm_res":
            y = y + res_ref[0].astype(jnp.float32)
        y = jnp.maximum(y, 0.0)
    elif mode == "tanh":
        y = jnp.tanh(acc)
    else:
        y = acc
    o_ref[0] = y.astype(o_ref.dtype)


def _fused_conv_call(x, wmat, bias, residual, *, oh, ow, kh, kw, mode, out_dtype):
    nb, hp, wp, cin = x.shape
    taps, _, cout = wmat.shape
    tco = cout if cout <= 128 else 128
    n_co = cout // tco

    in_specs = [
        pl.BlockSpec((1, hp, wp, cin), lambda n, j: (n, 0, 0, 0)),
        pl.BlockSpec((taps, cin, tco), lambda n, j: (0, 0, j)),
        pl.BlockSpec((1, tco), lambda n, j: (0, j)),
    ]
    args = [x, wmat, bias]
    if mode == "norm_res":
        in_specs.append(pl.BlockSpec((1, oh * ow, tco), lambda n, j: (n, 0, j)))
        args.append(residual)

    return pl.pallas_call(
        functools.partial(_fused_conv_kernel, kh=kh, kw=kw, oh=oh, ow=ow, mode=mode),
        out_shape=jax.ShapeDtypeStruct((nb, oh * ow, cout), out_dtype),
        grid=(nb, n_co),
        in_specs=in_specs,
        out_specs=pl.BlockSpec((1, oh * ow, tco), lambda n, j: (n, 0, j)),
        compiler_params=pltpu.CompilerParams(
            dimension_semantics=("parallel", "parallel"),
            vmem_limit_bytes=_VMEM_LIMIT),
    )(*args)


def _fused_conv_ok(hp, wp, cin, cout, kh, kw, oh, ow, stride, has_res, out_bytes):
    if stride not in (1, 2):
        return False
    if ow % 8 != 0:
        return False
    if stride == 2 and (hp % 2 or wp % 2):
        return False
    if cout > 128 and cout % 128 != 0:
        return False
    tco = cout if cout <= 128 else 128
    cin_eff = cin * (4 if stride == 2 else 1)
    taps = kh * kw if stride == 1 else ((kh + 1) // 2) * ((kw + 1) // 2)
    x_b = hp * wp * cin * 2
    w_b = taps * cin_eff * tco * 2
    o_b = oh * ow * tco * out_bytes
    r_b = oh * ow * tco * 2 if has_res else 0
    acc_b = oh * ow * tco * 4
    return 2 * (x_b + w_b + o_b + r_b) + acc_b <= _FUSED_BLOCK_BUDGET


def _space_to_depth_conv_inputs(xp, w):
    """Rewrite a stride-2 KxK conv on xp as a stride-1 (K+1)//2-sized conv on a
    space-to-depth-by-2 input (no zero MACs, no zero-dilated im2col)."""
    nb, hp, wp, cin = xp.shape
    cout, _, kh, kw = w.shape
    y = xp.reshape(nb, hp // 2, 2, wp // 2, 2, cin)
    y = jnp.transpose(y, (0, 1, 3, 2, 4, 5)).reshape(nb, hp // 2, wp // 2, 4 * cin)
    kh2, kw2 = (kh + 1) // 2, (kw + 1) // 2
    wm = jnp.transpose(w, (2, 3, 1, 0))                 # (kh, kw, cin, cout)
    w2 = jnp.zeros((kh2, kw2, 2, 2, cin, cout), jnp.float32)
    for p_off in range(kh2):
        for q_off in range(kw2):
            for a in range(2):
                for c in range(2):
                    di, dj = 2 * p_off + a, 2 * q_off + c
                    if di < kh and dj < kw:
                        w2 = w2.at[p_off, q_off, a, c].set(wm[di, dj])
    w2 = w2.reshape(kh2 * kw2, 4 * cin, cout)
    return y.astype(jnp.bfloat16), w2.astype(jnp.bfloat16), kh2, kw2


# ---------------------------------------------------------------------------
# Fallback path: Pallas matmul+bias (bf16 in, f32 acc) + standalone lane-dense IN
# ---------------------------------------------------------------------------
def _matmul_bias_kernel(a_ref, b_ref, bias_ref, o_ref, *, activation):
    acc = jnp.dot(a_ref[...], b_ref[...], preferred_element_type=jnp.float32)
    acc = acc + bias_ref[...]
    if activation == "tanh":
        acc = jnp.tanh(acc)
    o_ref[...] = acc.astype(o_ref.dtype)


def pallas_matmul_bias(a, b, bias, activation=None, out_dtype=jnp.float32):
    """a:[M,K] @ b:[K,N] + bias[N]; bf16 operands, f32 accumulate.
    K is never padded (full-dim blocks); M/N padded only when necessary."""
    m, k = a.shape
    _, n = b.shape
    a = a.astype(jnp.bfloat16)
    b = b.astype(jnp.bfloat16)
    tm = 256 if m % 256 == 0 else 128
    mp = _round_up(m, tm)
    np_ = _round_up(n, 128)
    if mp != m:
        a = jnp.pad(a, ((0, mp - m), (0, 0)))
    bias2 = bias.reshape(1, n).astype(jnp.float32)
    if np_ != n:
        b = jnp.pad(b, ((0, 0), (0, np_ - n)))
        bias2 = jnp.pad(bias2, ((0, 0), (0, np_ - n)))

    out = pl.pallas_call(
        functools.partial(_matmul_bias_kernel, activation=activation),
        out_shape=jax.ShapeDtypeStruct((mp, np_), out_dtype),
        grid=(mp // tm,),
        in_specs=[
            pl.BlockSpec((tm, k), lambda i: (i, 0)),
            pl.BlockSpec((k, np_), lambda i: (0, 0)),
            pl.BlockSpec((1, np_), lambda i: (0, 0)),
        ],
        out_specs=pl.BlockSpec((tm, np_), lambda i: (i, 0)),
        compiler_params=pltpu.CompilerParams(
            dimension_semantics=("parallel",),
            vmem_limit_bytes=_VMEM_LIMIT),
    )(a, b, bias2)
    if mp != m or np_ != n:
        out = out[:m, :n]
    return out


def _inorm_kernel(*refs, has_res):
    # x_ref: (1, TC, P) channel-major, lane-dense (P is the lane axis).
    if has_res:
        x_ref, r_ref, o_ref = refs
    else:
        x_ref, o_ref = refs
        r_ref = None
    x = x_ref[...].astype(jnp.float32)
    inv_p = 1.0 / float(x.shape[-1])
    mean = jnp.sum(x, axis=-1, keepdims=True) * inv_p
    ex2 = jnp.sum(x * x, axis=-1, keepdims=True) * inv_p
    var = jnp.maximum(ex2 - mean * mean, 0.0)
    y = (x - mean) * jax.lax.rsqrt(var + 1e-5)
    if has_res:
        y = y + r_ref[...].astype(jnp.float32)
    o_ref[...] = jnp.maximum(y, 0.0).astype(o_ref.dtype)


def instance_norm_relu(x_nhwc, residual=None, out_dtype=ACT_DTYPE):
    """Standalone InstanceNorm(+residual)+ReLU (fallback path only).
    Lane-dense (N, C, P) layout, channel-tiled grid, one-pass stats."""
    nb, h, w, c = x_nhwc.shape
    p = h * w
    xt = jnp.transpose(x_nhwc.reshape(nb, p, c), (0, 2, 1))
    tc = c
    while tc > 16 and tc % 2 == 0 and tc * p * 4 > (2 << 20):
        tc //= 2
    if c % tc != 0 or tc % 8 != 0:
        tc = c
    spec = pl.BlockSpec((1, tc, p), lambda n, j: (n, j, 0))
    in_specs = [spec]
    args = [xt]
    if residual is not None:
        rt = jnp.transpose(residual.reshape(nb, p, c), (0, 2, 1)).astype(xt.dtype)
        in_specs.append(spec)
        args.append(rt)
    out = pl.pallas_call(
        functools.partial(_inorm_kernel, has_res=residual is not None),
        out_shape=jax.ShapeDtypeStruct((nb, c, p), out_dtype),
        grid=(nb, c // tc),
        in_specs=in_specs,
        out_specs=pl.BlockSpec((1, tc, p), lambda n, j: (n, j, 0)),
        compiler_params=pltpu.CompilerParams(
            dimension_semantics=("parallel", "parallel"),
            vmem_limit_bytes=_VMEM_LIMIT),
    )(*args)
    return jnp.transpose(out, (0, 2, 1)).reshape(nb, h, w, c)


def _im2col(x, kh, kw, stride):
    n, h, w, c = x.shape
    oh = (h - kh) // stride + 1
    ow = (w - kw) // stride + 1
    patches = []
    for di in range(kh):
        for dj in range(kw):
            patches.append(x[:, di:di + stride * oh:stride, dj:dj + stride * ow:stride, :])
    p = jnp.stack(patches, axis=3)                      # (N, oh, ow, kh*kw, C)
    return p.reshape(n * oh * ow, kh * kw * c), (n, oh, ow)


# ---------------------------------------------------------------------------
# Conv layer (conv + optional IN(+residual)+ReLU / tanh)
# ---------------------------------------------------------------------------
def conv_layer(x, w, b, *, stride=1, pad=0, pad_mode="constant",
               norm=False, residual=None, activation=None, out_dtype=None):
    """x: NHWC activations; w: PyTorch Conv2d layout [Cout, Cin, kh, kw]."""
    out_dtype = out_dtype or ACT_DTYPE
    cout, cin, kh, kw = w.shape
    xp = x
    if pad > 0:
        xp = jnp.pad(xp, ((0, 0), (pad, pad), (pad, pad), (0, 0)), mode=pad_mode)
    nb, hp, wp, _ = xp.shape
    oh = (hp - kh) // stride + 1
    ow = (wp - kw) // stride + 1

    mode = ("norm_res" if (norm and residual is not None)
            else "norm" if norm
            else "tanh" if activation == "tanh" else "linear")
    res2 = None
    if mode == "norm_res":
        res2 = residual.reshape(nb, oh * ow, cout).astype(ACT_DTYPE)

    out_bytes = jnp.dtype(out_dtype).itemsize
    if _fused_conv_ok(hp, wp, cin, cout, kh, kw, oh, ow, stride,
                      mode == "norm_res", out_bytes):
        try:
            if stride == 1:
                y_in = xp.astype(jnp.bfloat16)
                wmat = jnp.transpose(w, (2, 3, 1, 0)).reshape(kh * kw, cin, cout)
                wmat = wmat.astype(jnp.bfloat16)
                tkh, tkw = kh, kw
            else:  # stride == 2 -> space-to-depth + fused 2x2 conv
                y_in, wmat, tkh, tkw = _space_to_depth_conv_inputs(xp, w)
            out = _fused_conv_call(
                y_in, wmat, b.astype(jnp.float32).reshape(1, cout), res2,
                oh=oh, ow=ow, kh=tkh, kw=tkw, mode=mode, out_dtype=out_dtype)
            return out.reshape(nb, oh, ow, cout)
        except Exception:
            pass  # fall back to the im2col + matmul path below

    # Fallback (large images / unsupported shapes): im2col + Pallas matmul.
    patches, _ = _im2col(xp, kh, kw, stride)
    wmat2 = jnp.transpose(w, (2, 3, 1, 0)).reshape(kh * kw * cin, cout)
    mm_dtype = ACT_DTYPE if norm else out_dtype
    out = pallas_matmul_bias(patches, wmat2, b,
                             activation=None if norm else activation,
                             out_dtype=mm_dtype)
    out = out.reshape(nb, oh, ow, cout)
    if norm:
        out = instance_norm_relu(out, residual=residual, out_dtype=out_dtype)
    return out


# ---------------------------------------------------------------------------
# Stride-2 ConvTranspose (k=3, p=1, op=1) via sub-pixel (4-parity) decomposition
# fused with InstanceNorm + ReLU.
# ---------------------------------------------------------------------------
def _convT_parity_kernel(x_ref, w_ref, b_ref, o_ref, *, oh, ow, norm):
    # x_ref: (1, oh+1, ow+1, Cin) bf16 (bottom/right zero-padded input)
    # w_ref: (4 parities, 4 taps, Cin, Cout) bf16;  b_ref: (1, Cout) f32
    # o_ref: (1, 4, oh*ow, Cout) -- parity-major sub-pixel outputs
    cin = x_ref.shape[-1]
    cout = o_ref.shape[-1]
    accs = [jnp.zeros((oh * ow, cout), jnp.float32) for _ in range(4)]
    for dp in range(2):
        for dq in range(2):
            patch = x_ref[0, dp:dp + oh, dq:dq + ow, :].reshape(oh * ow, cin)
            for par in range(4):
                accs[par] = accs[par] + jnp.dot(
                    patch, w_ref[par, dp * 2 + dq],
                    preferred_element_type=jnp.float32)
    accs = [a + b_ref[...] for a in accs]

    if norm:
        # InstanceNorm over the FULL (2*oh x 2*ow) output of each channel:
        # pool sums over the 4 parity groups.
        inv_p = 1.0 / float(4 * oh * ow)
        s = accs[0] * 0.0[..., :0].sum() if False else None  # placeholder removed below
        s = jnp.sum(accs[0], axis=0, keepdims=True)
        ss = jnp.sum(accs[0] * accs[0], axis=0, keepdims=True)
        for par in range(1, 4):
            s = s + jnp.sum(accs[par], axis=0, keepdims=True)
            ss = ss + jnp.sum(accs[par] * accs[par], axis=0, keepdims=True)
        mean = s * inv_p
        var = jnp.maximum(ss * inv_p - mean * mean, 0.0)
        inv = jax.lax.rsqrt(var + 1e-5)
        for par in range(4):
            y = jnp.maximum((accs[par] - mean) * inv, 0.0)
            o_ref[0, par] = y.astype(o_ref.dtype)
    else:
        for par in range(4):
            o_ref[0, par] = accs[par].astype(o_ref.dtype)


def _build_parity_weights(w_t):
    """w_t: ConvTranspose2d layout [Cin, Cout, 3, 3] -> (4 parity, 4 tap, Cin, Cout)."""
    cin, cout, kh, kw = w_t.shape
    wp = jnp.zeros((2, 2, 2, 2, cin, cout), jnp.float32)
    for rp in range(2):
        for cp in range(2):
            for dp in range(2):
                for dq in range(2):
                    kr = rp - 2 * dp + 1
                    kc = cp - 2 * dq + 1
                    if 0 <= kr < kh and 0 <= kc < kw:
                        wp = wp.at[rp, cp, dp, dq].set(w_t[:, :, kr, kc])
    return wp.reshape(4, 4, cin, cout).astype(jnp.bfloat16)


def _convT_fused_ok(h, w, cin, cout, out_bytes):
    if w % 8 != 0:
        return False
    x_b = (h + 1) * (w + 1) * cin * 2
    w_b = 16 * cin * cout * 2
    o_b = 4 * h * w * cout * out_bytes
    acc_b = 4 * h * w * cout * 4
    return 2 * (x_b + w_b + o_b) + acc_b <= _FUSED_BLOCK_BUDGET


def conv_transpose_s2(x, w_t, b, *, norm=True, out_dtype=None):
    """ConvTranspose2d(k=3, stride=2, padding=1, output_padding=1) [+IN+ReLU]."""
    out_dtype = out_dtype or ACT_DTYPE
    cin, cout, kh, kw = w_t.shape
    nb, h, w, _ = x.shape
    out_bytes = jnp.dtype(out_dtype).itemsize

    if kh == 3 and kw == 3 and _convT_fused_ok(h, w, cin, cout, out_bytes):
        try:
            xp = jnp.pad(x, ((0, 0), (0, 1), (0, 1), (0, 0))).astype(jnp.bfloat16)
            wparity = _build_parity_weights(w_t)
            out4 = pl.pallas_call(
                functools.partial(_convT_parity_kernel, oh=h, ow=w, norm=norm),
                out_shape=jax.ShapeDtypeStruct((nb, 4, h * w, cout), out_dtype),
                grid=(nb,),
                in_specs=[
                    pl.BlockSpec((1, h + 1, w + 1, cin), lambda n: (n, 0, 0, 0)),
                    pl.BlockSpec((4, 4, cin, cout), lambda n: (0, 0, 0, 0)),
                    pl.BlockSpec((1, cout), lambda n: (0, 0)),
                ],
                out_specs=pl.BlockSpec((1, 4, h * w, cout), lambda n: (n, 0, 0, 0)),
                compiler_params=pltpu.CompilerParams(
                    dimension_semantics=("parallel",),
                    vmem_limit_bytes=_VMEM_LIMIT),
            )(xp, wparity, b.astype(jnp.float32).reshape(1, cout))
            # pixel shuffle: (N, rp, cp, H, W, C) -> (N, 2H, 2W, C)
            out = out4.reshape(nb, 2, 2, h, w, cout)
            out = jnp.transpose(out, (0, 3, 1, 4, 2, 5)).reshape(nb, 2 * h, 2 * w, cout)
            return out
        except Exception:
            pass

    # Fallback: zero-dilation + equivalent direct conv (reuses conv_layer).
    xd = jnp.zeros((nb, 2 * h - 1, 2 * w - 1, cin), x.dtype)
    xd = xd.at[:, ::2, ::2, :].set(x)
    xpad = jnp.pad(xd, ((0, 0), (1, 2), (1, 2), (0, 0)))
    w_conv = jnp.transpose(jnp.flip(w_t, (2, 3)), (1, 0, 2, 3))
    return conv_layer(xpad, w_conv, b, stride=1, pad=0, norm=norm, out_dtype=out_dtype)


# ---------------------------------------------------------------------------
# Generator forward (semantics of the PyTorch module, skip_conn=False)
# ---------------------------------------------------------------------------
def generator_forward(params, x_nchw, num_down, num_res):
    x = jnp.transpose(x_nchw, (0, 2, 3, 1)).astype(ACT_DTYPE)   # NCHW -> NHWC, bf16

    # conv_in: ReflectionPad2d(2) + Conv 5x5 + InstanceNorm + ReLU
    w, b = params["conv_in"]
    out = conv_layer(x, w, b, stride=1, pad=2, pad_mode="reflect", norm=True)

    # down layers
    for (w1, b1), (w2, b2) in params["down"]:
        out = conv_layer(out, w1, b1, stride=2, pad=1, norm=True)
        out = conv_layer(out, w2, b2, stride=1, pad=1, norm=True)

    # residual blocks: reflect-pad conv + IN + ReLU; reflect-pad conv + IN + identity + ReLU
    for (w1, b1), (w2, b2) in params["res"]:
        identity = out
        h = conv_layer(out, w1, b1, stride=1, pad=1, pad_mode="reflect", norm=True)
        out = conv_layer(h, w2, b2, stride=1, pad=1, pad_mode="reflect",
                         norm=True, residual=identity)

    # up layers (skip_conn=False)
    for (w1, b1), (w2, b2) in params["up"]:
        out = conv_transpose_s2(out, w1, b1, norm=True)
        # ConvTranspose2d(k=3, s=1, p=1) == conv with spatially-flipped, transposed weights.
        w2c = jnp.transpose(jnp.flip(w2, (2, 3)), (1, 0, 2, 3))
        out = conv_layer(out, w2c, b2, stride=1, pad=1, norm=True)

    # conv_out: ReflectionPad2d(2) + Conv 5x5 + Tanh (fused into the conv kernel)
    w, b = params["conv_out"]
    out = conv_layer(out, w, b, stride=1, pad=2, pad_mode="reflect",
                     activation="tanh", out_dtype=jnp.float32)

    return jnp.transpose(out, (0, 3, 1, 2))                     # NHWC -> NCHW


# ---------------------------------------------------------------------------
# Deterministic parameter initialization (PyTorch default-like uniform)
# ---------------------------------------------------------------------------
def init_params(key, num_down, num_res):
    state = {"key": key}

    def nxt():
        state["key"], sub = jax.random.split(state["key"])
        return sub

    def conv_p(cout, cin, k):
        bound = 1.0 / math.sqrt(cin * k * k)
        w = jax.random.uniform(nxt(), (cout, cin, k, k), jnp.float32, -bound, bound)
        b = jax.random.uniform(nxt(), (cout,), jnp.float32, -bound, bound)
        return w, b

    def convT_p(cin, cout, k):
        bound = 1.0 / math.sqrt(cout * k * k)
        w = jax.random.uniform(nxt(), (cin, cout, k, k), jnp.float32, -bound, bound)
        b = jax.random.uniform(nxt(), (cout,), jnp.float32, -bound, bound)
        return w, b

    params = {"conv_in": conv_p(64, 3, 5)}
    feat = 64
    params["down"] = []
    for _ in range(num_down):
        nf = feat * 2
        params["down"].append((conv_p(nf, feat, 3), conv_p(nf, nf, 3)))
        feat = nf
    params["res"] = [(conv_p(feat, feat, 3), conv_p(feat, feat, 3)) for _ in range(num_res)]
    params["up"] = []
    for _ in range(num_down):
        nf = feat // 2
        params["up"].append((convT_p(feat, nf, 3), convT_p(nf, nf, 3)))
        feat = nf
    params["conv_out"] = conv_p(3, 64, 5)
    return params


# ---------------------------------------------------------------------------
if __name__ == "__main__":
    # Small config consistent with the module: image_size=16, down_size=8
    # -> num_down = log2(16/8) = 1;  num_res = 2;  batch = 2.
    image_size, down_size, num_res = 16, 8, 2
    num_down = int(math.log2(image_size // down_size))

    root = jax.random.PRNGKey(0)
    kx, kp = jax.random.split(root)
    x = jax.random.normal(kx, (2, 3, image_size, image_size), jnp.float32)
    params = init_params(kp, num_down, num_res)

    # NOTE: kept eager (no outer jit) so the per-layer fused-kernel -> im2col
    # fallback dispatch remains catchable at call time.
    out = generator_forward(params, x, num_down=num_down, num_res=num_res)
    out = jax.block_until_ready(out)

    assert out.shape == (2, 3, image_size, image_size), out.shape
    assert bool(jnp.all(jnp.isfinite(out)))
    assert bool(jnp.all(jnp.abs(out) <= 1.0 + 1e-5))   # tanh output range
    print("KERNEL_OK")
</pallas_src>

<mosaic_0001>
module attributes {stable_mosaic.version = 11 : i64} {
  func.func @_fused_conv_kernel(%arg0: i32, %arg1: i32, %arg2: memref<1x20x20x3xbf16, #tpu.memory_space<vmem>>, %arg3: memref<25x3x64xbf16, #tpu.memory_space<vmem>>, %arg4: memref<1x64xf32, #tpu.memory_space<vmem>>, %arg5: memref<1x256x64xbf16, #tpu.memory_space<vmem>>) attributes {dimension_semantics = [#tpu.dimension_semantics<parallel>, #tpu.dimension_semantics<parallel>], iteration_bounds = array<i64: 2, 1>, scalar_prefetch = 0 : i64, scratch_operands = 0 : i64, tpu.core_type = #tpu.core_type<tc>, window_params = [{transform_indices = @transform_0, window_bounds = array<i64: 1, 20, 20, 3>}, {transform_indices = @transform_1, window_bounds = array<i64: 25, 3, 64>}, {transform_indices = @transform_2, window_bounds = array<i64: 1, 64>}, {transform_indices = @transform_3, window_bounds = array<i64: 1, 256, 64>}]} {
    %cst = arith.constant 0.000000e+00 : f32
    %0 = vector.broadcast %cst : f32 to vector<256x64xf32>
    %c0 = arith.constant 0 : index
    %c0_0 = arith.constant 0 : index
    %c0_1 = arith.constant 0 : index
    %c0_2 = arith.constant 0 : index
    %1 = vector.load %arg2[%c0, %c0_0, %c0_1, %c0_2] : memref<1x20x20x3xbf16, #tpu.memory_space<vmem>>, vector<1x16x16x3xbf16>
    %2 = vector.shape_cast %1 : vector<1x16x16x3xbf16> to vector<16x16x3xbf16>
    %3 = vector.shape_cast %2 : vector<16x16x3xbf16> to vector<256x3xbf16>
    %c0_3 = arith.constant 0 : index
    %c0_4 = arith.constant 0 : index
    %c0_5 = arith.constant 0 : index
    %4 = vector.load %arg3[%c0_3, %c0_4, %c0_5] : memref<25x3x64xbf16, #tpu.memory_space<vmem>>, vector<1x3x64xbf16>
    %5 = vector.shape_cast %4 : vector<1x3x64xbf16> to vector<3x64xbf16>
    %cst_6 = arith.constant dense<0.000000e+00> : vector<256x64xf32>
    %6 = tpu.matmul %3, %5, %cst_6 {dimension_numbers = #tpu.dot_dimension_numbers<[1], [0], [0], [1], [0, 0, 1, 1], [], []>} : vector<256x3xbf16>, vector<3x64xbf16>, vector<256x64xf32> -> vector<256x64xf32>
    %7 = arith.addf %0, %6 : vector<256x64xf32>
    %c0_7 = arith.constant 0 : index
    %c0_8 = arith.constant 0 : index
    %c1 = arith.constant 1 : index
    %c0_9 = arith.constant 0 : index
    %8 = vector.load %arg2[%c0_7, %c0_8, %c1, %c0_9] : memref<1x20x20x3xbf16, #tpu.memory_space<vmem>>, vector<1x16x16x3xbf16>
    %9 = vector.shape_cast %8 : vector<1x16x16x3xbf16> to vector<16x16x3xbf16>
    %10 = vector.shape_cast %9 : vector<16x16x3xbf16> to vector<256x3xbf16>
    %c1_10 = arith.constant 1 : index
    %c0_11 = arith.constant 0 : index
    %c0_12 = arith.constant 0 : index
    %11 = vector.load %arg3[%c1_10, %c0_11, %c0_12] : memref<25x3x64xbf16, #tpu.memory_space<vmem>>, vector<1x3x64xbf16>
    %12 = vector.shape_cast %11 : vector<1x3x64xbf16> to vector<3x64xbf16>
    %cst_13 = arith.constant dense<0.000000e+00> : vector<256x64xf32>
    %13 = tpu.matmul %10, %12, %cst_13 {dimension_numbers = #tpu.dot_dimension_numbers<[1], [0], [0], [1], [0, 0, 1, 1], [], []>} : vector<256x3xbf16>, vector<3x64xbf16>, vector<256x64xf32> -> vector<256x64xf32>
    %14 = arith.addf %7, %13 : vector<256x64xf32>
    %c0_14 = arith.constant 0 : index
    %c0_15 = arith.constant 0 : index
    %c2 = arith.constant 2 : index
    %c0_16 = arith.constant 0 : index
    %15 = vector.load %arg2[%c0_14, %c0_15, %c2, %c0_16] : memref<1x20x20x3xbf16, #tpu.memory_space<vmem>>, vector<1x16x16x3xbf16>
    %16 = vector.shape_cast %15 : vector<1x16x16x3xbf16> to vector<16x16x3xbf16>
    %17 = vector.shape_cast %16 : vector<16x16x3xbf16> to vector<256x3xbf16>
    %c2_17 = arith.constant 2 : index
    %c0_18 = arith.constant 0 : index
    %c0_19 = arith.constant 0 : index
    %18 = vector.load %arg3[%c2_17, %c0_18, %c0_19] : memref<25x3x64xbf16, #tpu.memory_space<vmem>>, vector<1x3x64xbf16>
    %19 = vector.shape_cast %18 : vector<1x3x64xbf16> to vector<3x64xbf16>
    %cst_20 = arith.constant dense<0.000000e+00> : vector<256x64xf32>
    %20 = tpu.matmul %17, %19, %cst_20 {dimension_numbers = #tpu.dot_dimension_numbers<[1], [0], [0], [1], [0, 0, 1, 1], [], []>} : vector<256x3xbf16>, vector<3x64xbf16>, vector<256x64xf32> -> vector<256x64xf32>
    %21 = arith.addf %14, %20 : vector<256x64xf32>
    %c0_21 = arith.constant 0 : index
    %c0_22 = arith.constant 0 : index
    %c3 = arith.constant 3 : index
    %c0_23 = arith.constant 0 : index
    %22 = vector.load %arg2[%c0_21, %c0_22, %c3, %c0_23] : memref<1x20x20x3xbf16, #tpu.memory_space<vmem>>, vector<1x16x16x3xbf16>
    %23 = vector.shape_cast %22 : vector<1x16x16x3xbf16> to vector<16x16x3xbf16>
    %24 = vector.shape_cast %23 : vector<16x16x3xbf16> to vector<256x3xbf16>
    %c3_24 = arith.constant 3 : index
    %c0_25 = arith.constant 0 : index
    %c0_26 = arith.constant 0 : index
    %25 = vector.load %arg3[%c3_24, %c0_25, %c0_26] : memref<25x3x64xbf16, #tpu.memory_space<vmem>>, vector<1x3x64xbf16>
    %26 = vector.shape_cast %25 : vector<1x3x64xbf16> to vector<3x64xbf16>
    %cst_27 = arith.constant dense<0.000000e+00> : vector<256x64xf32>
    %27 = tpu.matmul %24, %26, %cst_27 {dimension_numbers = #tpu.dot_dimension_numbers<[1], [0], [0], [1], [0, 0, 1, 1], [], []>} : vector<256x3xbf16>, vector<3x64xbf16>, vector<256x64xf32> -> vector<256x64xf32>
    %28 = arith.addf %21, %27 : vector<256x64xf32>
    %c0_28 = arith.constant 0 : index
    %c0_29 = arith.constant 0 : index
    %c4 = arith.constant 4 : index
    %c0_30 = arith.constant 0 : index
    %29 = vector.load %arg2[%c0_28, %c0_29, %c4, %c0_30] : memref<1x20x20x3xbf16, #tpu.memory_space<vmem>>, vector<1x16x16x3xbf16>
    %30 = vector.shape_cast %29 : vector<1x16x16x3xbf16> to vector<16x16x3xbf16>
    %31 = vector.shape_cast %30 : vector<16x16x3xbf16> to vector<256x3xbf16>
    %c4_31 = arith.constant 4 : index
    %c0_32 = arith.constant 0 : index
    %c0_33 = arith.constant 0 : index
    %32 = vector.load %arg3[%c4_31, %c0_32, %c0_33] : memref<25x3x64xbf16, #tpu.memory_space<vmem>>, vector<1x3x64xbf16>
    %33 = vector.shape_cast %32 : vector<1x3x64xbf16> to vector<3x64xbf16>
    %cst_34 = arith.constant dense<0.000000e+00> : vector<256x64xf32>
    %34 = tpu.matmul %31, %33, %cst_34 {dimension_numbers = #tpu.dot_dimension_numbers<[1], [0], [0], [1], [0, 0, 1, 1], [], []>} : vector<256x3xbf16>, vector<3x64xbf16>, vector<256x64xf32> -> vector<256x64xf32>
    %35 = arith.addf %28, %34 : vector<256x64xf32>
    %c0_35 = arith.constant 0 : index
    %c1_36 = arith.constant 1 : index
    %c0_37 = arith.constant 0 : index
    %c0_38 = arith.constant 0 : index
    %36 = vector.load %arg2[%c0_35, %c1_36, %c0_37, %c0_38] : memref<1x20x20x3xbf16, #tpu.memory_space<vmem>>, vector<1x16x16x3xbf16>
    %37 = vector.shape_cast %36 : vector<1x16x16x3xbf16> to vector<16x16x3xbf16>
    %38 = vector.shape_cast %37 : vector<16x16x3xbf16> to vector<256x3xbf16>
    %c5 = arith.constant 5 : index
    %c0_39 = arith.constant 0 : index
    %c0_40 = arith.constant 0 : index
    %39 = vector.load %arg3[%c5, %c0_39, %c0_40] : memref<25x3x64xbf16, #tpu.memory_space<vmem>>, vector<1x3x64xbf16>
    %40 = vector.shape_cast %39 : vector<1x3x64xbf16> to vector<3x64xbf16>
    %cst_41 = arith.constant dense<0.000000e+00> : vector<256x64xf32>
    %41 = tpu.matmul %38, %40, %cst_41 {dimension_numbers = #tpu.dot_dimension_numbers<[1], [0], [0], [1], [0, 0, 1, 1], [], []>} : vector<256x3xbf16>, vector<3x64xbf16>, vector<256x64xf32> -> vector<256x64xf32>
    %42 = arith.addf %35, %41 : vector<256x64xf32>
    %c0_42 = arith.constant 0 : index
    %c1_43 = arith.constant 1 : index
    %c1_44 = arith.constant 1 : index
    %c0_45 = arith.constant 0 : index
    %43 = vector.load %arg2[%c0_42, %c1_43, %c1_44, %c0_45] : memref<1x20x20x3xbf16, #tpu.memory_space<vmem>>, vector<1x16x16x3xbf16>
    %44 = vector.shape_cast %43 : vector<1x16x16x3xbf16> to vector<16x16x3xbf16>
    %45 = vector.shape_cast %44 : vector<16x16x3xbf16> to vector<256x3xbf16>
    %c6 = arith.constant 6 : index
    %c0_46 = arith.constant 0 : index
    %c0_47 = arith.constant 0 : index
    %46 = vector.load %arg3[%c6, %c0_46, %c0_47] : memref<25x3x64xbf16, #tpu.memory_space<vmem>>, vector<1x3x64xbf16>
    %47 = vector.shape_cast %46 : vector<1x3x64xbf16> to vector<3x64xbf16>
    %cst_48 = arith.constant dense<0.000000e+00> : vector<256x64xf32>
    %48 = tpu.matmul %45, %47, %cst_48 {dimension_numbers = #tpu.dot_dimension_numbers<[1], [0], [0], [1], [0, 0, 1, 1], [], []>} : vector<256x3xbf16>, vector<3x64xbf16>, vector<256x64xf32> -> vector<256x64xf32>
    %49 = arith.addf %42, %48 : vector<256x64xf32>
    %c0_49 = arith.constant 0 : index
    %c1_50 = arith.constant 1 : index
    %c2_51 = arith.constant 2 : index
    %c0_52 = arith.constant 0 : index
    %50 = vector.load %arg2[%c0_49, %c1_50, %c2_51, %c0_52] : memref<1x20x20x3xbf16, #tpu.memory_space<vmem>>, vector<1x16x16x3xbf16>
    %51 = vector.shape_cast %50 : vector<1x16x16x3xbf16> to vector<16x16x3xbf16>
    %52 = vector.shape_cast %51 : vector<16x16x3xbf16> to vector<256x3xbf16>
    %c7 = arith.constant 7 : index
    %c0_53 = arith.constant 0 : index
    %c0_54 = arith.constant 0 : index
    %53 = vector.load %arg3[%c7, %c0_53, %c0_54] : memref<25x3x64xbf16, #tpu.memory_space<vmem>>, vector<1x3x64xbf16>
    %54 = vector.shape_cast %53 : vector<1x3x64xbf16> to vector<3x64xbf16>
    %cst_55 = arith.constant dense<0.000000e+00> : vector<256x64xf32>
    %55 = tpu.matmul %52, %54, %cst_55 {dimension_numbers = #tpu.dot_dimension_numbers<[1], [0], [0], [1], [0, 0, 1, 1], [], []>} : vector<256x3xbf16>, vector<3x64xbf16>, vector<256x64xf32> -> vector<256x64xf32>
    %56 = arith.addf %49, %55 : vector<256x64xf32>
    %c0_56 = arith.constant 0 : index
    %c1_57 = arith.constant 1 : index
    %c3_58 = arith.constant 3 : index
    %c0_59 = arith.constant 0 : index
    %57 = vector.load %arg2[%c0_56, %c1_57, %c3_58, %c0_59] : memref<1x20x20x3xbf16, #tpu.memory_space<vmem>>, vector<1x16x16x3xbf16>
    %58 = vector.shape_cast %57 : vector<1x16x16x3xbf16> to vector<16x16x3xbf16>
    %59 = vector.shape_cast %58 : vector<16x16x3xbf16> to vector<256x3xbf16>
    %c8 = arith.constant 8 : index
    %c0_60 = arith.constant 0 : index
    %c0_61 = arith.constant 0 : index
    %60 = vector.load %arg3[%c8, %c0_60, %c0_61] : memref<25x3x64xbf16, #tpu.memory_space<vmem>>, vector<1x3x64xbf16>
    %61 = vector.shape_cast %60 : vector<1x3x64xbf16> to vector<3x64xbf16>
    %cst_62 = arith.constant dense<0.000000e+00> : vector<256x64xf32>
    %62 = tpu.matmul %59, %61, %cst_62 {dimension_numbers = #tpu.dot_dimension_numbers<[1], [0], [0], [1], [0, 0, 1, 1], [], []>} : vector<256x3xbf16>, vector<3x64xbf16>, vector<256x64xf32> -> vector<256x64xf32>
    %63 = arith.addf %56, %62 : vector<256x64xf32>
    %c0_63 = arith.constant 0 : index
    %c1_64 = arith.constant 1 : index
    %c4_65 = arith.constant 4 : index
    %c0_66 = arith.constant 0 : index
    %64 = vector.load %arg2[%c0_63, %c1_64, %c4_65, %c0_66] : memref<1x20x20x3xbf16, #tpu.memory_space<vmem>>, vector<1x16x16x3xbf16>
    %65 = vector.shape_cast %64 : vector<1x16x16x3xbf16> to vector<16x16x3xbf16>
    %66 = vector.shape_cast %65 : vector<16x16x3xbf16> to vector<256x3xbf16>
    %c9 = arith.constant 9 : index
    %c0_67 = arith.constant 0 : index
    %c0_68 = arith.constant 0 : index
    %67 = vector.load %arg3[%c9, %c0_67, %c0_68] : memref<25x3x64xbf16, #tpu.memory_space<vmem>>, vector<1x3x64xbf16>
    %68 = vector.shape_cast %67 : vector<1x3x64xbf16> to vector<3x64xbf16>
    %cst_69 = arith.constant dense<0.000000e+00> : vector<256x64xf32>
    %69 = tpu.matmul %66, %68, %cst_69 {dimension_numbers = #tpu.dot_dimension_numbers<[1], [0], [0], [1], [0, 0, 1, 1], [], []>} : vector<256x3xbf16>, vector<3x64xbf16>, vector<256x64xf32> -> vector<256x64xf32>
    %70 = arith.addf %63, %69 : vector<256x64xf32>
    %c0_70 = arith.constant 0 : index
    %c2_71 = arith.constant 2 : index
    %c0_72 = arith.constant 0 : index
    %c0_73 = arith.constant 0 : index
    %71 = vector.load %arg2[%c0_70, %c2_71, %c0_72, %c0_73] : memref<1x20x20x3xbf16, #tpu.memory_space<vmem>>, vector<1x16x16x3xbf16>
    %72 = vector.shape_cast %71 : vector<1x16x16x3xbf16> to vector<16x16x3xbf16>
    %73 = vector.shape_cast %72 : vector<16x16x3xbf16> to vector<256x3xbf16>
    %c10 = arith.constant 10 : index
    %c0_74 = arith.constant 0 : index
    %c0_75 = arith.constant 0 : index
    %74 = vector.load %arg3[%c10, %c0_74, %c0_75] : memref<25x3x64xbf16, #tpu.memory_space<vmem>>, vector<1x3x64xbf16>
    %75 = vector.shape_cast %74 : vector<1x3x64xbf16> to vector<3x64xbf16>
    %cst_76 = arith.constant dense<0.000000e+00> : vector<256x64xf32>
    %76 = tpu.matmul %73, %75, %cst_76 {dimension_numbers = #tpu.dot_dimension_numbers<[1], [0], [0], [1], [0, 0, 1, 1], [], []>} : vector<256x3xbf16>, vector<3x64xbf16>, vector<256x64xf32> -> vector<256x64xf32>
    %77 = arith.addf %70, %76 : vector<256x64xf32>
    %c0_77 = arith.constant 0 : index
    %c2_78 = arith.constant 2 : index
    %c1_79 = arith.constant 1 : index
    %c0_80 = arith.constant 0 : index
    %78 = vector.load %arg2[%c0_77, %c2_78, %c1_79, %c0_80] : memref<1x20x20x3xbf16, #tpu.memory_space<vmem>>, vector<1x16x16x3xbf16>
    %79 = vector.shape_cast %78 : vector<1x16x16x3xbf16> to vector<16x16x3xbf16>
    %80 = vector.shape_cast %79 : vector<16x16x3xbf16> to vector<256x3xbf16>
    %c11 = arith.constant 11 : index
    %c0_81 = arith.constant 0 : index
    %c0_82 = arith.constant 0 : index
    %81 = vector.load %arg3[%c11, %c0_81, %c0_82] : memref<25x3x64xbf16, #tpu.memory_space<vmem>>, vector<1x3x64xbf16>
    %82 = vector.shape_cast %81 : vector<1x3x64xbf16> to vector<3x64xbf16>
    %cst_83 = arith.constant dense<0.000000e+00> : vector<256x64xf32>
    %83 = tpu.matmul %80, %82, %cst_83 {dimension_numbers = #tpu.dot_dimension_numbers<[1], [0], [0], [1], [0, 0, 1, 1], [], []>} : vector<256x3xbf16>, vector<3x64xbf16>, vector<256x64xf32> -> vector<256x64xf32>
    %84 = arith.addf %77, %83 : vector<256x64xf32>
    %c0_84 = arith.constant 0 : index
    %c2_85 = arith.constant 2 : index
    %c2_86 = arith.constant 2 : index
    %c0_87 = arith.constant 0 : index
    %85 = vector.load %arg2[%c0_84, %c2_85, %c2_86, %c0_87] : memref<1x20x20x3xbf16, #tpu.memory_space<vmem>>, vector<1x16x16x3xbf16>
    %86 = vector.shape_cast %85 : vector<1x16x16x3xbf16> to vector<16x16x3xbf16>
    %87 = vector.shape_cast %86 : vector<16x16x3xbf16> to vector<256x3xbf16>
    %c12 = arith.constant 12 : index
    %c0_88 = arith.constant 0 : index
    %c0_89 = arith.constant 0 : index
    %88 = vector.load %arg3[%c12, %c0_88, %c0_89] : memref<25x3x64xbf16, #tpu.memory_space<vmem>>, vector<1x3x64xbf16>
    %89 = vector.shape_cast %88 : vector<1x3x64xbf16> to vector<3x64xbf16>
    %cst_90 = arith.constant dense<0.000000e+00> : vector<256x64xf32>
    %90 = tpu.matmul %87, %89, %cst_90 {dimension_numbers = #tpu.dot_dimension_numbers<[1], [0], [0], [1], [0, 0, 1, 1], [], []>} : vector<256x3xbf16>, vector<3x64xbf16>, vector<256x64xf32> -> vector<256x64xf32>
    %91 = arith.addf %84, %90 : vector<256x64xf32>
    %c0_91 = arith.constant 0 : index
    %c2_92 = arith.constant 2 : index
    %c3_93 = arith.constant 3 : index
    %c0_94 = arith.constant 0 : index
    %92 = vector.load %arg2[%c0_91, %c2_92, %c3_93, %c0_94] : memref<1x20x20x3xbf16, #tpu.memory_space<vmem>>, vector<1x16x16x3xbf16>
    %93 = vector.shape_cast %92 : vector<1x16x16x3xbf16> to vector<16x16x3xbf16>
    %94 = vector.shape_cast %93 : vector<16x16x3xbf16> to vector<256x3xbf16>
    %c13 = arith.constant 13 : index
    %c0_95 = arith.constant 0 : index
    %c0_96 = arith.constant 0 : index
    %95 = vector.load %arg3[%c13, %c0_95, %c0_96] : memref<25x3x64xbf16, #tpu.memory_space<vmem>>, vector<1x3x64xbf16>
    %96 = vector.shape_cast %95 : vector<1x3x64xbf16> to vector<3x64xbf16>
    %cst_97 = arith.constant dense<0.000000e+00> : vector<256x64xf32>
    %97 = tpu.matmul %94, %96, %cst_97 {dimension_numbers = #tpu.dot_dimension_numbers<[1], [0], [0], [1], [0, 0, 1, 1], [], []>} : vector<256x3xbf16>, vector<3x64xbf16>, vector<256x64xf32> -> vector<256x64xf32>
    %98 = arith.addf %91, %97 : vector<256x64xf32>
    %c0_98 = arith.constant 0 : index
    %c2_99 = arith.constant 2 : index
    %c4_100 = arith.constant 4 : index
    %c0_101 = arith.constant 0 : index
    %99 = vector.load %arg2[%c0_98, %c2_99, %c4_100, %c0_101] : memref<1x20x20x3xbf16, #tpu.memory_space<vmem>>, vector<1x16x16x3xbf16>
    %100 = vector.shape_cast %99 : vector<1x16x16x3xbf16> to vector<16x16x3xbf16>
    %101 = vector.shape_cast %100 : vector<16x16x3xbf16> to vector<256x3xbf16>
    %c14 = arith.constant 14 : index
    %c0_102 = arith.constant 0 : index
    %c0_103 = arith.constant 0 : index
    %102 = vector.load %arg3[%c14, %c0_102, %c0_103] : memref<25x3x64xbf16, #tpu.memory_space<vmem>>, vector<1x3x64xbf16>
    %103 = vector.shape_cast %102 : vector<1x3x64xbf16> to vector<3x64xbf16>
    %cst_104 = arith.constant dense<0.000000e+00> : vector<256x64xf32>
    %104 = tpu.matmul %101, %103, %cst_104 {dimension_numbers = #tpu.dot_dimension_numbers<[1], [0], [0], [1], [0, 0, 1, 1], [], []>} : vector<256x3xbf16>, vector<3x64xbf16>, vector<256x64xf32> -> vector<256x64xf32>
    %105 = arith.addf %98, %104 : vector<256x64xf32>
    %c0_105 = arith.constant 0 : index
    %c3_106 = arith.constant 3 : index
    %c0_107 = arith.constant 0 : index
    %c0_108 = arith.constant 0 : index
    %106 = vector.load %arg2[%c0_105, %c3_106, %c0_107, %c0_108] : memref<1x20x20x3xbf16, #tpu.memory_space<vmem>>, vector<1x16x16x3xbf16>
    %107 = vector.shape_cast %106 : vector<1x16x16x3xbf16> to vector<16x16x3xbf16>
    %108 = vector.shape_cast %107 : vector<16x16x3xbf16> to vector<256x3xbf16>
    %c15 = arith.constant 15 : index
    %c0_109 = arith.constant 0 : index
    %c0_110 = arith.constant 0 : index
    %109 = vector.load %arg3[%c15, %c0_109, %c0_110] : memref<25x3x64xbf16, #tpu.memory_space<vmem>>, vector<1x3x64xbf16>
    %110 = vector.shape_cast %109 : vector<1x3x64xbf16> to vector<3x64xbf16>
    %cst_111 = arith.constant dense<0.000000e+00> : vector<256x64xf32>
    %111 = tpu.matmul %108, %110, %cst_111 {dimension_numbers = #tpu.dot_dimension_numbers<[1], [0], [0], [1], [0, 0, 1, 1], [], []>} : vector<256x3xbf16>, vector<3x64xbf16>, vector<256x64xf32> -> vector<256x64xf32>
    %112 = arith.addf %105, %111 : vector<256x64xf32>
    %c0_112 = arith.constant 0 : index
    %c3_113 = arith.constant 3 : index
    %c1_114 = arith.constant 1 : index
    %c0_115 = arith.constant 0 : index
    %113 = vector.load %arg2[%c0_112, %c3_113, %c1_114, %c0_115] : memref<1x20x20x3xbf16, #tpu.memory_space<vmem>>, vector<1x16x16x3xbf16>
    %114 = vector.shape_cast %113 : vector<1x16x16x3xbf16> to vector<16x16x3xbf16>
    %115 = vector.shape_cast %114 : vector<16x16x3xbf16> to vector<256x3xbf16>
    %c16 = arith.constant 16 : index
    %c0_116 = arith.constant 0 : index
    %c0_117 = arith.constant 0 : index
    %116 = vector.load %arg3[%c16, %c0_116, %c0_117] : memref<25x3x64xbf16, #tpu.memory_space<vmem>>, vector<1x3x64xbf16>
    %117 = vector.shape_cast %116 : vector<1x3x64xbf16> to vector<3x64xbf16>
    %cst_118 = arith.constant dense<0.000000e+00> : vector<256x64xf32>
    %118 = tpu.matmul %115, %117, %cst_118 {dimension_numbers = #tpu.dot_dimension_numbers<[1], [0], [0], [1], [0, 0, 1, 1], [], []>} : vector<256x3xbf16>, vector<3x64xbf16>, vector<256x64xf32> -> vector<256x64xf32>
    %119 = arith.addf %112, %118 : vector<256x64xf32>
    %c0_119 = arith.constant 0 : index
    %c3_120 = arith.constant 3 : index
    %c2_121 = arith.constant 2 : index
    %c0_122 = arith.constant 0 : index
    %120 = vector.load %arg2[%c0_119, %c3_120, %c2_121, %c0_122] : memref<1x20x20x3xbf16, #tpu.memory_space<vmem>>, vector<1x16x16x3xbf16>
    %121 = vector.shape_cast %120 : vector<1x16x16x3xbf16> to vector<16x16x3xbf16>
    %122 = vector.shape_cast %121 : vector<16x16x3xbf16> to vector<256x3xbf16>
    %c17 = arith.constant 17 : index
    %c0_123 = arith.constant 0 : index
    %c0_124 = arith.constant 0 : index
    %123 = vector.load %arg3[%c17, %c0_123, %c0_124] : memref<25x3x64xbf16, #tpu.memory_space<vmem>>, vector<1x3x64xbf16>
    %124 = vector.shape_cast %123 : vector<1x3x64xbf16> to vector<3x64xbf16>
    %cst_125 = arith.constant dense<0.000000e+00> : vector<256x64xf32>
    %125 = tpu.matmul %122, %124, %cst_125 {dimension_numbers = #tpu.dot_dimension_numbers<[1], [0], [0], [1], [0, 0, 1, 1], [], []>} : vector<256x3xbf16>, vector<3x64xbf16>, vector<256x64xf32> -> vector<256x64xf32>
    %126 = arith.addf %119, %125 : vector<256x64xf32>
    %c0_126 = arith.constant 0 : index
    %c3_127 = arith.constant 3 : index
    %c3_128 = arith.constant 3 : index
    %c0_129 = arith.constant 0 : index
    %127 = vector.load %arg2[%c0_126, %c3_127, %c3_128, %c0_129] : memref<1x20x20x3xbf16, #tpu.memory_space<vmem>>, vector<1x16x16x3xbf16>
    %128 = vector.shape_cast %127 : vector<1x16x16x3xbf16> to vector<16x16x3xbf16>
    %129 = vector.shape_cast %128 : vector<16x16x3xbf16> to vector<256x3xbf16>
    %c18 = arith.constant 18 : index
    %c0_130 = arith.constant 0 : index
    %c0_131 = arith.constant 0 : index
    %130 = vector.load %arg3[%c18, %c0_130, %c0_131] : memref<25x3x64xbf16, #tpu.memory_space<vmem>>, vector<1x3x64xbf16>
    %131 = vector.shape_cast %130 : vector<1x3x64xbf16> to vector<3x64xbf16>
    %cst_132 = arith.constant dense<0.000000e+00> : vector<256x64xf32>
    %132 = tpu.matmul %129, %131, %cst_132 {dimension_numbers = #tpu.dot_dimension_numbers<[1], [0], [0], [1], [0, 0, 1, 1], [], []>} : vector<256x3xbf16>, vector<3x64xbf16>, vector<256x64xf32> -> vector<256x64xf32>
    %133 = arith.addf %126, %132 : vector<256x64xf32>
    %c0_133 = arith.constant 0 : index
    %c3_134 = arith.constant 3 : index
    %c4_135 = arith.constant 4 : index
    %c0_136 = arith.constant 0 : index
    %134 = vector.load %arg2[%c0_133, %c3_134, %c4_135, %c0_136] : memref<1x20x20x3xbf16, #tpu.memory_space<vmem>>, vector<1x16x16x3xbf16>
    %135 = vector.shape_cast %134 : vector<1x16x16x3xbf16> to vector<16x16x3xbf16>
    %136 = vector.shape_cast %135 : vector<16x16x3xbf16> to vector<256x3xbf16>
    %c19 = arith.constant 19 : index
    %c0_137 = arith.constant 0 : index
    %c0_138 = arith.constant 0 : index
    %137 = vector.load %arg3[%c19, %c0_137, %c0_138] : memref<25x3x64xbf16, #tpu.memory_space<vmem>>, vector<1x3x64xbf16>
    %138 = vector.shape_cast %137 : vector<1x3x64xbf16> to vector<3x64xbf16>
    %cst_139 = arith.constant dense<0.000000e+00> : vector<256x64xf32>
    %139 = tpu.matmul %136, %138, %cst_139 {dimension_numbers = #tpu.dot_dimension_numbers<[1], [0], [0], [1], [0, 0, 1, 1], [], []>} : vector<256x3xbf16>, vector<3x64xbf16>, vector<256x64xf32> -> vector<256x64xf32>
    %140 = arith.addf %133, %139 : vector<256x64xf32>
    %c0_140 = arith.constant 0 : index
    %c4_141 = arith.constant 4 : index
    %c0_142 = arith.constant 0 : index
    %c0_143 = arith.constant 0 : index
    %141 = vector.load %arg2[%c0_140, %c4_141, %c0_142, %c0_143] : memref<1x20x20x3xbf16, #tpu.memory_space<vmem>>, vector<1x16x16x3xbf16>
    %142 = vector.shape_cast %141 : vector<1x16x16x3xbf16> to vector<16x16x3xbf16>
    %143 = vector.shape_cast %142 : vector<16x16x3xbf16> to vector<256x3xbf16>
    %c20 = arith.constant 20 : index
    %c0_144 = arith.constant 0 : index
    %c0_145 = arith.constant 0 : index
    %144 = vector.load %arg3[%c20, %c0_144, %c0_145] : memref<25x3x64xbf16, #tpu.memory_space<vmem>>, vector<1x3x64xbf16>
    %145 = vector.shape_cast %144 : vector<1x3x64xbf16> to vector<3x64xbf16>
    %cst_146 = arith.constant dense<0.000000e+00> : vector<256x64xf32>
    %146 = tpu.matmul %143, %145, %cst_146 {dimension_numbers = #tpu.dot_dimension_numbers<[1], [0], [0], [1], [0, 0, 1, 1], [], []>} : vector<256x3xbf16>, vector<3x64xbf16>, vector<256x64xf32> -> vector<256x64xf32>
    %147 = arith.addf %140, %146 : vector<256x64xf32>
    %c0_147 = arith.constant 0 : index
    %c4_148 = arith.constant 4 : index
    %c1_149 = arith.constant 1 : index
    %c0_150 = arith.constant 0 : index
    %148 = vector.load %arg2[%c0_147, %c4_148, %c1_149, %c0_150] : memref<1x20x20x3xbf16, #tpu.memory_space<vmem>>, vector<1x16x16x3xbf16>
    %149 = vector.shape_cast %148 : vector<1x16x16x3xbf16> to vector<16x16x3xbf16>
    %150 = vector.shape_cast %149 : vector<16x16x3xbf16> to vector<256x3xbf16>
    %c21 = arith.constant 21 : index
    %c0_151 = arith.constant 0 : index
    %c0_152 = arith.constant 0 : index
    %151 = vector.load %arg3[%c21, %c0_151, %c0_152] : memref<25x3x64xbf16, #tpu.memory_space<vmem>>, vector<1x3x64xbf16>
    %152 = vector.shape_cast %151 : vector<1x3x64xbf16> to vector<3x64xbf16>
    %cst_153 = arith.constant dense<0.000000e+00> : vector<256x64xf32>
    %153 = tpu.matmul %150, %152, %cst_153 {dimension_numbers = #tpu.dot_dimension_numbers<[1], [0], [0], [1], [0, 0, 1, 1], [], []>} : vector<256x3xbf16>, vector<3x64xbf16>, vector<256x64xf32> -> vector<256x64xf32>
    %154 = arith.addf %147, %153 : vector<256x64xf32>
    %c0_154 = arith.constant 0 : index
    %c4_155 = arith.constant 4 : index
    %c2_156 = arith.constant 2 : index
    %c0_157 = arith.constant 0 : index
    %155 = vector.load %arg2[%c0_154, %c4_155, %c2_156, %c0_157] : memref<1x20x20x3xbf16, #tpu.memory_space<vmem>>, vector<1x16x16x3xbf16>
    %156 = vector.shape_cast %155 : vector<1x16x16x3xbf16> to vector<16x16x3xbf16>
    %157 = vector.shape_cast %156 : vector<16x16x3xbf16> to vector<256x3xbf16>
    %c22 = arith.constant 22 : index
    %c0_158 = arith.constant 0 : index
    %c0_159 = arith.constant 0 : index
    %158 = vector.load %arg3[%c22, %c0_158, %c0_159] : memref<25x3x64xbf16, #tpu.memory_space<vmem>>, vector<1x3x64xbf16>
    %159 = vector.shape_cast %158 : vector<1x3x64xbf16> to vector<3x64xbf16>
    %cst_160 = arith.constant dense<0.000000e+00> : vector<256x64xf32>
    %160 = tpu.matmul %157, %159, %cst_160 {dimension_numbers = #tpu.dot_dimension_numbers<[1], [0], [0], [1], [0, 0, 1, 1], [], []>} : vector<256x3xbf16>, vector<3x64xbf16>, vector<256x64xf32> -> vector<256x64xf32>
    %161 = arith.addf %154, %160 : vector<256x64xf32>
    %c0_161 = arith.constant 0 : index
    %c4_162 = arith.constant 4 : index
    %c3_163 = arith.constant 3 : index
    %c0_164 = arith.constant 0 : index
    %162 = vector.load %arg2[%c0_161, %c4_162, %c3_163, %c0_164] : memref<1x20x20x3xbf16, #tpu.memory_space<vmem>>, vector<1x16x16x3xbf16>
    %163 = vector.shape_cast %162 : vector<1x16x16x3xbf16> to vector<16x16x3xbf16>
    %164 = vector.shape_cast %163 : vector<16x16x3xbf16> to vector<256x3xbf16>
    %c23 = arith.constant 23 : index
    %c0_165 = arith.constant 0 : index
    %c0_166 = arith.constant 0 : index
    %165 = vector.load %arg3[%c23, %c0_165, %c0_166] : memref<25x3x64xbf16, #tpu.memory_space<vmem>>, vector<1x3x64xbf16>
    %166 = vector.shape_cast %165 : vector<1x3x64xbf16> to vector<3x64xbf16>
    %cst_167 = arith.constant dense<0.000000e+00> : vector<256x64xf32>
    %167 = tpu.matmul %164, %166, %cst_167 {dimension_numbers = #tpu.dot_dimension_numbers<[1], [0], [0], [1], [0, 0, 1, 1], [], []>} : vector<256x3xbf16>, vector<3x64xbf16>, vector<256x64xf32> -> vector<256x64xf32>
    %168 = arith.addf %161, %167 : vector<256x64xf32>
    %c0_168 = arith.constant 0 : index
    %c4_169 = arith.constant 4 : index
    %c4_170 = arith.constant 4 : index
    %c0_171 = arith.constant 0 : index
    %169 = vector.load %arg2[%c0_168, %c4_169, %c4_170, %c0_171] : memref<1x20x20x3xbf16, #tpu.memory_space<vmem>>, vector<1x16x16x3xbf16>
    %170 = vector.shape_cast %169 : vector<1x16x16x3xbf16> to vector<16x16x3xbf16>
    %171 = vector.shape_cast %170 : vector<16x16x3xbf16> to vector<256x3xbf16>
    %c24 = arith.constant 24 : index
    %c0_172 = arith.constant 0 : index
    %c0_173 = arith.constant 0 : index
    %172 = vector.load %arg3[%c24, %c0_172, %c0_173] : memref<25x3x64xbf16, #tpu.memory_space<vmem>>, vector<1x3x64xbf16>
    %173 = vector.shape_cast %172 : vector<1x3x64xbf16> to vector<3x64xbf16>
    %cst_174 = arith.constant dense<0.000000e+00> : vector<256x64xf32>
    %174 = tpu.matmul %171, %173, %cst_174 {dimension_numbers = #tpu.dot_dimension_numbers<[1], [0], [0], [1], [0, 0, 1, 1], [], []>} : vector<256x3xbf16>, vector<3x64xbf16>, vector<256x64xf32> -> vector<256x64xf32>
    %175 = arith.addf %168, %174 : vector<256x64xf32>
    %c0_175 = arith.constant 0 : index
    %c0_176 = arith.constant 0 : index
    %176 = vector.load %arg4[%c0_175, %c0_176] : memref<1x64xf32, #tpu.memory_space<vmem>>, vector<1x64xf32>
    %177 = vector.broadcast %176 : vector<1x64xf32> to vector<256x64xf32>
    %178 = arith.addf %175, %177 : vector<256x64xf32>
    %cst_177 = arith.constant dense<0.000000e+00> : vector<64xf32>
    %179 = vector.multi_reduction <add>, %178, %cst_177 [0] : vector<256x64xf32> to vector<64xf32>
    %180 = vector.shape_cast %179 : vector<64xf32> to vector<1x64xf32>
    %cst_178 = arith.constant 3.906250e-03 : f32
    %181 = vector.broadcast %cst_178 : f32 to vector<1x64xf32>
    %182 = arith.mulf %180, %181 : vector<1x64xf32>
    %183 = arith.mulf %178, %178 : vector<256x64xf32>
    %cst_179 = arith.constant dense<0.000000e+00> : vector<64xf32>
    %184 = vector.multi_reduction <add>, %183, %cst_179 [0] : vector<256x64xf32> to vector<64xf32>
    %185 = vector.shape_cast %184 : vector<64xf32> to vector<1x64xf32>
    %cst_180 = arith.constant 3.906250e-03 : f32
    %186 = vector.broadcast %cst_180 : f32 to vector<1x64xf32>
    %187 = arith.mulf %185, %186 : vector<1x64xf32>
    %188 = arith.mulf %182, %182 : vector<1x64xf32>
    %189 = arith.subf %187, %188 : vector<1x64xf32>
    %cst_181 = arith.constant 0.000000e+00 : f32
    %190 = vector.broadcast %cst_181 : f32 to vector<1x64xf32>
    %191 = arith.maximumf %189, %190 : vector<1x64xf32>
    %192 = vector.broadcast %182 : vector<1x64xf32> to vector<256x64xf32>
    %193 = arith.subf %178, %192 : vector<256x64xf32>
    %cst_182 = arith.constant 9.99999974E-6 : f32
    %194 = vector.broadcast %cst_182 : f32 to vector<1x64xf32>
    %195 = arith.addf %191, %194 : vector<1x64xf32>
    %196 = math.rsqrt %195 : vector<1x64xf32>
    %197 = vector.broadcast %196 : vector<1x64xf32> to vector<256x64xf32>
    %198 = arith.mulf %193, %197 : vector<256x64xf32>
    %cst_183 = arith.constant 0.000000e+00 : f32
    %199 = vector.broadcast %cst_183 : f32 to vector<256x64xf32>
    %200 = arith.maximumf %198, %199 : vector<256x64xf32>
    %201 = arith.truncf %200 : vector<256x64xf32> to vector<256x64xbf16>
    %c0_184 = arith.constant 0 : index
    %c0_185 = arith.constant 0 : index
    %c0_186 = arith.constant 0 : index
    %202 = vector.load %arg5[%c0_184, %c0_185, %c0_186] : memref<1x256x64xbf16, #tpu.memory_space<vmem>>, vector<1x256x64xbf16>
    %203 = vector.shape_cast %202 : vector<1x256x64xbf16> to vector<256x64xbf16>
    %204 = vector.shape_cast %201 : vector<256x64xbf16> to vector<1x256x64xbf16>
    tpu.vector_store %arg5[%c0_184, %c0_185, %c0_186], %204 {strides = array<i32>} : memref<1x256x64xbf16, #tpu.memory_space<vmem>>, vector<1x256x64xbf16>,
    return
  }
  func.func @transform_0(%arg0: i32, %arg1: i32) -> (i32, i32, i32, i32) {
    %c0_i32 = arith.constant 0 : i32
    %c0_i32_0 = arith.constant 0 : i32
    %c0_i32_1 = arith.constant 0 : i32
    %c0_i32_2 = arith.constant 0 : i32
    return %arg0, %c0_i32, %c0_i32_0, %c0_i32_1 : i32, i32, i32, i32
  }
  func.func @transform_1(%arg0: i32, %arg1: i32) -> (i32, i32, i32) {
    %c0_i32 = arith.constant 0 : i32
    %c0_i32_0 = arith.constant 0 : i32
    %c0_i32_1 = arith.constant 0 : i32
    return %c0_i32, %c0_i32_0, %arg1 : i32, i32, i32
  }
  func.func @transform_2(%arg0: i32, %arg1: i32) -> (i32, i32) {
    %c0_i32 = arith.constant 0 : i32
    %c0_i32_0 = arith.constant 0 : i32
    return %c0_i32, %arg1 : i32, i32
  }
  func.func @transform_3(%arg0: i32, %arg1: i32) -> (i32, i32, i32) {
    %c0_i32 = arith.constant 0 : i32
    %c0_i32_0 = arith.constant 0 : i32
    return %arg0, %c0_i32, %arg1 : i32, i32, i32
  }
}

module attributes {stable_mosaic.version = 11 : i64} {
  func.func @_matmul_bias_kernel(%arg0: i32, %arg1: memref<256x75xbf16, #tpu.memory_space<vmem>>, %arg2: memref<75x128xbf16, #tpu.memory_space<vmem>>, %arg3: memref<1x128xf32, #tpu.memory_space<vmem>>, %arg4: memref<256x128xbf16, #tpu.memory_space<vmem>>) attributes {dimension_semantics = [#tpu.dimension_semantics<parallel>], iteration_bounds = array<i64: 2>, scalar_prefetch = 0 : i64, scratch_operands = 0 : i64, tpu.core_type = #tpu.core_type<tc>, window_params = [{transform_indices = @transform_0, window_bounds = array<i64: 256, 75>}, {pipeline_mode = #tpu.pipeline_mode<synchronous>, transform_indices = @transform_1, window_bounds = array<i64: 75, 128>}, {pipeline_mode = #tpu.pipeline_mode<synchronous>, transform_indices = @transform_2, window_bounds = array<i64: 1, 128>}, {transform_indices = @transform_3, window_bounds = array<i64: 256, 128>}]} {
    %c0 = arith.constant 0 : index
    %c0_0 = arith.constant 0 : index
    %0 = vector.load %arg1[%c0, %c0_0] : memref<256x75xbf16, #tpu.memory_space<vmem>>, vector<256x75xbf16>
    %c0_1 = arith.constant 0 : index
    %c0_2 = arith.constant 0 : index
    %1 = vector.load %arg2[%c0_1, %c0_2] : memref<75x128xbf16, #tpu.memory_space<vmem>>, vector<75x128xbf16>
    %cst = arith.constant dense<0.000000e+00> : vector<256x128xf32>
    %2 = tpu.matmul %0, %1, %cst {dimension_numbers = #tpu.dot_dimension_numbers<[1], [0], [0], [1], [0, 0, 1, 1], [], []>} : vector<256x75xbf16>, vector<75x128xbf16>, vector<256x128xf32> -> vector<256x128xf32>
    %c0_3 = arith.constant 0 : index
    %c0_4 = arith.constant 0 : index
    %3 = vector.load %arg3[%c0_3, %c0_4] : memref<1x128xf32, #tpu.memory_space<vmem>>, vector<1x128xf32>
    %4 = vector.broadcast %3 : vector<1x128xf32> to vector<256x128xf32>
    %5 = arith.addf %2, %4 : vector<256x128xf32>
    %6 = arith.truncf %5 : vector<256x128xf32> to vector<256x128xbf16>
    %c0_5 = arith.constant 0 : index
    %c0_6 = arith.constant 0 : index
    %7 = vector.load %arg4[%c0_5, %c0_6] : memref<256x128xbf16, #tpu.memory_space<vmem>>, vector<256x128xbf16>
    tpu.vector_store %arg4[%c0_5, %c0_6], %6 {strides = array<i32>} : memref<256x128xbf16, #tpu.memory_space<vmem>>, vector<256x128xbf16>,
    return
  }
  func.func @transform_0(%arg0: i32) -> (i32, i32) {
    %c0_i32 = arith.constant 0 : i32
    %c0_i32_0 = arith.constant 0 : i32
    return %arg0, %c0_i32 : i32, i32
  }
  func.func @transform_1(%arg0: i32) -> (i32, i32) {
    %c0_i32 = arith.constant 0 : i32
    %c0_i32_0 = arith.constant 0 : i32
    %c0_i32_1 = arith.constant 0 : i32
    return %c0_i32, %c0_i32_0 : i32, i32
  }
  func.func @transform_2(%arg0: i32) -> (i32, i32) {
    %c0_i32 = arith.constant 0 : i32
    %c0_i32_0 = arith.constant 0 : i32
    %c0_i32_1 = arith.constant 0 : i32
    return %c0_i32, %c0_i32_0 : i32, i32
  }
  func.func @transform_3(%arg0: i32) -> (i32, i32) {
    %c0_i32 = arith.constant 0 : i32
    %c0_i32_0 = arith.constant 0 : i32
    return %arg0, %c0_i32 : i32, i32
  }
}

</mosaic_0001>

<bundles_post_ra>
// kernel: tpu_custom_call.1
= control target key start
LH: loop header
LB: loop body
LE: loop exit
PB: predicated region body
PF: predicated region fallthrough
CT: control target
= control target key end

     0   :  { %s18116_s12 = smov 0   ;;  %s18118_s13 = smov 0   ;;  %s23646_s0 = inlined_call_operand.vmem [shape: bf16[2,20,20,3], index: 0, kind: input, shape index: {}]   ;;  %s23647_s1 = inlined_call_operand.vmem [shape: bf16[25,3,64], index: 1, kind: input, shape index: {}]   ;;  %s23648_s2 = inlined_call_operand.vmem [shape: f32[1,64], index: 2, kind: input, shape index: {}]   ;;  %s23649_s3 = inlined_call_operand.vmem [shape: bf16[2,256,64], index: 3, kind: output, shape index: {}]  }
   0x1   :  { %s18120_s14 = smov 0  }
   0x2 LB: > { %s25_s15 = sadd.s32 1, %s18089_s13  ;;  %p14146_p0 = scmp.ge.s32.totalorder %s18093_s14, 1  ;;  %s18093_s14 = sphi %s18120_s14, %s13_s14   ;;  %s18089_s13 = sphi %s18118_s13, %s24198_s13   ;;  %s18085_s12 = sphi %s18116_s12, %s24197_s12  }
   0x3   : > { %p27_p1 = scmp.ge.s32.totalorder %s25_s15, 2  ;;  %p168_p2 = scmp.lt.s32.totalorder %s18093_s14, 3 }
   0x5   : > { %s24200_s15 = smov (%p27_p1, %s25_s15), 0  ;;  %p169_p3 = pnand %p14146_p0, %p168_p2 }
   0x7   : > { %172 = sbr.rel (%p169_p3) target bundleno = 1357 (0x54d), region = 32 }
   0xe   : > { %vm758_vm0 = vcmask 1040384   ;;  %vm759_vm1 = vcmask 1041408   ;;  %v14849_v0 = vld [vmem:[%s23647_s1 + $0x18] sm:$0x3]  ;;  %v18095_v1 = vmov 65535   ;;  %p202_p4 = scmp.lt.s32.totalorder %s18085_s12, 1 }
   0xf   : > { %v760_v2 = vsel %vm758_vm0, 4294967295, %v18095_v1  ;;  %v14150_v3 = vld [vmem:[%s23647_s1 + $0x2] sm:$0x3]  ;;  %v255_v7 = vld [vmem:[%s23647_s1] sm:$0x3]  ;;  %vm1266_vm2 = vcmask 1042432  }
  0x10   : > { %v18141_v4 = vsel %vm759_vm1, %v760_v2, 0  ;;  %s24202_s12 = smov (!%p202_p4, %s18085_s12), 1  ;;  %v14898_v8 = vld [vmem:[%s23647_s1 + $0x1a] sm:$0x3]  ;;  %v14963_v11 = vld [vmem:[%s23647_s1 + $0x1c] sm:$0x3] }
  0x11   : > { %v18144_v5 = vand.u32 %v14849_v0, %v18141_v4  ;;  %v763_v6 = vand.u32 %v14150_v3, %v18141_v4  ;;  %v18156_v9 = vand.u32 %v18141_v4, %v255_v7  ;;  %v18159_v10 = vand.u32 %v14898_v8, %v18141_v4  ;;  %s17759_s24 = smul.u32 240, %s24202_s12  ;;  %s15681_s26 = sshll.u32 %s24202_s12, 7 }
  0x12   : > { %vm1267_vm3 = vcmask 1046532   ;;  %vm709_vm4 = vcmask 23552   ;;  %v18180_v15 = vand.u32 %v14963_v11, %v18141_v4  ;;  %v23890_v16 = vmov 0  ;;  %s23567_s28 = scalar_lea.vmem %s23649_s3, %s15681_s26 }
  0x13   : > { %23888 = vst [vmem:[#allocation2_spill] sm:$0xff] %v18144_v5  ;;  %16547 = vmatprep.subr.bf16.mxu0 %v18144_v5  ;;  %16139 = vmatprep.subr.bf16.mxu1 %v763_v6  ;;  %s18170_s29 = scalar_lea.vmem %s23646_s0, %s17759_s24  ;;  %vm18182_vm5 = vmor %vm1266_vm2, %vm1267_vm3  ;;  %vm272_vm6 = vsmask.f32 3328  ;;  %vm273_vm7 = vsmask.f32 7440  ;;  %vm2405_vm12 = vcmask 1045508  }
  0x14   : > { %16548 = vmatpush3.bf16.msra.mxu0 %v18144_v5  ;;  %16140 = vmatpush3.bf16.msra.mxu1 %v763_v6  ;;  %v18175_v12 = vld [vmem:[%s18170_s29 + $0x1c] sm:$0xf]  ;;  %v14738_v13 = vld [vmem:[%s18170_s29 + $0x20] sm:$0x1]  ;;  %v14817_v14 = vld [vmem:[%s18170_s29 + $0x18] sm:$0xe] }
  0x15   : > { %16173 = vmatprep.subr.bf16.mxu1 %v18156_v9  ;;  %16581 = vmatprep.subr.bf16.mxu0 %v18159_v10  ;;  %23889 = vst [vmem:[#allocation3_spill] sm:$0xff] %v18175_v12  ;;  %v23891_v16 = vsel %vm18182_vm5, 4294967295, %v23890_v16  ;;  %v23661_v17 = vshll.u32 %v18175_v12, 16  ;;  %v23660_v18 = vshrl.u32 %v18175_v12, 16  ;;  %v5927_v19 = vshll.u32 %v14738_v13, 16  ;;  %vm18245_vm8 = vmor %vm272_vm6, %vm273_vm7 }
  0x16   : > { %23892 = vst [vmem:[#allocation4_spill] sm:$0xff] %v23891_v16  ;;  %v14833_v20 = vrot.slane %v14817_v14, 9  ;;  %v18189_v21 = vld [vmem:[%s18170_s29 + $0x28] sm:$0xf]  ;;  %v6651_v22 = vrot.slane %v18175_v12, 5  ;;  %v6654_v23 = vrot.slane %v14738_v13, 5  ;;  %vm18920_vm13 = vmor %vm759_vm1, %vm2405_vm12 }
  0x17   : > { %23893 = vst [vmem:[#allocation5_spill] sm:$0xff] %v18189_v21  ;;  %v7072_v24 = vshrl.u32 %v14817_v14, 16  ;;  %v7075_v25 = vshll.u32 %v14817_v14, 16  ;;  %v14741_v26 = vld [vmem:[%s18170_s29 + $0x2c] sm:$0x1]  ;;  %v18193_v27 = vrot.slane %v5927_v19, 5 }
  0x18   : > { %v23650_v28 = vshll.u32 %v18189_v21, 16  ;;  %v5945_v29 = vshrl.u32 %v18189_v21, 16  ;;  %v5951_v30 = vshll.u32 %v14741_v26, 16  ;;  %v14818_v31 = vld [vmem:[%s18170_s29 + $0x24] sm:$0xe]  ;;  %v6652_v32 = vsel %vm18182_vm5, %v14833_v20, %v6651_v22 }
  0x19   : > { %23894 = vst [vmem:[#allocation6_spill] sm:$0xff] %v18193_v27  ;;  %v6653_v33 = vrot.slane %v6651_v22, 4  ;;  %v18200_v34 = vrot.slane %v7072_v24, 5  ;;  %v18202_v35 = vrot.slane %v7075_v25, 6  ;;  %v14834_v38 = vrot.slane %v14818_v31, 9 }
  0x1a   : > { %v18204_v36 = vrot.slane %v5945_v29, 4  ;;  %v18206_v37 = vrot.slane %v5951_v30, 5  ;;  %v6658_v39 = vrot.slane %v18189_v21, 5  ;;  %v223_v40 = vld [vmem:[%s18170_s29] sm:$0xf]  ;;  %v6661_v42 = vrot.slane %v14741_v26, 5 }
  0x1b   : > { %v6655_v41 = vsel %vm18182_vm5, %v6653_v33, %v6654_v23  ;;  %v7095_v43 = vshrl.u32 %v14818_v31, 16  ;;  %v7098_v44 = vshll.u32 %v14818_v31, 16  ;;  %v224_v45 = vld [vmem:[%s18170_s29 + $0x4] sm:$0xf]  ;;  %v18215_v49 = vrot.slane %v5945_v29, 5 }
  0x1c   : > { %23895 = vst [vmem:[#allocation7_spill] sm:$0xff] %v18204_v36  ;;  %23896 = vst [vmem:[#allocation8_spill] sm:$0xff] %v18206_v37  ;;  %v14850_v46 = vcombine.low %v6652_v32, %v6655_v41  ;;  %v6659_v47 = vsel %vm18182_vm5, %v14834_v38, %v6658_v39  ;;  %v6660_v48 = vrot.slane %v6658_v39, 4  ;;  %v18218_v50 = vld [vmem:[%s18170_s29 + $0x8] sm:$0x1]  ;;  %v18222_v53 = vrot.slane %v23650_v28, 6 }
  0x1d   : > { %v7097_v51 = vrot.slane %v7095_v43, 5  ;;  %v7100_v52 = vrot.slane %v7098_v44, 6  ;;  %v276_v56 = vshrl.u32 %v223_v40, 16  ;;  %v279_v57 = vshll.u32 %v223_v40, 16  ;;  %v225_v63 = vld [vmem:[%s18170_s29 + $0xc] sm:$0xf] }
  0x1e   : > { %16549 = vmatprep.mubr.msk.bf16.mxu0 %vm709_vm4, %v14850_v46  ;;  %v6662_v55 = vsel %vm18182_vm5, %v6660_v48, %v6661_v42  ;;  %v285_v58 = vshll.u32 %v224_v45, 16  ;;  %v289_v61 = vshrl.u32 %v224_v45, 16  ;;  %v295_v62 = vshll.u32 %v18218_v50, 16  ;;  %v226_v0 = vld [vmem:[%s18170_s29 + $0x10] sm:$0xf] }
  0x1f   : > { %v14851_v59 = vcombine.low %v6659_v47, %v6662_v55  ;;  %v7101_v60 = vor.u32 %v7100_v52, %v7097_v51  ;;  %v278_v1 = vrot.slane %v276_v56, 4  ;;  %v281_v2 = vrot.slane %v279_v57, 5  ;;  %v18233_v7 = vld [vmem:[%s18170_s29 + $0x14] sm:$0x1]  ;;  %v18256_v39 = vld [vmem:[%s18170_s29 + $0x30] sm:$0xe] }
  0x20   : > { %v287_v3 = vrot.slane %v285_v58, 5  ;;  %v291_v11 = vrot.slane %v289_v61, 4  ;;  %v297_v13 = vrot.slane %v295_v62, 5  ;;  %v18238_v14 = vrot.slane %v289_v61, 5  ;;  %v18251_v31 = vld [vmem:[%s18170_s29 + $0x34] sm:$0xf] }
  0x21   : > { %16550 = vmatmul.mubr.msk.bf16.vlgmr.msra.gmra.mrb[0].mxu0 %vm709_vm4, %v14851_v59  ;;  %v18236_v8 = vrot.slane %v7101_v60, 4  ;;  %v282_v19 = vor.u32 %v281_v2, %v278_v1  ;;  %v18240_v20 = vrot.slane %v285_v58, 6  ;;  %v300_v22 = vshrl.u32 %v225_v63, 16  ;;  %23902 = vst [vmem:[#allocation12_spill] sm:$0xff] %v18251_v31  ;;  %v14744_v44 = vld [vmem:[%s18170_s29 + $0x38] sm:$0x1] }
  0x22   : > { %23897 = vst [vmem:[#allocation9_spill] sm:$0xff] %v18238_v14  ;;  %v303_v23 = vshll.u32 %v225_v63, 16  ;;  %16582 = vmatpush3.bf16.msra.mxu0 %v18159_v10  ;;  %v23899_v24 = vmov 0  ;;  %v292_v25 = vor.u32 %v291_v11, %v287_v3  ;;  %v309_v26 = vshll.u32 %v226_v0, 16  ;;  %v18262_v51 = vld [vmem:[%s18170_s29 + $0x3c] sm:$0xe] }
  0x23   : > { %23898 = vst [vmem:[#allocation10_spill] sm:$0xff] %v18240_v20  ;;  %v23900_v24 = vsel %vm18245_vm8, 4294967295, %v23899_v24  ;;  %v313_v29 = vshrl.u32 %v226_v0, 16  ;;  %v319_v30 = vshll.u32 %v18233_v7, 16  ;;  %16615 = vmatprep.subr.bf16.mxu0 %v18180_v15  ;;  %v283_v32 = vrot.slane %v282_v19, 4 }
  0x24   : > { %23901 = vst [vmem:[#allocation11_spill] sm:$0xff] %v23900_v24  ;;  %v302_v33 = vrot.slane %v300_v22, 4  ;;  %v305_v10 = vrot.slane %v303_v23, 5  ;;  %v293_v40 = vrot.slane %v292_v25, 4  ;;  %v311_v41 = vrot.slane %v309_v26, 5 }
  0x25   : > { %v315_v42 = vrot.slane %v313_v29, 4  ;;  %v321_v43 = vrot.slane %v319_v30, 5  ;;  %v288_v45 = vsel %vm18245_vm8, %v283_v32, %v287_v3  ;;  %v1726_v47 = vrot.slane %v313_v29, 5  ;;  %v18269_v58 = vld [vmem:[%s18170_s29 + $0x40] sm:$0xf] }
  0x26   : > { %v306_v46 = vor.u32 %v305_v10, %v302_v33  ;;  %v1727_v48 = vrot.slane %v309_v26, 6  ;;  %v298_v52 = vsel %vm18245_vm8, %v293_v40, %v297_v13  ;;  %v14835_v56 = vrot.slane %v18256_v39, 9  ;;  %23903 = vst [vmem:[#allocation13_spill] sm:$0xff] %v18269_v58  ;;  %v14747_v59 = vld [vmem:[%s18170_s29 + $0x44] sm:$0x1] }
  0x27   : > { %v316_v55 = vor.u32 %v315_v42, %v311_v41  ;;  %v6665_v57 = vrot.slane %v18251_v31, 5  ;;  %v14151_v60 = vcombine.low %v288_v45, %v298_v52  ;;  %v6668_v63 = vrot.slane %v14744_v44, 5  ;;  %v227_v0 = vld [vmem:[%s18170_s29 + $0x18] sm:$0xf]  ;;  %v18284_v25 = vld [vmem:[%s18170_s29 + $0x1c] sm:$0xf] }
  0x28   : > { %v307_v61 = vrot.slane %v306_v46, 4  ;;  %v18272_v62 = vor.u32 %v1727_v48, %v1726_v47  ;;  %v14836_v11 = vrot.slane %v18262_v51, 9  ;;  %v6672_v22 = vrot.slane %v18269_v58, 5  ;;  %23905 = vst [vmem:[#allocation15_spill] sm:$0xff] %v18284_v25  ;;  %v258_v30 = vld [vmem:[%s18170_s29 + $0x20] sm:$0x1] }
  0x29   : > { %v317_v1 = vrot.slane %v316_v55, 4  ;;  %v6666_v2 = vsel %vm18182_vm5, %v14835_v56, %v6665_v57  ;;  %v6667_v3 = vrot.slane %v6665_v57, 4  ;;  %16141 = vmatprep.mubr.msk.bf16.mxu1 %vm709_vm4, %v14151_v60  ;;  %v6675_v23 = vrot.slane %v14747_v59, 5  ;;  %v229_v10 = vld [vmem:[%s18170_s29 + $0x24] sm:$0xf] }
  0x2a   : > { %23904 = vst [vmem:[#allocation14_spill] sm:$0xff] %v18272_v62  ;;  %v312_v13 = vsel %vm18245_vm8, %v307_v61, %v311_v41  ;;  %v324_v32 = vshrl.u32 %v227_v0, 16  ;;  %v327_v33 = vshll.u32 %v227_v0, 16  ;;  %v6673_v42 = vsel %vm18182_vm5, %v14836_v11, %v6672_v22  ;;  %v18297_v48 = vld [vmem:[%s18170_s29 + $0x28] sm:$0xf] }
  0x2b   : > { %v322_v26 = vsel %vm18245_vm8, %v317_v1, %v321_v43  ;;  %v6669_v29 = vsel %vm18182_vm5, %v6667_v3, %v6668_v63  ;;  %v6674_v44 = vrot.slane %v6672_v22, 4  ;;  %v23655_v47 = vshll.u32 %v18284_v25, 16  ;;  %23906 = vst [vmem:[#allocation16_spill] sm:$0xff] %v18297_v48  ;;  %v259_v56 = vld [vmem:[%s18170_s29 + $0x2c] sm:$0x1] }
  0x2c   : > { %v14152_v40 = vcombine.low %v312_v13, %v322_v26  ;;  %v14852_v41 = vcombine.low %v6666_v2, %v6669_v29  ;;  %v326_v45 = vrot.slane %v324_v32, 4  ;;  %v329_v46 = vrot.slane %v327_v33, 5  ;;  %v18310_v1 = vld [vmem:[%s18170_s29 + $0x4c] sm:$0xf]  ;;  %v18313_v2 = vld [vmem:[%s18170_s29 + $0x48] sm:$0xe] }
  0x2d   : > { %v23656_v43 = vshrl.u32 %v18284_v25, 16  ;;  %v6676_v52 = vsel %vm18182_vm5, %v6674_v44, %v6675_v23  ;;  %v343_v55 = vshll.u32 %v258_v30, 16  ;;  %v348_v57 = vshrl.u32 %v229_v10, 16  ;;  %23907 = vst [vmem:[#allocation17_spill] sm:$0xff] %v18310_v1  ;;  %v18320_v32 = vld [vmem:[%s18170_s29 + $0x58] sm:$0xf] }
  0x2e   : > { %16142 = vmatmul.mubr.msk.bf16.vlgmr.msra.gmra.mrb[0].mxu1 %vm709_vm4, %v14152_v40  ;;  %16553 = vmatprep.mubr.msk.bf16.mxu0 %vm709_vm4, %v14852_v41  ;;  %v351_v59 = vshll.u32 %v229_v10, 16  ;;  %v14853_v60 = vcombine.low %v6673_v42, %v6676_v52  ;;  %v330_v61 = vor.u32 %v329_v46, %v326_v45  ;;  %v335_v63 = vrot.slane %v23655_v47, 5  ;;  %23908 = vst [vmem:[#allocation18_spill] sm:$0xff] %v18320_v32  ;;  %v18327_v42 = vld [vmem:[%s18170_s29 + $0x54] sm:$0xe] }
  0x2f   : > { %16174 = vmatpush3.bf16.msra.mxu1 %v18156_v9  ;;  %v339_v0 = vrot.slane %v23656_v43, 4  ;;  %v345_v3 = vrot.slane %v343_v55, 5  ;;  %v350_v11 = vrot.slane %v348_v57, 4  ;;  %v23651_v22 = vshll.u32 %v18297_v48, 16  ;;  %v14750_v9 = vld [vmem:[%s18170_s29 + $0x50] sm:$0x1] }
  0x30   : > { %v353_v13 = vrot.slane %v351_v59, 5  ;;  %16554 = vmatmul.mubr.msk.bf16.gmra.mrb[4].mxu0 %vm709_vm4, %v14853_v60  ;;  %v331_v23 = vrot.slane %v330_v61, 4  ;;  %v23652_v29 = vshrl.u32 %v18297_v48, 16  ;;  %v367_v30 = vshll.u32 %v259_v56, 16  ;;  %v14753_v55 = vld [vmem:[%s18170_s29 + $0x5c] sm:$0x1] }
  0x31   : > { %v340_v26 = vor.u32 %v339_v0, %v335_v63  ;;  %v359_v10 = vrot.slane %v23651_v22, 5  ;;  %v14837_v40 = vrot.slane %v18313_v2, 9  ;;  %v6679_v41 = vrot.slane %v18310_v1, 5  ;;  %v18365_v22 = vld [vmem:[%s18170_s29 + $0x64] sm:$0xf] }
  0x32   : > { %v354_v33 = vor.u32 %v353_v13, %v350_v11  ;;  %v336_v44 = vsel %vm18245_vm8, %v331_v23, %v335_v63  ;;  %v363_v46 = vrot.slane %v23652_v29, 4  ;;  %v369_v52 = vrot.slane %v367_v30, 5  ;;  %v231_v13 = vld [vmem:[%s18170_s29 + $0x30] sm:$0xf]  ;;  %v18342_v23 = vld [vmem:[%s18170_s29 + $0x34] sm:$0xf] }
  0x33   : > { %v341_v45 = vrot.slane %v340_v26, 4  ;;  %v6680_v57 = vsel %vm18182_vm5, %v14837_v40, %v6679_v41  ;;  %v6681_v59 = vrot.slane %v6679_v41, 4  ;;  %v6682_v60 = vrot.slane %v14750_v9, 5  ;;  %23909 = vst [vmem:[#allocation19_spill] sm:$0xff] %v18342_v23  ;;  %v260_v9 = vld [vmem:[%s18170_s29 + $0x38] sm:$0x1] }
  0x34   : > { %v355_v56 = vrot.slane %v354_v33, 4  ;;  %v364_v0 = vor.u32 %v363_v46, %v359_v10  ;;  %v14838_v63 = vrot.slane %v18327_v42, 9  ;;  %v6686_v11 = vrot.slane %v18320_v32, 5  ;;  %23911 = vst [vmem:[#allocation21_spill] sm:$0xff] %v18365_v22  ;;  %v18368_v29 = vld [vmem:[%s18170_s29 + $0x60] sm:$0xe] }
  0x35   : > { %v346_v61 = vsel %vm18245_vm8, %v341_v45, %v345_v3  ;;  %v6683_v33 = vsel %vm18182_vm5, %v6681_v59, %v6682_v60  ;;  %v6689_v40 = vrot.slane %v14753_v55, 5  ;;  %v233_v3 = vld [vmem:[%s18170_s29 + $0x3c] sm:$0xf]  ;;  %v23654_v55 = vshrl.u32 %v18342_v23, 16  ;;  %v18402_v6 = vld [vmem:[%s18170_s29 + $0x4c] sm:$0xf] }
  0x36   : > { %v14153_v26 = vcombine.low %v336_v44, %v346_v61  ;;  %v360_v30 = vsel %vm18245_vm8, %v355_v56, %v359_v10  ;;  %v365_v41 = vrot.slane %v364_v0, 4  ;;  %v14854_v45 = vcombine.low %v6680_v57, %v6683_v33  ;;  %v18361_v61 = vld [vmem:[%s18170_s29 + $0x40] sm:$0xf]  ;;  %v261_v0 = vld [vmem:[%s18170_s29 + $0x44] sm:$0x1]  ;;  %23913 = vst [vmem:[#allocation23_spill] sm:$0xff] %v18402_v6 }
  0x37   : > { %v6687_v46 = vsel %vm18182_vm5, %v14838_v63, %v6686_v11  ;;  %v6688_v28 = vrot.slane %v6686_v11, 4  ;;  %v372_v44 = vshrl.u32 %v231_v13, 16  ;;  %v375_v10 = vshll.u32 %v231_v13, 16  ;;  %23910 = vst [vmem:[#allocation20_spill] sm:$0xff] %v18361_v61  ;;  %v18776_v36 = vld [vmem:[%s18170_s29 + $0xa0] sm:$0xf] }
  0x38   : > { %16145 = vmatprep.mubr.msk.bf16.mxu1 %vm709_vm4, %v14153_v26  ;;  %v23653_v56 = vshll.u32 %v18342_v23, 16  ;;  %v370_v59 = vsel %vm18245_vm8, %v365_v41, %v369_v52  ;;  %16557 = vmatprep.mubr.msk.bf16.mxu0 %vm709_vm4, %v14854_v45  ;;  %v391_v60 = vshll.u32 %v260_v9, 16  ;;  %v396_v63 = vshrl.u32 %v233_v3, 16  ;;  %v14756_v41 = vld [vmem:[%s18170_s29 + $0x68] sm:$0x1]  ;;  %23926 = vst [vmem:[#allocation34_spill] sm:$0xff] %v18776_v36 }
  0x39   : > { %v6690_v57 = vsel %vm18182_vm5, %v6688_v28, %v6689_v40  ;;  %v14154_v11 = vcombine.low %v360_v30, %v370_v59  ;;  %v374_v26 = vrot.slane %v372_v44, 4  ;;  %v377_v33 = vrot.slane %v375_v10, 5  ;;  %v18380_v10 = vld [vmem:[%s18170_s29 + $0x70] sm:$0xf]  ;;  %v18866_v24 = vld [vmem:[%s18170_s29 + $0x34] sm:$0xf] }
  0x3a   : > { %v14855_v13 = vcombine.low %v6687_v46, %v6690_v57  ;;  %v383_v52 = vrot.slane %v23653_v56, 5  ;;  %v387_v28 = vrot.slane %v23654_v55, 4  ;;  %v393_v40 = vrot.slane %v391_v60, 5  ;;  %23912 = vst [vmem:[#allocation22_spill] sm:$0xff] %v18380_v10  ;;  %v17883_v20 = vld [vmem:[%s18170_s29 + $0x1c] sm:$0xf] }
  0x3b   : > { %v398_v9 = vrot.slane %v396_v63, 4  ;;  %16146 = vmatmul.mubr.msk.bf16.gmra.mrb[4].mxu1 %vm709_vm4, %v14154_v11  ;;  %v378_v30 = vor.u32 %v377_v33, %v374_v26  ;;  %v399_v45 = vshll.u32 %v233_v3, 16  ;;  %v23657_v46 = vshll.u32 %v18361_v61, 16  ;;  %v14759_v63 = vld [vmem:[%s18170_s29 + $0x74] sm:$0x1] }
  0x3c   : > { %16558 = vmatmul.mubr.msk.bf16.gmra.mrb[8].mxu0 %vm709_vm4, %v14855_v13  ;;  %v23658_v44 = vshrl.u32 %v18361_v61, 16  ;;  %v388_v59 = vor.u32 %v387_v28, %v383_v52  ;;  %v415_v57 = vshll.u32 %v261_v0, 16  ;;  %v14839_v56 = vrot.slane %v18368_v29, 9  ;;  %v18390_v26 = vld [vmem:[%s18170_s29 + $0x6c] sm:$0xe] }
  0x3d   : > { %v6693_v60 = vrot.slane %v18365_v22, 5  ;;  %v379_v11 = vrot.slane %v378_v30, 4  ;;  %v401_v55 = vrot.slane %v399_v45, 5  ;;  %v407_v13 = vrot.slane %v23657_v46, 5  ;;  %v235_v46 = vld [vmem:[%s18170_s29 + $0x48] sm:$0xf] }
  0x3e   : > { %v411_v3 = vrot.slane %v23658_v44, 4  ;;  %v389_v33 = vrot.slane %v388_v59, 4  ;;  %v417_v28 = vrot.slane %v415_v57, 5  ;;  %v6696_v43 = vrot.slane %v14756_v41, 5  ;;  %v18876_v61 = vld [vmem:[%s18170_s29 + $0x40] sm:$0xf] }
  0x3f   : > { %v6694_v0 = vsel %vm18182_vm5, %v14839_v56, %v6693_v60  ;;  %v6695_v19 = vrot.slane %v6693_v60, 4  ;;  %v384_v47 = vsel %vm18245_vm8, %v379_v11, %v383_v52  ;;  %v402_v30 = vor.u32 %v401_v55, %v398_v9  ;;  %v262_v11 = vld [vmem:[%s18170_s29 + $0x50] sm:$0x1] }
  0x40   : > { %v412_v45 = vor.u32 %v411_v3, %v407_v13  ;;  %v394_v38 = vsel %vm18245_vm8, %v389_v33, %v393_v40  ;;  %v14840_v44 = vrot.slane %v18390_v26, 9  ;;  %v6700_v59 = vrot.slane %v18380_v10, 5 }
  0x41   : > { %v6703_v57 = vrot.slane %v14759_v63, 5  ;;  %vm1691_vm9 = vsmask.f32 2304  ;;  %vm1692_vm10 = vsmask.f32 6416  ;;  %v14155_v56 = vcombine.low %v384_v47, %v394_v38 }
  0x42   : > { %v403_v55 = vrot.slane %v402_v30, 4  ;;  %v413_v52 = vrot.slane %v412_v45, 4  ;;  %v6697_v9 = vsel %vm18182_vm5, %v6695_v19, %v6696_v43  ;;  %v6701_v40 = vsel %vm18182_vm5, %v14840_v44, %v6700_v59  ;;  %v237_v19 = vld [vmem:[%s18170_s29 + $0x54] sm:$0xf]  ;;  %v18417_v43 = vld [vmem:[%s18170_s29 + $0x58] sm:$0xf]  ;;  %vm18447_vm11 = vmor %vm1691_vm9, %vm1692_vm10 }
  0x43   : > { %v14856_v41 = vcombine.low %v6694_v0, %v6697_v9  ;;  %v6702_v60 = vrot.slane %v6700_v59, 4  ;;  %v420_v63 = vshrl.u32 %v235_v46, 16  ;;  %16149 = vmatprep.mubr.msk.bf16.mxu1 %vm709_vm4, %v14155_v56  ;;  %v423_v47 = vshll.u32 %v235_v46, 16  ;;  %23914 = vst [vmem:[#allocation24_spill] sm:$0xff] %v18417_v43  ;;  %v263_v59 = vld [vmem:[%s18170_s29 + $0x5c] sm:$0x1] }
  0x44   : > { %v408_v3 = vsel %vm18245_vm8, %v403_v55, %v407_v13  ;;  %v418_v38 = vsel %vm18245_vm8, %v413_v52, %v417_v28  ;;  %v23659_v33 = vshll.u32 %v18402_v6, 16  ;;  %v23680_v45 = vshrl.u32 %v18402_v6, 16  ;;  %v17877_v6 = vld [vmem:[%s18170_s29 + $0x3c] sm:$0xf] }
  0x45   : > { %v14156_v0 = vcombine.low %v408_v3, %v418_v38  ;;  %16561 = vmatprep.mubr.msk.bf16.mxu0 %vm709_vm4, %v14856_v41  ;;  %v6704_v44 = vsel %vm18182_vm5, %v6702_v60, %v6703_v57  ;;  %v422_v30 = vrot.slane %v420_v63, 4  ;;  %v425_v56 = vrot.slane %v423_v47, 5 }
  0x46   : > { %v14857_v13 = vcombine.low %v6701_v40, %v6704_v44  ;;  %v431_v46 = vrot.slane %v23659_v33, 5  ;;  %v439_v28 = vshll.u32 %v262_v11, 16  ;;  %v435_v55 = vrot.slane %v23680_v45, 4 }
  0x47   : > { %16150 = vmatmul.mubr.msk.bf16.gmra.mrb[8].mxu1 %vm709_vm4, %v14156_v0  ;;  %v444_v52 = vshrl.u32 %v237_v19, 16  ;;  %v447_v9 = vshll.u32 %v237_v19, 16  ;;  %v23662_v57 = vshll.u32 %v18417_v43, 16  ;;  %v426_v41 = vor.u32 %v425_v56, %v422_v30  ;;  %v14882_v0 = vld [vmem:[%s18170_s29 + $0x20] sm:$0x3] }
  0x48   : > { %16562 = vmatmul.mubr.msk.bf16.gmra.mrb[12].mxu0 %vm709_vm4, %v14857_v13  ;;  %v441_v60 = vrot.slane %v439_v28, 5  ;;  %v23663_v40 = vshrl.u32 %v18417_v43, 16  ;;  %v463_v63 = vshll.u32 %v263_v59, 16  ;;  %v436_v3 = vor.u32 %v435_v55, %v431_v46 }
  0x49   : > { %v446_v38 = vrot.slane %v444_v52, 4  ;;  %v449_v47 = vrot.slane %v447_v9, 5  ;;  %v455_v11 = vrot.slane %v23662_v57, 5  ;;  %v427_v44 = vrot.slane %v426_v41, 4 }
  0x4a   : > { %v459_v19 = vrot.slane %v23663_v40, 4  ;;  %v465_v33 = vrot.slane %v463_v63, 5  ;;  %v7078_v30 = vor.u32 %v18202_v35, %v18200_v34  ;;  %v437_v13 = vrot.slane %v436_v3, 4 }
  0x4b   : > { %v450_v56 = vor.u32 %v449_v47, %v446_v38  ;;  %v7080_v59 = vrot.slane %v23660_v18, 5  ;;  %v7081_v28 = vrot.slane %v23661_v17, 6  ;;  %v432_v55 = vsel %vm18245_vm8, %v427_v44, %v431_v46  ;;  %v14883_v47 = vld [vmem:[%s18170_s29 + $0x2c] sm:$0x3]  ;;  %v239_v17 = vld [vmem:[%s18170_s29 + $0x60] sm:$0xf] }
  0x4c   : > { %v460_v52 = vor.u32 %v459_v19, %v455_v11  ;;  %v23915_v9 = vmov 0  ;;  %v7079_v34 = vrot.slane %v7078_v30, 4  ;;  %v7086_v35 = vshrl.u32 %v14882_v0, 16 }
  0x4d   : > { %v23916_v9 = vsel %vm18447_vm11, 4294967295, %v23915_v9  ;;  %v442_v41 = vsel %vm18245_vm8, %v437_v13, %v441_v60  ;;  %v451_v63 = vrot.slane %v450_v56, 4  ;;  %v7082_v3 = vor.u32 %v7081_v28, %v7080_v59  ;;  %v18462_v13 = vld [vmem:[%s18170_s29 + $0x64] sm:$0xf] }
  0x4e   : > { %23917 = vst [vmem:[#allocation25_spill] sm:$0xff] %v23916_v9  ;;  %v7089_v38 = vshll.u32 %v14882_v0, 16  ;;  %v14157_v18 = vcombine.low %v432_v55, %v442_v41  ;;  %v461_v46 = vrot.slane %v460_v52, 4  ;;  %v7088_v44 = vrot.slane %v7086_v35, 5  ;;  %23918 = vst [vmem:[#allocation26_spill] sm:$0xff] %v18462_v13 }
  0x4f   : > { %v7105_v19 = vor.u32 %v18222_v53, %v18215_v49  ;;  %v456_v30 = vsel %vm18245_vm8, %v451_v63, %v455_v11  ;;  %v7083_v57 = vsel %vm18447_vm11, %v7079_v34, %v7082_v3  ;;  %v7084_v40 = vrot.slane %v7082_v3, 4  ;;  %v264_v11 = vld [vmem:[%s18170_s29 + $0x68] sm:$0x1] }
  0x50   : > { %v7091_v60 = vrot.slane %v7089_v38, 6  ;;  %16153 = vmatprep.mubr.msk.bf16.mxu1 %vm709_vm4, %v14157_v18  ;;  %v466_v0 = vsel %vm18245_vm8, %v461_v46, %v465_v33  ;;  %v7109_v56 = vshrl.u32 %v14883_v47, 16  ;;  %v7112_v55 = vshll.u32 %v14883_v47, 16  ;;  %v241_v33 = vld [vmem:[%s18170_s29 + $0x6c] sm:$0xf] }
  0x51   : > { %v7106_v49 = vsel %vm18447_vm11, %v18236_v8, %v7105_v19  ;;  %v7107_v53 = vrot.slane %v7105_v19, 4  ;;  %v14158_v59 = vcombine.low %v456_v30, %v466_v0  ;;  %v468_v52 = vshrl.u32 %v239_v17, 16  ;;  %v18478_v46 = vld [vmem:[%s18170_s29 + $0x70] sm:$0xf]  ;;  %v265_v30 = vld [vmem:[%s18170_s29 + $0x74] sm:$0x1] }
  0x52   : > { %v7092_v28 = vor.u32 %v7091_v60, %v7088_v44  ;;  %v7111_v34 = vrot.slane %v7109_v56, 5  ;;  %v471_v35 = vshll.u32 %v239_v17, 16  ;;  %v23664_v18 = vshll.u32 %v18462_v13, 16  ;;  %23919 = vst [vmem:[#allocation27_spill] sm:$0xff] %v18478_v46 }
  0x53   : > { %v23679_v41 = vshrl.u32 %v18462_v13, 16  ;;  %16154 = vmatmul.mubr.msk.bf16.gmra.mrb[12].mxu1 %vm709_vm4, %v14158_v59  ;;  %v7114_v63 = vrot.slane %v7112_v55, 6  ;;  %v470_v3 = vrot.slane %v468_v52, 4  ;;  %v487_v38 = vshll.u32 %v264_v11, 16 }
  0x54   : > { %v7093_v8 = vsel %vm18447_vm11, %v7084_v40, %v7092_v28  ;;  %v473_v44 = vrot.slane %v471_v35, 5  ;;  %v479_v17 = vrot.slane %v23664_v18, 5  ;;  %v492_v56 = vshrl.u32 %v241_v33, 16 }
  0x55   : > { %v14899_v47 = vcombine.low %v7083_v57, %v7093_v8  ;;  %v483_v19 = vrot.slane %v23679_v41, 4  ;;  %v7115_v60 = vor.u32 %v7114_v63, %v7111_v34  ;;  %v489_v0 = vrot.slane %v487_v38, 5  ;;  %v18607_v41 = vld [vmem:[%s18170_s29 + $0xa0] sm:$0xf] }
  0x56   : > { %v495_v59 = vshll.u32 %v241_v33, 16  ;;  %v474_v40 = vor.u32 %v473_v44, %v470_v3  ;;  %v23669_v28 = vshll.u32 %v18478_v46, 16  ;;  %v23678_v57 = vshrl.u32 %v18478_v46, 16 }
  0x57   : > { %16583 = vmatprep.mubr.msk.bf16.mxu0 %vm709_vm4, %v14899_v47  ;;  %v484_v11 = vor.u32 %v483_v19, %v479_v17  ;;  %v7116_v55 = vsel %vm18447_vm11, %v7107_v53, %v7115_v60  ;;  %v494_v52 = vrot.slane %v492_v56, 4  ;;  %v511_v8 = vshll.u32 %v265_v30, 16  ;;  %v14884_v19 = vld [vmem:[%s18170_s29 + $0x38] sm:$0x3] }
  0x58   : > { %v497_v35 = vrot.slane %v495_v59, 5  ;;  %v14900_v18 = vcombine.low %v7106_v49, %v7116_v55  ;;  %v475_v34 = vrot.slane %v474_v40, 4  ;;  %v503_v33 = vrot.slane %v23669_v28, 5 }
  0x59   : > { %v485_v63 = vrot.slane %v484_v11, 4  ;;  %v507_v3 = vrot.slane %v23678_v57, 4  ;;  %v513_v47 = vrot.slane %v511_v8, 5  ;;  %v23668_v44 = vshll.u32 %v18251_v31, 16 }
  0x5a   : > { %v498_v38 = vor.u32 %v497_v35, %v494_v52  ;;  %16584 = vmatmul.mubr.msk.bf16.vlgmr.msra.gmra.mrb[0].mxu0 %vm709_vm4, %v14900_v18  ;;  %v480_v53 = vsel %vm18245_vm8, %v475_v34, %v479_v17  ;;  %v23665_v30 = vshrl.u32 %v18251_v31, 16  ;;  %v7118_v60 = vshrl.u32 %v18256_v39, 16 }
  0x5b   : > { %v490_v49 = vsel %vm18245_vm8, %v485_v63, %v489_v0  ;;  %v508_v40 = vor.u32 %v507_v3, %v503_v33  ;;  %16616 = vmatpush3.bf16.msra.mxu0 %v18180_v15  ;;  %v7121_v11 = vshll.u32 %v18256_v39, 16  ;;  %v7127_v17 = vrot.slane %v23668_v44, 6 }
  0x5c   : > { %v14159_v56 = vcombine.low %v480_v53, %v490_v49  ;;  %v499_v59 = vrot.slane %v498_v38, 4  ;;  %v7120_v55 = vrot.slane %v7118_v60, 5  ;;  %v7126_v18 = vrot.slane %v23665_v30, 5  ;;  %v14885_v60 = vld [vmem:[%s18170_s29 + $0x44] sm:$0x3] }
  0x5d   : > { %v7132_v0 = vshrl.u32 %v14884_v19, 16  ;;  %v509_v35 = vrot.slane %v508_v40, 4  ;;  %v7123_v8 = vrot.slane %v7121_v11, 6  ;;  %v7135_v15 = vshll.u32 %v14884_v19, 16  ;;  %v243_v30 = vld [vmem:[%s18170_s29 + $0x78] sm:$0xf] }
  0x5e   : > { %16157 = vmatprep.mubr.msk.bf16.mxu1 %vm709_vm4, %v14159_v56  ;;  %v504_v52 = vsel %vm18245_vm8, %v499_v59, %v503_v33  ;;  %v7128_v34 = vor.u32 %v7127_v17, %v7126_v18  ;;  %v23667_v63 = vshll.u32 %v18269_v58, 16  ;;  %v23666_v38 = vshrl.u32 %v18269_v58, 16 }
  0x5f   : > { %v7134_v39 = vrot.slane %v7132_v0, 5  ;;  %v514_v3 = vsel %vm18245_vm8, %v509_v35, %v513_v47  ;;  %v7124_v53 = vor.u32 %v7123_v8, %v7120_v55  ;;  %v7137_v49 = vrot.slane %v7135_v15, 6 }
  0x60   : > { %v7141_v56 = vshrl.u32 %v18262_v51, 16  ;;  %v14160_v33 = vcombine.low %v504_v52, %v514_v3  ;;  %v7130_v59 = vrot.slane %v7128_v34, 4  ;;  %v7144_v19 = vshll.u32 %v18262_v51, 16  ;;  %v18526_v52 = vld [vmem:[%s18170_s29 + $0x7c] sm:$0xf] }
  0x61   : > { %v7149_v40 = vrot.slane %v23666_v38, 5  ;;  %v7125_v11 = vrot.slane %v7124_v53, 4  ;;  %v7138_v18 = vor.u32 %v7137_v49, %v7134_v39  ;;  %v7150_v47 = vrot.slane %v23667_v63, 6  ;;  %23920 = vst [vmem:[#allocation28_spill] sm:$0xff] %v18526_v52  ;;  %v266_v3 = vld [vmem:[%s18170_s29 + $0x80] sm:$0x1] }
  0x62   : > { %v7143_v17 = vrot.slane %v7141_v56, 5  ;;  %16158 = vmatmul.mubr.msk.bf16.gmra.mrb[16].mxu1 %vm709_vm4, %v14160_v33  ;;  %v7146_v55 = vrot.slane %v7144_v19, 6  ;;  %v7155_v0 = vshrl.u32 %v14885_v60, 16  ;;  %v7158_v35 = vshll.u32 %v14885_v60, 16  ;;  %v245_v38 = vld [vmem:[%s18170_s29 + $0x84] sm:$0xf] }
  0x63   : > { %v516_v8 = vshrl.u32 %v243_v30, 16  ;;  %v7129_v51 = vsel %vm18447_vm11, %v7125_v11, %v7128_v34  ;;  %v7139_v15 = vsel %vm18447_vm11, %v7130_v59, %v7138_v18  ;;  %v7151_v39 = vor.u32 %v7150_v47, %v7149_v40  ;;  %v18538_v18 = vld [vmem:[%s18170_s29 + $0x88] sm:$0xf]  ;;  %v267_v47 = vld [vmem:[%s18170_s29 + $0x8c] sm:$0x1] }
  0x64   : > { %v519_v53 = vshll.u32 %v243_v30, 16  ;;  %v14901_v49 = vcombine.low %v7129_v51, %v7139_v15  ;;  %v7147_v56 = vor.u32 %v7146_v55, %v7143_v17  ;;  %v7157_v33 = vrot.slane %v7155_v0, 5  ;;  %23921 = vst [vmem:[#allocation29_spill] sm:$0xff] %v18538_v18 }
  0x65   : > { %v7160_v19 = vrot.slane %v7158_v35, 6  ;;  %v7153_v60 = vrot.slane %v7151_v39, 4  ;;  %v518_v63 = vrot.slane %v516_v8, 4  ;;  %v23672_v28 = vshll.u32 %v18526_v52, 16 }
  0x66   : > { %v521_v44 = vrot.slane %v519_v53, 5  ;;  %16587 = vmatprep.mubr.msk.bf16.mxu0 %vm709_vm4, %v14901_v49  ;;  %v7148_v34 = vrot.slane %v7147_v56, 4  ;;  %v23677_v59 = vshrl.u32 %v18526_v52, 16  ;;  %v535_v40 = vshll.u32 %v266_v3, 16 }
  0x67   : > { %v7161_v11 = vor.u32 %v7160_v19, %v7157_v33  ;;  %v527_v17 = vrot.slane %v23672_v28, 5  ;;  %v540_v55 = vshrl.u32 %v245_v38, 16  ;;  %v543_v0 = vshll.u32 %v245_v38, 16 }
  0x68   : > { %v522_v30 = vor.u32 %v521_v44, %v518_v63  ;;  %v7152_v35 = vsel %vm18447_vm11, %v7148_v34, %v7151_v39  ;;  %v531_v51 = vrot.slane %v23677_v59, 4  ;;  %v537_v15 = vrot.slane %v535_v40, 5 }
  0x69   : > { %v7162_v8 = vsel %vm18447_vm11, %v7153_v60, %v7161_v11  ;;  %v542_v44 = vrot.slane %v540_v55, 4  ;;  %v545_v63 = vrot.slane %v543_v0, 5  ;;  %v23670_v56 = vshll.u32 %v18538_v18, 16  ;;  %v14886_v11 = vld [vmem:[%s18170_s29 + $0x50] sm:$0x3] }
  0x6a   : > { %v14902_v3 = vcombine.low %v7152_v35, %v7162_v8  ;;  %v523_v53 = vrot.slane %v522_v30, 4  ;;  %v532_v49 = vor.u32 %v531_v51, %v527_v17  ;;  %v23671_v38 = vshrl.u32 %v18538_v18, 16 }
  0x6b   : > { %v559_v33 = vshll.u32 %v267_v47, 16  ;;  %v546_v19 = vor.u32 %v545_v63, %v542_v44  ;;  %v23674_v60 = vshll.u32 %v18310_v1, 16  ;;  %v23673_v34 = vshrl.u32 %v18310_v1, 16 }
  0x6c   : > { %16588 = vmatmul.mubr.msk.bf16.gmra.mrb[4].mxu0 %vm709_vm4, %v14902_v3  ;;  %v528_v39 = vsel %vm18245_vm8, %v523_v53, %v527_v17  ;;  %v533_v40 = vrot.slane %v532_v49, 4  ;;  %v551_v30 = vrot.slane %v23670_v56, 5  ;;  %v555_v55 = vrot.slane %v23671_v38, 4 }
  0x6d   : > { %v561_v0 = vrot.slane %v559_v33, 5  ;;  %v547_v47 = vrot.slane %v546_v19, 4  ;;  %v7164_v35 = vshrl.u32 %v18313_v2, 16  ;;  %v7167_v17 = vshll.u32 %v18313_v2, 16 }
  0x6e   : > { %v7172_v8 = vrot.slane %v23673_v34, 5  ;;  %v538_v51 = vsel %vm18245_vm8, %v533_v40, %v537_v15  ;;  %v556_v3 = vor.u32 %v555_v55, %v551_v30  ;;  %v7173_v53 = vrot.slane %v23674_v60, 6  ;;  %v18572_v34 = vld [vmem:[%s18170_s29 + $0x5c] sm:$0x3] }
  0x6f   : > { %v7178_v44 = vshrl.u32 %v14886_v11, 16  ;;  %v14161_v63 = vcombine.low %v528_v39, %v538_v51  ;;  %v552_v49 = vsel %vm18245_vm8, %v547_v47, %v551_v30  ;;  %v7166_v33 = vrot.slane %v7164_v35, 5  ;;  %v18579_v30 = vld [vmem:[%s18170_s29 + $0x90] sm:$0xf] }
  0x70   : > { %v7169_v19 = vrot.slane %v7167_v17, 6  ;;  %v557_v56 = vrot.slane %v556_v3, 4  ;;  %v7174_v2 = vor.u32 %v7173_v53, %v7172_v8  ;;  %v7181_v28 = vshll.u32 %v14886_v11, 16 }
  0x71   : > { %v7180_v38 = vrot.slane %v7178_v44, 5  ;;  %16161 = vmatprep.mubr.msk.bf16.mxu1 %vm709_vm4, %v14161_v63  ;;  %v23676_v40 = vshll.u32 %v18320_v32, 16  ;;  %v23675_v55 = vshrl.u32 %v18320_v32, 16  ;;  %v7187_v39 = vshrl.u32 %v18327_v42, 16  ;;  %v18587_v44 = vld [vmem:[%s18170_s29 + $0x94] sm:$0xf] }
  0x72   : > { %v7170_v15 = vor.u32 %v7169_v19, %v7166_v33  ;;  %v562_v47 = vsel %vm18245_vm8, %v557_v56, %v561_v0  ;;  %v7176_v11 = vrot.slane %v7174_v2, 4  ;;  %v7183_v35 = vrot.slane %v7181_v28, 6  ;;  %v268_v56 = vld [vmem:[%s18170_s29 + $0x98] sm:$0x1]  ;;  %v18594_v0 = vld [vmem:[%s18170_s29 + $0x9c] sm:$0xf] }
  0x73   : > { %v7190_v17 = vshll.u32 %v18327_v42, 16  ;;  %v14162_v8 = vcombine.low %v552_v49, %v562_v47  ;;  %v7189_v3 = vrot.slane %v7187_v39, 5  ;;  %v7195_v53 = vrot.slane %v23675_v55, 5  ;;  %v18731_v32 = vld [vmem:[%s18170_s29 + $0x8c] sm:$0x3] }
  0x74   : > { %v7171_v51 = vrot.slane %v7170_v15, 4  ;;  %v7184_v63 = vor.u32 %v7183_v35, %v7180_v38  ;;  %v7196_v19 = vrot.slane %v23676_v40, 6  ;;  %v7201_v60 = vshrl.u32 %v18572_v34, 16 }
  0x75   : > { %v7192_v33 = vrot.slane %v7190_v17, 6  ;;  %16162 = vmatmul.mubr.msk.bf16.gmra.mrb[20].mxu1 %vm709_vm4, %v14162_v8  ;;  %v7204_v28 = vshll.u32 %v18572_v34, 16  ;;  %v564_v49 = vshrl.u32 %v18579_v30, 16  ;;  %v567_v38 = vshll.u32 %v18579_v30, 16 }
  0x76   : > { %v7175_v42 = vsel %vm18447_vm11, %v7171_v51, %v7174_v2  ;;  %v7185_v15 = vsel %vm18447_vm11, %v7176_v11, %v7184_v63  ;;  %v7197_v47 = vor.u32 %v7196_v19, %v7195_v53  ;;  %v7203_v35 = vrot.slane %v7201_v60, 5  ;;  %v269_v63 = vld [vmem:[%s18170_s29 + $0xa4] sm:$0x1] }
  0x77   : > { %v7193_v39 = vor.u32 %v7192_v33, %v7189_v3  ;;  %v14903_v17 = vcombine.low %v7175_v42, %v7185_v15  ;;  %v7206_v55 = vrot.slane %v7204_v28, 6  ;;  %v566_v8 = vrot.slane %v564_v49, 4 }
  0x78   : > { %v569_v40 = vrot.slane %v567_v38, 5  ;;  %v7199_v2 = vrot.slane %v7197_v47, 4  ;;  %v23687_v51 = vshll.u32 %v18587_v44, 16  ;;  %v23688_v57 = vshrl.u32 %v18587_v44, 16 }
  0x79   : > { %v7194_v59 = vrot.slane %v7193_v39, 4  ;;  %16591 = vmatprep.mubr.msk.bf16.mxu0 %vm709_vm4, %v14903_v17  ;;  %v7207_v45 = vor.u32 %v7206_v55, %v7203_v35  ;;  %v583_v3 = vshll.u32 %v268_v56, 16  ;;  %v588_v60 = vshrl.u32 %v18594_v0, 16 }
  0x7a   : > { %v570_v11 = vor.u32 %v569_v40, %v566_v8  ;;  %v575_v33 = vrot.slane %v23687_v51, 5  ;;  %v579_v19 = vrot.slane %v23688_v57, 4  ;;  %v591_v42 = vshll.u32 %v18594_v0, 16  ;;  %v18627_v8 = vld [vmem:[%s18170_s29 + $0x68] sm:$0x3] }
  0x7b   : > { %v7198_v53 = vsel %vm18447_vm11, %v7194_v59, %v7197_v47  ;;  %v7208_v55 = vsel %vm18447_vm11, %v7199_v2, %v7207_v45  ;;  %v585_v56 = vrot.slane %v583_v3, 5  ;;  %v590_v28 = vrot.slane %v588_v60, 4 }
  0x7c   : > { %v571_v40 = vrot.slane %v570_v11, 4  ;;  %v14904_v49 = vcombine.low %v7198_v53, %v7208_v55  ;;  %v580_v38 = vor.u32 %v579_v19, %v575_v33  ;;  %v593_v15 = vrot.slane %v591_v42, 5 }
  0x7d   : > { %v23681_v59 = vshll.u32 %v18607_v41, 16  ;;  %v23684_v47 = vshrl.u32 %v18607_v41, 16  ;;  %v607_v35 = vshll.u32 %v269_v63, 16  ;;  %v23683_v17 = vshll.u32 %v18365_v22, 16 }
  0x7e   : > { %v576_v39 = vsel %vm18245_vm8, %v571_v40, %v575_v33  ;;  %16592 = vmatmul.mubr.msk.bf16.gmra.mrb[8].mxu0 %vm709_vm4, %v14904_v49  ;;  %v581_v45 = vrot.slane %v580_v38, 4  ;;  %v594_v2 = vor.u32 %v593_v15, %v590_v28  ;;  %v23682_v3 = vshrl.u32 %v18365_v22, 16 }
  0x7f   : > { %v599_v11 = vrot.slane %v23681_v59, 5  ;;  %v603_v60 = vrot.slane %v23684_v47, 4  ;;  %v609_v53 = vrot.slane %v607_v35, 5  ;;  %v7210_v63 = vshrl.u32 %v18368_v29, 16 }
  0x80   : > { %v7213_v33 = vshll.u32 %v18368_v29, 16  ;;  %v586_v19 = vsel %vm18245_vm8, %v581_v45, %v585_v56  ;;  %v595_v42 = vrot.slane %v594_v2, 4  ;;  %v7218_v55 = vrot.slane %v23682_v3, 5  ;;  %v18648_v45 = vld [vmem:[%s18170_s29 + $0x74] sm:$0x3] }
  0x81   : > { %v7219_v40 = vrot.slane %v23683_v17, 6  ;;  %v14163_v28 = vcombine.low %v576_v39, %v586_v19  ;;  %v604_v49 = vor.u32 %v603_v60, %v599_v11  ;;  %v7212_v38 = vrot.slane %v7210_v63, 5 }
  0x82   : > { %v7215_v15 = vrot.slane %v7213_v33, 6  ;;  %v600_v35 = vsel %vm18245_vm8, %v595_v42, %v599_v11  ;;  %v7224_v29 = vshrl.u32 %v18627_v8, 16  ;;  %v7227_v56 = vshll.u32 %v18627_v8, 16  ;;  %v18655_v42 = vld [vmem:[%s18170_s29 + $0xa8] sm:$0xf] }
  0x83   : > { %v7220_v59 = vor.u32 %v7219_v40, %v7218_v55  ;;  %16165 = vmatprep.mubr.msk.bf16.mxu1 %vm709_vm4, %v14163_v28  ;;  %v605_v2 = vrot.slane %v604_v49, 4  ;;  %v23686_v39 = vshll.u32 %v18380_v10, 16  ;;  %v23685_v60 = vshrl.u32 %v18380_v10, 16 }
  0x84   : > { %v7216_v3 = vor.u32 %v7215_v15, %v7212_v38  ;;  %v7226_v33 = vrot.slane %v7224_v29, 5  ;;  %v7229_v19 = vrot.slane %v7227_v56, 6  ;;  %v7233_v11 = vshrl.u32 %v18390_v26, 16  ;;  %v18663_v38 = vld [vmem:[%s18170_s29 + $0xac] sm:$0xf] }
  0x85   : > { %v7222_v63 = vrot.slane %v7220_v59, 4  ;;  %v610_v55 = vsel %vm18245_vm8, %v605_v2, %v609_v53  ;;  %v7236_v28 = vshll.u32 %v18390_v26, 16  ;;  %v7241_v49 = vrot.slane %v23685_v60, 5  ;;  %v18678_v60 = vld [vmem:[%s18170_s29 + $0xb4] sm:$0xf] }
  0x86   : > { %v7217_v40 = vrot.slane %v7216_v3, 4  ;;  %v14164_v15 = vcombine.low %v600_v35, %v610_v55  ;;  %v7230_v17 = vor.u32 %v7229_v19, %v7226_v33  ;;  %v7235_v29 = vrot.slane %v7233_v11, 5  ;;  %v270_v33 = vld [vmem:[%s18170_s29 + $0xb0] sm:$0x1] }
  0x87   : > { %v7242_v56 = vrot.slane %v23686_v39, 6  ;;  %v7238_v53 = vrot.slane %v7236_v28, 6  ;;  %v7247_v3 = vshrl.u32 %v18648_v45, 16  ;;  %v7250_v26 = vshll.u32 %v18648_v45, 16 }
  0x88   : > { %v7221_v47 = vsel %vm18447_vm11, %v7217_v40, %v7220_v59  ;;  %16166 = vmatmul.mubr.msk.bf16.gmra.mrb[24].mxu1 %vm709_vm4, %v14164_v15  ;;  %v7231_v35 = vsel %vm18447_vm11, %v7222_v63, %v7230_v17  ;;  %v612_v19 = vshrl.u32 %v18655_v42, 16  ;;  %v615_v11 = vshll.u32 %v18655_v42, 16  ;;  %v18682_v17 = vld [vmem:[%s18170_s29 + $0xb8] sm:$0xf] }
  0x89   : > { %v7243_v2 = vor.u32 %v7242_v56, %v7241_v49  ;;  %v14905_v55 = vcombine.low %v7221_v47, %v7231_v35  ;;  %v7239_v59 = vor.u32 %v7238_v53, %v7235_v29  ;;  %v7249_v40 = vrot.slane %v7247_v3, 5  ;;  %v271_v56 = vld [vmem:[%s18170_s29 + $0xbc] sm:$0x1] }
  0x8a   : > { %v7252_v28 = vrot.slane %v7250_v26, 6  ;;  %v614_v51 = vrot.slane %v612_v19, 4  ;;  %v617_v15 = vrot.slane %v615_v11, 5  ;;  %v23689_v57 = vshll.u32 %v18663_v38, 16  ;;  %v18692_v19 = vld [vmem:[%s18170_s29 + $0x7c] sm:$0xf] }
  0x8b   : > { %v7245_v39 = vrot.slane %v7243_v2, 4  ;;  %16595 = vmatprep.mubr.msk.bf16.mxu0 %vm709_vm4, %v14905_v55  ;;  %v7240_v63 = vrot.slane %v7239_v59, 4  ;;  %v23696_v47 = vshrl.u32 %v18663_v38, 16  ;;  %v631_v29 = vshll.u32 %v270_v33, 16  ;;  %23922 = vst [vmem:[#allocation30_spill] sm:$0xff] %v18692_v19 }
  0x8c   : > { %v7253_v49 = vor.u32 %v7252_v28, %v7249_v40  ;;  %v618_v53 = vor.u32 %v617_v15, %v614_v51  ;;  %v623_v3 = vrot.slane %v23689_v57, 5  ;;  %v636_v26 = vshrl.u32 %v18678_v60, 16  ;;  %v14825_v59 = vld [vmem:[%s18170_s29 + $0x78] sm:$0xe] }
  0x8d   : > { %v639_v35 = vshll.u32 %v18678_v60, 16  ;;  %v7244_v11 = vsel %vm18447_vm11, %v7240_v63, %v7243_v2  ;;  %v627_v33 = vrot.slane %v23696_v47, 4  ;;  %v633_v51 = vrot.slane %v631_v29, 5 }
  0x8e   : > { %v7254_v55 = vsel %vm18447_vm11, %v7245_v39, %v7253_v49  ;;  %v619_v28 = vrot.slane %v618_v53, 4  ;;  %v638_v15 = vrot.slane %v636_v26, 4  ;;  %v23694_v10 = vshll.u32 %v18682_v17, 16  ;;  %v18709_v53 = vld [vmem:[%s18170_s29 + $0x80] sm:$0x3] }
  0x8f   : > { %v14906_v40 = vcombine.low %v7244_v11, %v7254_v55  ;;  %v641_v57 = vrot.slane %v639_v35, 5  ;;  %v628_v54 = vor.u32 %v627_v33, %v623_v3  ;;  %v23695_v22 = vshrl.u32 %v18682_v17, 16  ;;  %v18716_v55 = vld [vmem:[%s18170_s29 + $0x88] sm:$0xf] }
  0x90   : > { %v655_v2 = vshll.u32 %v271_v56, 16  ;;  %v624_v39 = vsel %vm18245_vm8, %v619_v28, %v623_v3  ;;  %v23704_v49 = vshll.u32 %v18692_v19, 16  ;;  %v23699_v29 = vshrl.u32 %v18692_v19, 16  ;;  %23923 = vst [vmem:[#allocation31_spill] sm:$0xff] %v18716_v55 }
  0x91   : > { %16596 = vmatmul.mubr.msk.bf16.gmra.mrb[12].mxu0 %vm709_vm4, %v14906_v40  ;;  %v642_v63 = vor.u32 %v641_v57, %v638_v15  ;;  %v629_v26 = vrot.slane %v628_v54, 4  ;;  %v647_v35 = vrot.slane %v23694_v10, 5  ;;  %v651_v56 = vrot.slane %v23695_v22, 4  ;;  %v18726_v22 = vld [vmem:[%s18170_s29 + $0x84] sm:$0xe] }
  0x92   : > { %v657_v11 = vrot.slane %v655_v2, 5  ;;  %v7256_v57 = vshrl.u32 %v14825_v59, 16  ;;  %v7259_v33 = vshll.u32 %v14825_v59, 16  ;;  %v7264_v40 = vrot.slane %v23699_v29, 5  ;;  %23924 = vst [vmem:[#allocation32_spill] sm:$0xff] %v18726_v22 }
  0x93   : > { %v643_v3 = vrot.slane %v642_v63, 4  ;;  %v634_v28 = vsel %vm18245_vm8, %v629_v26, %v633_v51  ;;  %v652_v54 = vor.u32 %v651_v56, %v647_v35  ;;  %v7265_v15 = vrot.slane %v23704_v49, 6 }
  0x94   : > { %v7270_v10 = vshrl.u32 %v18709_v53, 16  ;;  %v14165_v2 = vcombine.low %v624_v39, %v634_v28  ;;  %v7258_v47 = vrot.slane %v7256_v57, 5  ;;  %v7261_v59 = vrot.slane %v7259_v33, 6 }
  0x95   : > { %v648_v63 = vsel %vm18245_vm8, %v643_v3, %v647_v35  ;;  %v653_v29 = vrot.slane %v652_v54, 4  ;;  %v7266_v1 = vor.u32 %v7265_v15, %v7264_v40  ;;  %v7273_v51 = vshll.u32 %v18709_v53, 16  ;;  %v14231_v3 = vld [vmem:[%s23647_s1 + $0x4] sm:$0x3] }
  0x96   : > { %v7272_v58 = vrot.slane %v7270_v10, 5  ;;  %16169 = vmatprep.mubr.msk.bf16.mxu1 %vm709_vm4, %v14165_v2  ;;  %v7262_v26 = vor.u32 %v7261_v59, %v7258_v47  ;;  %v23706_v56 = vshll.u32 %v18716_v55, 16  ;;  %v23705_v39 = vshrl.u32 %v18716_v55, 16  ;;  %v18748_v2 = vld [vmem:[%s18170_s29 + $0x94] sm:$0xf] }
  0x97   : > { %v658_v10 = vsel %vm18245_vm8, %v653_v29, %v657_v11  ;;  %v7268_v57 = vrot.slane %v7266_v1, 4  ;;  %v7275_v33 = vrot.slane %v7273_v51, 6  ;;  %v7279_v40 = vshrl.u32 %v18726_v22, 16  ;;  %23925 = vst [vmem:[#allocation33_spill] sm:$0xff] %v18748_v2  ;;  %v14827_v59 = vld [vmem:[%s18170_s29 + $0x90] sm:$0xe] }
  0x98   : > { %v14166_v47 = vcombine.low %v648_v63, %v658_v10  ;;  %v7263_v28 = vrot.slane %v7262_v26, 4  ;;  %v7282_v54 = vshll.u32 %v18726_v22, 16  ;;  %v7287_v15 = vrot.slane %v23705_v39, 5  ;;  %v18755_v51 = vld [vmem:[%s18170_s29 + $0x98] sm:$0x3] }
  0x99   : > { %v7276_v35 = vor.u32 %v7275_v33, %v7272_v58  ;;  %v7281_v49 = vrot.slane %v7279_v40, 5  ;;  %v7288_v29 = vrot.slane %v23706_v56, 6  ;;  %v7293_v11 = vshrl.u32 %v18731_v32, 16  ;;  %v17867_v58 = vld [vmem:[%s18170_s29] sm:$0xf] }
  0x9a   : > { %16170 = vmatmul.mubr.msk.bf16.gmra.mrb[28].mxu1 %vm709_vm4, %v14166_v47  ;;  %v7267_v63 = vsel %vm18447_vm11, %v7263_v28, %v7266_v1  ;;  %v7284_v26 = vrot.slane %v7282_v54, 6  ;;  %v7296_v10 = vshll.u32 %v18731_v32, 16  ;;  %v18763_v33 = vld [vmem:[%s18170_s29 + $0x4] sm:$0xf]  ;;  %v1480_v47 = vand.u32 %v14231_v3, %v18141_v4  ;;  %v17869_v28 = vld [vmem:[%s18170_s29 + $0xc] sm:$0xf] }
  0x9b   : > { %v14183_v40 = vcombine.low %v17867_v58, %v18763_v33  ;;  %v7277_v39 = vsel %vm18447_vm11, %v7268_v57, %v7276_v35  ;;  %v7289_v56 = vor.u32 %v7288_v29, %v7287_v15  ;;  %v7295_v22 = vrot.slane %v7293_v11, 5  ;;  %v18772_v54 = vld [vmem:[%s18170_s29 + $0x10] sm:$0xf] }
  0x9c   : > { %v14907_v31 = vcombine.low %v7267_v63, %v7277_v39  ;;  %v7285_v37 = vor.u32 %v7284_v26, %v7281_v49  ;;  %v7298_v1 = vrot.slane %v7296_v10, 6  ;;  %v14184_v27 = vcombine.low %v17869_v28, %v18772_v54  ;;  %16207 = vmatprep.subr.bf16.mxu1 %v1480_v47  ;;  %v14828_v39 = vld [vmem:[%s18170_s29 + $0x9c] sm:$0xe] }
  0x9d   : > { %16175 = vmatprep.mubr.msk.bf16.mxu1 %vm709_vm4, %v14183_v40  ;;  %v7291_v58 = vrot.slane %v7289_v56, 4  ;;  %v23713_v35 = vshll.u32 %v18748_v2, 16  ;;  %v23712_v57 = vshrl.u32 %v18748_v2, 16  ;;  %v7302_v3 = vshrl.u32 %v14827_v59, 16 }
  0x9e   : > { %16599 = vmatprep.mubr.msk.bf16.mxu0 %vm709_vm4, %v14907_v31  ;;  %v7286_v49 = vrot.slane %v7285_v37, 4  ;;  %v7299_v15 = vor.u32 %v7298_v1, %v7295_v22  ;;  %v7305_v29 = vshll.u32 %v14827_v59, 16  ;;  %v7316_v11 = vshrl.u32 %v18755_v51, 16  ;;  %v18793_v59 = vld [vmem:[%s18170_s29 + $0xa4] sm:$0x3] }
  0x9f   : > { %v7304_v63 = vrot.slane %v7302_v3, 5  ;;  %v7310_v26 = vrot.slane %v23712_v57, 5  ;;  %v7311_v10 = vrot.slane %v23713_v35, 6  ;;  %v7319_v40 = vshll.u32 %v18755_v51, 16 }
  0xa0   : > { %v7290_v28 = vsel %vm18447_vm11, %v7286_v49, %v7289_v56  ;;  %v7300_v31 = vsel %vm18447_vm11, %v7291_v58, %v7299_v15  ;;  %v7307_v37 = vrot.slane %v7305_v29, 6  ;;  %v7318_v22 = vrot.slane %v7316_v11, 5 }
  0xa1   : > { %v14908_v1 = vcombine.low %v7290_v28, %v7300_v31  ;;  %v7312_v3 = vor.u32 %v7311_v10, %v7310_v26  ;;  %v7321_v12 = vrot.slane %v7319_v40, 6  ;;  %v23719_v57 = vshll.u32 %v18776_v36, 16  ;;  %v18805_v26 = vld [vmem:[%s18170_s29 + $0xac] sm:$0xf]  ;;  %v17871_v40 = vld [vmem:[%s18170_s29 + $0x18] sm:$0xf] }
  0xa2   : > { %16176 = vmatmul.mubr.msk.bf16.vlgmr.msra.gmra.mrb[0].mxu1 %vm709_vm4, %v14184_v27  ;;  %v7308_v35 = vor.u32 %v7307_v37, %v7304_v63  ;;  %v23718_v5 = vshrl.u32 %v18776_v36, 16  ;;  %v7325_v18 = vshrl.u32 %v14828_v39, 16  ;;  %v7328_v56 = vshll.u32 %v14828_v39, 16  ;;  %23927 = vst [vmem:[#allocation35_spill] sm:$0xff] %v18805_v26  ;;  %v18812_v28 = vld [vmem:[%s18170_s29 + $0x1c] sm:$0xf] }
  0xa3   : > { %16600 = vmatmul.mubr.msk.bf16.gmra.mrb[16].mxu0 %vm709_vm4, %v14908_v1  ;;  %16208 = vmatpush3.bf16.msra.mxu1 %v1480_v47  ;;  %v7314_v58 = vrot.slane %v7312_v3, 4  ;;  %v7322_v49 = vor.u32 %v7321_v12, %v7318_v22  ;;  %v7334_v15 = vrot.slane %v23719_v57, 6  ;;  %v7339_v29 = vshrl.u32 %v18793_v59, 16  ;;  %v18817_v31 = vld [vmem:[%s18170_s29 + $0xb0] sm:$0x3] }
  0xa4   : > { %v7309_v27 = vrot.slane %v7308_v35, 4  ;;  %v7327_v11 = vrot.slane %v7325_v18, 5  ;;  %v7330_v63 = vrot.slane %v7328_v56, 6  ;;  %v7333_v39 = vrot.slane %v23718_v5, 5  ;;  %v14829_v18 = vld [vmem:[%s18170_s29 + $0xa8] sm:$0xe] }
  0xa5   : > { %v7323_v47 = vsel %vm18447_vm11, %v7314_v58, %v7322_v49  ;;  %v7341_v12 = vrot.slane %v7339_v29, 5  ;;  %v7342_v10 = vshll.u32 %v18793_v59, 16  ;;  %v14185_v35 = vcombine.low %v17871_v40, %v18812_v28  ;;  %v17873_v56 = vld [vmem:[%s18170_s29 + $0x24] sm:$0xf]  ;;  %v18823_v5 = vld [vmem:[%s18170_s29 + $0x28] sm:$0xf] }
  0xa6   : > { %v7313_v37 = vsel %vm18447_vm11, %v7309_v27, %v7312_v3  ;;  %v7331_v22 = vor.u32 %v7330_v63, %v7327_v11  ;;  %v7335_v1 = vor.u32 %v7334_v15, %v7333_v39  ;;  %v14186_v58 = vcombine.low %v17873_v56, %v18823_v5  ;;  %v18827_v49 = vld [vmem:[%s18170_s29 + $0xb8] sm:$0xf]  ;;  %v14830_v15 = vld [vmem:[%s18170_s29 + $0xb4] sm:$0xe] }
  0xa7   : > { %23928 = vst [vmem:[#allocation36_spill] sm:$0xff] %v18827_v49  ;;  %v14909_v29 = vcombine.low %v7313_v37, %v7323_v47  ;;  %v7344_v57 = vrot.slane %v7342_v10, 6  ;;  %16179 = vmatprep.mubr.msk.bf16.mxu1 %vm709_vm4, %v14185_v35  ;;  %v23725_v40 = vshll.u32 %v18805_v26, 16  ;;  %v23724_v52 = vshrl.u32 %v18805_v26, 16 }
  0xa8   : > { %v7332_v46 = vrot.slane %v7331_v22, 4  ;;  %v7337_v3 = vrot.slane %v7335_v1, 4  ;;  %v7348_v27 = vshrl.u32 %v14829_v18, 16  ;;  %v7351_v11 = vshll.u32 %v14829_v18, 16 }
  0xa9   : > { %16603 = vmatprep.mubr.msk.bf16.mxu0 %vm709_vm4, %v14909_v29  ;;  %v7345_v63 = vor.u32 %v7344_v57, %v7341_v12  ;;  %v7356_v39 = vrot.slane %v23724_v52, 5  ;;  %v7357_v47 = vrot.slane %v23725_v40, 6  ;;  %v7362_v10 = vshrl.u32 %v18817_v31, 16  ;;  %v18847_v52 = vld [vmem:[%s18170_s29 + $0xbc] sm:$0x3] }
  0xaa   : > { %v7336_v35 = vsel %vm18447_vm11, %v7332_v46, %v7335_v1  ;;  %16180 = vmatmul.mubr.msk.bf16.gmra.mrb[4].mxu1 %vm709_vm4, %v14186_v58  ;;  %v7350_v37 = vrot.slane %v7348_v27, 5  ;;  %v7353_v18 = vrot.slane %v7351_v11, 6  ;;  %v7365_v22 = vshll.u32 %v18817_v31, 16 }
  0xab   : > { %v7346_v57 = vsel %vm18447_vm11, %v7337_v3, %v7345_v63  ;;  %v7358_v12 = vor.u32 %v7357_v47, %v7356_v39  ;;  %v7364_v56 = vrot.slane %v7362_v10, 5  ;;  %v23728_v29 = vshll.u32 %v18827_v49, 16  ;;  %v18853_v63 = vld [vmem:[%s18170_s29 + $0xc4] sm:$0xf]  ;;  %v14831_v39 = vld [vmem:[%s18170_s29 + $0xc0] sm:$0xe] }
  0xac   : > { %v14910_v40 = vcombine.low %v7336_v35, %v7346_v57  ;;  %v7354_v46 = vor.u32 %v7353_v18, %v7350_v37  ;;  %v7367_v1 = vrot.slane %v7365_v22, 6  ;;  %v23731_v58 = vshrl.u32 %v18827_v49, 16  ;;  %23929 = vst [vmem:[#allocation37_spill] sm:$0xff] %v18853_v63  ;;  %v18861_v18 = vld [vmem:[%s18170_s29 + $0xc8] sm:$0x3] }
  0xad   : > { %v7360_v27 = vrot.slane %v7358_v12, 4  ;;  %v7371_v11 = vshrl.u32 %v14830_v15, 16  ;;  %v7374_v13 = vshll.u32 %v14830_v15, 16  ;;  %v7380_v3 = vrot.slane %v23728_v29, 6  ;;  %v17875_v29 = vld [vmem:[%s18170_s29 + $0x30] sm:$0xf] }
  0xae   : > { %16604 = vmatmul.mubr.msk.bf16.gmra.mrb[20].mxu0 %vm709_vm4, %v14910_v40  ;;  %v7355_v47 = vrot.slane %v7354_v46, 4  ;;  %v7368_v10 = vor.u32 %v7367_v1, %v7364_v56  ;;  %v7379_v35 = vrot.slane %v23731_v58, 5  ;;  %v7385_v37 = vshrl.u32 %v18847_v52, 16 }
  0xaf   : > { %v7373_v22 = vrot.slane %v7371_v11, 5  ;;  %v7376_v15 = vrot.slane %v7374_v13, 6  ;;  %v7388_v57 = vshll.u32 %v18847_v52, 16  ;;  %v14187_v40 = vcombine.low %v17875_v29, %v18866_v24  ;;  %v18880_v29 = vld [vmem:[%s18170_s29 + $0xd0] sm:$0xf] }
  0xb0   : > { %v7359_v56 = vsel %vm18447_vm11, %v7355_v47, %v7358_v12  ;;  %v7369_v46 = vsel %vm18447_vm11, %v7360_v27, %v7368_v10  ;;  %v7381_v1 = vor.u32 %v7380_v3, %v7379_v35  ;;  %v7387_v58 = vrot.slane %v7385_v37, 5  ;;  %23930 = vst [vmem:[#allocation38_spill] sm:$0xff] %v18880_v29 }
  0xb1   : > { %v14911_v11 = vcombine.low %v7359_v56, %v7369_v46  ;;  %v7377_v43 = vor.u32 %v7376_v15, %v7373_v22  ;;  %v7390_v13 = vrot.slane %v7388_v57, 6  ;;  %16183 = vmatprep.mubr.msk.bf16.mxu1 %vm709_vm4, %v14187_v40  ;;  %v14188_v23 = vcombine.low %v17877_v6, %v18876_v61  ;;  %v14832_v40 = vld [vmem:[%s18170_s29 + $0xcc] sm:$0xe]  ;;  %v18898_v56 = vld [vmem:[%s18170_s29 + $0xd4] sm:$0x3] }
  0xb2   : > { %v7383_v48 = vrot.slane %v7381_v1, 4  ;;  %v23743_v12 = vshll.u32 %v18853_v63, 16  ;;  %v23742_v27 = vshrl.u32 %v18853_v63, 16  ;;  %v7394_v3 = vshrl.u32 %v14831_v39, 16  ;;  %23931 = vst [vmem:[#allocation39_spill] sm:$0xff] %v18898_v56 }
  0xb3   : > { %16607 = vmatprep.mubr.msk.bf16.mxu0 %vm709_vm4, %v14911_v11  ;;  %v7378_v47 = vrot.slane %v7377_v43, 4  ;;  %v7391_v10 = vor.u32 %v7390_v13, %v7387_v58  ;;  %16184 = vmatmul.mubr.msk.bf16.gmra.mrb[8].mxu1 %vm709_vm4, %v14188_v23  ;;  %v7397_v35 = vshll.u32 %v14831_v39, 16  ;;  %v7408_v37 = vshrl.u32 %v18861_v18, 16 }
  0xb4   : > { %v7396_v6 = vrot.slane %v7394_v3, 5  ;;  %v7402_v22 = vrot.slane %v23742_v27, 5  ;;  %v7403_v15 = vrot.slane %v23743_v12, 6  ;;  %v7411_v57 = vshll.u32 %v18861_v18, 16 }
  0xb5   : > { %v7382_v43 = vsel %vm18447_vm11, %v7378_v47, %v7381_v1  ;;  %v7392_v23 = vsel %vm18447_vm11, %v7383_v48, %v7391_v10  ;;  %v7399_v58 = vrot.slane %v7397_v35, 6  ;;  %v7410_v39 = vrot.slane %v7408_v37, 5  ;;  %v14931_v1 = vld [vmem:[%s18170_s29 + $0x18] sm:$0xc]  ;;  %v14932_v37 = vld [vmem:[%s18170_s29 + $0x24] sm:$0xc] }
  0xb6   : > { %v14912_v46 = vcombine.low %v7382_v43, %v7392_v23  ;;  %v7404_v11 = vor.u32 %v7403_v15, %v7402_v22  ;;  %v7413_v13 = vrot.slane %v7411_v57, 6  ;;  %v23749_v3 = vshll.u32 %v18880_v29, 16 }
  0xb7   : > { %v7400_v27 = vor.u32 %v7399_v58, %v7396_v6  ;;  %v23748_v12 = vshrl.u32 %v18880_v29, 16  ;;  %v7417_v62 = vshrl.u32 %v14832_v40, 16  ;;  %v7420_v25 = vshll.u32 %v14832_v40, 16  ;;  %v17879_v58 = vld [vmem:[%s18170_s29 + $0x48] sm:$0xf] }
  0xb8   : > { %16608 = vmatmul.mubr.msk.bf16.gmra.mrb[24].mxu0 %vm709_vm4, %v14912_v46  ;;  %v7406_v48 = vrot.slane %v7404_v11, 4  ;;  %v7414_v47 = vor.u32 %v7413_v13, %v7410_v39  ;;  %v7426_v10 = vrot.slane %v23749_v3, 6  ;;  %v7431_v35 = vshrl.u32 %v18898_v56, 16  ;;  %v18915_v39 = vld [vmem:[%s18170_s29 + $0x4c] sm:$0xf] }
  0xb9   : > { %v7401_v6 = vrot.slane %v7400_v27, 4  ;;  %v7419_v22 = vrot.slane %v7417_v62, 5  ;;  %v7422_v15 = vrot.slane %v7420_v25, 6  ;;  %v7425_v57 = vrot.slane %v23748_v12, 5  ;;  %23932 = vst [vmem:[#allocation40_spill] sm:$0xff] %v18915_v39 }
  0xba   : > { %v7415_v40 = vsel %vm18447_vm11, %v7406_v48, %v7414_v47  ;;  %v7433_v43 = vrot.slane %v7431_v35, 5  ;;  %v7434_v23 = vshll.u32 %v18898_v56, 16  ;;  %v14189_v46 = vcombine.low %v17879_v58, %v18915_v39  ;;  %v17881_v48 = vld [vmem:[%s18170_s29 + $0x54] sm:$0xf]  ;;  %v18928_v47 = vld [vmem:[%s18170_s29 + $0x58] sm:$0xf] }
  0xbb   : > { %v23933_v62 = vmov 0  ;;  %v7405_v25 = vsel %vm18447_vm11, %v7401_v6, %v7404_v11  ;;  %v7423_v27 = vor.u32 %v7422_v15, %v7419_v22  ;;  %v7427_v13 = vor.u32 %v7426_v10, %v7425_v57  ;;  %v17884_v11 = vld [vmem:[%s18170_s29 + $0x20] sm:$0x3]  ;;  %v15028_v22 = vld [vmem:[%s23647_s1 + $0x1e] sm:$0x3] }
  0xbc   : > { %v23934_v62 = vsel %vm18920_vm13, 4294967295, %v23933_v62  ;;  %v14190_v35 = vcombine.low %v17881_v48, %v18928_v47  ;;  %v14913_v12 = vcombine.low %v7405_v25, %v7415_v40  ;;  %v7436_v3 = vrot.slane %v7434_v23, 6  ;;  %16187 = vmatprep.mubr.msk.bf16.mxu1 %vm709_vm4, %v14189_v46  ;;  %v14933_v23 = vld [vmem:[%s18170_s29 + $0x30] sm:$0xc]  ;;  %v14934_v48 = vld [vmem:[%s18170_s29 + $0x3c] sm:$0xc] }
  0xbd   : > { %23935 = vst [vmem:[#allocation41_spill] sm:$0xff] %v23934_v62  ;;  %v14947_v58 = vrot.slane %v14931_v1, 10  ;;  %v7783_v14 = vrot.slane %v17883_v20, 6  ;;  %v7424_v39 = vrot.slane %v7423_v27, 4  ;;  %v7429_v56 = vrot.slane %v7427_v13, 4 }
  0xbe   : > { %16188 = vmatmul.mubr.msk.bf16.gmra.mrb[12].mxu1 %vm709_vm4, %v14190_v35  ;;  %v7786_v10 = vrot.slane %v17884_v11, 6  ;;  %v14948_v6 = vrot.slane %v14932_v37, 10  ;;  %16611 = vmatprep.mubr.msk.bf16.mxu0 %vm709_vm4, %v14913_v12  ;;  %v7437_v1 = vor.u32 %v7436_v3, %v7433_v43  ;;  %v23936_v57 = vrot.slane %v18189_v21, 6  ;;  %v17885_v12 = vld [vmem:[%s18170_s29 + $0x2c] sm:$0x3] }
  0xbf   : > { %v7784_v20 = vsel %vm18920_vm13, %v14947_v58, %v7783_v14  ;;  %v7785_v15 = vrot.slane %v7783_v14, 4  ;;  %v7428_v37 = vsel %vm18447_vm11, %v7424_v39, %v7427_v13  ;;  %v7793_v3 = vrot.slane %v17885_v12, 6  ;;  %v17886_v43 = vld [vmem:[%s18170_s29 + $0x60] sm:$0xf]  ;;  %v18955_v27 = vld [vmem:[%s18170_s29 + $0x64] sm:$0xf] }
  0xc0   : > { %v7792_v40 = vrot.slane %v23936_v57, 4  ;;  %v23937_v46 = vmov %v23936_v57  ;;  %v14191_v14 = vcombine.low %v17886_v43, %v18955_v27  ;;  %v14935_v35 = vld [vmem:[%s18170_s29 + $0x48] sm:$0xc]  ;;  %v7438_v39 = vsel %vm18447_vm11, %v7429_v56, %v7437_v1  ;;  %v17888_v11 = vld [vmem:[%s18170_s29 + $0x6c] sm:$0xf] }
  0xc1   : > { %v18950_v25 = vsel %vm18920_vm13, %v14948_v6, %v23937_v46  ;;  %v7787_v13 = vsel %vm18920_vm13, %v7785_v15, %v7786_v10  ;;  %v18965_v58 = vand.u32 %v15028_v22, %v18141_v4  ;;  %v18969_v6 = vld [vmem:[%s18170_s29 + $0x70] sm:$0xf]  ;;  %v14914_v46 = vcombine.low %v7428_v37, %v7438_v39  ;;  %v17890_v22 = vld [vmem:[%s18170_s29 + $0x34] sm:$0xf]  ;;  %v17891_v15 = vld [vmem:[%s18170_s29 + $0x38] sm:$0x3] }
  0xc2   : > { %v14192_v57 = vcombine.low %v17888_v11, %v18969_v6  ;;  %v14964_v12 = vcombine.low %v7784_v20, %v7787_v13  ;;  %v7794_v43 = vsel %vm18920_vm13, %v7792_v40, %v7793_v3  ;;  %16191 = vmatprep.mubr.msk.bf16.mxu1 %vm709_vm4, %v14191_v14  ;;  %v14949_v56 = vrot.slane %v14933_v23, 10  ;;  %v14936_v20 = vld [vmem:[%s18170_s29 + $0x54] sm:$0xc]  ;;  %v17892_v40 = vld [vmem:[%s18170_s29 + $0x40] sm:$0xf] }
  0xc3   : > { %v14965_v10 = vcombine.low %v18950_v25, %v7794_v43  ;;  %16649 = vmatprep.subr.bf16.mxu0 %v18965_v58  ;;  %v7797_v1 = vrot.slane %v17890_v22, 6  ;;  %v7800_v37 = vrot.slane %v17891_v15, 6  ;;  %v14950_v39 = vrot.slane %v14934_v48, 10  ;;  %16612 = vmatmul.mubr.msk.bf16.gmra.mrb[28].mxu0 %vm709_vm4, %v14914_v46  ;;  %v17893_v14 = vld [vmem:[%s18170_s29 + $0x44] sm:$0x3] }
  0xc4   : > { %v7804_v3 = vrot.slane %v17892_v40, 6  ;;  %v7807_v13 = vrot.slane %v17893_v14, 6  ;;  %v17894_v23 = vld [vmem:[%s18170_s29 + $0x78] sm:$0xf]  ;;  %v18985_v25 = vld [vmem:[%s18170_s29 + $0x7c] sm:$0xf]  ;;  %16617 = vmatprep.mubr.msk.bf16.mxu0 %vm709_vm4, %v14964_v12 }
  0xc5   : > { %23938 = vst [vmem:[#allocation42_spill] sm:$0xff] %v18985_v25  ;;  %v14193_v11 = vcombine.low %v17894_v23, %v18985_v25  ;;  %v17896_v43 = vld [vmem:[%s18170_s29 + $0x84] sm:$0xf]  ;;  %v18990_v21 = vld [vmem:[%s18170_s29 + $0x88] sm:$0xf]  ;;  %v7798_v48 = vsel %vm18920_vm13, %v14949_v56, %v7797_v1  ;;  %v7799_v46 = vrot.slane %v7797_v1, 4 }
  0xc6   : > { %23939 = vst [vmem:[#allocation43_spill] sm:$0xff] %v18990_v21  ;;  %v14194_v22 = vcombine.low %v17896_v43, %v18990_v21  ;;  %v14951_v15 = vrot.slane %v14935_v35, 10  ;;  %v17898_v40 = vld [vmem:[%s18170_s29 + $0x4c] sm:$0xf]  ;;  %16192 = vmatmul.mubr.msk.bf16.gmra.mrb[16].mxu1 %vm709_vm4, %v14192_v57  ;;  %v19000_v23 = vsel %vm18920_vm13, %v14950_v39, %v7804_v3  ;;  %v7806_v9 = vrot.slane %v7804_v3, 4 }
  0xc7   : > { %v7811_v14 = vrot.slane %v17898_v40, 6  ;;  %v17899_v43 = vld [vmem:[%s18170_s29 + $0x50] sm:$0x3]  ;;  %v14952_v12 = vrot.slane %v14936_v20, 10  ;;  %v7801_v25 = vsel %vm18920_vm13, %v7799_v46, %v7800_v37  ;;  %16195 = vmatprep.mubr.msk.bf16.mxu1 %vm709_vm4, %v14193_v11  ;;  %v17900_v57 = vld [vmem:[%s18170_s29 + $0x58] sm:$0xf]  ;;  %v14195_v37 = vcombine.low %v18579_v30, %v18587_v44 }
  0xc8   : > { %v7814_v21 = vrot.slane %v17899_v43, 6  ;;  %v7818_v1 = vrot.slane %v17900_v57, 6  ;;  %v14937_v39 = vld [vmem:[%s18170_s29 + $0x60] sm:$0xc]  ;;  %v14966_v40 = vcombine.low %v7798_v48, %v7801_v25  ;;  %v19014_v3 = vsel %vm18920_vm13, %v7806_v9, %v7807_v13  ;;  %v14938_v11 = vld [vmem:[%s18170_s29 + $0x6c] sm:$0xc] }
  0xc9   : > { %v19008_v35 = vsel %vm18920_vm13, %v14951_v15, %v7811_v14  ;;  %v7813_v56 = vrot.slane %v7811_v14, 4  ;;  %v7821_v20 = vrot.slane %v18572_v34, 6  ;;  %v14967_v46 = vcombine.low %v19000_v23, %v19014_v3  ;;  %v17901_v48 = vld [vmem:[%s18170_s29 + $0x64] sm:$0xf]  ;;  %v14939_v57 = vld [vmem:[%s18170_s29 + $0x78] sm:$0xc] }
  0xca   : > { %v19028_v25 = vsel %vm18920_vm13, %v14952_v12, %v7818_v1  ;;  %v7820_v9 = vrot.slane %v7818_v1, 4  ;;  %v14196_v30 = vcombine.low %v18594_v0, %v18607_v41  ;;  %v14953_v13 = vrot.slane %v14937_v39, 10  ;;  %v17902_v12 = vld [vmem:[%s18170_s29 + $0x70] sm:$0xf] }
  0xcb   : > { %v19024_v15 = vsel %vm18920_vm13, %v7813_v56, %v7814_v21  ;;  %v7825_v14 = vrot.slane %v17901_v48, 6  ;;  %v7828_v21 = vrot.slane %v18627_v8, 6  ;;  %v14954_v43 = vrot.slane %v14938_v11, 10  ;;  %16618 = vmatmul.mubr.msk.bf16.vlgmr.msra.gmra.mrb[0].mxu0 %vm709_vm4, %v14965_v10 }
  0xcc   : > { %v14968_v34 = vcombine.low %v19008_v35, %v19024_v15  ;;  %v19037_v23 = vsel %vm18920_vm13, %v7820_v9, %v7821_v20  ;;  %v7832_v56 = vrot.slane %v17902_v12, 6  ;;  %v7835_v3 = vrot.slane %v18648_v45, 6  ;;  %v14940_v20 = vld [vmem:[%s18170_s29 + $0x84] sm:$0xc]  ;;  %16650 = vmatpush3.bf16.msra.mxu0 %v18965_v58  ;;  %16621 = vmatprep.mubr.msk.bf16.mxu0 %vm709_vm4, %v14966_v40 }
  0xcd   : > { %v14969_v35 = vcombine.low %v19028_v25, %v19037_v23  ;;  %v19047_v1 = vsel %vm18920_vm13, %v14953_v13, %v7825_v14  ;;  %v7827_v39 = vrot.slane %v7825_v14, 4  ;;  %v14197_v11 = vcombine.low %v18655_v42, %v18663_v38  ;;  %v19069_v13 = vld [vmem:[%s18170_s29] sm:$0xe]  ;;  %v14944_v42 = vld [vmem:[%s18170_s29 + $0xb4] sm:$0xc] }
  0xce   : > { %v19055_v8 = vsel %vm18920_vm13, %v14954_v43, %v7832_v56  ;;  %v7834_v10 = vrot.slane %v7832_v56, 4  ;;  %16196 = vmatmul.mubr.msk.bf16.gmra.mrb[20].mxu1 %vm709_vm4, %v14194_v22  ;;  %v14955_v58 = vrot.slane %v14939_v57, 10  ;;  %v7839_v40 = vrot.slane %v18692_v19, 6  ;;  %v19083_v43 = vld [vmem:[%s18170_s29 + $0xc] sm:$0xe] }
  0xcf   : > { %v19064_v45 = vsel %vm18920_vm13, %v7827_v39, %v7828_v21  ;;  %v7842_v9 = vrot.slane %v18709_v53, 6  ;;  %16199 = vmatprep.mubr.msk.bf16.mxu1 %vm709_vm4, %v14195_v37  ;;  %v14956_v48 = vrot.slane %v14940_v20, 10  ;;  %v7846_v14 = vrot.slane %v18716_v55, 6  ;;  %v14264_v21 = vld [vmem:[%s23647_s1 + $0x6] sm:$0x3] }
  0xd0   : > { %v19076_v22 = vsel %vm18920_vm13, %v7834_v10, %v7835_v3  ;;  %v19089_v37 = vsel %vm18920_vm13, %v14955_v58, %v7839_v40  ;;  %v7841_v12 = vrot.slane %v7839_v40, 4  ;;  %v7849_v56 = vrot.slane %v18731_v32, 6  ;;  %v14941_v57 = vld [vmem:[%s18170_s29 + $0x90] sm:$0xc]  ;;  %v14942_v39 = vld [vmem:[%s18170_s29 + $0x9c] sm:$0xc] }
  0xd1   : > { %v19096_v3 = vsel %vm18920_vm13, %v14956_v48, %v7846_v14  ;;  %v7848_v20 = vrot.slane %v7846_v14, 4  ;;  %v14215_v10 = vrot.slane %v19069_v13, 9  ;;  %v1271_v15 = vrot.slane %v18763_v33, 5  ;;  %v1675_v19 = vld [vmem:[%s18170_s29 + $0x8] sm:$0x3] }
  0xd2   : > { %v19102_v53 = vsel %vm18920_vm13, %v7841_v12, %v7842_v9  ;;  %v19105_v58 = vand.u32 %v14264_v21, %v18141_v4  ;;  %v14216_v32 = vrot.slane %v19083_v43, 9  ;;  %v1278_v40 = vrot.slane %v18772_v54, 5 }
  0xd3   : > { %v19113_v14 = vsel %vm18920_vm13, %v7848_v20, %v7849_v56  ;;  %v19117_v33 = vsel %vm18182_vm5, %v14215_v10, %v1271_v15  ;;  %v1273_v9 = vrot.slane %v1271_v15, 4  ;;  %16622 = vmatmul.mubr.msk.bf16.gmra.mrb[4].mxu0 %vm709_vm4, %v14967_v46  ;;  %v14957_v56 = vrot.slane %v14941_v57, 10  ;;  %v19128_v20 = vld [vmem:[%s18170_s29 + $0x18] sm:$0xe] }
  0xd4   : > { %16241 = vmatprep.subr.bf16.mxu1 %v19105_v58  ;;  %v19125_v54 = vsel %vm18182_vm5, %v14216_v32, %v1278_v40  ;;  %v1280_v12 = vrot.slane %v1278_v40, 4  ;;  %16625 = vmatprep.mubr.msk.bf16.mxu0 %vm709_vm4, %v14968_v34  ;;  %v23940_v15 = vrot.slane %v18218_v50, 5  ;;  %v7853_v10 = vrot.slane %v18748_v2, 6 }
  0xd5   : > { %v7856_v21 = vrot.slane %v18755_v51, 6  ;;  %v14958_v48 = vrot.slane %v14942_v39, 10  ;;  %v23941_v34 = vrot.slane %v18233_v7, 5  ;;  %v7860_v32 = vrot.slane %v18776_v36, 6  ;;  %v19151_v39 = vld [vmem:[%s18170_s29 + $0x24] sm:$0xe] }
  0xd6   : > { %v1275_v46 = vsel %vm18182_vm5, %v1273_v9, %v23940_v15  ;;  %16200 = vmatmul.mubr.msk.bf16.gmra.mrb[24].mxu1 %vm709_vm4, %v14196_v30  ;;  %v7863_v51 = vrot.slane %v18793_v59, 6  ;;  %v19158_v7 = vsel %vm18920_vm13, %v14957_v56, %v7853_v10  ;;  %v7855_v30 = vrot.slane %v7853_v10, 4  ;;  %v14943_v15 = vld [vmem:[%s18170_s29 + $0xa8] sm:$0xc] }
  0xd7   : > { %v14232_v57 = vcombine.low %v19117_v33, %v1275_v46  ;;  %v19146_v50 = vsel %vm18182_vm5, %v1280_v12, %v23941_v34  ;;  %16203 = vmatprep.mubr.msk.bf16.mxu1 %vm709_vm4, %v14197_v11  ;;  %v14217_v40 = vrot.slane %v19128_v20, 9  ;;  %v19163_v33 = vsel %vm18920_vm13, %v14958_v48, %v7860_v32  ;;  %v17903_v12 = vld [vmem:[%s18170_s29 + $0x20] sm:$0x1]  ;;  %v17904_v34 = vld [vmem:[%s18170_s29 + $0x2c] sm:$0x1] }
  0xd8   : > { %v7862_v59 = vrot.slane %v7860_v32, 4  ;;  %v1285_v9 = vrot.slane %v18812_v28, 5  ;;  %v1288_v11 = vrot.slane %v17903_v12, 5  ;;  %v19170_v46 = vsel %vm18920_vm13, %v7855_v30, %v7856_v21  ;;  %v19193_v48 = vld [vmem:[%s18170_s29 + $0x30] sm:$0xe] }
  0xd9   : > { %v14218_v56 = vrot.slane %v19151_v39, 9  ;;  %v1292_v10 = vrot.slane %v18823_v5, 5  ;;  %v1295_v0 = vrot.slane %v17904_v34, 5  ;;  %v14959_v34 = vrot.slane %v14943_v15, 10  ;;  %v19273_v30 = vld [vmem:[%s18170_s29 + $0x54] sm:$0xe] }
  0xda   : > { %v19180_v28 = vsel %vm18920_vm13, %v7862_v59, %v7863_v51  ;;  %v19184_v32 = vsel %vm18182_vm5, %v14217_v40, %v1285_v9  ;;  %v1287_v21 = vrot.slane %v1285_v9, 4  ;;  %v7867_v40 = vrot.slane %v18805_v26, 6  ;;  %v17916_v26 = vld [vmem:[%s18170_s29 + $0xa4] sm:$0x1] }
  0xdb   : > { %v19190_v5 = vsel %vm18182_vm5, %v14218_v56, %v1292_v10  ;;  %v1294_v12 = vrot.slane %v1292_v10, 4  ;;  %16626 = vmatmul.mubr.msk.bf16.gmra.mrb[8].mxu0 %vm709_vm4, %v14969_v35  ;;  %v7870_v59 = vrot.slane %v18817_v31, 6  ;;  %v14960_v9 = vrot.slane %v14944_v42, 10  ;;  %v19218_v31 = vld [vmem:[%s18170_s29 + $0x3c] sm:$0xe] }
  0xdc   : > { %v19201_v51 = vsel %vm18182_vm5, %v1287_v21, %v1288_v11  ;;  %v23942_v56 = vcombine.low %v19047_v1, %v19064_v45  ;;  %v7874_v35 = vrot.slane %v18827_v49, 6  ;;  %v7877_v11 = vrot.slane %v18847_v52, 6  ;;  %v1233_v49 = vld [vmem:[%s18170_s29 + $0xb4] sm:$0xe] }
  0xdd   : > { %v14234_v25 = vcombine.low %v19184_v32, %v19201_v51  ;;  %v19213_v23 = vsel %vm18182_vm5, %v1294_v12, %v1295_v0  ;;  %v23943_v1 = vcombine.low %v18678_v60, %v18682_v17  ;;  %v19228_v42 = vsel %vm18920_vm13, %v14959_v34, %v7867_v40  ;;  %v17905_v32 = vld [vmem:[%s18170_s29 + $0x38] sm:$0x1]  ;;  %v14945_v12 = vld [vmem:[%s18170_s29 + $0xc0] sm:$0xc] }
  0xde   : > { %16629 = vmatprep.mubr.msk.bf16.mxu0 %vm709_vm4, %v23942_v56  ;;  %v7869_v0 = vrot.slane %v7867_v40, 4  ;;  %v14219_v15 = vrot.slane %v19193_v48, 9  ;;  %v19234_v52 = vsel %vm18920_vm13, %v14960_v9, %v7874_v35  ;;  %v7876_v60 = vrot.slane %v7874_v35, 4  ;;  %v14946_v9 = vld [vmem:[%s18170_s29 + $0xcc] sm:$0xc] }
  0xdf   : > { %16204 = vmatmul.mubr.msk.bf16.gmra.mrb[28].mxu1 %vm709_vm4, %v23943_v1  ;;  %v1299_v10 = vrot.slane %v18866_v24, 5  ;;  %v1302_v21 = vrot.slane %v17905_v32, 5  ;;  %v14220_v51 = vrot.slane %v19218_v31, 9  ;;  %v1306_v40 = vrot.slane %v18876_v61, 5 }
  0xe0   : > { %16209 = vmatprep.mubr.msk.bf16.mxu1 %vm709_vm4, %v14232_v57  ;;  %v19241_v34 = vsel %vm18920_vm13, %v7869_v0, %v7870_v59  ;;  %v17906_v57 = vld [vmem:[%s18170_s29 + $0x44] sm:$0x1]  ;;  %v19251_v24 = vsel %vm18920_vm13, %v7876_v60, %v7877_v11  ;;  %v19258_v0 = vld [vmem:[%s18170_s29 + $0x48] sm:$0xe]  ;;  %v14961_v35 = vrot.slane %v14945_v12, 10  ;;  %v7884_v60 = vrot.slane %v18861_v18, 6 }
  0xe1   : > { %v1309_v56 = vrot.slane %v17906_v57, 5  ;;  %v19255_v1 = vsel %vm18182_vm5, %v14219_v15, %v1299_v10  ;;  %v1301_v59 = vrot.slane %v1299_v10, 4  ;;  %v19264_v32 = vsel %vm18182_vm5, %v14220_v51, %v1306_v40  ;;  %v23945_v18 = vld [vmem:[#allocation39_spill] sm:$0xff] }
  0xe2   : > { %v1308_v57 = vrot.slane %v1306_v40, 4  ;;  %v7881_v15 = vrot.slane %v18853_v63, 6  ;;  %v14962_v10 = vrot.slane %v14946_v9, 10  ;;  %v23944_v61 = vcombine.low %v19055_v8, %v19076_v22  ;;  %v19288_v9 = vld [vmem:[%s18170_s29 + $0x60] sm:$0xe] }
  0xe3   : > { %v19268_v11 = vsel %vm18182_vm5, %v1301_v59, %v1302_v21  ;;  %v7888_v51 = vrot.slane %v18880_v29, 6  ;;  %v7891_v40 = vrot.slane %v23945_v18, 6  ;;  %v23946_v8 = vcombine.low %v19089_v37, %v19102_v53  ;;  %v19315_v12 = vld [vmem:[%s18170_s29 + $0x6c] sm:$0xe] }
  0xe4   : > { %16630 = vmatmul.mubr.msk.bf16.gmra.mrb[12].mxu0 %vm709_vm4, %v23944_v61  ;;  %v19283_v21 = vsel %vm18182_vm5, %v1308_v57, %v1309_v56  ;;  %v19298_v59 = vsel %vm18920_vm13, %v14961_v35, %v7881_v15  ;;  %v7883_v56 = vrot.slane %v7881_v15, 4  ;;  %v14221_v61 = vrot.slane %v19258_v0, 9  ;;  %v15109_v57 = vld [vmem:[%s23647_s1 + $0x20] sm:$0x3]  ;;  %v23948_v35 = vld [vmem:[#allocation40_spill] sm:$0xff] }
  0xe5   : > { %16633 = vmatprep.mubr.msk.bf16.mxu0 %vm709_vm4, %v23946_v8  ;;  %v23947_v53 = vcombine.low %v19125_v54, %v19146_v50  ;;  %v19310_v37 = vsel %vm18920_vm13, %v14962_v10, %v7888_v51  ;;  %v7890_v18 = vrot.slane %v7888_v51, 4  ;;  %v1313_v8 = vrot.slane %v23948_v35, 5  ;;  %v17907_v15 = vld [vmem:[%s18170_s29 + $0x50] sm:$0x1]  ;;  %v17908_v51 = vld [vmem:[%s18170_s29 + $0x5c] sm:$0x1] }
  0xe6   : > { %v1316_v22 = vrot.slane %v17907_v15, 5  ;;  %v19321_v54 = vsel %vm18920_vm13, %v7883_v56, %v7884_v60  ;;  %v14222_v50 = vrot.slane %v19273_v30, 9  ;;  %v1320_v10 = vrot.slane %v18928_v47, 5  ;;  %v19337_v56 = vld [vmem:[%s18170_s29 + $0x78] sm:$0xe] }
  0xe7   : > { %16210 = vmatmul.mubr.msk.bf16.vlgmr.msra.gmra.mrb[0].mxu1 %vm709_vm4, %v23947_v53  ;;  %v1323_v53 = vrot.slane %v17908_v51, 5  ;;  %v1315_v60 = vrot.slane %v1313_v8, 4  ;;  %v14223_v35 = vrot.slane %v19288_v9, 9  ;;  %v19356_v15 = vand.u32 %v15109_v57, %v18141_v4 }
  0xe8   : > { %16242 = vmatpush3.bf16.msra.mxu1 %v19105_v58  ;;  %16213 = vmatprep.mubr.msk.bf16.mxu1 %vm709_vm4, %v14234_v25  ;;  %v19330_v58 = vsel %vm18920_vm13, %v7890_v18, %v7891_v40  ;;  %v19334_v25 = vsel %vm18182_vm5, %v14221_v61, %v1313_v8  ;;  %v19343_v47 = vsel %vm18182_vm5, %v14222_v50, %v1320_v10  ;;  %v1322_v51 = vrot.slane %v1320_v10, 4  ;;  %v19347_v40 = vld [vmem:[%s18170_s29 + $0x84] sm:$0xe]  ;;  %v17909_v8 = vld [vmem:[%s18170_s29 + $0x68] sm:$0x1] }
  0xe9   : > { %v19351_v61 = vsel %vm18182_vm5, %v1315_v60, %v1316_v22  ;;  %v1327_v18 = vrot.slane %v18955_v27, 5  ;;  %v1330_v45 = vrot.slane %v17909_v8, 5  ;;  %v14224_v29 = vrot.slane %v19315_v12, 9  ;;  %16683 = vmatprep.subr.bf16.mxu0 %v19356_v15  ;;  %v19400_v50 = vld [vmem:[%s18170_s29 + $0x90] sm:$0xe] }
  0xea   : > { %v19362_v10 = vsel %vm18182_vm5, %v1322_v51, %v1323_v53  ;;  %v1334_v22 = vrot.slane %v18969_v6, 5  ;;  %v23949_v27 = vcombine.low %v19096_v3, %v19113_v14  ;;  %v17910_v51 = vld [vmem:[%s18170_s29 + $0x74] sm:$0x1]  ;;  %v23950_v6 = vcombine.low %v19158_v7, %v19170_v46  ;;  %v17911_v46 = vld [vmem:[%s18170_s29 + $0x80] sm:$0x1] }
  0xeb   : > { %v19374_v60 = vsel %vm18182_vm5, %v14223_v35, %v1327_v18  ;;  %v1329_v53 = vrot.slane %v1327_v18, 4  ;;  %v1337_v8 = vrot.slane %v17910_v51, 5  ;;  %v14225_v35 = vrot.slane %v19337_v56, 9 }
  0xec   : > { %16634 = vmatmul.mubr.msk.bf16.gmra.mrb[16].mxu0 %vm709_vm4, %v23949_v27  ;;  %v19384_v3 = vsel %vm18182_vm5, %v14224_v29, %v1334_v22  ;;  %v1336_v14 = vrot.slane %v1334_v22, 4  ;;  %v23951_v27 = vld [vmem:[#allocation42_spill] sm:$0xff]  ;;  %v23952_v18 = vcombine.low %v19190_v5, %v19213_v23  ;;  %v1344_v51 = vrot.slane %v17911_v46, 5  ;;  %v17914_v5 = vld [vmem:[%s18170_s29 + $0x98] sm:$0x1] }
  0xed   : > { %16637 = vmatprep.mubr.msk.bf16.mxu0 %vm709_vm4, %v23950_v6  ;;  %v1341_v57 = vrot.slane %v23951_v27, 5  ;;  %v19394_v7 = vsel %vm18182_vm5, %v1329_v53, %v1330_v45  ;;  %v14226_v29 = vrot.slane %v19347_v40, 9  ;;  %v23953_v6 = vld [vmem:[#allocation43_spill] sm:$0xff]  ;;  %v23954_v27 = vcombine.low %v19255_v1, %v19268_v11 }
  0xee   : > { %v1348_v22 = vrot.slane %v23953_v6, 5  ;;  %v19410_v23 = vsel %vm18182_vm5, %v1336_v14, %v1337_v8  ;;  %v17912_v6 = vld [vmem:[%s18170_s29 + $0x8c] sm:$0x1]  ;;  %v1358_v63 = vrot.slane %v17914_v5, 5  ;;  %v1232_v1 = vld [vmem:[%s18170_s29 + $0xa8] sm:$0xe] }
  0xef   : > { %16214 = vmatmul.mubr.msk.bf16.gmra.mrb[4].mxu1 %vm709_vm4, %v23952_v18  ;;  %v19414_v45 = vsel %vm18182_vm5, %v14225_v35, %v1341_v57  ;;  %v1343_v53 = vrot.slane %v1341_v57, 4  ;;  %v19417_v18 = vld [vmem:[%s18170_s29 + $0x9c] sm:$0xe]  ;;  %v1351_v8 = vrot.slane %v17912_v6, 5  ;;  %v14227_v57 = vrot.slane %v19400_v50, 9 }
  0xf0   : > { %16217 = vmatprep.mubr.msk.bf16.mxu1 %vm709_vm4, %v23954_v27  ;;  %v19423_v11 = vsel %vm18182_vm5, %v14226_v29, %v1348_v22  ;;  %v1350_v46 = vrot.slane %v1348_v22, 4  ;;  %v17913_v35 = vld [vmem:[%s18170_s29 + $0x94] sm:$0xf]  ;;  %v1365_v36 = vrot.slane %v17916_v26, 5  ;;  %v14229_v2 = vrot.slane %v1232_v1, 9 }
  0xf1   : > { %v19428_v14 = vsel %vm18182_vm5, %v1343_v53, %v1344_v51  ;;  %v1355_v27 = vrot.slane %v17913_v35, 5  ;;  %v14228_v51 = vrot.slane %v19417_v18, 9  ;;  %v17915_v53 = vld [vmem:[%s18170_s29 + $0xa0] sm:$0xf]  ;;  %v17917_v35 = vld [vmem:[%s18170_s29 + $0xac] sm:$0xf]  ;;  %v23957_v1 = vcombine.low %v19264_v32, %v19283_v21 }
  0xf2   : > { %v19438_v22 = vsel %vm18182_vm5, %v1350_v46, %v1351_v8  ;;  %v1362_v6 = vrot.slane %v17915_v53, 5  ;;  %v23955_v46 = vcombine.low %v19163_v33, %v19180_v28  ;;  %v1369_v55 = vrot.slane %v17917_v35, 5  ;;  %v17918_v33 = vld [vmem:[%s18170_s29 + $0xb0] sm:$0x1] }
  0xf3   : > { %v19447_v5 = vsel %vm18182_vm5, %v14227_v57, %v1355_v27  ;;  %v1357_v29 = vrot.slane %v1355_v27, 4  ;;  %v23956_v57 = vcombine.low %v19228_v42, %v19241_v34  ;;  %v1372_v28 = vrot.slane %v17918_v33, 5 }
  0xf4   : > { %16638 = vmatmul.mubr.msk.bf16.gmra.mrb[20].mxu0 %vm709_vm4, %v23955_v46  ;;  %v19456_v8 = vsel %vm18182_vm5, %v14228_v51, %v1362_v6  ;;  %v1364_v53 = vrot.slane %v1362_v6, 4  ;;  %v14230_v27 = vrot.slane %v1233_v49, 9  ;;  %v17919_v51 = vld [vmem:[%s18170_s29 + $0xb8] sm:$0xf]  ;;  %v23958_v49 = vcombine.low %v19334_v25, %v19351_v61  ;;  %v17920_v6 = vld [vmem:[%s18170_s29 + $0xbc] sm:$0x1] }
  0xf5   : > { %16641 = vmatprep.mubr.msk.bf16.mxu0 %vm709_vm4, %v23956_v57  ;;  %v19466_v26 = vsel %vm18182_vm5, %v1357_v29, %v1358_v63  ;;  %v1376_v46 = vrot.slane %v17919_v51, 5  ;;  %v19482_v63 = vsel %vm18182_vm5, %v14229_v2, %v1369_v55  ;;  %v1371_v29 = vrot.slane %v1369_v55, 4  ;;  %v14313_v55 = vld [vmem:[%s23647_s1 + $0x8] sm:$0x3]  ;;  %v23960_v57 = vld [vmem:[#allocation10_spill] sm:$0xff] }
  0xf6   : > { %v19478_v34 = vsel %vm18182_vm5, %v1364_v53, %v1365_v36  ;;  %v1379_v35 = vrot.slane %v17920_v6, 5  ;;  %v1695_v25 = vshrl.u32 %v19069_v13, 16  ;;  %v1698_v61 = vshll.u32 %v19069_v13, 16  ;;  %v23959_v53 = vld [vmem:[#allocation9_spill] sm:$0xff] }
  0xf7   : > { %16218 = vmatmul.mubr.msk.bf16.gmra.mrb[8].mxu1 %vm709_vm4, %v23957_v1  ;;  %v19492_v21 = vsel %vm18182_vm5, %v14230_v27, %v1376_v46  ;;  %v1378_v36 = vrot.slane %v1376_v46, 4  ;;  %v19500_v2 = vsel %vm18182_vm5, %v1371_v29, %v1372_v28  ;;  %v1705_v33 = vor.u32 %v23960_v57, %v23959_v53 }
  0xf8   : > { %16221 = vmatprep.mubr.msk.bf16.mxu1 %vm709_vm4, %v23958_v49  ;;  %v1709_v46 = vshrl.u32 %v1675_v19, 16  ;;  %v1712_v1 = vshll.u32 %v1675_v19, 16  ;;  %v1676_v49 = vld [vmem:[%s18170_s29 + $0x14] sm:$0x3]  ;;  %v1697_v29 = vrot.slane %v1695_v25, 5  ;;  %v1700_v6 = vrot.slane %v1698_v61, 6 }
  0xf9   : > { %v19510_v51 = vsel %vm18182_vm5, %v1378_v36, %v1379_v35  ;;  %v1707_v13 = vrot.slane %v1705_v33, 4  ;;  %v19516_v53 = vand.u32 %v14313_v55, %v18141_v4  ;;  %v1718_v57 = vshrl.u32 %v19083_v43, 16 }
  0xfa   : > { %v1711_v32 = vrot.slane %v1709_v46, 5  ;;  %v1714_v42 = vrot.slane %v1712_v1, 6  ;;  %v23961_v36 = vcombine.low %v19234_v52, %v19251_v24  ;;  %v1701_v19 = vor.u32 %v1700_v6, %v1697_v29  ;;  %v1677_v1 = vld [vmem:[%s18170_s29 + $0x20] sm:$0x3] }
  0xfb   : > { %v1721_v35 = vshll.u32 %v19083_v43, 16  ;;  %v1732_v28 = vshrl.u32 %v1676_v49, 16  ;;  %v1735_v25 = vshll.u32 %v1676_v49, 16  ;;  %v23962_v61 = vcombine.low %v19298_v59, %v19321_v54  ;;  %16275 = vmatprep.subr.bf16.mxu1 %v19516_v53 }
  0xfc   : > { %16642 = vmatmul.mubr.msk.bf16.gmra.mrb[24].mxu0 %vm709_vm4, %v23961_v36  ;;  %v1715_v46 = vor.u32 %v1714_v42, %v1711_v32  ;;  %v1720_v55 = vrot.slane %v1718_v57, 5  ;;  %v1741_v27 = vshrl.u32 %v19128_v20, 16  ;;  %v1744_v52 = vshll.u32 %v19128_v20, 16  ;;  %v23966_v20 = vld [vmem:[#allocation15_spill] sm:$0xff] }
  0xfd   : > { %16645 = vmatprep.mubr.msk.bf16.mxu0 %vm709_vm4, %v23962_v61  ;;  %v23963_v43 = vcombine.low %v19343_v47, %v19362_v10  ;;  %v1702_v24 = vrot.slane %v1701_v19, 4  ;;  %v1723_v49 = vrot.slane %v1721_v35, 6  ;;  %v1734_v59 = vrot.slane %v1732_v28, 5 }
  0xfe   : > { %v1737_v54 = vrot.slane %v1735_v25, 6  ;;  %v23964_v42 = vcombine.low %v19374_v60, %v19394_v7  ;;  %v1716_v29 = vsel %vm18447_vm11, %v1707_v13, %v1715_v46  ;;  %v1743_v6 = vrot.slane %v1741_v27, 5  ;;  %v17801_v60 = vld [vmem:[%s18170_s29 + $0x24] sm:$0xff]  }
  0xff   : > { %16222 = vmatmul.mubr.msk.bf16.gmra.mrb[12].mxu1 %vm709_vm4, %v23963_v43  ;;  %v1746_v57 = vrot.slane %v1744_v52, 6  ;;  %v23967_v36 = vshrl.u32 %v23966_v20, 16  ;;  %v1706_v47 = vsel %vm18447_vm11, %v1702_v24, %v1705_v33  ;;  %v1724_v10 = vor.u32 %v1723_v49, %v1720_v55  ;;  %v23969_v46 = vld [vmem:[#allocation14_spill] sm:$0xff] }
 0x100   : > { %16225 = vmatprep.mubr.msk.bf16.mxu1 %vm709_vm4, %v23964_v42  ;;  %v1738_v28 = vor.u32 %v1737_v54, %v1734_v59  ;;  %v23968_v19 = vshll.u32 %v23966_v20, 16  ;;  %v19549_v7 = vcombine.low %v1706_v47, %v1716_v29  ;;  %v1755_v43 = vshrl.u32 %v1677_v1, 16  ;;  %v1678_v59 = vld [vmem:[%s18170_s29 + $0x2c] sm:$0x3]  ;;  %v23972_v20 = vld [vmem:[#allocation16_spill] sm:$0xff] }
 0x101   : > { %v1749_v61 = vrot.slane %v23967_v36, 5  ;;  %v1747_v25 = vor.u32 %v1746_v57, %v1743_v6  ;;  %v1758_v13 = vshll.u32 %v1677_v1, 16  ;;  %v1725_v27 = vrot.slane %v1724_v10, 4 }
 0x102   : > { %v1750_v35 = vrot.slane %v23968_v19, 6  ;;  %v23970_v52 = vrot.slane %v23969_v46, 4  ;;  %v1764_v33 = vshrl.u32 %v19151_v39, 16  ;;  %v1757_v24 = vrot.slane %v1755_v43, 5 }
 0x103   : > { %v1748_v55 = vrot.slane %v1747_v25, 4  ;;  %v1760_v49 = vrot.slane %v1758_v13, 6  ;;  %v1767_v54 = vshll.u32 %v19151_v39, 16  ;;  %v23971_v29 = vcombine.low %v19310_v37, %v19330_v58 }
 0x104   : > { %v1739_v42 = vsel %vm18447_vm11, %v23970_v52, %v1738_v28  ;;  %v1751_v36 = vor.u32 %v1750_v35, %v1749_v61  ;;  %v1729_v1 = vsel %vm18447_vm11, %v1725_v27, %v23969_v46  ;;  %v1766_v57 = vrot.slane %v1764_v33, 5  ;;  %v23977_v52 = vld [vmem:[#allocation19_spill] sm:$0xff]  ;;  %v17802_v33 = vld [vmem:[%s18170_s29 + $0x30] sm:$0xff]  }
 0x105   : > { %16646 = vmatmul.mubr.msk.bf16.gmra.mrb[28].mxu0 %vm709_vm4, %v23971_v29  ;;  %v23973_v61 = vshrl.u32 %v23972_v20, 16  ;;  %v19568_v10 = vcombine.low %v1729_v1, %v1739_v42  ;;  %v1761_v37 = vor.u32 %v1760_v49, %v1757_v24  ;;  %v1769_v58 = vrot.slane %v1767_v54, 6  ;;  %v17803_v54 = vld [vmem:[%s18170_s29 + $0x3c] sm:$0xff]  }
 0x106   : > { %v1753_v6 = vrot.slane %v1751_v36, 4  ;;  %16651 = vmatprep.mubr.msk.bf16.mxu0 %vm709_vm4, %v17801_v60  ;;  %v1752_v39 = vsel %vm18447_vm11, %v1748_v55, %v1751_v36  ;;  %v23974_v28 = vcombine.low %v19384_v3, %v19410_v23  ;;  %v23975_v19 = vshll.u32 %v23972_v20, 16  ;;  %v1679_v3 = vld [vmem:[%s18170_s29 + $0x38] sm:$0x3] }
 0x107   : > { %v1772_v47 = vrot.slane %v23973_v61, 5  ;;  %v1778_v25 = vshrl.u32 %v1678_v59, 16  ;;  %v1781_v43 = vshll.u32 %v1678_v59, 16  ;;  %v1787_v60 = vshrl.u32 %v19193_v48, 16 }
 0x108   : > { %16226 = vmatmul.mubr.msk.bf16.gmra.mrb[16].mxu1 %vm709_vm4, %v23974_v28  ;;  %v1773_v35 = vrot.slane %v23975_v19, 6  ;;  %v23976_v13 = vcombine.low %v19414_v45, %v19428_v14  ;;  %v1762_v27 = vsel %vm18447_vm11, %v1753_v6, %v1761_v37  ;;  %v1770_v46 = vor.u32 %v1769_v58, %v1766_v57 }
 0x109   : > { %v1790_v23 = vshll.u32 %v19193_v48, 16  ;;  %v23978_v42 = vshrl.u32 %v23977_v52, 16  ;;  %v19590_v55 = vcombine.low %v1752_v39, %v1762_v27  ;;  %v1780_v49 = vrot.slane %v1778_v25, 5  ;;  %v1680_v25 = vld [vmem:[%s18170_s29 + $0x44] sm:$0x3] }
 0x10a   : > { %16229 = vmatprep.mubr.msk.bf16.mxu1 %vm709_vm4, %v23976_v13  ;;  %v1774_v24 = vor.u32 %v1773_v35, %v1772_v47  ;;  %v1783_v59 = vrot.slane %v1781_v43, 6  ;;  %v1771_v45 = vrot.slane %v1770_v46, 4  ;;  %v1789_v14 = vrot.slane %v1787_v60, 5 }
 0x10b   : > { %v1795_v36 = vrot.slane %v23978_v42, 5  ;;  %v1792_v29 = vrot.slane %v1790_v23, 6  ;;  %v23979_v1 = vshll.u32 %v23977_v52, 16  ;;  %v1801_v48 = vshrl.u32 %v1679_v3, 16 }
 0x10c   : > { %v1776_v57 = vrot.slane %v1774_v24, 4  ;;  %v1784_v20 = vor.u32 %v1783_v59, %v1780_v49  ;;  %v1804_v61 = vshll.u32 %v1679_v3, 16  ;;  %v1775_v37 = vsel %vm18447_vm11, %v1771_v45, %v1774_v24 }
 0x10d   : > { %v1796_v6 = vrot.slane %v23979_v1, 6  ;;  %v1793_v39 = vor.u32 %v1792_v29, %v1789_v14  ;;  %v1810_v47 = vshrl.u32 %v19218_v31, 16  ;;  %16652 = vmatmul.mubr.msk.bf16.vlgmr.msra.gmra.mrb[0].mxu0 %vm709_vm4, %v17802_v33  ;;  %v1803_v19 = vrot.slane %v1801_v48, 5  ;;  %v1681_v1 = vld [vmem:[%s18170_s29 + $0x50] sm:$0x3] }
 0x10e   : > { %v1785_v28 = vsel %vm18447_vm11, %v1776_v57, %v1784_v20  ;;  %v1806_v35 = vrot.slane %v1804_v61, 6  ;;  %v1813_v43 = vshll.u32 %v19218_v31, 16  ;;  %16684 = vmatpush3.bf16.msra.mxu0 %v19356_v15  ;;  %16655 = vmatprep.mubr.msk.bf16.mxu0 %vm709_vm4, %v17803_v54  ;;  %v23980_v3 = vcombine.low %v19423_v11, %v19438_v22  ;;  %v23981_v31 = vld [vmem:[#allocation20_spill] sm:$0xff]  ;;  %v17804_v54 = vld [vmem:[%s18170_s29 + $0x48] sm:$0xff]  }
 0x10f   : > { %v1797_v58 = vor.u32 %v1796_v6, %v1795_v36  ;;  %v19605_v60 = vcombine.low %v1775_v37, %v1785_v28  ;;  %v1794_v13 = vrot.slane %v1793_v39, 4  ;;  %v1812_v46 = vrot.slane %v1810_v47, 5  ;;  %v17805_v57 = vld [vmem:[%s18170_s29 + $0x54] sm:$0xff]  }
 0x110   : > { %16230 = vmatmul.mubr.msk.bf16.gmra.mrb[20].mxu1 %vm709_vm4, %v23980_v3  ;;  %v1807_v23 = vor.u32 %v1806_v35, %v1803_v19  ;;  %v1815_v52 = vrot.slane %v1813_v43, 6  ;;  %v23982_v42 = vshrl.u32 %v23981_v31, 16  ;;  %v23983_v36 = vshll.u32 %v23981_v31, 16 }
 0x111   : > { %v1799_v27 = vrot.slane %v1797_v58, 4  ;;  %v23984_v24 = vcombine.low %v19447_v5, %v19466_v26  ;;  %v1798_v49 = vsel %vm18447_vm11, %v1794_v13, %v1797_v58  ;;  %v1824_v11 = vshrl.u32 %v1680_v25, 16  ;;  %v23985_v58 = vld [vmem:[#allocation23_spill] sm:$0xff] }
 0x112   : > { %v1818_v15 = vrot.slane %v23982_v42, 5  ;;  %v1819_v33 = vrot.slane %v23983_v36, 6  ;;  %v1827_v22 = vshll.u32 %v1680_v25, 16  ;;  %v1833_v59 = vshrl.u32 %v19258_v0, 16 }
 0x113   : > { %16233 = vmatprep.mubr.msk.bf16.mxu1 %vm709_vm4, %v23984_v24  ;;  %v1808_v45 = vsel %vm18447_vm11, %v1799_v27, %v1807_v23  ;;  %v1816_v14 = vor.u32 %v1815_v52, %v1812_v46  ;;  %v1836_v6 = vshll.u32 %v19258_v0, 16  ;;  %v1826_v26 = vrot.slane %v1824_v11, 5  ;;  %v15061_v11 = vld [vmem:[%s18170_s29 + $0x24] sm:$0xf] }
 0x114   : > { %v1820_v29 = vor.u32 %v1819_v33, %v1818_v15  ;;  %v19628_v5 = vcombine.low %v1798_v49, %v1808_v45  ;;  %v1829_v20 = vrot.slane %v1827_v22, 6  ;;  %v1835_v48 = vrot.slane %v1833_v59, 5  ;;  %v1682_v15 = vld [vmem:[%s18170_s29 + $0x5c] sm:$0x3]  ;;  %v23990_v45 = vld [vmem:[#allocation24_spill] sm:$0xff] }
 0x115   : > { %v1817_v61 = vrot.slane %v1816_v14, 4  ;;  %v1838_v39 = vrot.slane %v1836_v6, 6  ;;  %v23986_v47 = vshrl.u32 %v23985_v58, 16  ;;  %v23987_v35 = vshll.u32 %v23985_v58, 16  ;;  %16656 = vmatmul.mubr.msk.bf16.gmra.mrb[4].mxu0 %vm709_vm4, %v17804_v54 }
 0x116   : > { %v1822_v37 = vrot.slane %v1820_v29, 4  ;;  %v1830_v19 = vor.u32 %v1829_v20, %v1826_v26  ;;  %v1847_v43 = vshrl.u32 %v1681_v1, 16  ;;  %v1850_v13 = vshll.u32 %v1681_v1, 16  ;;  %16659 = vmatprep.mubr.msk.bf16.mxu0 %vm709_vm4, %v17805_v57  ;;  %v17806_v1 = vld [vmem:[%s18170_s29 + $0x60] sm:$0xff]  }
 0x117   : > { %v1841_v28 = vrot.slane %v23986_v47, 5  ;;  %v1842_v25 = vrot.slane %v23987_v35, 6  ;;  %v1821_v0 = vsel %vm18447_vm11, %v1817_v61, %v1820_v29  ;;  %v1839_v27 = vor.u32 %v1838_v39, %v1835_v48  ;;  %v19662_v48 = vld [vmem:[%s18170_s29 + $0x28] sm:$0xf] }
 0x118   : > { %v1856_v46 = vshrl.u32 %v19273_v30, 16  ;;  %v1859_v3 = vshll.u32 %v19273_v30, 16  ;;  %v1831_v23 = vsel %vm18447_vm11, %v1822_v37, %v1830_v19  ;;  %v1849_v31 = vrot.slane %v1847_v43, 5  ;;  %v15063_v37 = vld [vmem:[%s18170_s29 + $0x2c] sm:$0x1] }
 0x119   : > { %v1843_v52 = vor.u32 %v1842_v25, %v1841_v28  ;;  %v1852_v42 = vrot.slane %v1850_v13, 6  ;;  %v23988_v36 = vcombine.low %v19456_v8, %v19478_v34  ;;  %v19647_v33 = vcombine.low %v1821_v0, %v1831_v23  ;;  %v15064_v25 = vld [vmem:[%s18170_s29 + $0x30] sm:$0xf] }
 0x11a   : > { %v1840_v30 = vrot.slane %v1839_v27, 4  ;;  %v1858_v24 = vrot.slane %v1856_v46, 5  ;;  %v1861_v49 = vrot.slane %v1859_v3, 6  ;;  %v23989_v22 = vcombine.low %v19482_v63, %v19500_v2  ;;  %v17807_v63 = vld [vmem:[%s18170_s29 + $0x6c] sm:$0xff]   ;;  %v19673_v46 = vld [vmem:[%s18170_s29 + $0x34] sm:$0xf] }
 0x11b   : > { %16234 = vmatmul.mubr.msk.bf16.gmra.mrb[24].mxu1 %vm709_vm4, %v23988_v36  ;;  %v1845_v59 = vrot.slane %v1843_v52, 4  ;;  %v1853_v54 = vor.u32 %v1852_v42, %v1849_v31  ;;  %v23991_v8 = vshrl.u32 %v23990_v45, 16  ;;  %v23992_v14 = vshll.u32 %v23990_v45, 16  ;;  %v15066_v36 = vld [vmem:[%s18170_s29 + $0x38] sm:$0x1] }
 0x11c   : > { %16237 = vmatprep.mubr.msk.bf16.mxu1 %vm709_vm4, %v23989_v22  ;;  %v1844_v6 = vsel %vm18447_vm11, %v1840_v30, %v1843_v52  ;;  %v1862_v57 = vor.u32 %v1861_v49, %v1858_v24  ;;  %v1870_v26 = vshrl.u32 %v1682_v15, 16  ;;  %v1873_v20 = vshll.u32 %v1682_v15, 16 }
 0x11d   : > { %v1864_v34 = vrot.slane %v23991_v8, 5  ;;  %v1865_v29 = vrot.slane %v23992_v14, 6  ;;  %v1854_v2 = vsel %vm18447_vm11, %v1845_v59, %v1853_v54  ;;  %v8595_v39 = vshrl.u32 %v15061_v11, 16  ;;  %16660 = vmatmul.mubr.msk.bf16.gmra.mrb[8].mxu0 %vm709_vm4, %v17806_v1 }
 0x11e   : > { %v8598_v58 = vshll.u32 %v15061_v11, 16  ;;  %v19668_v47 = vcombine.low %v1844_v6, %v1854_v2  ;;  %v1863_v28 = vrot.slane %v1862_v57, 4  ;;  %v1872_v19 = vrot.slane %v1870_v26, 5  ;;  %16663 = vmatprep.mubr.msk.bf16.mxu0 %vm709_vm4, %v17807_v63  ;;  %v17809_v57 = vld [vmem:[%s18170_s29 + $0x84] sm:$0xff]   ;;  %v20284_v26 = vld [vmem:[%s18170_s29 + $0x60] sm:$0xe] }
 0x11f   : > { %v1866_v61 = vor.u32 %v1865_v29, %v1864_v34  ;;  %v1875_v35 = vrot.slane %v1873_v20, 6  ;;  %v8597_v13 = vrot.slane %v8595_v39, 4  ;;  %v23803_v27 = vshll.u32 %v19662_v48, 16  ;;  %v17808_v34 = vld [vmem:[%s18170_s29 + $0x78] sm:$0xff]   ;;  %v1683_v2 = vld [vmem:[%s18170_s29 + $0x68] sm:$0x3] }
 0x120   : > { %v8600_v0 = vrot.slane %v8598_v58, 5  ;;  %v23804_v52 = vshrl.u32 %v19662_v48, 16  ;;  %v8614_v31 = vshll.u32 %v15063_v37, 16  ;;  %v8619_v30 = vshrl.u32 %v15064_v25, 16 }
 0x121   : > { %v1868_v43 = vrot.slane %v1866_v61, 4  ;;  %v1867_v3 = vsel %vm18447_vm11, %v1863_v28, %v1866_v61  ;;  %v1876_v23 = vor.u32 %v1875_v35, %v1872_v19  ;;  %v8606_v15 = vrot.slane %v23803_v27, 5  ;;  %v23995_v28 = vld [vmem:[#allocation26_spill] sm:$0xff] }
 0x122   : > { %v8601_v42 = vor.u32 %v8600_v0, %v8597_v13  ;;  %v8622_v24 = vshll.u32 %v15064_v25, 16  ;;  %v23993_v49 = vcombine.low %v19492_v21, %v19510_v51  ;;  %v8610_v22 = vrot.slane %v23804_v52, 4  ;;  %v2367_v27 = vld [vmem:[%s18170_s29 + $0x84] sm:$0xc]  ;;  %v17950_v52 = vld [vmem:[%s18170_s29 + $0x50] sm:$0x1] }
 0x123   : > { %v1877_v11 = vsel %vm18447_vm11, %v1868_v43, %v1876_v23  ;;  %v8616_v59 = vrot.slane %v8614_v31, 5  ;;  %v23801_v54 = vshll.u32 %v19673_v46, 16  ;;  %v8621_v21 = vrot.slane %v8619_v30, 4  ;;  %v15174_v23 = vld [vmem:[%s23647_s1 + $0x22] sm:$0x3] }
 0x124   : > { %16238 = vmatmul.mubr.msk.bf16.gmra.mrb[28].mxu1 %vm709_vm4, %v23993_v49  ;;  %v19694_v45 = vcombine.low %v1867_v3, %v1877_v11  ;;  %v8602_v8 = vrot.slane %v8601_v42, 4  ;;  %v8624_v51 = vrot.slane %v8622_v24, 5  ;;  %v8611_v14 = vor.u32 %v8610_v22, %v8606_v15 }
 0x125   : > { %16243 = vmatprep.mubr.msk.bf16.mxu1 %vm709_vm4, %v19549_v7  ;;  %v8630_v29 = vrot.slane %v23801_v54, 5  ;;  %v23802_v1 = vshrl.u32 %v19673_v46, 16  ;;  %v8638_v6 = vshll.u32 %v15066_v36, 16  ;;  %v1879_v7 = vshrl.u32 %v19288_v9, 16  ;;  %16664 = vmatmul.mubr.msk.bf16.gmra.mrb[12].mxu0 %vm709_vm4, %v17808_v34  ;;  %v1684_v34 = vld [vmem:[%s18170_s29 + $0x74] sm:$0x3] }
 0x126   : > { %v8607_v20 = vsel %vm18245_vm8, %v8602_v8, %v8606_v15  ;;  %v8625_v63 = vor.u32 %v8624_v51, %v8621_v21  ;;  %v1882_v61 = vshll.u32 %v19288_v9, 16  ;;  %v8612_v37 = vrot.slane %v8611_v14, 4  ;;  %16667 = vmatprep.mubr.msk.bf16.mxu0 %vm709_vm4, %v17809_v57 }
 0x127   : > { %v8634_v39 = vrot.slane %v23802_v1, 4  ;;  %v8640_v58 = vrot.slane %v8638_v6, 5  ;;  %v23996_v19 = vshrl.u32 %v23995_v28, 16  ;;  %v1881_v43 = vrot.slane %v1879_v7, 5  ;;  %v15067_v7 = vld [vmem:[%s18170_s29 + $0x3c] sm:$0xf] }
 0x128   : > { %v8626_v25 = vrot.slane %v8625_v63, 4  ;;  %v1884_v13 = vrot.slane %v1882_v61, 6  ;;  %v23997_v0 = vshll.u32 %v23995_v28, 16  ;;  %v8617_v9 = vsel %vm18245_vm8, %v8612_v37, %v8616_v59  ;;  %v17811_v61 = vld [vmem:[%s18170_s29 + $0x9c] sm:$0xff]  }
 0x129   : > { %v1887_v35 = vrot.slane %v23996_v19, 5  ;;  %v8635_v31 = vor.u32 %v8634_v39, %v8630_v29  ;;  %v1893_v42 = vshrl.u32 %v1683_v2, 16  ;;  %v1896_v15 = vshll.u32 %v1683_v2, 16  ;;  %v19749_v28 = vld [vmem:[%s18170_s29 + $0x40] sm:$0xf] }
 0x12a   : > { %v1888_v3 = vrot.slane %v23997_v0, 6  ;;  %v19719_v36 = vcombine.low %v8607_v20, %v8617_v9  ;;  %v8631_v30 = vsel %vm18245_vm8, %v8626_v25, %v8630_v29  ;;  %v1885_v24 = vor.u32 %v1884_v13, %v1881_v43  ;;  %v17810_v29 = vld [vmem:[%s18170_s29 + $0x90] sm:$0xff]   ;;  %v23998_v20 = vld [vmem:[#allocation27_spill] sm:$0xff] }
 0x12b   : > { %v8636_v11 = vrot.slane %v8635_v31, 4  ;;  %v1895_v22 = vrot.slane %v1893_v42, 5  ;;  %v1898_v59 = vrot.slane %v1896_v15, 6  ;;  %v19726_v8 = vand.u32 %v15174_v23, %v18141_v4  ;;  %v15070_v31 = vld [vmem:[%s18170_s29 + $0x48] sm:$0xf] }
 0x12c   : > { %v1889_v49 = vor.u32 %v1888_v3, %v1887_v35  ;;  %16244 = vmatmul.mubr.msk.bf16.vlgmr.msra.gmra.mrb[0].mxu1 %vm709_vm4, %v19568_v10  ;;  %v1886_v21 = vrot.slane %v1885_v24, 4  ;;  %v1902_v14 = vshrl.u32 %v19315_v12, 16  ;;  %v1905_v10 = vshll.u32 %v19315_v12, 16  ;;  %v15069_v3 = vld [vmem:[%s18170_s29 + $0x44] sm:$0x1] }
 0x12d   : > { %16276 = vmatpush3.bf16.msra.mxu1 %v19516_v53  ;;  %16247 = vmatprep.mubr.msk.bf16.mxu1 %vm709_vm4, %v19590_v55  ;;  %v8641_v6 = vsel %vm18245_vm8, %v8636_v11, %v8640_v58  ;;  %v1899_v57 = vor.u32 %v1898_v59, %v1895_v22  ;;  %v23999_v53 = vshrl.u32 %v23998_v20, 16  ;;  %v24000_v55 = vshll.u32 %v23998_v20, 16  ;;  %v15072_v20 = vld [vmem:[%s18170_s29 + $0x50] sm:$0x1] }
 0x12e   : > { %v1891_v51 = vrot.slane %v1889_v49, 4  ;;  %16717 = vmatprep.subr.bf16.mxu0 %v19726_v8  ;;  %v19744_v37 = vcombine.low %v8631_v30, %v8641_v6  ;;  %v1890_v12 = vsel %vm18447_vm11, %v1886_v21, %v1889_v49  ;;  %v1904_v39 = vrot.slane %v1902_v14, 5  ;;  %16668 = vmatmul.mubr.msk.bf16.gmra.mrb[16].mxu0 %vm709_vm4, %v17810_v29  ;;  %v19762_v21 = vld [vmem:[%s18170_s29 + $0x4c] sm:$0xf] }
 0x12f   : > { %v1910_v63 = vrot.slane %v23999_v53, 5  ;;  %v1911_v2 = vrot.slane %v24000_v55, 6  ;;  %v1907_v58 = vrot.slane %v1905_v10, 6  ;;  %v1916_v25 = vshrl.u32 %v1684_v34, 16  ;;  %16671 = vmatprep.mubr.msk.bf16.mxu0 %vm709_vm4, %v17811_v61  ;;  %v17813_v61 = vld [vmem:[%s18170_s29 + $0xb4] sm:$0xff]  }
 0x130   : > { %v1900_v19 = vsel %vm18447_vm11, %v1891_v51, %v1899_v57  ;;  %v1919_v43 = vshll.u32 %v1684_v34, 16  ;;  %v8643_v23 = vshrl.u32 %v15067_v7, 16  ;;  %v8646_v9 = vshll.u32 %v15067_v7, 16 }
 0x131   : > { %v1912_v35 = vor.u32 %v1911_v2, %v1910_v63  ;;  %v19753_v13 = vcombine.low %v1890_v12, %v1900_v19  ;;  %v1908_v0 = vor.u32 %v1907_v58, %v1904_v39  ;;  %v1918_v15 = vrot.slane %v1916_v25, 5 }
 0x132   : > { %v1921_v30 = vrot.slane %v1919_v43, 6  ;;  %v23795_v24 = vshll.u32 %v19749_v28, 16  ;;  %v8645_v11 = vrot.slane %v8643_v23, 4  ;;  %v8648_v22 = vrot.slane %v8646_v9, 5  ;;  %v1685_v9 = vld [vmem:[%s18170_s29 + $0x80] sm:$0x3] }
 0x133   : > { %v1914_v42 = vrot.slane %v1912_v35, 4  ;;  %v1909_v49 = vrot.slane %v1908_v0, 4  ;;  %v23796_v59 = vshrl.u32 %v19749_v28, 16  ;;  %v8662_v14 = vshll.u32 %v15069_v3, 16 }
 0x134   : > { %16248 = vmatmul.mubr.msk.bf16.gmra.mrb[4].mxu1 %vm709_vm4, %v19605_v60  ;;  %v1922_v51 = vor.u32 %v1921_v30, %v1918_v15  ;;  %v8654_v34 = vrot.slane %v23795_v24, 5  ;;  %v8667_v10 = vshrl.u32 %v15070_v31, 16  ;;  %v8649_v6 = vor.u32 %v8648_v22, %v8645_v11  ;;  %v17812_v60 = vld [vmem:[%s18170_s29 + $0xa8] sm:$0xff]  }
 0x135   : > { %16251 = vmatprep.mubr.msk.bf16.mxu1 %vm709_vm4, %v19628_v5  ;;  %v1913_v29 = vsel %vm18447_vm11, %v1909_v49, %v1912_v35  ;;  %v8658_v57 = vrot.slane %v23796_v59, 4  ;;  %v8670_v53 = vshll.u32 %v15070_v31, 16  ;;  %v8664_v55 = vrot.slane %v8662_v14, 5  ;;  %v24001_v49 = vld [vmem:[#allocation28_spill] sm:$0xff] }
 0x136   : > { %v1923_v63 = vsel %vm18447_vm11, %v1914_v42, %v1922_v51  ;;  %v8669_v2 = vrot.slane %v8667_v10, 4  ;;  %v23792_v7 = vshll.u32 %v19762_v21, 16  ;;  %v8650_v12 = vrot.slane %v8649_v6, 4  ;;  %16672 = vmatmul.mubr.msk.bf16.gmra.mrb[20].mxu0 %vm709_vm4, %v17812_v60  ;;  %v17815_v60 = vld [vmem:[%s18170_s29 + $0xcc] sm:$0xff]  }
 0x137   : > { %v19780_v5 = vcombine.low %v1913_v29, %v1923_v63  ;;  %v8659_v39 = vor.u32 %v8658_v57, %v8654_v34  ;;  %v8672_v58 = vrot.slane %v8670_v53, 5  ;;  %v23793_v35 = vshrl.u32 %v19762_v21, 16  ;;  %16675 = vmatprep.mubr.msk.bf16.mxu0 %vm709_vm4, %v17813_v61  ;;  %v17814_v53 = vld [vmem:[%s18170_s29 + $0xc0] sm:$0xff]   ;;  %v20148_v59 = vld [vmem:[%s18170_s29 + $0xd0] sm:$0xf] }
 0x138   : > { %v8678_v19 = vrot.slane %v23792_v7, 5  ;;  %v8686_v25 = vshll.u32 %v15072_v20, 16  ;;  %v1925_v43 = vshrl.u32 %v19337_v56, 16  ;;  %v8655_v0 = vsel %vm18245_vm8, %v8650_v12, %v8654_v34 }
 0x139   : > { %v8660_v3 = vrot.slane %v8659_v39, 4  ;;  %v8673_v23 = vor.u32 %v8672_v58, %v8669_v2  ;;  %v1928_v31 = vshll.u32 %v19337_v56, 16  ;;  %v8682_v42 = vrot.slane %v23793_v35, 4  ;;  %v1686_v58 = vld [vmem:[%s18170_s29 + $0x8c] sm:$0x3] }
 0x13a   : > { %v8688_v15 = vrot.slane %v8686_v25, 5  ;;  %v1927_v30 = vrot.slane %v1925_v43, 5  ;;  %v24002_v11 = vshrl.u32 %v24001_v49, 16  ;;  %v24003_v56 = vshll.u32 %v24001_v49, 16 }
 0x13b   : > { %v8665_v51 = vsel %vm18245_vm8, %v8660_v3, %v8664_v55  ;;  %v8674_v34 = vrot.slane %v8673_v23, 4  ;;  %v1930_v14 = vrot.slane %v1928_v31, 6  ;;  %v8683_v6 = vor.u32 %v8682_v42, %v8678_v19  ;;  %v24004_v23 = vld [vmem:[#allocation29_spill] sm:$0xff]  ;;  %v15073_v31 = vld [vmem:[%s18170_s29 + $0x54] sm:$0xf] }
 0x13c   : > { %v1933_v22 = vrot.slane %v24002_v11, 5  ;;  %v1934_v10 = vrot.slane %v24003_v56, 6  ;;  %16252 = vmatmul.mubr.msk.bf16.gmra.mrb[8].mxu1 %vm709_vm4, %v19647_v33  ;;  %v19802_v29 = vcombine.low %v8655_v0, %v8665_v51  ;;  %v1939_v57 = vshrl.u32 %v1685_v9, 16 }
 0x13d   : > { %v1942_v20 = vshll.u32 %v1685_v9, 16  ;;  %16255 = vmatprep.mubr.msk.bf16.mxu1 %vm709_vm4, %v19668_v47  ;;  %v8679_v63 = vsel %vm18245_vm8, %v8674_v34, %v8678_v19  ;;  %v1931_v55 = vor.u32 %v1930_v14, %v1927_v30  ;;  %v1948_v61 = vshrl.u32 %v19347_v40, 16  ;;  %v19825_v14 = vld [vmem:[%s18170_s29 + $0x58] sm:$0xf] }
 0x13e   : > { %v1935_v2 = vor.u32 %v1934_v10, %v1933_v22  ;;  %v8684_v12 = vrot.slane %v8683_v6, 4  ;;  %v1941_v33 = vrot.slane %v1939_v57, 5  ;;  %v1951_v25 = vshll.u32 %v19347_v40, 16  ;;  %16676 = vmatmul.mubr.msk.bf16.gmra.mrb[24].mxu0 %vm709_vm4, %v17814_v53  ;;  %v19831_v6 = vld [vmem:[%s18170_s29 + $0x5c] sm:$0x1] }
 0x13f   : > { %v1944_v39 = vrot.slane %v1942_v20, 6  ;;  %v1932_v43 = vrot.slane %v1931_v55, 4  ;;  %v1950_v3 = vrot.slane %v1948_v61, 5  ;;  %v24005_v9 = vshrl.u32 %v24004_v23, 16  ;;  %16679 = vmatprep.mubr.msk.bf16.mxu0 %vm709_vm4, %v17815_v60  ;;  %v15076_v61 = vld [vmem:[%s18170_s29 + $0x60] sm:$0xf] }
 0x140   : > { %v1937_v0 = vrot.slane %v1935_v2, 4  ;;  %v8689_v19 = vsel %vm18245_vm8, %v8684_v12, %v8688_v15  ;;  %v1953_v30 = vrot.slane %v1951_v25, 6  ;;  %v24006_v49 = vshll.u32 %v24004_v23, 16 }
 0x141   : > { %v1956_v47 = vrot.slane %v24005_v9, 5  ;;  %v1945_v42 = vor.u32 %v1944_v39, %v1941_v33  ;;  %v19820_v22 = vcombine.low %v8679_v63, %v8689_v19  ;;  %v1936_v40 = vsel %vm18447_vm11, %v1932_v43, %v1935_v2  ;;  %v19851_v9 = vld [vmem:[%s18170_s29 + $0x68] sm:$0x1] }
 0x142   : > { %v1957_v11 = vrot.slane %v24006_v49, 6  ;;  %v1962_v51 = vshrl.u32 %v1686_v58, 16  ;;  %v1965_v34 = vshll.u32 %v1686_v58, 16  ;;  %v1954_v56 = vor.u32 %v1953_v30, %v1950_v3  ;;  %v17816_v3 = vld [vmem:[%s18170_s29 + $0xd8] sm:$0xff]  }
 0x143   : > { %v1946_v15 = vsel %vm18447_vm11, %v1937_v0, %v1945_v42  ;;  %v8691_v57 = vshrl.u32 %v15073_v31, 16  ;;  %v8694_v2 = vshll.u32 %v15073_v31, 16  ;;  %v23789_v39 = vshll.u32 %v19825_v14, 16  ;;  %v19843_v0 = vld [vmem:[%s18170_s29 + $0x64] sm:$0xf] }
 0x144   : > { %v1958_v10 = vor.u32 %v1957_v11, %v1956_v47  ;;  %v14275_v20 = vcombine.low %v1936_v40, %v1946_v15  ;;  %v1964_v63 = vrot.slane %v1962_v51, 5  ;;  %v1967_v55 = vrot.slane %v1965_v34, 6  ;;  %16256 = vmatmul.mubr.msk.bf16.gmra.mrb[12].mxu1 %vm709_vm4, %v19694_v45 }
 0x145   : > { %v1955_v53 = vrot.slane %v1954_v56, 4  ;;  %v8693_v33 = vrot.slane %v8691_v57, 4  ;;  %16259 = vmatprep.mubr.msk.bf16.mxu1 %vm709_vm4, %v19753_v13  ;;  %v8696_v58 = vrot.slane %v8694_v2, 5  ;;  %v23790_v25 = vshrl.u32 %v19825_v14, 16 }
 0x146   : > { %v1960_v12 = vrot.slane %v1958_v10, 4  ;;  %v1968_v60 = vor.u32 %v1967_v55, %v1964_v63  ;;  %v8710_v43 = vshll.u32 %v19831_v6, 16  ;;  %v8702_v23 = vrot.slane %v23789_v39, 5  ;;  %16680 = vmatmul.mubr.msk.bf16.gmra.mrb[28].mxu0 %vm709_vm4, %v17816_v3  ;;  %v19864_v55 = vld [vmem:[%s18170_s29 + $0x98] sm:$0x3] }
 0x147   : > { %v1959_v45 = vsel %vm18447_vm11, %v1955_v53, %v1958_v10  ;;  %v8715_v47 = vshrl.u32 %v15076_v61, 16  ;;  %v8718_v31 = vshll.u32 %v15076_v61, 16  ;;  %v8697_v19 = vor.u32 %v8696_v58, %v8693_v33  ;;  %16685 = vmatprep.mubr.msk.bf16.mxu0 %vm709_vm4, %v19719_v36 }
 0x148   : > { %v1969_v13 = vsel %vm18447_vm11, %v1960_v12, %v1968_v60  ;;  %v8706_v42 = vrot.slane %v23790_v25, 4  ;;  %v8712_v30 = vrot.slane %v8710_v43, 5  ;;  %v23783_v51 = vshll.u32 %v19843_v0, 16  ;;  %v15103_v25 = vld [vmem:[%s18170_s29 + $0xcc] sm:$0xf] }
 0x149   : > { %v14276_v49 = vcombine.low %v1959_v45, %v1969_v13  ;;  %v8717_v11 = vrot.slane %v8715_v47, 4  ;;  %v8720_v40 = vrot.slane %v8718_v31, 5  ;;  %v8698_v34 = vrot.slane %v8697_v19, 4 }
 0x14a   : > { %v8707_v15 = vor.u32 %v8706_v42, %v8702_v23  ;;  %v23788_v56 = vshrl.u32 %v19843_v0, 16  ;;  %v8734_v10 = vshll.u32 %v19851_v9, 16  ;;  %v8726_v63 = vrot.slane %v23783_v51, 5 }
 0x14b   : > { %v8721_v57 = vor.u32 %v8720_v40, %v8717_v11  ;;  %v1971_v2 = vshrl.u32 %v19400_v50, 16  ;;  %v1974_v61 = vshll.u32 %v19400_v50, 16  ;;  %v8703_v53 = vsel %vm18245_vm8, %v8698_v34, %v8702_v23 }
 0x14c   : > { %v8708_v12 = vrot.slane %v8707_v15, 4  ;;  %v8730_v33 = vrot.slane %v23788_v56, 4  ;;  %v8736_v60 = vrot.slane %v8734_v10, 5  ;;  %16260 = vmatmul.mubr.msk.bf16.gmra.mrb[16].mxu1 %vm709_vm4, %v19780_v5  ;;  %v24007_v50 = vshrl.u32 %v18587_v44, 16  ;;  %v17931_v56 = vld [vmem:[%s18170_s29 + $0x34] sm:$0xf] }
 0x14d   : > { %v8722_v58 = vrot.slane %v8721_v57, 4  ;;  %v1973_v43 = vrot.slane %v1971_v2, 5  ;;  %v1976_v3 = vrot.slane %v1974_v61, 6  ;;  %16263 = vmatprep.mubr.msk.bf16.mxu1 %vm709_vm4, %v14275_v20  ;;  %v24008_v47 = vshll.u32 %v18587_v44, 16 }
 0x14e   : > { %v1979_v45 = vrot.slane %v24007_v50, 5  ;;  %v8713_v36 = vsel %vm18245_vm8, %v8708_v12, %v8712_v30  ;;  %v8731_v23 = vor.u32 %v8730_v33, %v8726_v63  ;;  %v1985_v13 = vshrl.u32 %v19864_v55, 16  ;;  %v19890_v30 = vld [vmem:[%s18170_s29 + $0xa4] sm:$0x3]  ;;  %16686 = vmatmul.mubr.msk.bf16.vlgmr.msra.gmra.mrb[0].mxu0 %vm709_vm4, %v19744_v37 }
 0x14f   : > { %v1980_v31 = vrot.slane %v24008_v47, 6  ;;  %v19884_v5 = vcombine.low %v8703_v53, %v8713_v36  ;;  %v8727_v19 = vsel %vm18245_vm8, %v8722_v58, %v8726_v63  ;;  %v1977_v42 = vor.u32 %v1976_v3, %v1973_v43  ;;  %v15079_v53 = vld [vmem:[%s18170_s29 + $0x6c] sm:$0xf]  ;;  %v19902_v3 = vld [vmem:[%s18170_s29 + $0x70] sm:$0xf]  ;;  %16718 = vmatpush3.bf16.msra.mxu0 %v19726_v8  ;;  %16689 = vmatprep.mubr.msk.bf16.mxu0 %vm709_vm4, %v19802_v29 }
 0x150   : > { %v1988_v11 = vshll.u32 %v19864_v55, 16  ;;  %v8732_v20 = vrot.slane %v8731_v23, 4  ;;  %v1987_v34 = vrot.slane %v1985_v13, 5  ;;  %v1994_v44 = vshrl.u32 %v19417_v18, 16  ;;  %v19919_v13 = vld [vmem:[%s18170_s29 + $0x74] sm:$0x1] }
 0x151   : > { %v1981_v40 = vor.u32 %v1980_v31, %v1979_v45  ;;  %v1978_v15 = vrot.slane %v1977_v42, 4  ;;  %v1997_v57 = vshll.u32 %v19417_v18, 16  ;;  %v24009_v2 = vshrl.u32 %v18607_v41, 16  ;;  %v15082_v42 = vld [vmem:[%s18170_s29 + $0x78] sm:$0xf] }
 0x152   : > { %v1990_v10 = vrot.slane %v1988_v11, 6  ;;  %v8737_v63 = vsel %vm18245_vm8, %v8732_v20, %v8736_v60  ;;  %v1996_v33 = vrot.slane %v1994_v44, 5  ;;  %v24010_v58 = vshll.u32 %v18607_v41, 16 }
 0x153   : > { %v2002_v61 = vrot.slane %v24009_v2, 5  ;;  %v1983_v12 = vrot.slane %v1981_v40, 4  ;;  %v19906_v50 = vcombine.low %v8727_v19, %v8737_v63  ;;  %v1982_v18 = vsel %vm18447_vm11, %v1978_v15, %v1981_v40 }
 0x154   : > { %v2003_v43 = vrot.slane %v24010_v58, 6  ;;  %v1991_v45 = vor.u32 %v1990_v10, %v1987_v34  ;;  %v1999_v36 = vrot.slane %v1997_v57, 6  ;;  %v2008_v60 = vshrl.u32 %v19890_v30, 16  ;;  %16264 = vmatmul.mubr.msk.bf16.gmra.mrb[20].mxu1 %vm709_vm4, %v14276_v49  ;;  %v19924_v34 = vld [vmem:[%s18170_s29 + $0x7c] sm:$0xf] }
 0x155   : > { %v2011_v23 = vshll.u32 %v19890_v30, 16  ;;  %v8739_v37 = vshrl.u32 %v15079_v53, 16  ;;  %v8742_v19 = vshll.u32 %v15079_v53, 16  ;;  %v23781_v8 = vshll.u32 %v19902_v3, 16 }
 0x156   : > { %v2004_v41 = vor.u32 %v2003_v43, %v2002_v61  ;;  %v1992_v47 = vsel %vm18447_vm11, %v1983_v12, %v1991_v45  ;;  %v2000_v31 = vor.u32 %v1999_v36, %v1996_v33  ;;  %v2010_v20 = vrot.slane %v2008_v60, 5  ;;  %v19934_v33 = vld [vmem:[%s18170_s29 + $0x80] sm:$0x1]  ;;  %16690 = vmatmul.mubr.msk.bf16.gmra.mrb[4].mxu0 %vm709_vm4, %v19820_v22 }
 0x157   : > { %v14277_v29 = vcombine.low %v1982_v18, %v1992_v47  ;;  %v2013_v40 = vrot.slane %v2011_v23, 6  ;;  %v8741_v15 = vrot.slane %v8739_v37, 4  ;;  %v8744_v49 = vrot.slane %v8742_v19, 5  ;;  %16693 = vmatprep.mubr.msk.bf16.mxu0 %vm709_vm4, %v19884_v5 }
 0x158   : > { %v2006_v11 = vrot.slane %v2004_v41, 4  ;;  %v2001_v44 = vrot.slane %v2000_v31, 4  ;;  %v8750_v10 = vrot.slane %v23781_v8, 5  ;;  %v23782_v2 = vshrl.u32 %v19902_v3, 16 }
 0x159   : > { %16267 = vmatprep.mubr.msk.bf16.mxu1 %vm709_vm4, %v14277_v29  ;;  %v2014_v57 = vor.u32 %v2013_v40, %v2010_v20  ;;  %v8758_v61 = vshll.u32 %v19919_v13, 16  ;;  %v8763_v53 = vshrl.u32 %v15082_v42, 16  ;;  %v8745_v12 = vor.u32 %v8744_v49, %v8741_v15  ;;  %v19950_v29 = vld [vmem:[%s18170_s29 + $0xb0] sm:$0x3] }
 0x15a   : > { %v2005_v63 = vsel %vm18447_vm11, %v2001_v44, %v2004_v41  ;;  %v8766_v58 = vshll.u32 %v15082_v42, 16  ;;  %v23775_v43 = vshll.u32 %v19924_v34, 16  ;;  %v8754_v45 = vrot.slane %v23782_v2, 4 }
 0x15b   : > { %v2015_v18 = vsel %vm18447_vm11, %v2006_v11, %v2014_v57  ;;  %v8760_v36 = vrot.slane %v8758_v61, 5  ;;  %v8765_v60 = vrot.slane %v8763_v53, 4  ;;  %v8746_v23 = vrot.slane %v8745_v12, 4  ;;  %v17921_v11 = vld [vmem:[%s18170_s29 + $0xa8] sm:$0xe] }
 0x15c   : > { %v14278_v41 = vcombine.low %v2005_v63, %v2015_v18  ;;  %v8768_v37 = vrot.slane %v8766_v58, 5  ;;  %v8774_v47 = vrot.slane %v23775_v43, 5  ;;  %v8755_v31 = vor.u32 %v8754_v45, %v8750_v10 }
 0x15d   : > { %v23779_v19 = vshrl.u32 %v19924_v34, 16  ;;  %v8782_v42 = vshll.u32 %v19934_v33, 16  ;;  %v2017_v20 = vshrl.u32 %v17921_v11, 16  ;;  %v8751_v22 = vsel %vm18245_vm8, %v8746_v23, %v8750_v10  ;;  %v17922_v23 = vld [vmem:[%s18170_s29 + $0xb4] sm:$0xe] }
 0x15e   : > { %16268 = vmatmul.mubr.msk.bf16.gmra.mrb[24].mxu1 %vm709_vm4, %v14278_v41  ;;  %v8769_v40 = vor.u32 %v8768_v37, %v8765_v60  ;;  %v2020_v44 = vshll.u32 %v17921_v11, 16  ;;  %v24011_v15 = vshrl.u32 %v18663_v38, 16  ;;  %v8756_v49 = vrot.slane %v8755_v31, 4  ;;  %16694 = vmatmul.mubr.msk.bf16.gmra.mrb[8].mxu0 %vm709_vm4, %v19906_v50 }
 0x15f   : > { %v8778_v57 = vrot.slane %v23779_v19, 4  ;;  %v8784_v61 = vrot.slane %v8782_v42, 5  ;;  %v2019_v53 = vrot.slane %v2017_v20, 5  ;;  %v24012_v58 = vshll.u32 %v18663_v38, 16 }
 0x160   : > { %v2025_v5 = vrot.slane %v24011_v15, 5  ;;  %v8770_v63 = vrot.slane %v8769_v40, 4  ;;  %v2022_v12 = vrot.slane %v2020_v44, 6  ;;  %v2031_v45 = vshrl.u32 %v19950_v29, 16  ;;  %v19970_v40 = vld [vmem:[%s18170_s29 + $0xbc] sm:$0x3] }
 0x161   : > { %v2026_v18 = vrot.slane %v24012_v58, 6  ;;  %v8761_v10 = vsel %vm18245_vm8, %v8756_v49, %v8760_v36  ;;  %v8779_v60 = vor.u32 %v8778_v57, %v8774_v47  ;;  %v2034_v41 = vshll.u32 %v19950_v29, 16 }
 0x162   : > { %v2040_v37 = vshrl.u32 %v17922_v23, 16  ;;  %v15116_v31 = vcombine.low %v8751_v22, %v8761_v10  ;;  %v8775_v42 = vsel %vm18245_vm8, %v8770_v63, %v8774_v47  ;;  %v2023_v11 = vor.u32 %v2022_v12, %v2019_v53  ;;  %v15085_v47 = vld [vmem:[%s18170_s29 + $0x84] sm:$0xf] }
 0x163   : > { %v2027_v20 = vor.u32 %v2026_v18, %v2025_v5  ;;  %v8780_v38 = vrot.slane %v8779_v60, 4  ;;  %v2033_v44 = vrot.slane %v2031_v45, 5  ;;  %v2036_v15 = vrot.slane %v2034_v41, 6 }
 0x164   : > { %v2042_v58 = vrot.slane %v2040_v37, 5  ;;  %v2024_v36 = vrot.slane %v2023_v11, 4  ;;  %v2043_v57 = vshll.u32 %v17922_v23, 16  ;;  %v24013_v22 = vshrl.u32 %v18682_v17, 16  ;;  %16697 = vmatprep.mubr.msk.bf16.mxu0 %vm709_vm4, %v15116_v31  ;;  %v19987_v23 = vld [vmem:[%s18170_s29 + $0x88] sm:$0xf] }
 0x165   : > { %v2029_v49 = vrot.slane %v2027_v20, 4  ;;  %v8785_v5 = vsel %vm18245_vm8, %v8780_v38, %v8784_v61  ;;  %v2037_v53 = vor.u32 %v2036_v15, %v2033_v44  ;;  %v24014_v63 = vshll.u32 %v18682_v17, 16  ;;  %v19992_v11 = vld [vmem:[%s18170_s29 + $0x8c] sm:$0x1] }
 0x166   : > { %v2048_v10 = vrot.slane %v24013_v22, 5  ;;  %v2054_v50 = vshrl.u32 %v19970_v40, 16  ;;  %v15117_v18 = vcombine.low %v8775_v42, %v8785_v5  ;;  %v2028_v45 = vsel %vm18447_vm11, %v2024_v36, %v2027_v20  ;;  %v15088_v20 = vld [vmem:[%s18170_s29 + $0x90] sm:$0xf] }
 0x167   : > { %v2049_v12 = vrot.slane %v24014_v63, 6  ;;  %v2045_v60 = vrot.slane %v2043_v57, 6  ;;  %v2057_v41 = vshll.u32 %v19970_v40, 16  ;;  %v2038_v37 = vsel %vm18447_vm11, %v2029_v49, %v2037_v53 }
 0x168   : > { %v2056_v31 = vrot.slane %v2054_v50, 5  ;;  %v8787_v17 = vshrl.u32 %v15085_v47, 16  ;;  %v14279_v38 = vcombine.low %v2028_v45, %v2038_v37  ;;  %v8790_v15 = vshll.u32 %v15085_v47, 16  ;;  %v20007_v50 = vld [vmem:[%s18170_s29 + $0x98] sm:$0x1]  ;;  %16698 = vmatmul.mubr.msk.bf16.gmra.mrb[12].mxu0 %vm709_vm4, %v15117_v18 }
 0x169   : > { %v2050_v61 = vor.u32 %v2049_v12, %v2048_v10  ;;  %v2046_v44 = vor.u32 %v2045_v60, %v2042_v58  ;;  %v2059_v42 = vrot.slane %v2057_v41, 6  ;;  %v23773_v22 = vshll.u32 %v19987_v23, 16  ;;  %v20000_v12 = vld [vmem:[%s18170_s29 + $0x94] sm:$0xf] }
 0x16a   : > { %v8789_v57 = vrot.slane %v8787_v17, 4  ;;  %v23774_v5 = vshrl.u32 %v19987_v23, 16  ;;  %16271 = vmatprep.mubr.msk.bf16.mxu1 %vm709_vm4, %v14279_v38  ;;  %v8792_v53 = vrot.slane %v8790_v15, 5  ;;  %v8806_v63 = vshll.u32 %v19992_v11, 16  ;;  %v2356_v38 = vld [vmem:[%s18170_s29] sm:$0xc] }
 0x16b   : > { %v2052_v36 = vrot.slane %v2050_v61, 4  ;;  %v2047_v49 = vrot.slane %v2046_v44, 4  ;;  %v2060_v10 = vor.u32 %v2059_v42, %v2056_v31  ;;  %v8798_v58 = vrot.slane %v23773_v22, 5 }
 0x16c   : > { %v8802_v47 = vrot.slane %v23774_v5, 4  ;;  %v8811_v45 = vshrl.u32 %v15088_v20, 16  ;;  %v8814_v60 = vshll.u32 %v15088_v20, 16  ;;  %v8793_v31 = vor.u32 %v8792_v53, %v8789_v57  ;;  %v14378_v53 = vld [vmem:[%s23647_s1 + $0xa] sm:$0x3] }
 0x16d   : > { %v2051_v41 = vsel %vm18447_vm11, %v2047_v49, %v2050_v61  ;;  %v2061_v37 = vsel %vm18447_vm11, %v2052_v36, %v2060_v10  ;;  %v8808_v17 = vrot.slane %v8806_v63, 5  ;;  %v23776_v20 = vshll.u32 %v20000_v12, 16  ;;  %v17923_v49 = vld [vmem:[%s18170_s29 + $0x4] sm:$0xf] }
 0x16e   : > { %v14280_v44 = vcombine.low %v2051_v41, %v2061_v37  ;;  %v8803_v42 = vor.u32 %v8802_v47, %v8798_v58  ;;  %v8813_v15 = vrot.slane %v8811_v45, 4  ;;  %v8816_v22 = vrot.slane %v8814_v60, 5  ;;  %v2357_v60 = vld [vmem:[%s18170_s29 + $0xc] sm:$0xc] }
 0x16f   : > { %v8794_v5 = vrot.slane %v8793_v31, 4  ;;  %v23777_v18 = vshrl.u32 %v20000_v12, 16  ;;  %v8830_v43 = vshll.u32 %v20007_v50, 16  ;;  %v14297_v57 = vrot.slane %v2356_v38, 10 }
 0x170   : > { %16272 = vmatmul.mubr.msk.bf16.gmra.mrb[28].mxu1 %vm709_vm4, %v14280_v44  ;;  %v8804_v61 = vrot.slane %v8803_v42, 4  ;;  %v8817_v36 = vor.u32 %v8816_v22, %v8813_v15  ;;  %v2409_v10 = vrot.slane %v17923_v49, 6  ;;  %v8822_v47 = vrot.slane %v23776_v20, 5  ;;  %v15091_v44 = vld [vmem:[%s18170_s29 + $0x9c] sm:$0xf] }
 0x171   : > { %v8799_v63 = vsel %vm18245_vm8, %v8794_v5, %v8798_v58  ;;  %v8826_v45 = vrot.slane %v23777_v18, 4  ;;  %v8832_v22 = vrot.slane %v8830_v43, 5  ;;  %v17924_v42 = vld [vmem:[%s18170_s29 + $0x8] sm:$0x3]  ;;  %v2977_v49 = vand.u32 %v14378_v53, %v18141_v4  ;;  %v20038_v20 = vld [vmem:[%s18170_s29 + $0xa0] sm:$0xf] }
 0x172   : > { %v8809_v41 = vsel %vm18245_vm8, %v8804_v61, %v8808_v17  ;;  %v8818_v37 = vrot.slane %v8817_v36, 4  ;;  %v2410_v31 = vsel %vm18920_vm13, %v14297_v57, %v2409_v10  ;;  %v2411_v38 = vrot.slane %v2409_v10, 4  ;;  %v17925_v17 = vld [vmem:[%s18170_s29 + $0x10] sm:$0xf]  ;;  %v17926_v36 = vld [vmem:[%s18170_s29 + $0x14] sm:$0x3] }
 0x173   : > { %v15118_v5 = vcombine.low %v8799_v63, %v8809_v41  ;;  %v8827_v58 = vor.u32 %v8826_v45, %v8822_v47  ;;  %v2412_v15 = vrot.slane %v17924_v42, 6  ;;  %v14298_v18 = vrot.slane %v2357_v60, 10  ;;  %16309 = vmatprep.subr.bf16.mxu1 %v2977_v49  ;;  %v20048_v53 = vld [vmem:[%s18170_s29 + $0xa4] sm:$0x1] }
 0x174   : > { %v8823_v43 = vsel %vm18245_vm8, %v8818_v37, %v8822_v47  ;;  %v2416_v61 = vrot.slane %v17925_v17, 6  ;;  %v2419_v57 = vrot.slane %v17926_v36, 6  ;;  %v8835_v45 = vshrl.u32 %v15091_v44, 16  ;;  %v15094_v17 = vld [vmem:[%s18170_s29 + $0xa8] sm:$0xf] }
 0x175   : > { %16701 = vmatprep.mubr.msk.bf16.mxu0 %vm709_vm4, %v15118_v5  ;;  %v8828_v10 = vrot.slane %v8827_v58, 4  ;;  %v2413_v63 = vsel %vm18920_vm13, %v2411_v38, %v2412_v15  ;;  %v8838_v41 = vshll.u32 %v15091_v44, 16  ;;  %v23778_v42 = vshll.u32 %v20038_v20, 16  ;;  %v20058_v36 = vld [vmem:[%s18170_s29 + $0xac] sm:$0xf] }
 0x176   : > { %v14314_v47 = vcombine.low %v2410_v31, %v2413_v63  ;;  %v2417_v60 = vsel %vm18920_vm13, %v14298_v18, %v2416_v61  ;;  %v2418_v37 = vrot.slane %v2416_v61, 4  ;;  %v8837_v58 = vrot.slane %v8835_v45, 4  ;;  %v20067_v63 = vld [vmem:[%s18170_s29 + $0xb0] sm:$0x1] }
 0x177   : > { %v8833_v5 = vsel %vm18245_vm8, %v8828_v10, %v8832_v22  ;;  %v8840_v38 = vrot.slane %v8838_v41, 5  ;;  %v23780_v15 = vshrl.u32 %v20038_v20, 16  ;;  %v8846_v31 = vrot.slane %v23778_v42, 5 }
 0x178   : > { %v15119_v44 = vcombine.low %v8823_v43, %v8833_v5  ;;  %16277 = vmatprep.mubr.msk.bf16.mxu1 %vm709_vm4, %v14314_v47  ;;  %v2420_v18 = vsel %vm18920_vm13, %v2418_v37, %v2419_v57  ;;  %v8854_v61 = vshll.u32 %v20048_v53, 16  ;;  %v8859_v41 = vshrl.u32 %v15094_v17, 16  ;;  %v2358_v43 = vld [vmem:[%s18170_s29 + $0x18] sm:$0xc] }
 0x179   : > { %v14315_v22 = vcombine.low %v2417_v60, %v2420_v18  ;;  %v8841_v10 = vor.u32 %v8840_v38, %v8837_v58  ;;  %v8850_v45 = vrot.slane %v23780_v15, 4  ;;  %v8862_v5 = vshll.u32 %v15094_v17, 16  ;;  %v2359_v38 = vld [vmem:[%s18170_s29 + $0x24] sm:$0xc] }
 0x17a   : > { %16702 = vmatmul.mubr.msk.bf16.gmra.mrb[16].mxu0 %vm709_vm4, %v15119_v44  ;;  %v8856_v47 = vrot.slane %v8854_v61, 5  ;;  %v23784_v57 = vshll.u32 %v20058_v36, 16  ;;  %v23785_v37 = vshrl.u32 %v20058_v36, 16  ;;  %v8861_v60 = vrot.slane %v8859_v41, 4  ;;  %v17927_v41 = vld [vmem:[%s18170_s29 + $0x1c] sm:$0xf] }
 0x17b   : > { %16278 = vmatmul.mubr.msk.bf16.vlgmr.msra.gmra.mrb[0].mxu1 %vm709_vm4, %v14315_v22  ;;  %v8842_v42 = vrot.slane %v8841_v10, 4  ;;  %v8851_v19 = vor.u32 %v8850_v45, %v8846_v31  ;;  %v8878_v58 = vshll.u32 %v20067_v63, 16  ;;  %v8864_v18 = vrot.slane %v8862_v5, 5  ;;  %v17928_v5 = vld [vmem:[%s18170_s29 + $0x20] sm:$0x3] }
 0x17c   : > { %16310 = vmatpush3.bf16.msra.mxu1 %v2977_v49  ;;  %v8870_v17 = vrot.slane %v23784_v57, 5  ;;  %v8874_v44 = vrot.slane %v23785_v37, 4  ;;  %v14299_v61 = vrot.slane %v2358_v43, 10  ;;  %v2423_v15 = vrot.slane %v17927_v41, 6  ;;  %v15097_v57 = vld [vmem:[%s18170_s29 + $0xb4] sm:$0xf] }
 0x17d   : > { %v8847_v22 = vsel %vm18245_vm8, %v8842_v42, %v8846_v31  ;;  %v8852_v10 = vrot.slane %v8851_v19, 4  ;;  %v8880_v45 = vrot.slane %v8878_v58, 5  ;;  %v8865_v8 = vor.u32 %v8864_v18, %v8861_v60  ;;  %v17929_v19 = vld [vmem:[%s18170_s29 + $0x28] sm:$0xf]  ;;  %v17930_v18 = vld [vmem:[%s18170_s29 + $0x2c] sm:$0x3] }
 0x17e   : > { %v8875_v49 = vor.u32 %v8874_v44, %v8870_v17  ;;  %v2426_v2 = vrot.slane %v17928_v5, 6  ;;  %v14300_v51 = vrot.slane %v2359_v38, 10  ;;  %v2424_v43 = vsel %vm18920_vm13, %v14299_v61, %v2423_v15  ;;  %v20094_v5 = vld [vmem:[%s18170_s29 + $0xb8] sm:$0xf]  ;;  %v20101_v61 = vld [vmem:[%s18170_s29 + $0xbc] sm:$0x1] }
 0x17f   : > { %v8857_v37 = vsel %vm18245_vm8, %v8852_v10, %v8856_v47  ;;  %v2425_v42 = vrot.slane %v2423_v15, 4  ;;  %v2430_v31 = vrot.slane %v17929_v19, 6  ;;  %v8866_v41 = vrot.slane %v8865_v8, 4  ;;  %v15100_v19 = vld [vmem:[%s18170_s29 + $0xc0] sm:$0xf] }
 0x180   : > { %v15120_v58 = vcombine.low %v8847_v22, %v8857_v37  ;;  %v8876_v60 = vrot.slane %v8875_v49, 4  ;;  %v2433_v44 = vrot.slane %v17930_v18, 6  ;;  %v8883_v15 = vshrl.u32 %v15097_v57, 16 }
 0x181   : > { %v2427_v38 = vsel %vm18920_vm13, %v2425_v42, %v2426_v2  ;;  %v2431_v47 = vsel %vm18920_vm13, %v14300_v51, %v2430_v31  ;;  %v2432_v10 = vrot.slane %v2430_v31, 4  ;;  %v8871_v8 = vsel %vm18245_vm8, %v8866_v41, %v8870_v17  ;;  %v20110_v2 = vld [vmem:[%s18170_s29 + $0xc4] sm:$0xf] }
 0x182   : > { %16705 = vmatprep.mubr.msk.bf16.mxu0 %vm709_vm4, %v15120_v58  ;;  %v8881_v37 = vsel %vm18245_vm8, %v8876_v60, %v8880_v45  ;;  %v14316_v22 = vcombine.low %v2424_v43, %v2427_v38  ;;  %v8886_v49 = vshll.u32 %v15097_v57, 16  ;;  %v8885_v31 = vrot.slane %v8883_v15, 4  ;;  %v20119_v57 = vld [vmem:[%s18170_s29 + $0xc8] sm:$0x1] }
 0x183   : > { %v15121_v51 = vcombine.low %v8871_v8, %v8881_v37  ;;  %v2434_v42 = vsel %vm18920_vm13, %v2432_v10, %v2433_v44  ;;  %v23786_v58 = vshll.u32 %v20094_v5, 16  ;;  %v23787_v41 = vshrl.u32 %v20094_v5, 16  ;;  %v2360_v10 = vld [vmem:[%s18170_s29 + $0x30] sm:$0xc] }
 0x184   : > { %16281 = vmatprep.mubr.msk.bf16.mxu1 %vm709_vm4, %v14316_v22  ;;  %v14317_v18 = vcombine.low %v2431_v47, %v2434_v42  ;;  %v8888_v17 = vrot.slane %v8886_v49, 5  ;;  %v8902_v45 = vshll.u32 %v20101_v61, 16  ;;  %v8907_v60 = vshrl.u32 %v15100_v19, 16  ;;  %v2361_v42 = vld [vmem:[%s18170_s29 + $0x3c] sm:$0xc] }
 0x185   : > { %16706 = vmatmul.mubr.msk.bf16.gmra.mrb[20].mxu0 %vm709_vm4, %v15121_v51  ;;  %v8894_v43 = vrot.slane %v23786_v58, 5  ;;  %v8910_v44 = vshll.u32 %v15100_v19, 16  ;;  %v23791_v38 = vshll.u32 %v20110_v2, 16  ;;  %v8898_v15 = vrot.slane %v23787_v41, 4 }
 0x186   : > { %16282 = vmatmul.mubr.msk.bf16.gmra.mrb[4].mxu1 %vm709_vm4, %v14317_v18  ;;  %v8889_v47 = vor.u32 %v8888_v17, %v8885_v31  ;;  %v8904_v8 = vrot.slane %v8902_v45, 5  ;;  %v23794_v37 = vshrl.u32 %v20110_v2, 16  ;;  %v8909_v22 = vrot.slane %v8907_v60, 4  ;;  %v17932_v60 = vld [vmem:[%s18170_s29 + $0x38] sm:$0x3] }
 0x187   : > { %v8912_v49 = vrot.slane %v8910_v44, 5  ;;  %v8918_v19 = vrot.slane %v23791_v38, 5  ;;  %v8926_v51 = vshll.u32 %v20119_v57, 16  ;;  %v8899_v18 = vor.u32 %v8898_v15, %v8894_v43 }
 0x188   : > { %v8890_v58 = vrot.slane %v8889_v47, 4  ;;  %v8922_v31 = vrot.slane %v23794_v37, 4  ;;  %v14301_v17 = vrot.slane %v2360_v10, 10  ;;  %v2437_v39 = vrot.slane %v17931_v56, 6  ;;  %v17934_v37 = vld [vmem:[%s18170_s29 + $0x44] sm:$0x3] }
 0x189   : > { %v8913_v41 = vor.u32 %v8912_v49, %v8909_v22  ;;  %v8928_v45 = vrot.slane %v8926_v51, 5  ;;  %v2440_v44 = vrot.slane %v17932_v60, 6  ;;  %v8900_v7 = vrot.slane %v8899_v18, 4  ;;  %v17933_v49 = vld [vmem:[%s18170_s29 + $0x40] sm:$0xf] }
 0x18a   : > { %v8895_v38 = vsel %vm18245_vm8, %v8890_v58, %v8894_v43  ;;  %v8923_v47 = vor.u32 %v8922_v31, %v8918_v19  ;;  %v14302_v15 = vrot.slane %v2361_v42, 10  ;;  %v2438_v10 = vsel %vm18920_vm13, %v14301_v17, %v2437_v39  ;;  %v20157_v18 = vld [vmem:[%s18170_s29 + $0xd4] sm:$0x1] }
 0x18b   : > { %v8914_v35 = vrot.slane %v8913_v41, 4  ;;  %v2439_v22 = vrot.slane %v2437_v39, 4  ;;  %v2444_v51 = vrot.slane %v17933_v49, 6  ;;  %v8905_v56 = vsel %vm18245_vm8, %v8900_v7, %v8904_v8  ;;  %v15106_v7 = vld [vmem:[%s18170_s29 + $0xd8] sm:$0xf] }
 0x18c   : > { %v8924_v60 = vrot.slane %v8923_v47, 4  ;;  %v2447_v24 = vrot.slane %v17934_v37, 6  ;;  %v8931_v58 = vshrl.u32 %v15103_v25, 16  ;;  %v15122_v43 = vcombine.low %v8895_v38, %v8905_v56  ;;  %v20166_v47 = vld [vmem:[%s18170_s29 + $0xdc] sm:$0xf] }
 0x18d   : > { %v8919_v41 = vsel %vm18245_vm8, %v8914_v35, %v8918_v19  ;;  %v2441_v42 = vsel %vm18920_vm13, %v2439_v22, %v2440_v44  ;;  %v2445_v39 = vsel %vm18920_vm13, %v14302_v15, %v2444_v51  ;;  %v2446_v31 = vrot.slane %v2444_v51, 4  ;;  %24015 = vst [vmem:[#allocation39_spill] sm:$0xff] %v20166_v47 }
 0x18e   : > { %v8929_v8 = vsel %vm18245_vm8, %v8924_v60, %v8928_v45  ;;  %v14318_v37 = vcombine.low %v2438_v10, %v2441_v42  ;;  %v8933_v17 = vrot.slane %v8931_v58, 4  ;;  %16709 = vmatprep.mubr.msk.bf16.mxu0 %vm709_vm4, %v15122_v43  ;;  %v8934_v35 = vshll.u32 %v15103_v25, 16  ;;  %v20173_v10 = vld [vmem:[%s18170_s29 + $0xe0] sm:$0x1]  ;;  %v2362_v58 = vld [vmem:[%s18170_s29 + $0x48] sm:$0xc] }
 0x18f   : > { %v15123_v38 = vcombine.low %v8919_v41, %v8929_v8  ;;  %v23797_v19 = vshll.u32 %v20148_v59, 16  ;;  %v23800_v44 = vshrl.u32 %v20148_v59, 16  ;;  %v2448_v15 = vsel %vm18920_vm13, %v2446_v31, %v2447_v24 }
 0x190   : > { %16285 = vmatprep.mubr.msk.bf16.mxu1 %vm709_vm4, %v14318_v37  ;;  %v8950_v45 = vshll.u32 %v20157_v18, 16  ;;  %v8955_v22 = vshrl.u32 %v15106_v7, 16  ;;  %v8958_v49 = vshll.u32 %v15106_v7, 16  ;;  %v14319_v25 = vcombine.low %v2445_v39, %v2448_v15  ;;  %v17935_v15 = vld [vmem:[%s18170_s29 + $0x4c] sm:$0xf] }
 0x191   : > { %16710 = vmatmul.mubr.msk.bf16.gmra.mrb[24].mxu0 %vm709_vm4, %v15123_v38  ;;  %v8936_v51 = vrot.slane %v8934_v35, 5  ;;  %v8942_v56 = vrot.slane %v23797_v19, 5  ;;  %v8946_v60 = vrot.slane %v23800_v44, 4  ;;  %v23798_v42 = vshll.u32 %v20166_v47, 16  ;;  %v20207_v44 = vld [vmem:[%s18170_s29 + $0x30] sm:$0xe] }
 0x192   : > { %v8952_v24 = vrot.slane %v8950_v45, 5  ;;  %v8957_v43 = vrot.slane %v8955_v22, 4  ;;  %v8960_v41 = vrot.slane %v8958_v49, 5  ;;  %16286 = vmatmul.mubr.msk.bf16.gmra.mrb[8].mxu1 %vm709_vm4, %v14319_v25  ;;  %v23799_v39 = vshrl.u32 %v20166_v47, 16  ;;  %v2363_v22 = vld [vmem:[%s18170_s29 + $0x54] sm:$0xc] }
 0x193   : > { %v8937_v7 = vor.u32 %v8936_v51, %v8933_v17  ;;  %v8947_v8 = vor.u32 %v8946_v60, %v8942_v56  ;;  %v8974_v37 = vshll.u32 %v20173_v10, 16  ;;  %v8966_v38 = vrot.slane %v23798_v42, 5 }
 0x194   : > { %v8961_v31 = vor.u32 %v8960_v41, %v8957_v43  ;;  %v14303_v35 = vrot.slane %v2362_v58, 10  ;;  %v2451_v45 = vrot.slane %v17935_v15, 6  ;;  %v8970_v17 = vrot.slane %v23799_v39, 4  ;;  %v17936_v41 = vld [vmem:[%s18170_s29 + $0x50] sm:$0x3] }
 0x195   : > { %v8938_v49 = vrot.slane %v8937_v7, 4  ;;  %v8948_v19 = vrot.slane %v8947_v8, 4  ;;  %v8976_v25 = vrot.slane %v8974_v37, 5  ;;  %v2454_v42 = vrot.slane %v17936_v41, 6  ;;  %v20195_v58 = vld [vmem:[%s18170_s29 + $0x24] sm:$0xe] }
 0x196   : > { %v8962_v51 = vrot.slane %v8961_v31, 4  ;;  %v2452_v60 = vsel %vm18920_vm13, %v14303_v35, %v2451_v45  ;;  %v2453_v43 = vrot.slane %v2451_v45, 4  ;;  %v8971_v15 = vor.u32 %v8970_v17, %v8966_v38  ;;  %v17937_v45 = vld [vmem:[%s18170_s29 + $0x58] sm:$0xf] }
 0x197   : > { %v8943_v7 = vsel %vm18245_vm8, %v8938_v49, %v8942_v56  ;;  %v8953_v8 = vsel %vm18245_vm8, %v8948_v19, %v8952_v24  ;;  %v14304_v37 = vrot.slane %v2363_v22, 10  ;;  %v2458_v41 = vrot.slane %v17937_v45, 6  ;;  %v17938_v19 = vld [vmem:[%s18170_s29 + $0x5c] sm:$0x3]  ;;  %v17942_v45 = vld [vmem:[%s18170_s29 + $0x38] sm:$0x1] }
 0x198   : > { %v15124_v39 = vcombine.low %v8943_v7, %v8953_v8  ;;  %v8967_v31 = vsel %vm18245_vm8, %v8962_v51, %v8966_v38  ;;  %v2455_v35 = vsel %vm18920_vm13, %v2453_v43, %v2454_v42  ;;  %v8972_v56 = vrot.slane %v8971_v15, 4  ;;  %v17939_v42 = vld [vmem:[%s18170_s29 + $0x28] sm:$0xf]  ;;  %v17940_v43 = vld [vmem:[%s18170_s29 + $0x2c] sm:$0x1] }
 0x199   : > { %v14320_v49 = vcombine.low %v2452_v60, %v2455_v35  ;;  %v2461_v24 = vrot.slane %v17938_v19, 6  ;;  %v15158_v22 = vrot.slane %v20195_v58, 9  ;;  %v2459_v38 = vsel %vm18920_vm13, %v14304_v37, %v2458_v41  ;;  %v2364_v8 = vld [vmem:[%s18170_s29 + $0x60] sm:$0xc]  ;;  %v17941_v35 = vld [vmem:[%s18170_s29 + $0x34] sm:$0xf] }
 0x19a   : > { %16713 = vmatprep.mubr.msk.bf16.mxu0 %vm709_vm4, %v15124_v39  ;;  %v2460_v17 = vrot.slane %v2458_v41, 4  ;;  %v9338_v51 = vrot.slane %v17939_v42, 5  ;;  %v9341_v7 = vrot.slane %v17940_v43, 5  ;;  %v8977_v60 = vsel %vm18245_vm8, %v8972_v56, %v8976_v25  ;;  %v15223_v41 = vld [vmem:[%s23647_s1 + $0x24] sm:$0x3] }
 0x19b   : > { %16289 = vmatprep.mubr.msk.bf16.mxu1 %vm709_vm4, %v14320_v49  ;;  %v15159_v15 = vrot.slane %v20207_v44, 9  ;;  %v9345_v39 = vrot.slane %v17941_v35, 5  ;;  %v9348_v37 = vrot.slane %v17942_v45, 5  ;;  %v15125_v19 = vcombine.low %v8967_v31, %v8977_v60  ;;  %v2365_v49 = vld [vmem:[%s18170_s29 + $0x6c] sm:$0xc] }
 0x19c   : > { %v2462_v42 = vsel %vm18920_vm13, %v2460_v17, %v2461_v24  ;;  %v9339_v25 = vsel %vm18182_vm5, %v15158_v22, %v9338_v51  ;;  %v9340_v56 = vrot.slane %v9338_v51, 4  ;;  %v14305_v54 = vrot.slane %v2364_v8, 10  ;;  %v17943_v60 = vld [vmem:[%s18170_s29 + $0x64] sm:$0xf]  ;;  %v17944_v17 = vld [vmem:[%s18170_s29 + $0x68] sm:$0x3] }
 0x19d   : > { %v14321_v43 = vcombine.low %v2459_v38, %v2462_v42  ;;  %v9346_v35 = vsel %vm18182_vm5, %v15159_v15, %v9345_v39  ;;  %v9347_v45 = vrot.slane %v9345_v39, 4  ;;  %16714 = vmatmul.mubr.msk.bf16.gmra.mrb[28].mxu0 %vm709_vm4, %v15125_v19  ;;  %v2465_v24 = vrot.slane %v17943_v60, 6  ;;  %v20240_v38 = vld [vmem:[%s18170_s29 + $0x3c] sm:$0xe]  ;;  %v17945_v19 = vld [vmem:[%s18170_s29 + $0x70] sm:$0xf] }
 0x19e   : > { %v9342_v31 = vsel %vm18182_vm5, %v9340_v56, %v9341_v7  ;;  %v2468_v22 = vrot.slane %v17944_v17, 6  ;;  %v10225_v51 = vand.u32 %v15223_v41, %v18141_v4  ;;  %v14306_v39 = vrot.slane %v2365_v49, 10  ;;  %v20247_v42 = vld [vmem:[%s18170_s29 + $0x48] sm:$0xe] }
 0x19f   : > { %16290 = vmatmul.mubr.msk.bf16.gmra.mrb[12].mxu1 %vm709_vm4, %v14321_v43  ;;  %v15175_v15 = vcombine.low %v9339_v25, %v9342_v31  ;;  %v9349_v8 = vsel %vm18182_vm5, %v9347_v45, %v9348_v37  ;;  %v2472_v7 = vrot.slane %v17945_v19, 6  ;;  %v2466_v41 = vsel %vm18920_vm13, %v14305_v54, %v2465_v24  ;;  %v17946_v43 = vld [vmem:[%s18170_s29 + $0x74] sm:$0x3]  ;;  %v17947_v31 = vld [vmem:[%s18170_s29 + $0x40] sm:$0xf] }
 0x1a0   : > { %v15176_v56 = vcombine.low %v9346_v35, %v9349_v8  ;;  %v2467_v60 = vrot.slane %v2465_v24, 4  ;;  %16751 = vmatprep.subr.bf16.mxu0 %v10225_v51  ;;  %v2475_v25 = vrot.slane %v17946_v43, 6  ;;  %v15160_v45 = vrot.slane %v20240_v38, 9  ;;  %v17948_v24 = vld [vmem:[%s18170_s29 + $0x44] sm:$0x1] }
 0x1a1   : > { %16719 = vmatprep.mubr.msk.bf16.mxu0 %vm709_vm4, %v15175_v15  ;;  %v2473_v37 = vsel %vm18920_vm13, %v14306_v39, %v2472_v7  ;;  %v2474_v49 = vrot.slane %v2472_v7, 4  ;;  %v9352_v35 = vrot.slane %v17947_v31, 5  ;;  %v9355_v17 = vrot.slane %v17948_v24, 5  ;;  %v17949_v19 = vld [vmem:[%s18170_s29 + $0x4c] sm:$0xf] }
 0x1a2   : > { %v2469_v54 = vsel %vm18920_vm13, %v2467_v60, %v2468_v22  ;;  %v15161_v8 = vrot.slane %v20247_v42, 9  ;;  %v9359_v15 = vrot.slane %v17949_v19, 5  ;;  %v2366_v43 = vld [vmem:[%s18170_s29 + $0x78] sm:$0xc]  ;;  %v9362_v19 = vrot.slane %v17950_v52, 5 }
 0x1a3   : > { %v14322_v39 = vcombine.low %v2466_v41, %v2469_v54  ;;  %v2476_v7 = vsel %vm18920_vm13, %v2474_v49, %v2475_v25  ;;  %v9353_v31 = vsel %vm18182_vm5, %v15160_v45, %v9352_v35  ;;  %v9354_v1 = vrot.slane %v9352_v35, 4  ;;  %v17951_v49 = vld [vmem:[%s18170_s29 + $0x7c] sm:$0xf]  ;;  %v17952_v45 = vld [vmem:[%s18170_s29 + $0x80] sm:$0x3] }
 0x1a4   : > { %v14323_v22 = vcombine.low %v2473_v37, %v2476_v7  ;;  %v9360_v60 = vsel %vm18182_vm5, %v15161_v8, %v9359_v15  ;;  %v9361_v24 = vrot.slane %v9359_v15, 4  ;;  %v14307_v25 = vrot.slane %v2366_v43, 10  ;;  %v20277_v37 = vld [vmem:[%s18170_s29 + $0x54] sm:$0xe]  ;;  %v17953_v7 = vld [vmem:[%s18170_s29 + $0x88] sm:$0xf] }
 0x1a5   : > { %16293 = vmatprep.mubr.msk.bf16.mxu1 %vm709_vm4, %v14322_v39  ;;  %v9356_v41 = vsel %vm18182_vm5, %v9354_v1, %v9355_v17  ;;  %v2479_v54 = vrot.slane %v17951_v49, 6  ;;  %v2482_v35 = vrot.slane %v17952_v45, 6  ;;  %16720 = vmatmul.mubr.msk.bf16.vlgmr.msra.gmra.mrb[0].mxu0 %vm709_vm4, %v15176_v56  ;;  %v14308_v52 = vrot.slane %v2367_v27, 10  ;;  %v17954_v49 = vld [vmem:[%s18170_s29 + $0x8c] sm:$0x3] }
 0x1a6   : > { %v15177_v8 = vcombine.low %v9353_v31, %v9356_v41  ;;  %v9363_v15 = vsel %vm18182_vm5, %v9361_v24, %v9362_v19  ;;  %v2486_v39 = vrot.slane %v17953_v7, 6  ;;  %16752 = vmatpush3.bf16.msra.mxu0 %v10225_v51  ;;  %v2489_v56 = vrot.slane %v17954_v49, 6  ;;  %v17955_v49 = vld [vmem:[%s18170_s29 + $0x94] sm:$0xf] }
 0x1a7   : > { %16294 = vmatmul.mubr.msk.bf16.gmra.mrb[16].mxu1 %vm709_vm4, %v14323_v22  ;;  %v15178_v1 = vcombine.low %v9360_v60, %v9363_v15  ;;  %v2480_v17 = vsel %vm18920_vm13, %v14307_v25, %v2479_v54  ;;  %v2481_v43 = vrot.slane %v2479_v54, 4  ;;  %v15162_v24 = vrot.slane %v20277_v37, 9  ;;  %v2368_v25 = vld [vmem:[%s18170_s29 + $0x90] sm:$0xc] }
 0x1a8   : > { %16723 = vmatprep.mubr.msk.bf16.mxu0 %vm709_vm4, %v15177_v8  ;;  %v2487_v27 = vsel %vm18920_vm13, %v14308_v52, %v2486_v39  ;;  %v2488_v31 = vrot.slane %v2486_v39, 4  ;;  %v9366_v22 = vrot.slane %v19825_v14, 5  ;;  %v9369_v60 = vrot.slane %v19831_v6, 5  ;;  %v2369_v52 = vld [vmem:[%s18170_s29 + $0x9c] sm:$0xc] }
 0x1a9   : > { %v2483_v51 = vsel %vm18920_vm13, %v2481_v43, %v2482_v35  ;;  %v15163_v19 = vrot.slane %v20284_v26, 9  ;;  %v9373_v41 = vrot.slane %v19843_v0, 5  ;;  %v9376_v39 = vrot.slane %v19851_v9, 5  ;;  %v20321_v9 = vld [vmem:[%s18170_s29 + $0x78] sm:$0xe] }
 0x1aa   : > { %v14324_v54 = vcombine.low %v2480_v17, %v2483_v51  ;;  %v2490_v45 = vsel %vm18920_vm13, %v2488_v31, %v2489_v56  ;;  %v9367_v8 = vsel %vm18182_vm5, %v15162_v24, %v9366_v22  ;;  %v9368_v15 = vrot.slane %v9366_v22, 4  ;;  %v20315_v24 = vld [vmem:[%s18170_s29 + $0x6c] sm:$0xe] }
 0x1ab   : > { %v14325_v35 = vcombine.low %v2487_v27, %v2490_v45  ;;  %v9374_v6 = vsel %vm18182_vm5, %v15163_v19, %v9373_v41  ;;  %v9375_v7 = vrot.slane %v9373_v41, 4  ;;  %v14309_v43 = vrot.slane %v2368_v25, 10  ;;  %v17956_v19 = vld [vmem:[%s18170_s29 + $0xa0] sm:$0xf] }
 0x1ac   : > { %16297 = vmatprep.mubr.msk.bf16.mxu1 %vm709_vm4, %v14324_v54  ;;  %v9370_v17 = vsel %vm18182_vm5, %v9368_v15, %v9369_v60  ;;  %v2493_v56 = vrot.slane %v17955_v49, 6  ;;  %v2496_v31 = vrot.slane %v19864_v55, 6  ;;  %v14310_v51 = vrot.slane %v2369_v52, 10 }
 0x1ad   : > { %v15179_v27 = vcombine.low %v9367_v8, %v9370_v17  ;;  %v9377_v22 = vsel %vm18182_vm5, %v9375_v7, %v9376_v39  ;;  %v2500_v41 = vrot.slane %v17956_v19, 6  ;;  %16724 = vmatmul.mubr.msk.bf16.gmra.mrb[4].mxu0 %vm709_vm4, %v15178_v1  ;;  %v2503_v55 = vrot.slane %v19890_v30, 6  ;;  %v2370_v7 = vld [vmem:[%s18170_s29 + $0xa8] sm:$0xc] }
 0x1ae   : > { %v15180_v60 = vcombine.low %v9374_v6, %v9377_v22  ;;  %v2494_v25 = vsel %vm18920_vm13, %v14309_v43, %v2493_v56  ;;  %v2495_v54 = vrot.slane %v2493_v56, 4  ;;  %v15164_v15 = vrot.slane %v20315_v24, 9  ;;  %v2371_v56 = vld [vmem:[%s18170_s29 + $0xb4] sm:$0xc] }
 0x1af   : > { %16298 = vmatmul.mubr.msk.bf16.gmra.mrb[20].mxu1 %vm709_vm4, %v14325_v35  ;;  %16727 = vmatprep.mubr.msk.bf16.mxu0 %vm709_vm4, %v15179_v27  ;;  %v2501_v45 = vsel %vm18920_vm13, %v14310_v51, %v2500_v41  ;;  %v2502_v8 = vrot.slane %v2500_v41, 4  ;;  %v9380_v1 = vrot.slane %v19902_v3, 5  ;;  %v9383_v6 = vrot.slane %v19919_v13, 5  ;;  %v17957_v41 = vld [vmem:[%s18170_s29 + $0xac] sm:$0xf] }
 0x1b0   : > { %v2497_v52 = vsel %vm18920_vm13, %v2495_v54, %v2496_v31  ;;  %v15165_v30 = vrot.slane %v20321_v9, 9  ;;  %v9387_v35 = vrot.slane %v19924_v34, 5  ;;  %v9390_v22 = vrot.slane %v19934_v33, 5  ;;  %v20361_v33 = vld [vmem:[%s18170_s29 + $0x90] sm:$0xe] }
 0x1b1   : > { %v14326_v39 = vcombine.low %v2494_v25, %v2497_v52  ;;  %v2504_v17 = vsel %vm18920_vm13, %v2502_v8, %v2503_v55  ;;  %v9381_v43 = vsel %vm18182_vm5, %v15164_v15, %v9380_v1  ;;  %v9382_v49 = vrot.slane %v9380_v1, 4  ;;  %v20355_v55 = vld [vmem:[%s18170_s29 + $0x84] sm:$0xe]  ;;  %v17958_v1 = vld [vmem:[%s18170_s29 + $0xb8] sm:$0xf] }
 0x1b2   : > { %v14327_v31 = vcombine.low %v2501_v45, %v2504_v17  ;;  %v20346_v13 = vsel %vm18182_vm5, %v15165_v30, %v9387_v35  ;;  %v9389_v27 = vrot.slane %v9387_v35, 4  ;;  %v14311_v19 = vrot.slane %v2370_v7, 10 }
 0x1b3   : > { %16301 = vmatprep.mubr.msk.bf16.mxu1 %vm709_vm4, %v14326_v39  ;;  %v9384_v51 = vsel %vm18182_vm5, %v9382_v49, %v9383_v6  ;;  %v2507_v25 = vrot.slane %v17957_v41, 6  ;;  %v2510_v54 = vrot.slane %v19950_v29, 6  ;;  %v14312_v15 = vrot.slane %v2371_v56, 10  ;;  %v14459_v49 = vld [vmem:[%s23647_s1 + $0xc] sm:$0x3] }
 0x1b4   : > { %v15181_v45 = vcombine.low %v9381_v43, %v9384_v51  ;;  %v9391_v8 = vsel %vm18182_vm5, %v9389_v27, %v9390_v22  ;;  %v2514_v52 = vrot.slane %v17958_v1, 6  ;;  %v2517_v29 = vrot.slane %v19970_v40, 6  ;;  %v20383_v27 = vld [vmem:[%s18170_s29 + $0x9c] sm:$0xe]  ;;  %v20390_v41 = vld [vmem:[%s18170_s29 + $0xa8] sm:$0xe] }
 0x1b5   : > { %v15182_v30 = vcombine.low %v20346_v13, %v9391_v8  ;;  %v2508_v6 = vsel %vm18920_vm13, %v14311_v19, %v2507_v25  ;;  %v2509_v35 = vrot.slane %v2507_v25, 4  ;;  %16728 = vmatmul.mubr.msk.bf16.gmra.mrb[8].mxu0 %vm709_vm4, %v15180_v60  ;;  %v15166_v17 = vrot.slane %v20355_v55, 9 }
 0x1b6   : > { %v2515_v7 = vsel %vm18920_vm13, %v14312_v15, %v2514_v52  ;;  %v2516_v39 = vrot.slane %v2514_v52, 4  ;;  %v9394_v43 = vrot.slane %v19987_v23, 5  ;;  %16731 = vmatprep.mubr.msk.bf16.mxu0 %vm709_vm4, %v15181_v45  ;;  %v9397_v60 = vrot.slane %v19992_v11, 5 }
 0x1b7   : > { %16302 = vmatmul.mubr.msk.bf16.gmra.mrb[24].mxu1 %vm709_vm4, %v14327_v31  ;;  %v2511_v40 = vsel %vm18920_vm13, %v2509_v35, %v2510_v54  ;;  %v15167_v56 = vrot.slane %v20361_v33, 9  ;;  %v9401_v13 = vrot.slane %v20000_v12, 5  ;;  %v9404_v45 = vrot.slane %v20007_v50, 5 }
 0x1b8   : > { %v14328_v22 = vcombine.low %v2508_v6, %v2511_v40  ;;  %v2518_v51 = vsel %vm18920_vm13, %v2516_v39, %v2517_v29  ;;  %v9395_v31 = vsel %vm18182_vm5, %v15166_v17, %v9394_v43  ;;  %v9396_v19 = vrot.slane %v9394_v43, 4  ;;  %v20406_v6 = vld [vmem:[%s18170_s29 + $0xb4] sm:$0xe]  ;;  %v20413_v39 = vld [vmem:[%s18170_s29 + $0xc0] sm:$0xe]  ;;  %v17817_v43 = vld [vmem:[%s18170_s29 + $0xc] sm:$0xff]  }
 0x1b9   : > { %v14329_v25 = vcombine.low %v2515_v7, %v2518_v51  ;;  %v20394_v11 = vsel %vm18182_vm5, %v15167_v56, %v9401_v13  ;;  %v9403_v54 = vrot.slane %v9401_v13, 4  ;;  %v20401_v15 = vand.u32 %v14459_v49, %v18141_v4  ;;  %v20426_v51 = vld [vmem:[%s18170_s29 + $0xcc] sm:$0xe] }
 0x1ba   : > { %16305 = vmatprep.mubr.msk.bf16.mxu1 %vm709_vm4, %v14328_v22  ;;  %v9398_v8 = vsel %vm18182_vm5, %v9396_v19, %v9397_v60  ;;  %v15168_v1 = vrot.slane %v20383_v27, 9  ;;  %v9408_v52 = vrot.slane %v20038_v20, 5  ;;  %v9411_v50 = vrot.slane %v20048_v53, 5 }
 0x1bb   : > { %v15183_v35 = vcombine.low %v9395_v31, %v9398_v8  ;;  %v9405_v29 = vsel %vm18182_vm5, %v9403_v54, %v9404_v45  ;;  %v15169_v7 = vrot.slane %v20390_v41, 9  ;;  %16343 = vmatprep.subr.bf16.mxu1 %v20401_v15  ;;  %v9415_v60 = vrot.slane %v20058_v36, 5 }
 0x1bc   : > { %v15184_v17 = vcombine.low %v20394_v11, %v9405_v29  ;;  %v9409_v49 = vsel %vm18182_vm5, %v15168_v1, %v9408_v52  ;;  %v9410_v40 = vrot.slane %v9408_v52, 4  ;;  %v9418_v56 = vrot.slane %v20067_v63, 5 }
 0x1bd   : > { %v15170_v13 = vrot.slane %v20406_v6, 9  ;;  %v9422_v53 = vrot.slane %v20094_v5, 5  ;;  %v9425_v22 = vrot.slane %v20101_v61, 5  ;;  %16732 = vmatmul.mubr.msk.bf16.gmra.mrb[12].mxu0 %vm709_vm4, %v15182_v30  ;;  %v20433_v19 = vsel %vm18182_vm5, %v15169_v7, %v9415_v60 }
 0x1be   : > { %v9412_v31 = vsel %vm18182_vm5, %v9410_v40, %v9411_v50  ;;  %v9417_v11 = vrot.slane %v9415_v60, 4  ;;  %v15171_v63 = vrot.slane %v20413_v39, 9  ;;  %16735 = vmatprep.mubr.msk.bf16.mxu0 %vm709_vm4, %v15183_v35  ;;  %v9429_v45 = vrot.slane %v20110_v2, 5  ;;  %v20452_v35 = vld [vmem:[%s18170_s29 + $0xd8] sm:$0xe] }
 0x1bf   : > { %16306 = vmatmul.mubr.msk.bf16.gmra.mrb[28].mxu1 %vm709_vm4, %v14329_v25  ;;  %v15185_v61 = vcombine.low %v9409_v49, %v9412_v31  ;;  %v20440_v54 = vsel %vm18182_vm5, %v15170_v13, %v9422_v53  ;;  %v9424_v30 = vrot.slane %v9422_v53, 4  ;;  %v9432_v1 = vrot.slane %v20119_v57, 5 }
 0x1c0   : > { %16311 = vmatprep.mubr.msk.bf16.mxu1 %vm709_vm4, %v17817_v43  ;;  %v20446_v8 = vsel %vm18182_vm5, %v9417_v11, %v9418_v56  ;;  %v15172_v25 = vrot.slane %v20426_v51, 9  ;;  %v9436_v52 = vrot.slane %v20148_v59, 5  ;;  %v20462_v7 = vsel %vm18182_vm5, %v15171_v63, %v9429_v45  ;;  %v17818_v56 = vld [vmem:[%s18170_s29 + $0x18] sm:$0xff]   ;;  %v15207_v11 = vld [vmem:[%s18170_s29 + $0x2c] sm:$0x3]  ;;  %v17819_v63 = vld [vmem:[%s18170_s29 + $0x24] sm:$0xff]  }
 0x1c1   : > { %v20458_v50 = vsel %vm18182_vm5, %v9424_v30, %v9425_v22  ;;  %v9431_v57 = vrot.slane %v9429_v45, 4  ;;  %v9439_v60 = vrot.slane %v20157_v18, 5  ;;  %v15173_v53 = vrot.slane %v20452_v35, 9 }
 0x1c2   : > { %v20468_v49 = vsel %vm18182_vm5, %v15172_v25, %v9436_v52  ;;  %v9438_v40 = vrot.slane %v9436_v52, 4  ;;  %v9443_v22 = vrot.slane %v20166_v47, 5  ;;  %v9446_v31 = vrot.slane %v20173_v10, 5 }
 0x1c3   : > { %v20474_v13 = vsel %vm18182_vm5, %v9431_v57, %v9432_v1  ;;  %v9759_v18 = vshrl.u32 %v20195_v58, 16  ;;  %v9762_v1 = vshll.u32 %v20195_v58, 16  ;;  %v24016_v57 = vshrl.u32 %v19662_v48, 16 }
 0x1c4   : > { %v20485_v45 = vsel %vm18182_vm5, %v9438_v40, %v9439_v60  ;;  %v20493_v10 = vsel %vm18182_vm5, %v15173_v53, %v9443_v22  ;;  %v9445_v52 = vrot.slane %v9443_v22, 4  ;;  %v24017_v43 = vshll.u32 %v19662_v48, 16  ;;  %v15208_v22 = vld [vmem:[%s18170_s29 + $0x38] sm:$0x3] }
 0x1c5   : > { %v9767_v30 = vrot.slane %v24016_v57, 5  ;;  %16736 = vmatmul.mubr.msk.bf16.gmra.mrb[16].mxu0 %vm709_vm4, %v15184_v17  ;;  %v9761_v40 = vrot.slane %v9759_v18, 5  ;;  %v9764_v60 = vrot.slane %v9762_v1, 6  ;;  %v9773_v62 = vshrl.u32 %v15207_v11, 16 }
 0x1c6   : > { %v9768_v29 = vrot.slane %v24017_v43, 6  ;;  %16739 = vmatprep.mubr.msk.bf16.mxu0 %vm709_vm4, %v15185_v61  ;;  %v20504_v58 = vsel %vm18182_vm5, %v9445_v52, %v9446_v31  ;;  %v9776_v53 = vshll.u32 %v15207_v11, 16  ;;  %v9782_v57 = vshrl.u32 %v20207_v44, 16  ;;  %v15288_v31 = vld [vmem:[%s23647_s1 + $0x26] sm:$0x3] }
 0x1c7   : > { %16312 = vmatmul.mubr.msk.bf16.vlgmr.msra.gmra.mrb[0].mxu1 %vm709_vm4, %v17818_v56  ;;  %v9785_v17 = vshll.u32 %v20207_v44, 16  ;;  %v9765_v43 = vor.u32 %v9764_v60, %v9761_v40  ;;  %v9775_v56 = vrot.slane %v9773_v62, 5  ;;  %v24018_v44 = vshrl.u32 %v19673_v46, 16 }
 0x1c8   : > { %16344 = vmatpush3.bf16.msra.mxu1 %v20401_v15  ;;  %16315 = vmatprep.mubr.msk.bf16.mxu1 %vm709_vm4, %v17819_v63  ;;  %v9769_v61 = vor.u32 %v9768_v29, %v9767_v30  ;;  %v9778_v11 = vrot.slane %v9776_v53, 6  ;;  %v9784_v18 = vrot.slane %v9782_v57, 5  ;;  %v24019_v63 = vshll.u32 %v19673_v46, 16  ;;  %v17820_v29 = vld [vmem:[%s18170_s29 + $0x30] sm:$0xff]   ;;  %v17821_v53 = vld [vmem:[%s18170_s29 + $0x3c] sm:$0xff]  }
 0x1c9   : > { %v9787_v1 = vrot.slane %v9785_v17, 6  ;;  %v9790_v52 = vrot.slane %v24018_v44, 5  ;;  %v9766_v15 = vrot.slane %v9765_v43, 4  ;;  %v9796_v40 = vshrl.u32 %v15208_v22, 16 }
 0x1ca   : > { %v9771_v25 = vrot.slane %v9769_v61, 4  ;;  %v9791_v16 = vrot.slane %v24019_v63, 6  ;;  %v9779_v30 = vor.u32 %v9778_v11, %v9775_v56  ;;  %v9799_v60 = vshll.u32 %v15208_v22, 16  ;;  %v15209_v56 = vld [vmem:[%s18170_s29 + $0x44] sm:$0x3] }
 0x1cb   : > { %v9788_v62 = vor.u32 %v9787_v1, %v9784_v18  ;;  %v20522_v48 = vand.u32 %v15288_v31, %v18141_v4  ;;  %v9770_v57 = vsel %vm18447_vm11, %v9766_v15, %v9769_v61  ;;  %v9798_v44 = vrot.slane %v9796_v40, 5 }
 0x1cc   : > { %v9792_v17 = vor.u32 %v9791_v16, %v9790_v52  ;;  %v9805_v43 = vshrl.u32 %v20240_v38, 16  ;;  %v9780_v46 = vsel %vm18447_vm11, %v9771_v25, %v9779_v30  ;;  %v9801_v47 = vrot.slane %v9799_v60, 6 }
 0x1cd   : > { %v9789_v63 = vrot.slane %v9788_v62, 4  ;;  %16785 = vmatprep.subr.bf16.mxu0 %v20522_v48  ;;  %v9808_v22 = vshll.u32 %v20240_v38, 16  ;;  %v24020_v31 = vcombine.low %v20433_v19, %v20446_v8  ;;  %v20537_v61 = vcombine.low %v9770_v57, %v9780_v46  ;;  %v17822_v46 = vld [vmem:[%s18170_s29 + $0x48] sm:$0xff]  }
 0x1ce   : > { %v9794_v16 = vrot.slane %v9792_v17, 4  ;;  %v9807_v11 = vrot.slane %v9805_v43, 5  ;;  %v24021_v18 = vshrl.u32 %v19749_v28, 16  ;;  %v24022_v1 = vcombine.low %v20440_v54, %v20458_v50 }
 0x1cf   : > { %16740 = vmatmul.mubr.msk.bf16.gmra.mrb[20].mxu0 %vm709_vm4, %v24020_v31  ;;  %16316 = vmatmul.mubr.msk.bf16.gmra.mrb[4].mxu1 %vm709_vm4, %v17820_v29  ;;  %v9793_v38 = vsel %vm18447_vm11, %v9789_v63, %v9792_v17  ;;  %v9802_v19 = vor.u32 %v9801_v47, %v9798_v44  ;;  %v9810_v8 = vrot.slane %v9808_v22, 6  ;;  %v24023_v52 = vshll.u32 %v19749_v28, 16  ;;  %v15210_v47 = vld [vmem:[%s18170_s29 + $0x50] sm:$0x3] }
 0x1d0   : > { %v9813_v25 = vrot.slane %v24021_v18, 5  ;;  %16743 = vmatprep.mubr.msk.bf16.mxu0 %vm709_vm4, %v24022_v1  ;;  %16319 = vmatprep.mubr.msk.bf16.mxu1 %vm709_vm4, %v17821_v53  ;;  %v9819_v40 = vshrl.u32 %v15209_v56, 16  ;;  %v9822_v30 = vshll.u32 %v15209_v56, 16  ;;  %v9828_v29 = vshrl.u32 %v20247_v42, 16 }
 0x1d1   : > { %v9814_v15 = vrot.slane %v24023_v52, 6  ;;  %v9831_v54 = vshll.u32 %v20247_v42, 16  ;;  %v9803_v50 = vsel %vm18447_vm11, %v9794_v16, %v9802_v19  ;;  %v9811_v62 = vor.u32 %v9810_v8, %v9807_v11  ;;  %v17823_v16 = vld [vmem:[%s18170_s29 + $0x54] sm:$0xff]   ;;  %v15211_v52 = vld [vmem:[%s18170_s29 + $0x5c] sm:$0x3] }
 0x1d2   : > { %v24024_v57 = vshrl.u32 %v19762_v21, 16  ;;  %v20558_v17 = vcombine.low %v9793_v38, %v9803_v50  ;;  %v9821_v44 = vrot.slane %v9819_v40, 5  ;;  %v9824_v53 = vrot.slane %v9822_v30, 6 }
 0x1d3   : > { %v9815_v60 = vor.u32 %v9814_v15, %v9813_v25  ;;  %v9830_v43 = vrot.slane %v9828_v29, 5  ;;  %v9812_v63 = vrot.slane %v9811_v62, 4  ;;  %v9833_v22 = vrot.slane %v9831_v54, 6 }
 0x1d4   : > { %v9836_v28 = vrot.slane %v24024_v57, 5  ;;  %v24025_v42 = vshll.u32 %v19762_v21, 16  ;;  %v9825_v11 = vor.u32 %v9824_v53, %v9821_v44  ;;  %v9842_v18 = vshrl.u32 %v15210_v47, 16 }
 0x1d5   : > { %v9817_v56 = vrot.slane %v9815_v60, 4  ;;  %v9845_v25 = vshll.u32 %v15210_v47, 16  ;;  %v9851_v1 = vshrl.u32 %v20277_v37, 16  ;;  %v9816_v38 = vsel %vm18447_vm11, %v9812_v63, %v9815_v60 }
 0x1d6   : > { %v9837_v31 = vrot.slane %v24025_v42, 6  ;;  %v9834_v19 = vor.u32 %v9833_v22, %v9830_v43  ;;  %v9854_v15 = vshll.u32 %v20277_v37, 16  ;;  %v24026_v40 = vcombine.low %v20462_v7, %v20474_v13  ;;  %v15212_v42 = vld [vmem:[%s18170_s29 + $0x68] sm:$0x3] }
 0x1d7   : > { %v9826_v21 = vsel %vm18447_vm11, %v9817_v56, %v9825_v11  ;;  %v9844_v30 = vrot.slane %v9842_v18, 5  ;;  %v9847_v29 = vrot.slane %v9845_v25, 6  ;;  %v9853_v54 = vrot.slane %v9851_v1, 5  ;;  %16320 = vmatmul.mubr.msk.bf16.gmra.mrb[8].mxu1 %vm709_vm4, %v17822_v46  ;;  %v17825_v1 = vld [vmem:[%s18170_s29 + $0x6c] sm:$0xff]  }
 0x1d8   : > { %v9838_v8 = vor.u32 %v9837_v31, %v9836_v28  ;;  %16744 = vmatmul.mubr.msk.bf16.gmra.mrb[24].mxu0 %vm709_vm4, %v24026_v40  ;;  %v24027_v50 = vcombine.low %v20468_v49, %v20485_v45  ;;  %v20580_v62 = vcombine.low %v9816_v38, %v9826_v21  ;;  %v9835_v37 = vrot.slane %v9834_v19, 4  ;;  %16323 = vmatprep.mubr.msk.bf16.mxu1 %vm709_vm4, %v17823_v16  ;;  %v17824_v16 = vld [vmem:[%s18170_s29 + $0x60] sm:$0xff]  }
 0x1d9   : > { %v9856_v13 = vrot.slane %v9854_v15, 6  ;;  %v9848_v60 = vor.u32 %v9847_v29, %v9844_v30  ;;  %v24028_v47 = vshrl.u32 %v19825_v14, 16  ;;  %v24029_v28 = vshll.u32 %v19825_v14, 16 }
 0x1da   : > { %16747 = vmatprep.mubr.msk.bf16.mxu0 %vm709_vm4, %v24027_v50  ;;  %v9840_v7 = vrot.slane %v9838_v8, 4  ;;  %v9865_v49 = vshrl.u32 %v15211_v52, 16  ;;  %v9839_v45 = vsel %vm18447_vm11, %v9835_v37, %v9838_v8  ;;  %v9868_v43 = vshll.u32 %v15211_v52, 16 }
 0x1db   : > { %v9859_v57 = vrot.slane %v24028_v47, 5  ;;  %v9860_v44 = vrot.slane %v24029_v28, 6  ;;  %v9857_v53 = vor.u32 %v9856_v13, %v9853_v54  ;;  %v9874_v46 = vshrl.u32 %v20284_v26, 16 }
 0x1dc   : > { %v9849_v63 = vsel %vm18447_vm11, %v9840_v7, %v9848_v60  ;;  %v9867_v22 = vrot.slane %v9865_v49, 5  ;;  %v9877_v31 = vshll.u32 %v20284_v26, 16  ;;  %v9870_v18 = vrot.slane %v9868_v43, 6  ;;  %v15213_v7 = vld [vmem:[%s18170_s29 + $0x74] sm:$0x3] }
 0x1dd   : > { %v9861_v56 = vor.u32 %v9860_v44, %v9859_v57  ;;  %v20595_v14 = vcombine.low %v9839_v45, %v9849_v63  ;;  %v9858_v11 = vrot.slane %v9857_v53, 4  ;;  %v9876_v25 = vrot.slane %v9874_v46, 5 }
 0x1de   : > { %v9879_v19 = vrot.slane %v9877_v31, 6  ;;  %v24030_v8 = vshrl.u32 %v19843_v0, 16  ;;  %v24031_v15 = vshll.u32 %v19843_v0, 16  ;;  %v9871_v26 = vor.u32 %v9870_v18, %v9867_v22  ;;  %v17826_v31 = vld [vmem:[%s18170_s29 + $0x78] sm:$0xff]  }
 0x1df   : > { %v9863_v38 = vrot.slane %v9861_v56, 4  ;;  %v9862_v21 = vsel %vm18447_vm11, %v9858_v11, %v9861_v56  ;;  %v9888_v30 = vshrl.u32 %v15212_v42, 16  ;;  %v9891_v29 = vshll.u32 %v15212_v42, 16  ;;  %16324 = vmatmul.mubr.msk.bf16.gmra.mrb[12].mxu1 %vm709_vm4, %v17824_v16 }
 0x1e0   : > { %v9882_v52 = vrot.slane %v24030_v8, 5  ;;  %v9883_v40 = vrot.slane %v24031_v15, 6  ;;  %v24032_v54 = vcombine.low %v20493_v10, %v20504_v58  ;;  %v9880_v50 = vor.u32 %v9879_v19, %v9876_v25  ;;  %16327 = vmatprep.mubr.msk.bf16.mxu1 %vm709_vm4, %v17825_v1  ;;  %v15214_v1 = vld [vmem:[%s18170_s29 + $0x80] sm:$0x3] }
 0x1e1   : > { %v9897_v13 = vshrl.u32 %v20315_v24, 16  ;;  %v9900_v60 = vshll.u32 %v20315_v24, 16  ;;  %v9872_v0 = vsel %vm18447_vm11, %v9863_v38, %v9871_v26  ;;  %v9890_v47 = vrot.slane %v9888_v30, 5  ;;  %v17827_v38 = vld [vmem:[%s18170_s29 + $0x84] sm:$0xff]  }
 0x1e2   : > { %16748 = vmatmul.mubr.msk.bf16.gmra.mrb[28].mxu0 %vm709_vm4, %v24032_v54  ;;  %v9884_v37 = vor.u32 %v9883_v40, %v9882_v52  ;;  %v9893_v10 = vrot.slane %v9891_v29, 6  ;;  %v24033_v58 = vshrl.u32 %v19902_v3, 16  ;;  %v20619_v28 = vcombine.low %v9862_v21, %v9872_v0 }
 0x1e3   : > { %16753 = vmatprep.mubr.msk.bf16.mxu0 %vm709_vm4, %v20537_v61  ;;  %v9881_v44 = vrot.slane %v9880_v50, 4  ;;  %v9899_v49 = vrot.slane %v9897_v13, 5  ;;  %v9902_v61 = vrot.slane %v9900_v60, 6  ;;  %v24034_v53 = vshll.u32 %v19902_v3, 16 }
 0x1e4   : > { %v9905_v57 = vrot.slane %v24033_v58, 5  ;;  %v9886_v24 = vrot.slane %v9884_v37, 4  ;;  %v9894_v45 = vor.u32 %v9893_v10, %v9890_v47  ;;  %v9911_v46 = vshrl.u32 %v15213_v7, 16  ;;  %v15215_v10 = vld [vmem:[%s18170_s29 + $0x8c] sm:$0x3] }
 0x1e5   : > { %v9906_v43 = vrot.slane %v24034_v53, 6  ;;  %v9885_v63 = vsel %vm18447_vm11, %v9881_v44, %v9884_v37  ;;  %v9914_v56 = vshll.u32 %v15213_v7, 16  ;;  %v9920_v22 = vshrl.u32 %v20321_v9, 16 }
 0x1e6   : > { %v9923_v42 = vshll.u32 %v20321_v9, 16  ;;  %v9895_v16 = vsel %vm18447_vm11, %v9886_v24, %v9894_v45  ;;  %v9903_v11 = vor.u32 %v9902_v61, %v9899_v49  ;;  %v9913_v25 = vrot.slane %v9911_v46, 5 }
 0x1e7   : > { %v9907_v18 = vor.u32 %v9906_v43, %v9905_v57  ;;  %v20632_v3 = vcombine.low %v9885_v63, %v9895_v16  ;;  %v9916_v19 = vrot.slane %v9914_v56, 6  ;;  %v9922_v8 = vrot.slane %v9920_v22, 5  ;;  %16328 = vmatmul.mubr.msk.bf16.gmra.mrb[16].mxu1 %vm709_vm4, %v17826_v31  ;;  %v17828_v43 = vld [vmem:[%s18170_s29 + $0x90] sm:$0xff]  }
 0x1e8   : > { %v9925_v52 = vrot.slane %v9923_v42, 6  ;;  %v9904_v15 = vrot.slane %v9903_v11, 4  ;;  %v24035_v21 = vshrl.u32 %v19924_v34, 16  ;;  %v24036_v9 = vshll.u32 %v19924_v34, 16  ;;  %16331 = vmatprep.mubr.msk.bf16.mxu1 %vm709_vm4, %v17827_v38  ;;  %v17829_v42 = vld [vmem:[%s18170_s29 + $0x9c] sm:$0xff]  }
 0x1e9   : > { %v9909_v40 = vrot.slane %v9907_v18, 4  ;;  %v9917_v29 = vor.u32 %v9916_v19, %v9913_v25  ;;  %v9934_v50 = vshrl.u32 %v15214_v1, 16  ;;  %v9937_v37 = vshll.u32 %v15214_v1, 16  ;;  %v15216_v11 = vld [vmem:[%s18170_s29 + $0x98] sm:$0x3] }
 0x1ea   : > { %v9928_v26 = vrot.slane %v24035_v21, 5  ;;  %v9929_v30 = vrot.slane %v24036_v9, 6  ;;  %16754 = vmatmul.mubr.msk.bf16.vlgmr.msra.gmra.mrb[0].mxu0 %vm709_vm4, %v20558_v17  ;;  %v9926_v54 = vor.u32 %v9925_v52, %v9922_v8  ;;  %v9908_v7 = vsel %vm18447_vm11, %v9904_v15, %v9907_v18  ;;  %v14411_v52 = vld [vmem:[%s18170_s29 + $0xc] sm:$0xf]  ;;  %v20677_v9 = vld [vmem:[%s18170_s29 + $0x10] sm:$0xf] }
 0x1eb   : > { %16786 = vmatpush3.bf16.msra.mxu0 %v20522_v48  ;;  %v9943_v60 = vshrl.u32 %v20355_v55, 16  ;;  %v9946_v34 = vshll.u32 %v20355_v55, 16  ;;  %16757 = vmatprep.mubr.msk.bf16.mxu0 %vm709_vm4, %v20580_v62  ;;  %v9918_v17 = vsel %vm18447_vm11, %v9909_v40, %v9917_v29  ;;  %v9936_v47 = vrot.slane %v9934_v50, 5 }
 0x1ec   : > { %v9930_v13 = vor.u32 %v9929_v30, %v9928_v26  ;;  %v9927_v0 = vrot.slane %v9926_v54, 4  ;;  %v9939_v48 = vrot.slane %v9937_v37, 6  ;;  %v20652_v58 = vcombine.low %v9908_v7, %v9918_v17 }
 0x1ed   : > { %v9945_v44 = vrot.slane %v9943_v60, 5  ;;  %v9948_v55 = vrot.slane %v9946_v34, 6  ;;  %v24037_v49 = vshrl.u32 %v19987_v23, 16  ;;  %v24038_v61 = vshll.u32 %v19987_v23, 16  ;;  %v14414_v60 = vld [vmem:[%s18170_s29 + $0x18] sm:$0xf] }
 0x1ee   : > { %v9932_v57 = vrot.slane %v9930_v13, 4  ;;  %v9931_v24 = vsel %vm18447_vm11, %v9927_v0, %v9930_v13  ;;  %v9940_v62 = vor.u32 %v9939_v48, %v9936_v47  ;;  %v9957_v63 = vshrl.u32 %v15215_v10, 16  ;;  %v14524_v47 = vld [vmem:[%s23647_s1 + $0xe] sm:$0x3] }
 0x1ef   : > { %v9951_v45 = vrot.slane %v24037_v49, 5  ;;  %v9952_v53 = vrot.slane %v24038_v61, 6  ;;  %v9949_v46 = vor.u32 %v9948_v55, %v9945_v44  ;;  %v9960_v56 = vshll.u32 %v15215_v10, 16  ;;  %16332 = vmatmul.mubr.msk.bf16.gmra.mrb[20].mxu1 %vm709_vm4, %v17828_v43  ;;  %v17830_v55 = vld [vmem:[%s18170_s29 + $0xa8] sm:$0xff]   ;;  %v20700_v61 = vld [vmem:[%s18170_s29 + $0x1c] sm:$0xf] }
 0x1f0   : > { %v9966_v22 = vshrl.u32 %v20361_v33, 16  ;;  %v9941_v31 = vsel %vm18447_vm11, %v9932_v57, %v9940_v62  ;;  %v9969_v18 = vshll.u32 %v20361_v33, 16  ;;  %v24039_v25 = vshrl.u32 %v20000_v12, 16  ;;  %16335 = vmatprep.mubr.msk.bf16.mxu1 %vm709_vm4, %v17829_v42 }
 0x1f1   : > { %v9953_v16 = vor.u32 %v9952_v53, %v9951_v45  ;;  %v20669_v1 = vcombine.low %v9931_v24, %v9941_v31  ;;  %v9950_v38 = vrot.slane %v9949_v46, 4  ;;  %v9959_v19 = vrot.slane %v9957_v63, 5  ;;  %v17831_v53 = vld [vmem:[%s18170_s29 + $0xb4] sm:$0xff]  }
 0x1f2   : > { %v9974_v23 = vrot.slane %v24039_v25, 5  ;;  %v9962_v8 = vrot.slane %v9960_v56, 6  ;;  %16758 = vmatmul.mubr.msk.bf16.gmra.mrb[4].mxu0 %vm709_vm4, %v20595_v14  ;;  %v9968_v40 = vrot.slane %v9966_v22, 5  ;;  %v9971_v21 = vrot.slane %v9969_v18, 6 }
 0x1f3   : > { %v9955_v15 = vrot.slane %v9953_v16, 4  ;;  %v24040_v26 = vshll.u32 %v20000_v12, 16  ;;  %16761 = vmatprep.mubr.msk.bf16.mxu0 %vm709_vm4, %v20619_v28  ;;  %v9954_v30 = vsel %vm18447_vm11, %v9950_v38, %v9953_v16  ;;  %v9980_v54 = vshrl.u32 %v15216_v11, 16  ;;  %v14413_v12 = vld [vmem:[%s18170_s29 + $0x14] sm:$0x1] }
 0x1f4   : > { %v9963_v29 = vor.u32 %v9962_v8, %v9959_v19  ;;  %v9983_v14 = vshll.u32 %v15216_v11, 16  ;;  %v9972_v50 = vor.u32 %v9971_v21, %v9968_v40  ;;  %v3221_v7 = vshrl.u32 %v14411_v52, 16  ;;  %v14416_v16 = vld [vmem:[%s18170_s29 + $0x20] sm:$0x1] }
 0x1f5   : > { %v9975_v33 = vrot.slane %v24040_v26, 6  ;;  %v3224_v13 = vshll.u32 %v14411_v52, 16  ;;  %v9982_v34 = vrot.slane %v9980_v54, 5  ;;  %v23841_v0 = vshll.u32 %v20677_v9, 16 }
 0x1f6   : > { %v9964_v28 = vsel %vm18447_vm11, %v9955_v15, %v9963_v29  ;;  %v9985_v17 = vrot.slane %v9983_v14, 6  ;;  %v9973_v10 = vrot.slane %v9972_v50, 4  ;;  %v3223_v44 = vrot.slane %v3221_v7, 4  ;;  %v15217_v14 = vld [vmem:[%s18170_s29 + $0xa4] sm:$0x3] }
 0x1f7   : > { %v9976_v37 = vor.u32 %v9975_v33, %v9974_v23  ;;  %v20693_v48 = vcombine.low %v9954_v30, %v9964_v28  ;;  %v3226_v62 = vrot.slane %v3224_v13, 5  ;;  %v3232_v49 = vrot.slane %v23841_v0, 5  ;;  %16336 = vmatmul.mubr.msk.bf16.gmra.mrb[24].mxu1 %vm709_vm4, %v17830_v55  ;;  %v21164_v0 = vld [vmem:[%s18170_s29 + $0xc] sm:$0xe]  ;;  %v18026_v33 = vld [vmem:[%s18170_s29 + $0x94] sm:$0xf] }
 0x1f8   : > { %v9986_v24 = vor.u32 %v9985_v17, %v9982_v34  ;;  %v23843_v45 = vshrl.u32 %v20677_v9, 16  ;;  %v3240_v46 = vshll.u32 %v14413_v12, 16  ;;  %v20706_v63 = vand.u32 %v14524_v47, %v18141_v4  ;;  %16339 = vmatprep.mubr.msk.bf16.mxu1 %vm709_vm4, %v17831_v53  ;;  %v15218_v53 = vld [vmem:[%s18170_s29 + $0xb0] sm:$0x3] }
 0x1f9   : > { %v9978_v57 = vrot.slane %v9976_v37, 4  ;;  %v9977_v43 = vsel %vm18447_vm11, %v9973_v10, %v9976_v37  ;;  %v3245_v56 = vshrl.u32 %v14414_v60, 16  ;;  %v3227_v42 = vor.u32 %v3226_v62, %v3223_v44 }
 0x1fa   : > { %v3236_v31 = vrot.slane %v23843_v45, 4  ;;  %v3248_v11 = vshll.u32 %v14414_v60, 16  ;;  %16762 = vmatmul.mubr.msk.bf16.gmra.mrb[8].mxu0 %vm709_vm4, %v20632_v3  ;;  %v3242_v25 = vrot.slane %v3240_v46, 5  ;;  %16377 = vmatprep.subr.bf16.mxu1 %v20706_v63  ;;  %v23838_v38 = vshll.u32 %v20700_v61, 16  ;;  %v17832_v60 = vld [vmem:[%s18170_s29 + $0xc0] sm:$0xff]  }
 0x1fb   : > { %v9987_v22 = vsel %vm18447_vm11, %v9978_v57, %v9986_v24  ;;  %v3247_v23 = vrot.slane %v3245_v56, 4  ;;  %16765 = vmatprep.mubr.msk.bf16.mxu0 %vm709_vm4, %v20652_v58  ;;  %v3228_v19 = vrot.slane %v3227_v42, 4  ;;  %v23840_v3 = vshrl.u32 %v20700_v61, 16  ;;  %v14417_v42 = vld [vmem:[%s18170_s29 + $0x24] sm:$0xf] }
 0x1fc   : > { %v20715_v18 = vcombine.low %v9977_v43, %v9987_v22  ;;  %v3237_v8 = vor.u32 %v3236_v31, %v3232_v49  ;;  %v3250_v52 = vrot.slane %v3248_v11, 5  ;;  %v3256_v15 = vrot.slane %v23838_v38, 5  ;;  %v17976_v38 = vld [vmem:[%s18170_s29 + $0x8c] sm:$0x3] }
 0x1fd   : > { %v3264_v40 = vshll.u32 %v14416_v16, 16  ;;  %v9989_v21 = vshrl.u32 %v20383_v27, 16  ;;  %v9992_v26 = vshll.u32 %v20383_v27, 16  ;;  %v3233_v30 = vsel %vm18245_vm8, %v3228_v19, %v3232_v49 }
 0x1fe   : > { %v3238_v58 = vrot.slane %v3237_v8, 4  ;;  %v3251_v29 = vor.u32 %v3250_v52, %v3247_v23  ;;  %v3260_v54 = vrot.slane %v23840_v3, 4  ;;  %v24042_v7 = vshrl.u32 %v20038_v20, 16  ;;  %v20756_v23 = vld [vmem:[%s18170_s29 + $0x28] sm:$0xf] }
 0x1ff   : > { %v3266_v50 = vrot.slane %v3264_v40, 5  ;;  %v9991_v37 = vrot.slane %v9989_v21, 5  ;;  %v9994_v12 = vrot.slane %v9992_v26, 6  ;;  %v24043_v17 = vshll.u32 %v20038_v20, 16  ;;  %16340 = vmatmul.mubr.msk.bf16.gmra.mrb[28].mxu1 %vm709_vm4, %v17832_v60  ;;  %v17977_v3 = vld [vmem:[%s18170_s29 + $0x94] sm:$0xf] }
 0x200   : > { %v9997_v13 = vrot.slane %v24042_v7, 5  ;;  %v3243_v27 = vsel %vm18245_vm8, %v3238_v58, %v3242_v25  ;;  %v3252_v28 = vrot.slane %v3251_v29, 4  ;;  %v3261_v34 = vor.u32 %v3260_v54, %v3256_v15  ;;  %v14419_v29 = vld [vmem:[%s18170_s29 + $0x2c] sm:$0x1] }
 0x201   : > { %v9998_v47 = vrot.slane %v24043_v17, 6  ;;  %v14460_v10 = vcombine.low %v3233_v30, %v3243_v27  ;;  %v9995_v57 = vor.u32 %v9994_v12, %v9991_v37  ;;  %v10003_v44 = vshrl.u32 %v15217_v14, 16 }
 0x202   : > { %v10006_v55 = vshll.u32 %v15217_v14, 16  ;;  %v3257_v24 = vsel %vm18245_vm8, %v3252_v28, %v3256_v15  ;;  %v3262_v62 = vrot.slane %v3261_v34, 4  ;;  %v10012_v43 = vshrl.u32 %v20390_v41, 16  ;;  %16766 = vmatmul.mubr.msk.bf16.gmra.mrb[12].mxu0 %vm709_vm4, %v20669_v1  ;;  %v20771_v34 = vld [vmem:[%s18170_s29 + $0x34] sm:$0xf] }
 0x203   : > { %v9999_v49 = vor.u32 %v9998_v47, %v9997_v13  ;;  %v9996_v46 = vrot.slane %v9995_v57, 4  ;;  %v10005_v20 = vrot.slane %v10003_v44, 5  ;;  %v10015_v22 = vshll.u32 %v20390_v41, 16  ;;  %16769 = vmatprep.mubr.msk.bf16.mxu0 %vm709_vm4, %v20693_v48  ;;  %16345 = vmatprep.mubr.msk.bf16.mxu1 %vm709_vm4, %v14460_v10  ;;  %v14420_v13 = vld [vmem:[%s18170_s29 + $0x30] sm:$0xf] }
 0x204   : > { %v10008_v56 = vrot.slane %v10006_v55, 6  ;;  %v3267_v31 = vsel %vm18245_vm8, %v3262_v62, %v3266_v50  ;;  %v10014_v11 = vrot.slane %v10012_v43, 5  ;;  %v24044_v25 = vshrl.u32 %v20058_v36, 16 }
 0x205   : > { %v10001_v16 = vrot.slane %v9999_v49, 4  ;;  %v14461_v41 = vcombine.low %v3257_v24, %v3267_v31  ;;  %v10000_v19 = vsel %vm18447_vm11, %v9996_v46, %v9999_v49  ;;  %v10017_v48 = vrot.slane %v10015_v22, 6  ;;  %v20779_v24 = vld [vmem:[%s18170_s29 + $0x38] sm:$0x1] }
 0x206   : > { %v10020_v1 = vrot.slane %v24044_v25, 5  ;;  %v10009_v8 = vor.u32 %v10008_v56, %v10005_v20  ;;  %v24045_v52 = vshll.u32 %v20058_v36, 16  ;;  %v10026_v40 = vshrl.u32 %v15218_v53, 16 }
 0x207   : > { %v10029_v21 = vshll.u32 %v15218_v53, 16  ;;  %v3269_v26 = vshrl.u32 %v14417_v42, 16  ;;  %v10018_v58 = vor.u32 %v10017_v48, %v10014_v11  ;;  %v3272_v54 = vshll.u32 %v14417_v42, 16  ;;  %16346 = vmatmul.mubr.msk.bf16.vlgmr.msra.gmra.mrb[0].mxu1 %vm709_vm4, %v14461_v41 }
 0x208   : > { %v10021_v15 = vrot.slane %v24045_v52, 6  ;;  %v10010_v30 = vsel %vm18447_vm11, %v10001_v16, %v10009_v8  ;;  %v23833_v14 = vshll.u32 %v20756_v23, 16  ;;  %v10028_v12 = vrot.slane %v10026_v40, 5  ;;  %16378 = vmatpush3.bf16.msra.mxu1 %v20706_v63 }
 0x209   : > { %v15234_v50 = vcombine.low %v10000_v19, %v10010_v30  ;;  %v10031_v7 = vrot.slane %v10029_v21, 6  ;;  %v10019_v36 = vrot.slane %v10018_v58, 4  ;;  %v3271_v60 = vrot.slane %v3269_v26, 4  ;;  %v20796_v19 = vld [vmem:[%s18170_s29 + $0xbc] sm:$0x3] }
 0x20a   : > { %v10022_v37 = vor.u32 %v10021_v15, %v10020_v1  ;;  %v3274_v27 = vrot.slane %v3272_v54, 5  ;;  %v3280_v28 = vrot.slane %v23833_v14, 5  ;;  %v23837_v10 = vshrl.u32 %v20756_v23, 16  ;;  %16770 = vmatmul.mubr.msk.bf16.gmra.mrb[16].mxu0 %vm709_vm4, %v20715_v18  ;;  %v14453_v14 = vld [vmem:[%s18170_s29 + $0xb4] sm:$0xf] }
 0x20b   : > { %v10032_v47 = vor.u32 %v10031_v7, %v10028_v12  ;;  %v3288_v57 = vshll.u32 %v14419_v29, 16  ;;  %v3293_v62 = vshrl.u32 %v14420_v13, 16  ;;  %v3296_v49 = vshll.u32 %v14420_v13, 16  ;;  %16773 = vmatprep.mubr.msk.bf16.mxu0 %vm709_vm4, %v15234_v50 }
 0x20c   : > { %v10024_v17 = vrot.slane %v10022_v37, 4  ;;  %v10023_v44 = vsel %vm18447_vm11, %v10019_v36, %v10022_v37  ;;  %v3275_v55 = vor.u32 %v3274_v27, %v3271_v60  ;;  %v3284_v43 = vrot.slane %v23837_v10, 4 }
 0x20d   : > { %v3290_v18 = vrot.slane %v3288_v57, 5  ;;  %v23830_v46 = vshll.u32 %v20771_v34, 16  ;;  %v3295_v22 = vrot.slane %v3293_v62, 4  ;;  %v3298_v42 = vrot.slane %v3296_v49, 5 }
 0x20e   : > { %v10033_v53 = vsel %vm18447_vm11, %v10024_v17, %v10032_v47  ;;  %v3276_v56 = vrot.slane %v3275_v55, 4  ;;  %v3285_v31 = vor.u32 %v3284_v43, %v3280_v28  ;;  %v23832_v11 = vshrl.u32 %v20771_v34, 16  ;;  %v20814_v17 = vld [vmem:[%s18170_s29 + $0xc8] sm:$0x3] }
 0x20f   : > { %v15235_v20 = vcombine.low %v10023_v44, %v10033_v53  ;;  %v3304_v16 = vrot.slane %v23830_v46, 5  ;;  %v3312_v25 = vshll.u32 %v20779_v24, 16  ;;  %v3299_v41 = vor.u32 %v3298_v42, %v3295_v22  ;;  %v14423_v53 = vld [vmem:[%s18170_s29 + $0x3c] sm:$0xf] }
 0x210   : > { %v3281_v1 = vsel %vm18245_vm8, %v3276_v56, %v3280_v28  ;;  %v10035_v63 = vshrl.u32 %v20406_v6, 16  ;;  %v10038_v8 = vshll.u32 %v20406_v6, 16  ;;  %v3286_v48 = vrot.slane %v3285_v31, 4 }
 0x211   : > { %v3308_v52 = vrot.slane %v23832_v11, 4  ;;  %v3314_v15 = vrot.slane %v3312_v25, 5  ;;  %v24046_v40 = vshrl.u32 %v20094_v5, 16  ;;  %v3300_v26 = vrot.slane %v3299_v41, 4  ;;  %v20830_v25 = vld [vmem:[%s18170_s29 + $0x40] sm:$0xf] }
 0x212   : > { %v10037_v30 = vrot.slane %v10035_v63, 5  ;;  %v10040_v58 = vrot.slane %v10038_v8, 6  ;;  %v24047_v29 = vshll.u32 %v20094_v5, 16  ;;  %v3291_v50 = vsel %vm18245_vm8, %v3286_v48, %v3290_v18  ;;  %16774 = vmatmul.mubr.msk.bf16.gmra.mrb[20].mxu0 %vm709_vm4, %v15235_v20  ;;  %v20836_v8 = vld [vmem:[%s18170_s29 + $0x44] sm:$0x1] }
 0x213   : > { %v10043_v21 = vrot.slane %v24046_v40, 5  ;;  %v3309_v37 = vor.u32 %v3308_v52, %v3304_v16  ;;  %v10049_v6 = vshrl.u32 %v20796_v19, 16  ;;  %v10052_v12 = vshll.u32 %v20796_v19, 16  ;;  %v17973_v11 = vld [vmem:[%s18170_s29 + $0x7c] sm:$0xf] }
 0x214   : > { %v10044_v54 = vrot.slane %v24047_v29, 6  ;;  %v14462_v7 = vcombine.low %v3281_v1, %v3291_v50  ;;  %v3305_v13 = vsel %vm18245_vm8, %v3300_v26, %v3304_v16  ;;  %v10041_v36 = vor.u32 %v10040_v58, %v10037_v30 }
 0x215   : > { %v3310_v27 = vrot.slane %v3309_v37, 4  ;;  %v10051_v5 = vrot.slane %v10049_v6, 5  ;;  %v10054_v28 = vrot.slane %v10052_v12, 6  ;;  %v10058_v47 = vshrl.u32 %v20413_v39, 16  ;;  %v20845_v12 = vld [vmem:[%s18170_s29 + $0x4c] sm:$0xf] }
 0x216   : > { %v10045_v60 = vor.u32 %v10044_v54, %v10043_v21  ;;  %16349 = vmatprep.mubr.msk.bf16.mxu1 %vm709_vm4, %v14462_v7  ;;  %v10042_v57 = vrot.slane %v10041_v36, 4  ;;  %v10061_v55 = vshll.u32 %v20413_v39, 16  ;;  %v24048_v62 = vshrl.u32 %v20110_v2, 16  ;;  %v14426_v21 = vld [vmem:[%s18170_s29 + $0x48] sm:$0xf] }
 0x217   : > { %v3315_v43 = vsel %vm18245_vm8, %v3310_v27, %v3314_v15  ;;  %v10055_v18 = vor.u32 %v10054_v28, %v10051_v5  ;;  %v10060_v20 = vrot.slane %v10058_v47, 5  ;;  %v24049_v56 = vshll.u32 %v20110_v2, 16 }
 0x218   : > { %v10047_v44 = vrot.slane %v10045_v60, 4  ;;  %v10066_v49 = vrot.slane %v24048_v62, 5  ;;  %v14463_v42 = vcombine.low %v3305_v13, %v3315_v43  ;;  %v10046_v31 = vsel %vm18447_vm11, %v10042_v57, %v10045_v60  ;;  %v20854_v57 = vld [vmem:[%s18170_s29 + $0x50] sm:$0x1] }
 0x219   : > { %v10067_v22 = vrot.slane %v24049_v56, 6  ;;  %v10063_v16 = vrot.slane %v10061_v55, 6  ;;  %v10072_v39 = vshrl.u32 %v20814_v17, 16  ;;  %v10075_v63 = vshll.u32 %v20814_v17, 16 }
 0x21a   : > { %v10056_v1 = vsel %vm18447_vm11, %v10047_v44, %v10055_v18  ;;  %v3317_v2 = vshrl.u32 %v14423_v53, 16  ;;  %16350 = vmatmul.mubr.msk.bf16.gmra.mrb[4].mxu1 %vm709_vm4, %v14463_v42  ;;  %v3320_v40 = vshll.u32 %v14423_v53, 16  ;;  %v23825_v29 = vshll.u32 %v20830_v25, 16 }
 0x21b   : > { %v10068_v41 = vor.u32 %v10067_v22, %v10066_v49  ;;  %v15236_v48 = vcombine.low %v10046_v31, %v10056_v1  ;;  %v10064_v52 = vor.u32 %v10063_v16, %v10060_v20  ;;  %v10074_v15 = vrot.slane %v10072_v39, 5 }
 0x21c   : > { %v10077_v30 = vrot.slane %v10075_v63, 6  ;;  %v3319_v58 = vrot.slane %v3317_v2, 4  ;;  %v3322_v50 = vrot.slane %v3320_v40, 5  ;;  %v23829_v37 = vshrl.u32 %v20830_v25, 16 }
 0x21d   : > { %v10070_v26 = vrot.slane %v10068_v41, 4  ;;  %16777 = vmatprep.mubr.msk.bf16.mxu0 %vm709_vm4, %v15236_v48  ;;  %v10065_v54 = vrot.slane %v10064_v52, 4  ;;  %v3336_v6 = vshll.u32 %v20836_v8, 16  ;;  %v3328_v13 = vrot.slane %v23825_v29, 5  ;;  %v14447_v29 = vld [vmem:[%s18170_s29 + $0x9c] sm:$0xf] }
 0x21e   : > { %v10078_v7 = vor.u32 %v10077_v30, %v10074_v15  ;;  %v3341_v36 = vshrl.u32 %v14426_v21, 16  ;;  %v3344_v60 = vshll.u32 %v14426_v21, 16  ;;  %v3323_v5 = vor.u32 %v3322_v50, %v3319_v58 }
 0x21f   : > { %v10069_v27 = vsel %vm18447_vm11, %v10065_v54, %v10068_v41  ;;  %v3332_v28 = vrot.slane %v23829_v37, 4  ;;  %v3338_v47 = vrot.slane %v3336_v6, 5  ;;  %v23822_v49 = vshll.u32 %v20845_v12, 16  ;;  %v20870_v41 = vld [vmem:[%s18170_s29 + $0xd4] sm:$0x3] }
 0x220   : > { %v10079_v44 = vsel %vm18447_vm11, %v10070_v26, %v10078_v7  ;;  %v3343_v55 = vrot.slane %v3341_v36, 4  ;;  %v3346_v62 = vrot.slane %v3344_v60, 5  ;;  %v3324_v43 = vrot.slane %v3323_v5, 4 }
 0x221   : > { %v15237_v53 = vcombine.low %v10069_v27, %v10079_v44  ;;  %v3333_v18 = vor.u32 %v3332_v28, %v3328_v13  ;;  %v23824_v20 = vshrl.u32 %v20845_v12, 16  ;;  %v3352_v22 = vrot.slane %v23822_v49, 5  ;;  %v20884_v27 = vld [vmem:[%s18170_s29 + $0xe0] sm:$0x3]  ;;  %v24052_v44 = vld [vmem:[#allocation39_spill] sm:$0xff] }
 0x222   : > { %v3347_v56 = vor.u32 %v3346_v62, %v3343_v55  ;;  %v3360_v42 = vshll.u32 %v20854_v57, 16  ;;  %v10081_v31 = vshrl.u32 %v20426_v51, 16  ;;  %v3329_v16 = vsel %vm18245_vm8, %v3324_v43, %v3328_v13 }
 0x223   : > { %16778 = vmatmul.mubr.msk.bf16.gmra.mrb[24].mxu0 %vm709_vm4, %v15237_v53  ;;  %v3334_v39 = vrot.slane %v3333_v18, 4  ;;  %v3356_v1 = vrot.slane %v23824_v20, 4  ;;  %v10084_v63 = vshll.u32 %v20426_v51, 16  ;;  %v24050_v15 = vshrl.u32 %v20148_v59, 16  ;;  %v14429_v53 = vld [vmem:[%s18170_s29 + $0x54] sm:$0xf] }
 0x224   : > { %v3348_v2 = vrot.slane %v3347_v56, 4  ;;  %v3362_v48 = vrot.slane %v3360_v42, 5  ;;  %v10083_v52 = vrot.slane %v10081_v31, 5  ;;  %v24051_v58 = vshll.u32 %v20148_v59, 16  ;;  %v17969_v20 = vld [vmem:[%s18170_s29 + $0x64] sm:$0xf] }
 0x225   : > { %v10089_v40 = vrot.slane %v24050_v15, 5  ;;  %v3339_v21 = vsel %vm18245_vm8, %v3334_v39, %v3338_v47  ;;  %v3357_v26 = vor.u32 %v3356_v1, %v3352_v22  ;;  %v10086_v30 = vrot.slane %v10084_v63, 6 }
 0x226   : > { %v10090_v54 = vrot.slane %v24051_v58, 6  ;;  %v14464_v50 = vcombine.low %v3329_v16, %v3339_v21  ;;  %v3353_v51 = vsel %vm18245_vm8, %v3348_v2, %v3352_v22  ;;  %v10095_v6 = vshrl.u32 %v20870_v41, 16  ;;  %v14432_v58 = vld [vmem:[%s18170_s29 + $0x60] sm:$0xf] }
 0x227   : > { %v10098_v7 = vshll.u32 %v20870_v41, 16  ;;  %v3358_v13 = vrot.slane %v3357_v26, 4  ;;  %v10087_v36 = vor.u32 %v10086_v30, %v10083_v52  ;;  %v10104_v5 = vshrl.u32 %v20452_v35, 16  ;;  %v20901_v52 = vld [vmem:[%s18170_s29 + $0x58] sm:$0xf] }
 0x228   : > { %v10091_v60 = vor.u32 %v10090_v54, %v10089_v40  ;;  %16353 = vmatprep.mubr.msk.bf16.mxu1 %vm709_vm4, %v14464_v50  ;;  %v10097_v59 = vrot.slane %v10095_v6, 5  ;;  %v10107_v47 = vshll.u32 %v20452_v35, 16  ;;  %v24053_v55 = vshrl.u32 %v24052_v44, 16  ;;  %v20907_v26 = vld [vmem:[%s18170_s29 + $0x5c] sm:$0x1] }
 0x229   : > { %v10100_v28 = vrot.slane %v10098_v7, 6  ;;  %v3363_v43 = vsel %vm18245_vm8, %v3358_v13, %v3362_v48  ;;  %v10088_v18 = vrot.slane %v10087_v36, 4  ;;  %v10106_v22 = vrot.slane %v10104_v5, 5 }
 0x22a   : > { %v10112_v62 = vrot.slane %v24053_v55, 5  ;;  %v10093_v56 = vrot.slane %v10091_v60, 4  ;;  %v14465_v42 = vcombine.low %v3353_v51, %v3363_v43  ;;  %v10109_v16 = vrot.slane %v10107_v47, 6  ;;  %v20915_v47 = vld [vmem:[%s18170_s29 + $0x64] sm:$0xf] }
 0x22b   : > { %v10101_v31 = vor.u32 %v10100_v28, %v10097_v59  ;;  %v24054_v39 = vshll.u32 %v24052_v44, 16  ;;  %v10092_v35 = vsel %vm18447_vm11, %v10088_v18, %v10091_v60  ;;  %v10118_v63 = vshrl.u32 %v20884_v27, 16  ;;  %v20922_v43 = vld [vmem:[%s18170_s29 + $0x68] sm:$0x1] }
 0x22c   : > { %v10121_v2 = vshll.u32 %v20884_v27, 16  ;;  %v3365_v48 = vshrl.u32 %v14429_v53, 16  ;;  %16354 = vmatmul.mubr.msk.bf16.gmra.mrb[8].mxu1 %vm709_vm4, %v14465_v42  ;;  %v10110_v40 = vor.u32 %v10109_v16, %v10106_v22  ;;  %v3368_v30 = vshll.u32 %v14429_v53, 16 }
 0x22d   : > { %v10113_v1 = vrot.slane %v24054_v39, 6  ;;  %v10102_v15 = vsel %vm18447_vm11, %v10093_v56, %v10101_v31  ;;  %v10120_v50 = vrot.slane %v10118_v63, 5  ;;  %v23820_v60 = vshll.u32 %v20901_v52, 16  ;;  %v15256_v56 = vld [vmem:[%s18170_s29 + $0x24] sm:$0xc] }
 0x22e   : > { %v15238_v54 = vcombine.low %v10092_v35, %v10102_v15  ;;  %v10123_v51 = vrot.slane %v10121_v2, 6  ;;  %v3367_v6 = vrot.slane %v3365_v48, 4  ;;  %v10111_v7 = vrot.slane %v10110_v40, 4 }
 0x22f   : > { %v10114_v21 = vor.u32 %v10113_v1, %v10112_v62  ;;  %v3370_v36 = vrot.slane %v3368_v30, 5  ;;  %v23821_v59 = vshrl.u32 %v20901_v52, 16  ;;  %v3384_v28 = vshll.u32 %v20907_v26, 16 }
 0x230   : > { %16781 = vmatprep.mubr.msk.bf16.mxu0 %vm709_vm4, %v15238_v54  ;;  %v10124_v5 = vor.u32 %v10123_v51, %v10120_v50  ;;  %v3389_v44 = vshrl.u32 %v14432_v58, 16  ;;  %v3376_v53 = vrot.slane %v23820_v60, 5  ;;  %v3392_v18 = vshll.u32 %v14432_v58, 16  ;;  %v17959_v50 = vld [vmem:[%s18170_s29 + $0x28] sm:$0xf] }
 0x231   : > { %v10116_v13 = vrot.slane %v10114_v21, 4  ;;  %v10115_v55 = vsel %vm18447_vm11, %v10111_v7, %v10114_v21  ;;  %v3371_v62 = vor.u32 %v3370_v36, %v3367_v6  ;;  %v3380_v42 = vrot.slane %v23821_v59, 4  ;;  %v15257_v21 = vld [vmem:[%s18170_s29 + $0x30] sm:$0xc]  ;;  %v17960_v36 = vld [vmem:[%s18170_s29 + $0x2c] sm:$0x3] }
 0x232   : > { %v3386_v31 = vrot.slane %v3384_v28, 5  ;;  %v3391_v16 = vrot.slane %v3389_v44, 4  ;;  %v3394_v35 = vrot.slane %v3392_v18, 5  ;;  %v23814_v63 = vshll.u32 %v20915_v47, 16  ;;  %v14435_v28 = vld [vmem:[%s18170_s29 + $0x6c] sm:$0xf] }
 0x233   : > { %v10125_v22 = vsel %vm18447_vm11, %v10116_v13, %v10124_v5  ;;  %v3372_v1 = vrot.slane %v3371_v62, 4  ;;  %v3381_v2 = vor.u32 %v3380_v42, %v3376_v53  ;;  %v23816_v48 = vshrl.u32 %v20915_v47, 16  ;;  %v17961_v42 = vld [vmem:[%s18170_s29 + $0x34] sm:$0xf]  ;;  %v17967_v60 = vld [vmem:[%s18170_s29 + $0x58] sm:$0xf] }
 0x234   : > { %v15239_v39 = vcombine.low %v10115_v55, %v10125_v22  ;;  %v3408_v15 = vshll.u32 %v20922_v43, 16  ;;  %v15272_v40 = vrot.slane %v15256_v56, 10  ;;  %v3395_v58 = vor.u32 %v3394_v35, %v3391_v16  ;;  %v20950_v35 = vld [vmem:[%s18170_s29 + $0x70] sm:$0xf] }
 0x235   : > { %v3377_v30 = vsel %vm18245_vm8, %v3372_v1, %v3376_v53  ;;  %v3400_v54 = vrot.slane %v23814_v63, 5  ;;  %v10470_v51 = vrot.slane %v17959_v50, 6  ;;  %v3382_v6 = vrot.slane %v3381_v2, 4  ;;  %v17965_v63 = vld [vmem:[%s18170_s29 + $0x4c] sm:$0xf] }
 0x236   : > { %16782 = vmatmul.mubr.msk.bf16.gmra.mrb[28].mxu0 %vm709_vm4, %v15239_v39  ;;  %v3404_v7 = vrot.slane %v23816_v48, 4  ;;  %v3410_v13 = vrot.slane %v3408_v15, 5  ;;  %v10473_v5 = vrot.slane %v17960_v36, 6  ;;  %v3396_v44 = vrot.slane %v3395_v58, 4  ;;  %v17962_v39 = vld [vmem:[%s18170_s29 + $0x38] sm:$0x3] }
 0x237   : > { %v10471_v62 = vsel %vm18920_vm13, %v15272_v40, %v10470_v51  ;;  %v10472_v53 = vrot.slane %v10470_v51, 4  ;;  %v15273_v18 = vrot.slane %v15257_v21, 10  ;;  %v3387_v56 = vsel %vm18245_vm8, %v3382_v6, %v3386_v31  ;;  %v20957_v58 = vld [vmem:[%s18170_s29 + $0x74] sm:$0x1]  ;;  %v15353_v31 = vld [vmem:[%s23647_s1 + $0x28] sm:$0x3] }
 0x238   : > { %v3405_v22 = vor.u32 %v3404_v7, %v3400_v54  ;;  %v10477_v16 = vrot.slane %v17961_v42, 6  ;;  %v10480_v1 = vrot.slane %v17962_v39, 6  ;;  %v14466_v2 = vcombine.low %v3377_v30, %v3387_v56  ;;  %v14441_v48 = vld [vmem:[%s18170_s29 + $0x84] sm:$0xf] }
 0x239   : > { %v3401_v15 = vsel %vm18245_vm8, %v3396_v44, %v3400_v54  ;;  %v10474_v40 = vsel %vm18920_vm13, %v10472_v53, %v10473_v5  ;;  %v3413_v21 = vshrl.u32 %v14435_v28, 16  ;;  %v3416_v7 = vshll.u32 %v14435_v28, 16  ;;  %v14438_v44 = vld [vmem:[%s18170_s29 + $0x78] sm:$0xf]  ;;  %v20979_v28 = vld [vmem:[%s18170_s29 + $0x80] sm:$0x1] }
 0x23a   : > { %v3406_v50 = vrot.slane %v3405_v22, 4  ;;  %v15289_v51 = vcombine.low %v10471_v62, %v10474_v40  ;;  %v10478_v30 = vsel %vm18920_vm13, %v15273_v18, %v10477_v16  ;;  %v10479_v6 = vrot.slane %v10477_v16, 4  ;;  %16357 = vmatprep.mubr.msk.bf16.mxu1 %vm709_vm4, %v14466_v2  ;;  %v20976_v22 = vld [vmem:[%s18170_s29 + $0x7c] sm:$0xf] }
 0x23b   : > { %v3415_v54 = vrot.slane %v3413_v21, 4  ;;  %v23812_v36 = vshll.u32 %v20950_v35, 16  ;;  %v23813_v5 = vshrl.u32 %v20950_v35, 16  ;;  %v3432_v18 = vshll.u32 %v20957_v58, 16 }
 0x23c   : > { %v3411_v53 = vsel %vm18245_vm8, %v3406_v50, %v3410_v13  ;;  %16787 = vmatprep.mubr.msk.bf16.mxu0 %vm709_vm4, %v15289_v51  ;;  %v10481_v62 = vsel %vm18920_vm13, %v10479_v6, %v10480_v1  ;;  %v11038_v56 = vand.u32 %v15353_v31, %v18141_v4  ;;  %v3418_v39 = vrot.slane %v3416_v7, 5  ;;  %v15258_v13 = vld [vmem:[%s18170_s29 + $0x3c] sm:$0xc] }
 0x23d   : > { %v14467_v42 = vcombine.low %v3401_v15, %v3411_v53  ;;  %v15290_v16 = vcombine.low %v10478_v30, %v10481_v62  ;;  %v3424_v2 = vrot.slane %v23812_v36, 5  ;;  %v3428_v40 = vrot.slane %v23813_v5, 4  ;;  %v17963_v5 = vld [vmem:[%s18170_s29 + $0x40] sm:$0xf] }
 0x23e   : > { %v3434_v1 = vrot.slane %v3432_v18, 5  ;;  %16819 = vmatprep.subr.bf16.mxu0 %v11038_v56  ;;  %v3437_v21 = vshrl.u32 %v14438_v44, 16  ;;  %v3440_v50 = vshll.u32 %v14438_v44, 16  ;;  %v3419_v31 = vor.u32 %v3418_v39, %v3415_v54  ;;  %v15259_v44 = vld [vmem:[%s18170_s29 + $0x48] sm:$0xc] }
 0x23f   : > { %16358 = vmatmul.mubr.msk.bf16.gmra.mrb[12].mxu1 %vm709_vm4, %v14467_v42  ;;  %16788 = vmatmul.mubr.msk.bf16.vlgmr.msra.gmra.mrb[0].mxu0 %vm709_vm4, %v15290_v16  ;;  %v23815_v15 = vshll.u32 %v20976_v22, 16  ;;  %v23819_v51 = vshrl.u32 %v20976_v22, 16  ;;  %v3456_v30 = vshll.u32 %v20979_v28, 16  ;;  %v3429_v6 = vor.u32 %v3428_v40, %v3424_v2 }
 0x240   : > { %v3439_v7 = vrot.slane %v3437_v21, 4  ;;  %v3442_v53 = vrot.slane %v3440_v50, 5  ;;  %16820 = vmatpush3.bf16.msra.mxu0 %v11038_v56  ;;  %v15274_v62 = vrot.slane %v15258_v13, 10  ;;  %v3420_v18 = vrot.slane %v3419_v31, 4  ;;  %v17964_v21 = vld [vmem:[%s18170_s29 + $0x44] sm:$0x3] }
 0x241   : > { %v3448_v54 = vrot.slane %v23815_v15, 5  ;;  %v3452_v42 = vrot.slane %v23819_v51, 4  ;;  %v3458_v16 = vrot.slane %v3456_v30, 5  ;;  %v3430_v39 = vrot.slane %v3429_v6, 4 }
 0x242   : > { %v3443_v36 = vor.u32 %v3442_v53, %v3439_v7  ;;  %v10484_v40 = vrot.slane %v17963_v5, 6  ;;  %v10487_v50 = vrot.slane %v17964_v21, 6  ;;  %v3425_v56 = vsel %vm18245_vm8, %v3420_v18, %v3424_v2  ;;  %v21007_v53 = vld [vmem:[%s18170_s29 + $0x88] sm:$0xf] }
 0x243   : > { %v3453_v13 = vor.u32 %v3452_v42, %v3448_v54  ;;  %v15275_v31 = vrot.slane %v15259_v44, 10  ;;  %v10491_v15 = vrot.slane %v17965_v63, 6  ;;  %v3435_v30 = vsel %vm18245_vm8, %v3430_v39, %v3434_v1  ;;  %v17966_v1 = vld [vmem:[%s18170_s29 + $0x50] sm:$0x3]  ;;  %v21017_v42 = vld [vmem:[%s18170_s29 + $0x8c] sm:$0x1] }
 0x244   : > { %v3444_v6 = vrot.slane %v3443_v36, 4  ;;  %v10485_v7 = vsel %vm18920_vm13, %v15274_v62, %v10484_v40  ;;  %v10486_v5 = vrot.slane %v10484_v40, 4  ;;  %v14468_v21 = vcombine.low %v3425_v56, %v3435_v30 }
 0x245   : > { %v3454_v2 = vrot.slane %v3453_v13, 4  ;;  %v10492_v44 = vsel %vm18920_vm13, %v15275_v31, %v10491_v15  ;;  %v10493_v18 = vrot.slane %v10491_v15, 4  ;;  %v10494_v62 = vrot.slane %v17966_v1, 6  ;;  %v14444_v31 = vld [vmem:[%s18170_s29 + $0x90] sm:$0xf] }
 0x246   : > { %v3449_v63 = vsel %vm18245_vm8, %v3444_v6, %v3448_v54  ;;  %v10488_v36 = vsel %vm18920_vm13, %v10486_v5, %v10487_v50  ;;  %v3461_v39 = vshrl.u32 %v14441_v48, 16  ;;  %16361 = vmatprep.mubr.msk.bf16.mxu1 %vm709_vm4, %v14468_v21  ;;  %v3464_v13 = vshll.u32 %v14441_v48, 16  ;;  %v21025_v54 = vld [vmem:[%s18170_s29 + $0x94] sm:$0xf]  ;;  %v21031_v1 = vld [vmem:[%s18170_s29 + $0x98] sm:$0x1] }
 0x247   : > { %v3459_v40 = vsel %vm18245_vm8, %v3454_v2, %v3458_v16  ;;  %v15291_v56 = vcombine.low %v10485_v7, %v10488_v36  ;;  %v23817_v15 = vshll.u32 %v21007_v53, 16  ;;  %v10495_v30 = vsel %vm18920_vm13, %v10493_v18, %v10494_v62  ;;  %v15260_v62 = vld [vmem:[%s18170_s29 + $0x54] sm:$0xc] }
 0x248   : > { %v14469_v50 = vcombine.low %v3449_v63, %v3459_v40  ;;  %v3463_v6 = vrot.slane %v3461_v39, 4  ;;  %v23818_v5 = vshrl.u32 %v21007_v53, 16  ;;  %v15292_v16 = vcombine.low %v10492_v44, %v10495_v30 }
 0x249   : > { %16791 = vmatprep.mubr.msk.bf16.mxu0 %vm709_vm4, %v15291_v56  ;;  %v3466_v7 = vrot.slane %v3464_v13, 5  ;;  %v3472_v48 = vrot.slane %v23817_v15, 5  ;;  %v3480_v21 = vshll.u32 %v21017_v42, 16  ;;  %v3485_v18 = vshrl.u32 %v14444_v31, 16  ;;  %v15261_v15 = vld [vmem:[%s18170_s29 + $0x60] sm:$0xc] }
 0x24a   : > { %16362 = vmatmul.mubr.msk.bf16.gmra.mrb[16].mxu1 %vm709_vm4, %v14469_v50  ;;  %v3476_v2 = vrot.slane %v23818_v5, 4  ;;  %v3488_v63 = vshll.u32 %v14444_v31, 16  ;;  %v23823_v36 = vshll.u32 %v21025_v54, 16  ;;  %16792 = vmatmul.mubr.msk.bf16.gmra.mrb[4].mxu0 %vm709_vm4, %v15292_v16  ;;  %v23828_v40 = vshrl.u32 %v21025_v54, 16 }
 0x24b   : > { %v3467_v44 = vor.u32 %v3466_v7, %v3463_v6  ;;  %v3482_v39 = vrot.slane %v3480_v21, 5  ;;  %v3504_v56 = vshll.u32 %v21031_v1, 16  ;;  %v3487_v50 = vrot.slane %v3485_v18, 4 }
 0x24c   : > { %v3477_v13 = vor.u32 %v3476_v2, %v3472_v48  ;;  %v3490_v30 = vrot.slane %v3488_v63, 5  ;;  %v3496_v31 = vrot.slane %v23823_v36, 5  ;;  %v3500_v16 = vrot.slane %v23828_v40, 4  ;;  %v17968_v2 = vld [vmem:[%s18170_s29 + $0x5c] sm:$0x3] }
 0x24d   : > { %v3468_v5 = vrot.slane %v3467_v44, 4  ;;  %v3506_v6 = vrot.slane %v3504_v56, 5  ;;  %v15276_v7 = vrot.slane %v15260_v62, 10  ;;  %v10498_v59 = vrot.slane %v17967_v60, 6  ;;  %v17971_v40 = vld [vmem:[%s18170_s29 + $0x70] sm:$0xf] }
 0x24e   : > { %v3478_v21 = vrot.slane %v3477_v13, 4  ;;  %v3491_v51 = vor.u32 %v3490_v30, %v3487_v50  ;;  %v10501_v18 = vrot.slane %v17968_v2, 6  ;;  %v3501_v49 = vor.u32 %v3500_v16, %v3496_v31  ;;  %v21061_v50 = vld [vmem:[%s18170_s29 + $0xa0] sm:$0xf] }
 0x24f   : > { %v3473_v63 = vsel %vm18245_vm8, %v3468_v5, %v3472_v48  ;;  %v15277_v36 = vrot.slane %v15261_v15, 10  ;;  %v10505_v44 = vrot.slane %v17969_v20, 6  ;;  %v10499_v13 = vsel %vm18920_vm13, %v15276_v7, %v10498_v59 }
 0x250   : > { %v3483_v62 = vsel %vm18245_vm8, %v3478_v21, %v3482_v39  ;;  %v3492_v56 = vrot.slane %v3491_v51, 4  ;;  %v10500_v60 = vrot.slane %v10498_v59, 4  ;;  %v3502_v5 = vrot.slane %v3501_v49, 4  ;;  %v17970_v39 = vld [vmem:[%s18170_s29 + $0x68] sm:$0x3] }
 0x251   : > { %v14470_v30 = vcombine.low %v3473_v63, %v3483_v62  ;;  %v10506_v15 = vsel %vm18920_vm13, %v15277_v36, %v10505_v44  ;;  %v10507_v48 = vrot.slane %v10505_v44, 4  ;;  %v10508_v16 = vrot.slane %v17970_v39, 6  ;;  %v21071_v59 = vld [vmem:[%s18170_s29 + $0xa4] sm:$0x1]  ;;  %v14450_v63 = vld [vmem:[%s18170_s29 + $0xa8] sm:$0xf] }
 0x252   : > { %v3497_v20 = vsel %vm18245_vm8, %v3492_v56, %v3496_v31  ;;  %v10502_v51 = vsel %vm18920_vm13, %v10500_v60, %v10501_v18  ;;  %v3509_v7 = vshrl.u32 %v14447_v29, 16  ;;  %v3507_v49 = vsel %vm18245_vm8, %v3502_v5, %v3506_v6  ;;  %v21079_v31 = vld [vmem:[%s18170_s29 + $0xac] sm:$0xf]  ;;  %v21085_v60 = vld [vmem:[%s18170_s29 + $0xb0] sm:$0x1] }
 0x253   : > { %16365 = vmatprep.mubr.msk.bf16.mxu1 %vm709_vm4, %v14470_v30  ;;  %v15293_v21 = vcombine.low %v10499_v13, %v10502_v51  ;;  %v3512_v36 = vshll.u32 %v14447_v29, 16  ;;  %v23826_v2 = vshll.u32 %v21061_v50, 16  ;;  %v14471_v18 = vcombine.low %v3497_v20, %v3507_v49  ;;  %v15262_v39 = vld [vmem:[%s18170_s29 + $0x6c] sm:$0xc] }
 0x254   : > { %v10509_v44 = vsel %vm18920_vm13, %v10507_v48, %v10508_v16  ;;  %v3511_v62 = vrot.slane %v3509_v7, 4  ;;  %v23827_v56 = vshrl.u32 %v21061_v50, 16  ;;  %v3528_v30 = vshll.u32 %v21071_v59, 16 }
 0x255   : > { %16795 = vmatprep.mubr.msk.bf16.mxu0 %vm709_vm4, %v15293_v21  ;;  %v15294_v6 = vcombine.low %v10506_v15, %v10509_v44  ;;  %v3514_v13 = vrot.slane %v3512_v36, 5  ;;  %v3520_v29 = vrot.slane %v23826_v2, 5  ;;  %16366 = vmatmul.mubr.msk.bf16.gmra.mrb[20].mxu1 %vm709_vm4, %v14471_v18  ;;  %v3533_v48 = vshrl.u32 %v14450_v63, 16  ;;  %v15263_v44 = vld [vmem:[%s18170_s29 + $0x78] sm:$0xc] }
 0x256   : > { %v3524_v5 = vrot.slane %v23827_v56, 4  ;;  %v3536_v20 = vshll.u32 %v14450_v63, 16  ;;  %v23831_v51 = vshll.u32 %v21079_v31, 16  ;;  %v3530_v16 = vrot.slane %v3528_v30, 5 }
 0x257   : > { %16796 = vmatmul.mubr.msk.bf16.gmra.mrb[8].mxu0 %vm709_vm4, %v15294_v6  ;;  %v3515_v15 = vor.u32 %v3514_v13, %v3511_v62  ;;  %v23836_v7 = vshrl.u32 %v21079_v31, 16  ;;  %v3552_v49 = vshll.u32 %v21085_v60, 16  ;;  %v3535_v36 = vrot.slane %v3533_v48, 4 }
 0x258   : > { %v3525_v21 = vor.u32 %v3524_v5, %v3520_v29  ;;  %v3538_v18 = vrot.slane %v3536_v20, 5  ;;  %v3544_v63 = vrot.slane %v23831_v51, 5  ;;  %v15278_v13 = vrot.slane %v15262_v39, 10  ;;  %v17972_v5 = vld [vmem:[%s18170_s29 + $0x74] sm:$0x3] }
 0x259   : > { %v3516_v2 = vrot.slane %v3515_v15, 4  ;;  %v3548_v6 = vrot.slane %v23836_v7, 4  ;;  %v3554_v62 = vrot.slane %v3552_v49, 5  ;;  %v10512_v37 = vrot.slane %v17971_v40, 6  ;;  %v17975_v7 = vld [vmem:[%s18170_s29 + $0x88] sm:$0xf] }
 0x25a   : > { %v3526_v30 = vrot.slane %v3525_v21, 4  ;;  %v3539_v56 = vor.u32 %v3538_v18, %v3535_v36  ;;  %v10515_v48 = vrot.slane %v17972_v5, 6  ;;  %v15279_v51 = vrot.slane %v15263_v44, 10  ;;  %v21115_v36 = vld [vmem:[%s18170_s29 + $0xb8] sm:$0xf] }
 0x25b   : > { %v3521_v20 = vsel %vm18245_vm8, %v3516_v2, %v3520_v29  ;;  %v3549_v46 = vor.u32 %v3548_v6, %v3544_v63  ;;  %v10519_v15 = vrot.slane %v17973_v11, 6  ;;  %v10513_v21 = vsel %vm18920_vm13, %v15278_v13, %v10512_v37 }
 0x25c   : > { %v3531_v39 = vsel %vm18245_vm8, %v3526_v30, %v3530_v16  ;;  %v3540_v49 = vrot.slane %v3539_v56, 4  ;;  %v10514_v40 = vrot.slane %v10512_v37, 4  ;;  %v17974_v16 = vld [vmem:[%s18170_s29 + $0x80] sm:$0x3]  ;;  %v21125_v37 = vld [vmem:[%s18170_s29 + $0xbc] sm:$0x1] }
 0x25d   : > { %v14472_v18 = vcombine.low %v3521_v20, %v3531_v39  ;;  %v3550_v2 = vrot.slane %v3549_v46, 4  ;;  %v10520_v29 = vsel %vm18920_vm13, %v15279_v51, %v10519_v15  ;;  %v10521_v44 = vrot.slane %v10519_v15, 4  ;;  %v14456_v20 = vld [vmem:[%s18170_s29 + $0xc0] sm:$0xf] }
 0x25e   : > { %v3545_v11 = vsel %vm18245_vm8, %v3540_v49, %v3544_v63  ;;  %v10516_v56 = vsel %vm18920_vm13, %v10514_v40, %v10515_v48  ;;  %v10522_v6 = vrot.slane %v17974_v16, 6  ;;  %v3557_v13 = vshrl.u32 %v14453_v14, 16  ;;  %v21133_v63 = vld [vmem:[%s18170_s29 + $0xc4] sm:$0xf]  ;;  %v21139_v40 = vld [vmem:[%s18170_s29 + $0xc8] sm:$0x1] }
 0x25f   : > { %16369 = vmatprep.mubr.msk.bf16.mxu1 %vm709_vm4, %v14472_v18  ;;  %v3555_v46 = vsel %vm18245_vm8, %v3550_v2, %v3554_v62  ;;  %v15295_v30 = vcombine.low %v10513_v21, %v10516_v56  ;;  %v3560_v51 = vshll.u32 %v14453_v14, 16  ;;  %v23834_v5 = vshll.u32 %v21115_v36, 16  ;;  %24056 = vst [vmem:[#allocation40_spill] sm:$0xff] %v21133_v63  ;;  %v15264_v16 = vld [vmem:[%s18170_s29 + $0x84] sm:$0xc] }
 0x260   : > { %v14473_v48 = vcombine.low %v3545_v11, %v3555_v46  ;;  %v10523_v15 = vsel %vm18920_vm13, %v10521_v44, %v10522_v6  ;;  %v3559_v39 = vrot.slane %v3557_v13, 4  ;;  %v23835_v49 = vshrl.u32 %v21115_v36, 16 }
 0x261   : > { %16799 = vmatprep.mubr.msk.bf16.mxu0 %vm709_vm4, %v15295_v30  ;;  %v15296_v62 = vcombine.low %v10520_v29, %v10523_v15  ;;  %v3562_v21 = vrot.slane %v3560_v51, 5  ;;  %v3568_v14 = vrot.slane %v23834_v5, 5  ;;  %v3576_v18 = vshll.u32 %v21125_v37, 16  ;;  %v15265_v15 = vld [vmem:[%s18170_s29 + $0x90] sm:$0xc] }
 0x262   : > { %16370 = vmatmul.mubr.msk.bf16.gmra.mrb[24].mxu1 %vm709_vm4, %v14473_v48  ;;  %v3572_v2 = vrot.slane %v23835_v49, 4  ;;  %v3581_v44 = vshrl.u32 %v14456_v20, 16  ;;  %v3584_v11 = vshll.u32 %v14456_v20, 16  ;;  %v23839_v56 = vshll.u32 %v21133_v63, 16 }
 0x263   : > { %16800 = vmatmul.mubr.msk.bf16.gmra.mrb[12].mxu0 %vm709_vm4, %v15296_v62  ;;  %v3563_v29 = vor.u32 %v3562_v21, %v3559_v39  ;;  %v3578_v6 = vrot.slane %v3576_v18, 5  ;;  %v23842_v13 = vshrl.u32 %v21133_v63, 16  ;;  %v3600_v46 = vshll.u32 %v21139_v40, 16 }
 0x264   : > { %v3573_v30 = vor.u32 %v3572_v2, %v3568_v14  ;;  %v3583_v51 = vrot.slane %v3581_v44, 4  ;;  %v3586_v48 = vrot.slane %v3584_v11, 5  ;;  %v3592_v20 = vrot.slane %v23839_v56, 5 }
 0x265   : > { %v3564_v5 = vrot.slane %v3563_v29, 4  ;;  %v3596_v62 = vrot.slane %v23842_v13, 4  ;;  %v3602_v39 = vrot.slane %v3600_v46, 5  ;;  %v15280_v21 = vrot.slane %v15264_v16, 10  ;;  %v17986_v13 = vld [vmem:[%s18170_s29 + $0xb0] sm:$0x3] }
 0x266   : > { %v3574_v18 = vrot.slane %v3573_v30, 4  ;;  %v3587_v49 = vor.u32 %v3586_v48, %v3583_v51  ;;  %v10526_v10 = vrot.slane %v17975_v7, 6  ;;  %v10529_v2 = vrot.slane %v17976_v38, 6  ;;  %v21176_v48 = vld [vmem:[%s18170_s29 + $0x18] sm:$0xe] }
 0x267   : > { %v3569_v44 = vsel %vm18245_vm8, %v3564_v5, %v3568_v14  ;;  %v3597_v11 = vor.u32 %v3596_v62, %v3592_v20  ;;  %v15281_v56 = vrot.slane %v15265_v15, 10  ;;  %v10533_v29 = vrot.slane %v17977_v3, 6  ;;  %v14573_v3 = vld [vmem:[%s23647_s1 + $0x10] sm:$0x3] }
 0x268   : > { %v3579_v16 = vsel %vm18245_vm8, %v3574_v18, %v3578_v6  ;;  %v3588_v46 = vrot.slane %v3587_v49, 4  ;;  %v10527_v7 = vsel %vm18920_vm13, %v15280_v21, %v10526_v10  ;;  %v10528_v38 = vrot.slane %v10526_v10, 4  ;;  %v17978_v6 = vld [vmem:[%s18170_s29 + $0x98] sm:$0x3]  ;;  %v17979_v18 = vld [vmem:[%s18170_s29 + $0x10] sm:$0xf] }
 0x269   : > { %v14474_v30 = vcombine.low %v3569_v44, %v3579_v16  ;;  %v3598_v51 = vrot.slane %v3597_v11, 4  ;;  %v10534_v5 = vsel %vm18920_vm13, %v15281_v56, %v10533_v29  ;;  %v10535_v14 = vrot.slane %v10533_v29, 4  ;;  %v17980_v11 = vld [vmem:[%s18170_s29 + $0x14] sm:$0x1]  ;;  %v15266_v29 = vld [vmem:[%s18170_s29 + $0x9c] sm:$0xc] }
 0x26a   : > { %v3593_v49 = vsel %vm18245_vm8, %v3588_v46, %v3592_v20  ;;  %v10530_v10 = vsel %vm18920_vm13, %v10528_v38, %v10529_v2  ;;  %v10536_v15 = vrot.slane %v17978_v6, 6  ;;  %v14508_v62 = vrot.slane %v21164_v0, 9 }
 0x26b   : > { %16373 = vmatprep.mubr.msk.bf16.mxu1 %vm709_vm4, %v14474_v30  ;;  %v3603_v56 = vsel %vm18245_vm8, %v3598_v51, %v3602_v39  ;;  %v15297_v21 = vcombine.low %v10527_v7, %v10530_v10  ;;  %v3964_v44 = vrot.slane %v17979_v18, 5  ;;  %v3967_v20 = vrot.slane %v17980_v11, 5  ;;  %v15267_v39 = vld [vmem:[%s18170_s29 + $0xa8] sm:$0xc]  ;;  %v17984_v11 = vld [vmem:[%s18170_s29 + $0xa4] sm:$0x3] }
 0x26c   : > { %v14475_v16 = vcombine.low %v3593_v49, %v3603_v56  ;;  %v10537_v2 = vsel %vm18920_vm13, %v10535_v14, %v10536_v15  ;;  %v21193_v46 = vand.u32 %v14573_v3, %v18141_v4  ;;  %v14509_v38 = vrot.slane %v21176_v48, 9  ;;  %v17981_v49 = vld [vmem:[%s18170_s29 + $0x1c] sm:$0xf]  ;;  %v17982_v14 = vld [vmem:[%s18170_s29 + $0x20] sm:$0x1] }
 0x26d   : > { %16803 = vmatprep.mubr.msk.bf16.mxu0 %vm709_vm4, %v15297_v21  ;;  %v15298_v7 = vcombine.low %v10534_v5, %v10537_v2  ;;  %v3965_v51 = vsel %vm18182_vm5, %v14508_v62, %v3964_v44  ;;  %v3966_v10 = vrot.slane %v3964_v44, 4  ;;  %v3971_v6 = vrot.slane %v17981_v49, 5  ;;  %v17983_v56 = vld [vmem:[%s18170_s29 + $0xa0] sm:$0xf]  ;;  %v21207_v5 = vld [vmem:[%s18170_s29 + $0x24] sm:$0xe] }
 0x26e   : > { %16374 = vmatmul.mubr.msk.bf16.gmra.mrb[28].mxu1 %vm709_vm4, %v14475_v16  ;;  %16411 = vmatprep.subr.bf16.mxu1 %v21193_v46  ;;  %v3974_v3 = vrot.slane %v17982_v14, 5  ;;  %v15282_v15 = vrot.slane %v15266_v29, 10  ;;  %v10540_v18 = vrot.slane %v17983_v56, 6  ;;  %v10543_v21 = vrot.slane %v17984_v11, 6  ;;  %v17985_v56 = vld [vmem:[%s18170_s29 + $0xac] sm:$0xf] }
 0x26f   : > { %16804 = vmatmul.mubr.msk.bf16.gmra.mrb[16].mxu0 %vm709_vm4, %v15298_v7  ;;  %v3968_v62 = vsel %vm18182_vm5, %v3966_v10, %v3967_v20  ;;  %v3972_v44 = vsel %vm18182_vm5, %v14509_v38, %v3971_v6  ;;  %v3973_v16 = vrot.slane %v3971_v6, 4  ;;  %v15283_v2 = vrot.slane %v15267_v39, 10  ;;  %v17987_v10 = vld [vmem:[%s18170_s29 + $0x28] sm:$0xf]  ;;  %v21223_v39 = vld [vmem:[%s18170_s29 + $0x30] sm:$0xe] }
 0x270   : > { %v14525_v29 = vcombine.low %v3965_v51, %v3968_v62  ;;  %v10541_v49 = vsel %vm18920_vm13, %v15282_v15, %v10540_v18  ;;  %v10542_v14 = vrot.slane %v10540_v18, 4  ;;  %v10547_v11 = vrot.slane %v17985_v56, 6  ;;  %v15268_v18 = vld [vmem:[%s18170_s29 + $0xb4] sm:$0xc]  ;;  %v17988_v56 = vld [vmem:[%s18170_s29 + $0x2c] sm:$0x1] }
 0x271   : > { %v3975_v7 = vsel %vm18182_vm5, %v3973_v16, %v3974_v3  ;;  %v10550_v45 = vrot.slane %v17986_v13, 6  ;;  %v14510_v20 = vrot.slane %v21207_v5, 9  ;;  %v3978_v38 = vrot.slane %v17987_v10, 5 }
 0x272   : > { %16379 = vmatprep.mubr.msk.bf16.mxu1 %vm709_vm4, %v14525_v29  ;;  %v14526_v51 = vcombine.low %v3972_v44, %v3975_v7  ;;  %v10544_v6 = vsel %vm18920_vm13, %v10542_v14, %v10543_v21  ;;  %v10548_v3 = vsel %vm18920_vm13, %v15283_v2, %v10547_v11  ;;  %v10549_v15 = vrot.slane %v10547_v11, 4  ;;  %v17989_v21 = vld [vmem:[%s18170_s29 + $0x34] sm:$0xf]  ;;  %v15269_v11 = vld [vmem:[%s18170_s29 + $0xc0] sm:$0xc] }
 0x273   : > { %v15299_v13 = vcombine.low %v10541_v49, %v10544_v6  ;;  %v3979_v62 = vsel %vm18182_vm5, %v14510_v20, %v3978_v38  ;;  %v3980_v16 = vrot.slane %v3978_v38, 4  ;;  %v3981_v10 = vrot.slane %v17988_v56, 5  ;;  %v17990_v38 = vld [vmem:[%s18170_s29 + $0xb8] sm:$0xf]  ;;  %v21245_v56 = vld [vmem:[%s18170_s29 + $0x3c] sm:$0xe] }
 0x274   : > { %v10551_v44 = vsel %vm18920_vm13, %v10549_v15, %v10550_v45  ;;  %v14511_v29 = vrot.slane %v21223_v39, 9  ;;  %v3985_v14 = vrot.slane %v17989_v21, 5  ;;  %v3988_v2 = vrot.slane %v20779_v24, 5 }
 0x275   : > { %16807 = vmatprep.mubr.msk.bf16.mxu0 %vm709_vm4, %v15299_v13  ;;  %v15300_v49 = vcombine.low %v10548_v3, %v10551_v44  ;;  %v3982_v7 = vsel %vm18182_vm5, %v3980_v16, %v3981_v10  ;;  %v15284_v20 = vrot.slane %v15268_v18, 10  ;;  %v10554_v6 = vrot.slane %v17990_v38, 6  ;;  %v17991_v10 = vld [vmem:[%s18170_s29 + $0xc4] sm:$0xf] }
 0x276   : > { %16380 = vmatmul.mubr.msk.bf16.vlgmr.msra.gmra.mrb[0].mxu1 %vm709_vm4, %v14526_v51  ;;  %v14527_v45 = vcombine.low %v3979_v62, %v3982_v7  ;;  %v3986_v24 = vsel %vm18182_vm5, %v14511_v29, %v3985_v14  ;;  %v3987_v15 = vrot.slane %v3985_v14, 4  ;;  %v10557_v13 = vrot.slane %v20796_v19, 6  ;;  %v21263_v29 = vld [vmem:[%s18170_s29 + $0x48] sm:$0xe]  ;;  %v15270_v7 = vld [vmem:[%s18170_s29 + $0xcc] sm:$0xc] }
 0x277   : > { %16412 = vmatpush3.bf16.msra.mxu1 %v21193_v46  ;;  %16808 = vmatmul.mubr.msk.bf16.gmra.mrb[20].mxu0 %vm709_vm4, %v15300_v49  ;;  %v10555_v3 = vsel %vm18920_vm13, %v15284_v20, %v10554_v6  ;;  %v10556_v18 = vrot.slane %v10554_v6, 4  ;;  %v15285_v16 = vrot.slane %v15269_v11, 10  ;;  %v10561_v51 = vrot.slane %v17991_v10, 6  ;;  %v17992_v10 = vld [vmem:[%s18170_s29 + $0xd0] sm:$0xf] }
 0x278   : > { %16383 = vmatprep.mubr.msk.bf16.mxu1 %vm709_vm4, %v14527_v45  ;;  %v3989_v62 = vsel %vm18182_vm5, %v3987_v15, %v3988_v2  ;;  %v10564_v44 = vrot.slane %v20814_v17, 6  ;;  %v14512_v19 = vrot.slane %v21245_v56, 9  ;;  %v3992_v46 = vrot.slane %v20830_v25, 5 }
 0x279   : > { %v14528_v21 = vcombine.low %v3986_v24, %v3989_v62  ;;  %v10558_v14 = vsel %vm18920_vm13, %v10556_v18, %v10557_v13  ;;  %v10562_v11 = vsel %vm18920_vm13, %v15285_v16, %v10561_v51  ;;  %v10563_v49 = vrot.slane %v10561_v51, 4  ;;  %v15271_v13 = vld [vmem:[%s18170_s29 + $0xd8] sm:$0xc]  ;;  %v21284_v51 = vld [vmem:[%s18170_s29 + $0x54] sm:$0xe] }
 0x27a   : > { %v15301_v2 = vcombine.low %v10555_v3, %v10558_v14  ;;  %v3993_v17 = vsel %vm18182_vm5, %v14512_v19, %v3992_v46  ;;  %v3994_v20 = vrot.slane %v3992_v46, 4  ;;  %v3995_v38 = vrot.slane %v20836_v8, 5 }
 0x27b   : > { %v10565_v6 = vsel %vm18920_vm13, %v10563_v49, %v10564_v44  ;;  %v14513_v45 = vrot.slane %v21263_v29, 9  ;;  %v3999_v24 = vrot.slane %v20845_v12, 5  ;;  %v4002_v15 = vrot.slane %v20854_v57, 5  ;;  %v17993_v49 = vld [vmem:[%s18170_s29 + $0xdc] sm:$0xf] }
 0x27c   : > { %16811 = vmatprep.mubr.msk.bf16.mxu0 %vm709_vm4, %v15301_v2  ;;  %v15302_v3 = vcombine.low %v10562_v11, %v10565_v6  ;;  %v3996_v18 = vsel %vm18182_vm5, %v3994_v20, %v3995_v38  ;;  %v15286_v16 = vrot.slane %v15270_v7, 10  ;;  %v10568_v8 = vrot.slane %v17992_v10, 6  ;;  %v21301_v20 = vld [vmem:[%s18170_s29 + $0x60] sm:$0xe] }
 0x27d   : > { %v14529_v62 = vcombine.low %v3993_v17, %v3996_v18  ;;  %v4000_v44 = vsel %vm18182_vm5, %v14513_v45, %v3999_v24  ;;  %v4001_v19 = vrot.slane %v3999_v24, 4  ;;  %v10571_v57 = vrot.slane %v20870_v41, 6 }
 0x27e   : > { %16384 = vmatmul.mubr.msk.bf16.gmra.mrb[4].mxu1 %vm709_vm4, %v14528_v21  ;;  %v10569_v46 = vsel %vm18920_vm13, %v15286_v16, %v10568_v8  ;;  %v10570_v14 = vrot.slane %v10568_v8, 4  ;;  %v15287_v11 = vrot.slane %v15271_v13, 10  ;;  %v10575_v7 = vrot.slane %v17993_v49, 6  ;;  %v21308_v13 = vld [vmem:[%s18170_s29 + $0x6c] sm:$0xe] }
 0x27f   : > { %16812 = vmatmul.mubr.msk.bf16.gmra.mrb[24].mxu0 %vm709_vm4, %v15302_v3  ;;  %16387 = vmatprep.mubr.msk.bf16.mxu1 %vm709_vm4, %v14529_v62  ;;  %v4003_v2 = vsel %vm18182_vm5, %v4001_v19, %v4002_v15  ;;  %v10578_v17 = vrot.slane %v20884_v27, 6  ;;  %v14514_v41 = vrot.slane %v21284_v51, 9  ;;  %v4006_v21 = vrot.slane %v20901_v52, 5  ;;  %v15434_v16 = vld [vmem:[%s23647_s1 + $0x2a] sm:$0x3] }
 0x280   : > { %v14530_v38 = vcombine.low %v4000_v44, %v4003_v2  ;;  %v10572_v6 = vsel %vm18920_vm13, %v10570_v14, %v10571_v57  ;;  %v10576_v45 = vsel %vm18920_vm13, %v15287_v11, %v10575_v7  ;;  %v10577_v24 = vrot.slane %v10575_v7, 4  ;;  %v21322_v19 = vld [vmem:[%s18170_s29 + $0x78] sm:$0xe]  ;;  %v21330_v11 = vld [vmem:[%s18170_s29 + $0x84] sm:$0xe]  ;;  %v17833_v2 = vld [vmem:[%s18170_s29 + $0x30] sm:$0xff]  }
 0x281   : > { %v15303_v15 = vcombine.low %v10569_v46, %v10572_v6  ;;  %v4007_v27 = vsel %vm18182_vm5, %v14514_v41, %v4006_v21  ;;  %v4008_v3 = vrot.slane %v4006_v21, 4  ;;  %v4009_v18 = vrot.slane %v20907_v26, 5 }
 0x282   : > { %v10579_v10 = vsel %vm18920_vm13, %v10577_v24, %v10578_v17  ;;  %v14515_v8 = vrot.slane %v21301_v20, 9  ;;  %v4013_v62 = vrot.slane %v20915_v47, 5  ;;  %v4016_v44 = vrot.slane %v20922_v43, 5  ;;  %v21341_v24 = vld [vmem:[%s18170_s29 + $0x90] sm:$0xe] }
 0x283   : > { %16815 = vmatprep.mubr.msk.bf16.mxu0 %vm709_vm4, %v15303_v15  ;;  %v15304_v26 = vcombine.low %v10576_v45, %v10579_v10  ;;  %v4010_v57 = vsel %vm18182_vm5, %v4008_v3, %v4009_v18  ;;  %v14516_v46 = vrot.slane %v21308_v13, 9  ;;  %v4020_v14 = vrot.slane %v20950_v35, 5 }
 0x284   : > { %v14531_v49 = vcombine.low %v4007_v27, %v4010_v57  ;;  %v4014_v7 = vsel %vm18182_vm5, %v14515_v8, %v4013_v62  ;;  %v4015_v43 = vrot.slane %v4013_v62, 4  ;;  %v4023_v17 = vrot.slane %v20957_v58, 5  ;;  %v21356_v8 = vld [vmem:[%s18170_s29 + $0x9c] sm:$0xe] }
 0x285   : > { %v4021_v41 = vsel %vm18182_vm5, %v14516_v46, %v4020_v14  ;;  %v4022_v21 = vrot.slane %v4020_v14, 4  ;;  %v11764_v6 = vand.u32 %v15434_v16, %v18141_v4  ;;  %v14517_v45 = vrot.slane %v21322_v19, 9 }
 0x286   : > { %16388 = vmatmul.mubr.msk.bf16.gmra.mrb[8].mxu1 %vm709_vm4, %v14530_v38  ;;  %v4017_v15 = vsel %vm18182_vm5, %v4015_v43, %v4016_v44  ;;  %v4027_v27 = vrot.slane %v20976_v22, 5  ;;  %v4030_v58 = vrot.slane %v20979_v28, 5  ;;  %v14518_v3 = vrot.slane %v21330_v11, 9 }
 0x287   : > { %16816 = vmatmul.mubr.msk.bf16.gmra.mrb[28].mxu0 %vm709_vm4, %v15304_v26  ;;  %16391 = vmatprep.mubr.msk.bf16.mxu1 %vm709_vm4, %v14531_v49  ;;  %v14532_v18 = vcombine.low %v4014_v7, %v4017_v15  ;;  %v4024_v16 = vsel %vm18182_vm5, %v4022_v21, %v4023_v17  ;;  %v4034_v38 = vrot.slane %v21007_v53, 5  ;;  %v4037_v10 = vrot.slane %v21017_v42, 5  ;;  %v21371_v49 = vld [vmem:[%s18170_s29 + $0xa8] sm:$0xe]  ;;  %v17834_v21 = vld [vmem:[%s18170_s29 + $0x3c] sm:$0xff]  }
 0x288   : > { %16821 = vmatprep.mubr.msk.bf16.mxu0 %vm709_vm4, %v17833_v2  ;;  %v14533_v28 = vcombine.low %v4021_v41, %v4024_v16  ;;  %16853 = vmatprep.subr.bf16.mxu0 %v11764_v6  ;;  %v21361_v62 = vsel %vm18182_vm5, %v14517_v45, %v4027_v27  ;;  %v4029_v44 = vrot.slane %v4027_v27, 4  ;;  %v14519_v26 = vrot.slane %v21341_v24, 9  ;;  %v14506_v41 = vld [vmem:[%s18170_s29 + $0xb4] sm:$0xe] }
 0x289   : > { %v21366_v57 = vsel %vm18182_vm5, %v14518_v3, %v4034_v38  ;;  %v4036_v42 = vrot.slane %v4034_v38, 4  ;;  %v4041_v46 = vrot.slane %v21025_v54, 5  ;;  %v4044_v14 = vrot.slane %v21031_v1, 5 }
 0x28a   : > { %v21375_v7 = vsel %vm18182_vm5, %v4029_v44, %v4030_v58  ;;  %v14520_v43 = vrot.slane %v21356_v8, 9  ;;  %v4048_v2 = vrot.slane %v21061_v50, 5  ;;  %v4051_v17 = vrot.slane %v21071_v59, 5  ;;  %v17835_v58 = vld [vmem:[%s18170_s29 + $0x48] sm:$0xff]  }
 0x28b   : > { %v14534_v45 = vcombine.low %v21361_v62, %v21375_v7  ;;  %v21386_v1 = vsel %vm18182_vm5, %v4036_v42, %v4037_v10  ;;  %v21390_v15 = vsel %vm18182_vm5, %v14519_v26, %v4041_v46  ;;  %v4043_v27 = vrot.slane %v4041_v46, 4  ;;  %v14507_v62 = vld [vmem:[%s18170_s29 + $0xc0] sm:$0xe] }
 0x28c   : > { %v14535_v3 = vcombine.low %v21366_v57, %v21386_v1  ;;  %v21397_v59 = vsel %vm18182_vm5, %v14520_v43, %v4048_v2  ;;  %v4050_v16 = vrot.slane %v4048_v2, 4  ;;  %v14521_v38 = vrot.slane %v21371_v49, 9 }
 0x28d   : > { %v21403_v10 = vsel %vm18182_vm5, %v4043_v27, %v4044_v14  ;;  %v4055_v44 = vrot.slane %v21079_v31, 5  ;;  %v4058_v26 = vrot.slane %v21085_v60, 5  ;;  %v14522_v42 = vrot.slane %v14506_v41, 9 }
 0x28e   : > { %16392 = vmatmul.mubr.msk.bf16.gmra.mrb[12].mxu1 %vm709_vm4, %v14532_v18  ;;  %v21412_v46 = vsel %vm18182_vm5, %v4050_v16, %v4051_v17  ;;  %v4062_v7 = vrot.slane %v21115_v36, 5  ;;  %v4065_v14 = vrot.slane %v21125_v37, 5  ;;  %v14523_v2 = vrot.slane %v14507_v62, 9 }
 0x28f   : > { %16822 = vmatmul.mubr.msk.bf16.vlgmr.msra.gmra.mrb[0].mxu0 %vm709_vm4, %v17834_v21  ;;  %16395 = vmatprep.mubr.msk.bf16.mxu1 %vm709_vm4, %v14533_v28  ;;  %v21422_v18 = vsel %vm18182_vm5, %v14521_v38, %v4055_v44  ;;  %v4057_v43 = vrot.slane %v4055_v44, 4  ;;  %v4069_v28 = vrot.slane %v21133_v63, 5  ;;  %v4072_v41 = vrot.slane %v21139_v40, 5  ;;  %v14557_v21 = vld [vmem:[%s18170_s29 + $0x14] sm:$0x3]  ;;  %v17837_v40 = vld [vmem:[%s18170_s29 + $0x60] sm:$0xff]  }
 0x290   : > { %16854 = vmatpush3.bf16.msra.mxu0 %v11764_v6  ;;  %16825 = vmatprep.mubr.msk.bf16.mxu0 %vm709_vm4, %v17835_v58  ;;  %v21427_v37 = vsel %vm18182_vm5, %v14522_v42, %v4062_v7  ;;  %v4064_v17 = vrot.slane %v4062_v7, 4  ;;  %v4385_v6 = vshrl.u32 %v21164_v0, 16  ;;  %v4388_v27 = vshll.u32 %v21164_v0, 16  ;;  %v14638_v38 = vld [vmem:[%s23647_s1 + $0x12] sm:$0x3] }
 0x291   : > { %v21434_v1 = vsel %vm18182_vm5, %v4057_v43, %v4058_v26  ;;  %v24058_v58 = vshrl.u32 %v20677_v9, 16  ;;  %v21451_v44 = vsel %vm18182_vm5, %v14523_v2, %v4069_v28  ;;  %v4071_v0 = vrot.slane %v4069_v28, 4  ;;  %v17836_v26 = vld [vmem:[%s18170_s29 + $0x54] sm:$0xff]  }
 0x292   : > { %v21447_v62 = vsel %vm18182_vm5, %v4064_v17, %v4065_v14  ;;  %v4387_v7 = vrot.slane %v4385_v6, 5  ;;  %v4390_v43 = vrot.slane %v4388_v27, 6  ;;  %v4399_v17 = vshrl.u32 %v14557_v21, 16  ;;  %v14558_v6 = vld [vmem:[%s18170_s29 + $0x20] sm:$0x3] }
 0x293   : > { %v4393_v16 = vrot.slane %v24058_v58, 5  ;;  %v24059_v58 = vshll.u32 %v20677_v9, 16  ;;  %v21461_v14 = vsel %vm18182_vm5, %v4071_v0, %v4072_v41  ;;  %v4402_v57 = vshll.u32 %v14557_v21, 16 }
 0x294   : > { %v21464_v2 = vand.u32 %v14638_v38, %v18141_v4  ;;  %v4391_v55 = vor.u32 %v4390_v43, %v4387_v7  ;;  %v4408_v27 = vshrl.u32 %v21176_v48, 16  ;;  %v4401_v9 = vrot.slane %v4399_v17, 5 }
 0x295   : > { %v4394_v60 = vrot.slane %v24059_v58, 6  ;;  %v4404_v58 = vrot.slane %v4402_v57, 6  ;;  %v4411_v41 = vshll.u32 %v21176_v48, 16  ;;  %v24060_v21 = vshrl.u32 %v20700_v61, 16 }
 0x296   : > { %16396 = vmatmul.mubr.msk.bf16.gmra.mrb[16].mxu1 %vm709_vm4, %v14534_v45  ;;  %16445 = vmatprep.subr.bf16.mxu1 %v21464_v2  ;;  %v4392_v0 = vrot.slane %v4391_v55, 4  ;;  %v24061_v7 = vshll.u32 %v20700_v61, 16  ;;  %v4422_v48 = vshrl.u32 %v14558_v6, 16  ;;  %v4425_v17 = vshll.u32 %v14558_v6, 16 }
 0x297   : > { %v4395_v42 = vor.u32 %v4394_v60, %v4393_v16  ;;  %v4416_v38 = vrot.slane %v24060_v21, 5  ;;  %16826 = vmatmul.mubr.msk.bf16.gmra.mrb[4].mxu0 %vm709_vm4, %v17836_v26  ;;  %16399 = vmatprep.mubr.msk.bf16.mxu1 %vm709_vm4, %v14535_v3  ;;  %v4410_v16 = vrot.slane %v4408_v27, 5  ;;  %v4405_v57 = vor.u32 %v4404_v58, %v4401_v9  ;;  %v17838_v9 = vld [vmem:[%s18170_s29 + $0x6c] sm:$0xff]  }
 0x298   : > { %v4417_v45 = vrot.slane %v24061_v7, 6  ;;  %16829 = vmatprep.mubr.msk.bf16.mxu0 %vm709_vm4, %v17837_v40  ;;  %v4413_v43 = vrot.slane %v4411_v41, 6  ;;  %v4431_v55 = vshrl.u32 %v21207_v5, 16  ;;  %v4434_v3 = vshll.u32 %v21207_v5, 16  ;;  %v14559_v40 = vld [vmem:[%s18170_s29 + $0x2c] sm:$0x3] }
 0x299   : > { %v4397_v60 = vrot.slane %v4395_v42, 4  ;;  %v4396_v26 = vsel %vm18447_vm11, %v4392_v0, %v4395_v42  ;;  %v4424_v7 = vrot.slane %v4422_v48, 5  ;;  %v4427_v28 = vrot.slane %v4425_v17, 6  ;;  %v17839_v42 = vld [vmem:[%s18170_s29 + $0x78] sm:$0xff]  }
 0x29a   : > { %v4418_v21 = vor.u32 %v4417_v45, %v4416_v38  ;;  %v4414_v27 = vor.u32 %v4413_v43, %v4410_v16  ;;  %v4433_v6 = vrot.slane %v4431_v55, 5  ;;  %v4436_v30 = vrot.slane %v4434_v3, 6  ;;  %v14560_v3 = vld [vmem:[%s18170_s29 + $0x38] sm:$0x3] }
 0x29b   : > { %v4406_v61 = vsel %vm18447_vm11, %v4397_v60, %v4405_v57  ;;  %v4428_v0 = vor.u32 %v4427_v28, %v4424_v7  ;;  %v24062_v45 = vshrl.u32 %v20756_v23, 16  ;;  %v24063_v63 = vshll.u32 %v20756_v23, 16 }
 0x29c   : > { %v21488_v58 = vcombine.low %v4396_v26, %v4406_v61  ;;  %v4420_v41 = vrot.slane %v4418_v21, 4  ;;  %v4415_v38 = vrot.slane %v4414_v27, 4  ;;  %v4437_v16 = vor.u32 %v4436_v30, %v4433_v6 }
 0x29d   : > { %v4439_v5 = vrot.slane %v24062_v45, 5  ;;  %v4440_v60 = vrot.slane %v24063_v63, 6  ;;  %v4445_v57 = vshrl.u32 %v14559_v40, 16  ;;  %v4448_v43 = vshll.u32 %v14559_v40, 16  ;;  %v14561_v45 = vld [vmem:[%s18170_s29 + $0x44] sm:$0x3] }
 0x29e   : > { %v4454_v48 = vshrl.u32 %v21223_v39, 16  ;;  %v24064_v17 = vcombine.low %v21390_v15, %v21403_v10  ;;  %v4419_v26 = vsel %vm18447_vm11, %v4415_v38, %v4418_v21  ;;  %v4429_v28 = vsel %vm18447_vm11, %v4420_v41, %v4428_v0 }
 0x29f   : > { %v4441_v55 = vor.u32 %v4440_v60, %v4439_v5  ;;  %v4457_v23 = vshll.u32 %v21223_v39, 16  ;;  %16830 = vmatmul.mubr.msk.bf16.gmra.mrb[8].mxu0 %vm709_vm4, %v17838_v9  ;;  %v24065_v63 = vcombine.low %v21397_v59, %v21412_v46  ;;  %v21511_v30 = vcombine.low %v4419_v26, %v4429_v28  ;;  %v17840_v60 = vld [vmem:[%s18170_s29 + $0x84] sm:$0xff]   ;;  %v17841_v26 = vld [vmem:[%s18170_s29 + $0x90] sm:$0xff]  }
 0x2a0   : > { %16400 = vmatmul.mubr.msk.bf16.gmra.mrb[20].mxu1 %vm709_vm4, %v24064_v17  ;;  %v4438_v15 = vrot.slane %v4437_v16, 4  ;;  %v4447_v10 = vrot.slane %v4445_v57, 5  ;;  %v4450_v21 = vrot.slane %v4448_v43, 6  ;;  %16833 = vmatprep.mubr.msk.bf16.mxu0 %vm709_vm4, %v17839_v42  ;;  %v4456_v27 = vrot.slane %v4454_v48, 5 }
 0x2a1   : > { %16403 = vmatprep.mubr.msk.bf16.mxu1 %vm709_vm4, %v24065_v63  ;;  %v4443_v61 = vrot.slane %v4441_v55, 4  ;;  %v4459_v7 = vrot.slane %v4457_v23, 6  ;;  %v24066_v39 = vshrl.u32 %v20771_v34, 16  ;;  %v24067_v9 = vshll.u32 %v20771_v34, 16 }
 0x2a2   : > { %v4442_v59 = vsel %vm18447_vm11, %v4438_v15, %v4441_v55  ;;  %v4451_v46 = vor.u32 %v4450_v21, %v4447_v10  ;;  %v4468_v6 = vshrl.u32 %v14560_v3, 16  ;;  %v4471_v0 = vshll.u32 %v14560_v3, 16 }
 0x2a3   : > { %v4462_v40 = vrot.slane %v24066_v39, 5  ;;  %v4463_v41 = vrot.slane %v24067_v9, 6  ;;  %v4460_v38 = vor.u32 %v4459_v7, %v4456_v27  ;;  %v4477_v42 = vshrl.u32 %v21245_v56, 16 }
 0x2a4   : > { %v4480_v5 = vshll.u32 %v21245_v56, 16  ;;  %v4452_v16 = vsel %vm18447_vm11, %v4443_v61, %v4451_v46  ;;  %v4470_v43 = vrot.slane %v4468_v6, 5  ;;  %v24068_v48 = vshrl.u32 %v20830_v25, 16 }
 0x2a5   : > { %v4464_v57 = vor.u32 %v4463_v41, %v4462_v40  ;;  %v21529_v34 = vcombine.low %v4442_v59, %v4452_v16  ;;  %v4461_v28 = vrot.slane %v4460_v38, 4  ;;  %v4473_v55 = vrot.slane %v4471_v0, 6 }
 0x2a6   : > { %v4485_v17 = vrot.slane %v24068_v48, 5  ;;  %v4479_v3 = vrot.slane %v4477_v42, 5  ;;  %v4482_v63 = vrot.slane %v4480_v5, 6  ;;  %v24069_v56 = vshll.u32 %v20830_v25, 16 }
 0x2a7   : > { %v4466_v23 = vrot.slane %v4464_v57, 4  ;;  %v4491_v10 = vshrl.u32 %v14561_v45, 16  ;;  %v24070_v21 = vcombine.low %v21422_v18, %v21434_v1  ;;  %v4465_v61 = vsel %vm18447_vm11, %v4461_v28, %v4464_v57  ;;  %16834 = vmatmul.mubr.msk.bf16.gmra.mrb[12].mxu0 %vm709_vm4, %v17840_v60  ;;  %v14562_v18 = vld [vmem:[%s18170_s29 + $0x50] sm:$0x3] }
 0x2a8   : > { %v4486_v15 = vrot.slane %v24069_v56, 6  ;;  %v4474_v27 = vor.u32 %v4473_v55, %v4470_v43  ;;  %v4494_v7 = vshll.u32 %v14561_v45, 16  ;;  %v4500_v39 = vshrl.u32 %v21263_v29, 16  ;;  %16837 = vmatprep.mubr.msk.bf16.mxu0 %vm709_vm4, %v17841_v26  ;;  %v17842_v43 = vld [vmem:[%s18170_s29 + $0x9c] sm:$0xff]   ;;  %v17843_v55 = vld [vmem:[%s18170_s29 + $0xa8] sm:$0xff]  }
 0x2a9   : > { %16404 = vmatmul.mubr.msk.bf16.gmra.mrb[24].mxu1 %vm709_vm4, %v24070_v21  ;;  %v24071_v40 = vcombine.low %v21427_v37, %v21447_v62  ;;  %v4483_v25 = vor.u32 %v4482_v63, %v4479_v3  ;;  %v4493_v46 = vrot.slane %v4491_v10, 5  ;;  %v4503_v1 = vshll.u32 %v21263_v29, 16 }
 0x2aa   : > { %v4487_v59 = vor.u32 %v4486_v15, %v4485_v17  ;;  %v4475_v9 = vsel %vm18447_vm11, %v4466_v23, %v4474_v27  ;;  %v4496_v41 = vrot.slane %v4494_v7, 6  ;;  %v4502_v6 = vrot.slane %v4500_v39, 5 }
 0x2ab   : > { %16407 = vmatprep.mubr.msk.bf16.mxu1 %vm709_vm4, %v24071_v40  ;;  %v24072_v38 = vshrl.u32 %v20845_v12, 16  ;;  %v21552_v62 = vcombine.low %v4465_v61, %v4475_v9  ;;  %v4484_v0 = vrot.slane %v4483_v25, 4  ;;  %v4505_v42 = vrot.slane %v4503_v1, 6  ;;  %v14564_v9 = vld [vmem:[%s18170_s29 + $0x68] sm:$0x3] }
 0x2ac   : > { %v4489_v45 = vrot.slane %v4487_v59, 4  ;;  %v4497_v5 = vor.u32 %v4496_v41, %v4493_v46  ;;  %v24073_v29 = vshll.u32 %v20845_v12, 16  ;;  %v4514_v16 = vshrl.u32 %v14562_v18, 16  ;;  %v14563_v12 = vld [vmem:[%s18170_s29 + $0x5c] sm:$0x3] }
 0x2ad   : > { %v4508_v37 = vrot.slane %v24072_v38, 5  ;;  %v4517_v57 = vshll.u32 %v14562_v18, 16  ;;  %v4488_v48 = vsel %vm18447_vm11, %v4484_v0, %v4487_v59  ;;  %v4506_v17 = vor.u32 %v4505_v42, %v4502_v6 }
 0x2ae   : > { %v4509_v60 = vrot.slane %v24073_v29, 6  ;;  %v4523_v26 = vshrl.u32 %v21284_v51, 16  ;;  %v4526_v28 = vshll.u32 %v21284_v51, 16  ;;  %v4498_v3 = vsel %vm18447_vm11, %v4489_v45, %v4497_v5  ;;  %v15386_v45 = vld [vmem:[%s18170_s29 + $0x30] sm:$0xf] }
 0x2af   : > { %v4516_v63 = vrot.slane %v4514_v16, 5  ;;  %v4519_v56 = vrot.slane %v4517_v57, 6  ;;  %v21565_v15 = vcombine.low %v4488_v48, %v4498_v3  ;;  %v4507_v10 = vrot.slane %v4506_v17, 4  ;;  %16838 = vmatmul.mubr.msk.bf16.gmra.mrb[16].mxu0 %vm709_vm4, %v17842_v43  ;;  %v21592_v57 = vld [vmem:[%s18170_s29 + $0x34] sm:$0xf] }
 0x2b0   : > { %v4510_v23 = vor.u32 %v4509_v60, %v4508_v37  ;;  %v4525_v21 = vrot.slane %v4523_v26, 5  ;;  %v4528_v61 = vrot.slane %v4526_v28, 6  ;;  %v24074_v27 = vcombine.low %v21451_v44, %v21461_v14  ;;  %16841 = vmatprep.mubr.msk.bf16.mxu0 %vm709_vm4, %v17843_v55  ;;  %v17844_v43 = vld [vmem:[%s18170_s29 + $0xb4] sm:$0xff]   ;;  %v17845_v55 = vld [vmem:[%s18170_s29 + $0xc0] sm:$0xff]  }
 0x2b1   : > { %v4520_v7 = vor.u32 %v4519_v56, %v4516_v63  ;;  %v24075_v39 = vshrl.u32 %v20901_v52, 16  ;;  %v24076_v25 = vshll.u32 %v20901_v52, 16  ;;  %v4537_v14 = vshrl.u32 %v14563_v12, 16 }
 0x2b2   : > { %16408 = vmatmul.mubr.msk.bf16.gmra.mrb[28].mxu1 %vm709_vm4, %v24074_v27  ;;  %v4512_v51 = vrot.slane %v4510_v23, 4  ;;  %v4511_v46 = vsel %vm18447_vm11, %v4507_v10, %v4510_v23  ;;  %v4529_v44 = vor.u32 %v4528_v61, %v4525_v21  ;;  %v4540_v18 = vshll.u32 %v14563_v12, 16  ;;  %v15388_v61 = vld [vmem:[%s18170_s29 + $0x38] sm:$0x1] }
 0x2b3   : > { %v4531_v40 = vrot.slane %v24075_v39, 5  ;;  %v4532_v59 = vrot.slane %v24076_v25, 6  ;;  %16413 = vmatprep.mubr.msk.bf16.mxu1 %vm709_vm4, %v21488_v58  ;;  %v4546_v41 = vshrl.u32 %v21301_v20, 16  ;;  %v4549_v6 = vshll.u32 %v21301_v20, 16  ;;  %v21610_v25 = vld [vmem:[%s18170_s29 + $0x40] sm:$0xf] }
 0x2b4   : > { %v4521_v52 = vsel %vm18447_vm11, %v4512_v51, %v4520_v7  ;;  %v4530_v38 = vrot.slane %v4529_v44, 4  ;;  %v4539_v37 = vrot.slane %v4537_v14, 5  ;;  %v4542_v0 = vrot.slane %v4540_v18, 6  ;;  %v15389_v51 = vld [vmem:[%s18170_s29 + $0x3c] sm:$0xf] }
 0x2b5   : > { %v4533_v1 = vor.u32 %v4532_v59, %v4531_v40  ;;  %v21586_v58 = vcombine.low %v4511_v46, %v4521_v52  ;;  %v4548_v5 = vrot.slane %v4546_v41, 5  ;;  %v4551_v29 = vrot.slane %v4549_v6, 6  ;;  %v15391_v41 = vld [vmem:[%s18170_s29 + $0x44] sm:$0x1] }
 0x2b6   : > { %v24077_v60 = vshrl.u32 %v20915_v47, 16  ;;  %v4543_v48 = vor.u32 %v4542_v0, %v4539_v37  ;;  %v24078_v17 = vshll.u32 %v20915_v47, 16  ;;  %v4560_v28 = vshrl.u32 %v14564_v9, 16 }
 0x2b7   : > { %v4535_v42 = vrot.slane %v4533_v1, 4  ;;  %v4534_v20 = vsel %vm18447_vm11, %v4530_v38, %v4533_v1  ;;  %v4552_v3 = vor.u32 %v4551_v29, %v4548_v5  ;;  %v4563_v23 = vshll.u32 %v14564_v9, 16  ;;  %16842 = vmatmul.mubr.msk.bf16.gmra.mrb[20].mxu0 %vm709_vm4, %v17844_v43  ;;  %v17847_v43 = vld [vmem:[%s18170_s29 + $0xd8] sm:$0xff]  }
 0x2b8   : > { %v4554_v16 = vrot.slane %v24077_v60, 5  ;;  %v4555_v26 = vrot.slane %v24078_v17, 6  ;;  %v11282_v63 = vshrl.u32 %v15386_v45, 16  ;;  %v11285_v56 = vshll.u32 %v15386_v45, 16  ;;  %16845 = vmatprep.mubr.msk.bf16.mxu0 %vm709_vm4, %v17845_v55 }
 0x2b9   : > { %v4544_v12 = vsel %vm18447_vm11, %v4535_v42, %v4543_v48  ;;  %v4562_v21 = vrot.slane %v4560_v28, 5  ;;  %v23878_v27 = vshll.u32 %v21592_v57, 16  ;;  %v4553_v7 = vrot.slane %v4552_v3, 4  ;;  %v17846_v42 = vld [vmem:[%s18170_s29 + $0xcc] sm:$0xff]  }
 0x2ba   : > { %v4556_v10 = vor.u32 %v4555_v26, %v4554_v16  ;;  %16414 = vmatmul.mubr.msk.bf16.vlgmr.msra.gmra.mrb[0].mxu1 %vm709_vm4, %v21511_v30  ;;  %v21607_v47 = vcombine.low %v4534_v20, %v4544_v12  ;;  %v4565_v39 = vrot.slane %v4563_v23, 6  ;;  %v11284_v40 = vrot.slane %v11282_v63, 4  ;;  %v14565_v23 = vld [vmem:[%s18170_s29 + $0x74] sm:$0x3] }
 0x2bb   : > { %16446 = vmatpush3.bf16.msra.mxu1 %v21464_v2  ;;  %v11287_v46 = vrot.slane %v11285_v56, 5  ;;  %v11293_v44 = vrot.slane %v23878_v27, 5  ;;  %v23879_v14 = vshrl.u32 %v21592_v57, 16  ;;  %16417 = vmatprep.mubr.msk.bf16.mxu1 %vm709_vm4, %v21529_v34  ;;  %v11301_v2 = vshll.u32 %v15388_v61, 16  ;;  %v14617_v27 = vld [vmem:[%s18170_s29 + $0x90] sm:$0xc] }
 0x2bc   : > { %v4558_v59 = vrot.slane %v4556_v10, 4  ;;  %v4557_v30 = vsel %vm18447_vm11, %v4553_v7, %v4556_v10  ;;  %v4566_v18 = vor.u32 %v4565_v39, %v4562_v21  ;;  %v11306_v52 = vshrl.u32 %v15389_v51, 16 }
 0x2bd   : > { %v11288_v1 = vor.u32 %v11287_v46, %v11284_v40  ;;  %v11297_v9 = vrot.slane %v23879_v14, 4  ;;  %v11309_v6 = vshll.u32 %v15389_v51, 16  ;;  %v23874_v38 = vshll.u32 %v21610_v25, 16  ;;  %v15499_v51 = vld [vmem:[%s23647_s1 + $0x2c] sm:$0x3] }
 0x2be   : > { %v4567_v34 = vsel %vm18447_vm11, %v4558_v59, %v4566_v18  ;;  %v11303_v37 = vrot.slane %v11301_v2, 5  ;;  %v11308_v0 = vrot.slane %v11306_v52, 4  ;;  %v23877_v45 = vshrl.u32 %v21610_v25, 16 }
 0x2bf   : > { %v21630_v5 = vcombine.low %v4557_v30, %v4567_v34  ;;  %v11289_v29 = vrot.slane %v11288_v1, 4  ;;  %v11298_v60 = vor.u32 %v11297_v9, %v11293_v44  ;;  %v11311_v16 = vrot.slane %v11309_v6, 5  ;;  %16846 = vmatmul.mubr.msk.bf16.gmra.mrb[24].mxu0 %vm709_vm4, %v17846_v42  ;;  %v17848_v34 = vld [vmem:[%s18170_s29 + $0xe4] sm:$0xff]  }
 0x2c0   : > { %v11317_v20 = vrot.slane %v23874_v38, 5  ;;  %v11321_v48 = vrot.slane %v23877_v45, 4  ;;  %v11325_v17 = vshll.u32 %v15391_v41, 16  ;;  %v4569_v26 = vshrl.u32 %v21308_v13, 16  ;;  %16849 = vmatprep.mubr.msk.bf16.mxu0 %vm709_vm4, %v17847_v43  ;;  %v14566_v41 = vld [vmem:[%s18170_s29 + $0x80] sm:$0x3] }
 0x2c1   : > { %v11294_v28 = vsel %vm18245_vm8, %v11289_v29, %v11293_v44  ;;  %v11299_v55 = vrot.slane %v11298_v60, 4  ;;  %v11312_v3 = vor.u32 %v11311_v16, %v11308_v0  ;;  %v4572_v63 = vshll.u32 %v21308_v13, 16  ;;  %v15392_v60 = vld [vmem:[%s18170_s29 + $0x48] sm:$0xf] }
 0x2c2   : > { %16418 = vmatmul.mubr.msk.bf16.gmra.mrb[4].mxu1 %vm709_vm4, %v21552_v62  ;;  %v11322_v56 = vor.u32 %v11321_v48, %v11317_v20  ;;  %v11327_v12 = vrot.slane %v11325_v17, 5  ;;  %v4571_v10 = vrot.slane %v4569_v26, 5  ;;  %v24079_v21 = vshrl.u32 %v20950_v35, 16 }
 0x2c3   : > { %16421 = vmatprep.mubr.msk.bf16.mxu1 %vm709_vm4, %v21565_v15  ;;  %v11304_v13 = vsel %vm18245_vm8, %v11299_v55, %v11303_v37  ;;  %v11313_v62 = vrot.slane %v11312_v3, 4  ;;  %v4574_v7 = vrot.slane %v4572_v63, 6  ;;  %v24080_v39 = vshll.u32 %v20950_v35, 16  ;;  %v21677_v63 = vld [vmem:[%s18170_s29 + $0x4c] sm:$0xf] }
 0x2c4   : > { %v4577_v61 = vrot.slane %v24079_v21, 5  ;;  %v15435_v59 = vcombine.low %v11294_v28, %v11304_v13  ;;  %v11323_v46 = vrot.slane %v11322_v56, 4  ;;  %v4583_v44 = vshrl.u32 %v14565_v23, 16 }
 0x2c5   : > { %v4578_v40 = vrot.slane %v24080_v39, 6  ;;  %v4586_v30 = vshll.u32 %v14565_v23, 16  ;;  %v11318_v15 = vsel %vm18245_vm8, %v11313_v62, %v11317_v20  ;;  %v4575_v18 = vor.u32 %v4574_v7, %v4571_v10  ;;  %v15395_v62 = vld [vmem:[%s18170_s29 + $0x54] sm:$0xf] }
 0x2c6   : > { %v21660_v52 = vand.u32 %v15499_v51, %v18141_v4  ;;  %v11328_v35 = vsel %vm18245_vm8, %v11323_v46, %v11327_v12  ;;  %v4585_v1 = vrot.slane %v4583_v44, 5  ;;  %v4592_v6 = vshrl.u32 %v21322_v19, 16  ;;  %v15394_v12 = vld [vmem:[%s18170_s29 + $0x50] sm:$0x1] }
 0x2c7   : > { %v4579_v2 = vor.u32 %v4578_v40, %v4577_v61  ;;  %v4588_v9 = vrot.slane %v4586_v30, 6  ;;  %v15436_v37 = vcombine.low %v11318_v15, %v11328_v35  ;;  %v4576_v0 = vrot.slane %v4575_v18, 4  ;;  %16850 = vmatmul.mubr.msk.bf16.gmra.mrb[28].mxu0 %vm709_vm4, %v17848_v34  ;;  %v21692_v18 = vld [vmem:[%s18170_s29 + $0x58] sm:$0xf]  ;;  %v15397_v35 = vld [vmem:[%s18170_s29 + $0x5c] sm:$0x1] }
 0x2c8   : > { %16887 = vmatprep.subr.bf16.mxu0 %v21660_v52  ;;  %v4595_v29 = vshll.u32 %v21322_v19, 16  ;;  %v4594_v43 = vrot.slane %v4592_v6, 5  ;;  %v24081_v20 = vshrl.u32 %v20976_v22, 16  ;;  %v24082_v17 = vshll.u32 %v20976_v22, 16  ;;  %16855 = vmatprep.mubr.msk.bf16.mxu0 %vm709_vm4, %v15435_v59  ;;  %24083 = vst [vmem:[#allocation42_spill] sm:$0xff] %v21692_v18 }
 0x2c9   : > { %v4581_v42 = vrot.slane %v4579_v2, 4  ;;  %v4589_v16 = vor.u32 %v4588_v9, %v4585_v1  ;;  %v4580_v28 = vsel %vm18447_vm11, %v4576_v0, %v4579_v2  ;;  %v4606_v3 = vshrl.u32 %v14566_v41, 16 }
 0x2ca   : > { %v4600_v48 = vrot.slane %v24081_v20, 5  ;;  %v4601_v26 = vrot.slane %v24082_v17, 6  ;;  %v4597_v55 = vrot.slane %v4595_v29, 6  ;;  %v4609_v23 = vshll.u32 %v14566_v41, 16  ;;  %16422 = vmatmul.mubr.msk.bf16.gmra.mrb[8].mxu1 %vm709_vm4, %v21586_v58 }
 0x2cb   : > { %v4590_v19 = vsel %vm18447_vm11, %v4581_v42, %v4589_v16  ;;  %v11330_v10 = vshrl.u32 %v15392_v60, 16  ;;  %v11333_v22 = vshll.u32 %v15392_v60, 16  ;;  %16425 = vmatprep.mubr.msk.bf16.mxu1 %vm709_vm4, %v21607_v47  ;;  %v4608_v51 = vrot.slane %v4606_v3, 5 }
 0x2cc   : > { %v4602_v56 = vor.u32 %v4601_v26, %v4600_v48  ;;  %v14582_v21 = vcombine.low %v4580_v28, %v4590_v19  ;;  %v4598_v61 = vor.u32 %v4597_v55, %v4594_v43  ;;  %v4611_v13 = vrot.slane %v4609_v23, 6  ;;  %v14567_v28 = vld [vmem:[%s18170_s29 + $0x8c] sm:$0x3] }
 0x2cd   : > { %v11332_v7 = vrot.slane %v11330_v10, 4  ;;  %v11335_v39 = vrot.slane %v11333_v22, 5  ;;  %v23870_v40 = vshll.u32 %v21677_v63, 16  ;;  %v23873_v30 = vshrl.u32 %v21677_v63, 16 }
 0x2ce   : > { %v4604_v58 = vrot.slane %v4602_v56, 4  ;;  %v4599_v46 = vrot.slane %v4598_v61, 4  ;;  %v4612_v44 = vor.u32 %v4611_v13, %v4608_v51  ;;  %v11349_v15 = vshll.u32 %v15394_v12, 16 }
 0x2cf   : > { %v11336_v47 = vor.u32 %v11335_v39, %v11332_v7  ;;  %v11341_v2 = vrot.slane %v23870_v40, 5  ;;  %v11354_v1 = vshrl.u32 %v15395_v62, 16  ;;  %v11357_v9 = vshll.u32 %v15395_v62, 16  ;;  %16856 = vmatmul.mubr.msk.bf16.vlgmr.msra.gmra.mrb[0].mxu0 %vm709_vm4, %v15436_v37 }
 0x2d0   : > { %v4603_v59 = vsel %vm18447_vm11, %v4599_v46, %v4602_v56  ;;  %v4613_v41 = vsel %vm18447_vm11, %v4604_v58, %v4612_v44  ;;  %v11345_v6 = vrot.slane %v23873_v30, 4  ;;  %v11351_v34 = vrot.slane %v11349_v15, 5  ;;  %16888 = vmatpush3.bf16.msra.mxu0 %v21660_v52  ;;  %v18009_v30 = vld [vmem:[%s18170_s29 + $0x5c] sm:$0x3] }
 0x2d1   : > { %v14583_v0 = vcombine.low %v4603_v59, %v4613_v41  ;;  %v11337_v42 = vrot.slane %v11336_v47, 4  ;;  %v11356_v29 = vrot.slane %v11354_v1, 4  ;;  %v11359_v60 = vrot.slane %v11357_v9, 5  ;;  %v21728_v47 = vld [vmem:[%s18170_s29 + $0x98] sm:$0x3] }
 0x2d2   : > { %v11346_v16 = vor.u32 %v11345_v6, %v11341_v2  ;;  %v23866_v43 = vshll.u32 %v21692_v18, 16  ;;  %v23869_v20 = vshrl.u32 %v21692_v18, 16  ;;  %v11373_v48 = vshll.u32 %v15397_v35, 16  ;;  %16426 = vmatmul.mubr.msk.bf16.gmra.mrb[12].mxu1 %vm709_vm4, %v21630_v5  ;;  %v15398_v41 = vld [vmem:[%s18170_s29 + $0x60] sm:$0xf] }
 0x2d3   : > { %v11342_v17 = vsel %vm18245_vm8, %v11337_v42, %v11341_v2  ;;  %v11360_v26 = vor.u32 %v11359_v60, %v11356_v29  ;;  %v4615_v55 = vshrl.u32 %v21330_v11, 16  ;;  %v4618_v3 = vshll.u32 %v21330_v11, 16  ;;  %16429 = vmatprep.mubr.msk.bf16.mxu1 %vm709_vm4, %v14582_v21  ;;  %v22176_v18 = vld [vmem:[%s18170_s29 + $0x60] sm:$0xe] }
 0x2d4   : > { %v11347_v23 = vrot.slane %v11346_v16, 4  ;;  %v11365_v19 = vrot.slane %v23866_v43, 5  ;;  %v11369_v5 = vrot.slane %v23869_v20, 4  ;;  %v11375_v56 = vrot.slane %v11373_v48, 5  ;;  %v21741_v16 = vld [vmem:[%s18170_s29 + $0x64] sm:$0xf] }
 0x2d5   : > { %v11361_v12 = vrot.slane %v11360_v26, 4  ;;  %v4617_v10 = vrot.slane %v4615_v55, 5  ;;  %v4620_v22 = vrot.slane %v4618_v3, 6  ;;  %v24084_v11 = vshrl.u32 %v21007_v53, 16 }
 0x2d6   : > { %v11352_v37 = vsel %vm18245_vm8, %v11347_v23, %v11351_v34  ;;  %v11370_v21 = vor.u32 %v11369_v5, %v11365_v19  ;;  %v24085_v51 = vshll.u32 %v21007_v53, 16  ;;  %v4629_v62 = vshrl.u32 %v14567_v28, 16 }
 0x2d7   : > { %v4623_v61 = vrot.slane %v24084_v11, 5  ;;  %v15437_v58 = vcombine.low %v11342_v17, %v11352_v37  ;;  %v11366_v52 = vsel %vm18245_vm8, %v11361_v12, %v11365_v19  ;;  %v4621_v7 = vor.u32 %v4620_v22, %v4617_v10  ;;  %v15401_v12 = vld [vmem:[%s18170_s29 + $0x6c] sm:$0xf]  ;;  %v21757_v37 = vld [vmem:[%s18170_s29 + $0x70] sm:$0xf] }
 0x2d8   : > { %v4624_v13 = vrot.slane %v24085_v51, 6  ;;  %v4632_v39 = vshll.u32 %v14567_v28, 16  ;;  %v11371_v46 = vrot.slane %v11370_v21, 4  ;;  %v4631_v15 = vrot.slane %v4629_v62, 5 }
 0x2d9   : > { %v4638_v2 = vshrl.u32 %v21341_v24, 16  ;;  %16859 = vmatprep.mubr.msk.bf16.mxu0 %vm709_vm4, %v15437_v58  ;;  %v4622_v53 = vrot.slane %v4621_v7, 4  ;;  %v4641_v1 = vshll.u32 %v21341_v24, 16  ;;  %v24086_v9 = vshrl.u32 %v21025_v54, 16 }
 0x2da   : > { %v4625_v44 = vor.u32 %v4624_v13, %v4623_v61  ;;  %v4634_v35 = vrot.slane %v4632_v39, 6  ;;  %v11376_v6 = vsel %vm18245_vm8, %v11371_v46, %v11375_v56  ;;  %v24087_v29 = vshll.u32 %v21025_v54, 16  ;;  %16430 = vmatmul.mubr.msk.bf16.gmra.mrb[16].mxu1 %vm709_vm4, %v14583_v0  ;;  %v21752_v0 = vld [vmem:[%s18170_s29 + $0x68] sm:$0x1] }
 0x2db   : > { %v4646_v59 = vrot.slane %v24086_v9, 5  ;;  %v4640_v42 = vrot.slane %v4638_v2, 5  ;;  %v15438_v48 = vcombine.low %v11366_v52, %v11376_v6  ;;  %v4643_v26 = vrot.slane %v4641_v1, 6 }
 0x2dc   : > { %v4627_v34 = vrot.slane %v4625_v44, 4  ;;  %v4647_v60 = vrot.slane %v24087_v29, 6  ;;  %v4626_v24 = vsel %vm18447_vm11, %v4622_v53, %v4625_v44  ;;  %v4635_v17 = vor.u32 %v4634_v35, %v4631_v15  ;;  %v21767_v15 = vld [vmem:[%s18170_s29 + $0x74] sm:$0x1] }
 0x2dd   : > { %v4652_v55 = vshrl.u32 %v21728_v47, 16  ;;  %v4655_v3 = vshll.u32 %v21728_v47, 16  ;;  %v11378_v23 = vshrl.u32 %v15398_v41, 16  ;;  %16860 = vmatmul.mubr.msk.bf16.gmra.mrb[4].mxu0 %vm709_vm4, %v15438_v48  ;;  %v4644_v19 = vor.u32 %v4643_v26, %v4640_v42 }
 0x2de   : > { %v4648_v28 = vor.u32 %v4647_v60, %v4646_v59  ;;  %v4636_v54 = vsel %vm18447_vm11, %v4627_v34, %v4635_v17  ;;  %v11381_v5 = vshll.u32 %v15398_v41, 16  ;;  %v23862_v56 = vshll.u32 %v21741_v16, 16 }
 0x2df   : > { %v14584_v10 = vcombine.low %v4626_v24, %v4636_v54  ;;  %v4654_v11 = vrot.slane %v4652_v55, 5  ;;  %v4657_v61 = vrot.slane %v4655_v3, 6  ;;  %v4645_v21 = vrot.slane %v4644_v19, 4  ;;  %v21779_v24 = vld [vmem:[%s18170_s29 + $0xa4] sm:$0x3] }
 0x2e0   : > { %v4650_v22 = vrot.slane %v4648_v28, 4  ;;  %v11380_v51 = vrot.slane %v11378_v23, 4  ;;  %v11383_v13 = vrot.slane %v11381_v5, 5  ;;  %v11389_v62 = vrot.slane %v23862_v56, 5 }
 0x2e1   : > { %16433 = vmatprep.mubr.msk.bf16.mxu1 %vm709_vm4, %v14584_v10  ;;  %v4658_v58 = vor.u32 %v4657_v61, %v4654_v11  ;;  %v23865_v52 = vshrl.u32 %v21741_v16, 16  ;;  %v11397_v7 = vshll.u32 %v21752_v0, 16  ;;  %v11402_v39 = vshrl.u32 %v15401_v12, 16 }
 0x2e2   : > { %v4649_v46 = vsel %vm18447_vm11, %v4645_v21, %v4648_v28  ;;  %v11384_v44 = vor.u32 %v11383_v13, %v11380_v51  ;;  %v11405_v2 = vshll.u32 %v15401_v12, 16  ;;  %v23859_v53 = vshll.u32 %v21757_v37, 16 }
 0x2e3   : > { %v4659_v35 = vsel %vm18447_vm11, %v4650_v22, %v4658_v58  ;;  %v11393_v1 = vrot.slane %v23865_v52, 4  ;;  %v11399_v9 = vrot.slane %v11397_v7, 5  ;;  %v11404_v59 = vrot.slane %v11402_v39, 4  ;;  %v18005_v52 = vld [vmem:[%s18170_s29 + $0x44] sm:$0x3] }
 0x2e4   : > { %v14585_v41 = vcombine.low %v4649_v46, %v4659_v35  ;;  %v11385_v6 = vrot.slane %v11384_v44, 4  ;;  %v11407_v34 = vrot.slane %v11405_v2, 5  ;;  %v11413_v42 = vrot.slane %v23859_v53, 5  ;;  %v21800_v44 = vld [vmem:[%s18170_s29 + $0xb0] sm:$0x3] }
 0x2e5   : > { %v11394_v29 = vor.u32 %v11393_v1, %v11389_v62  ;;  %v23861_v60 = vshrl.u32 %v21757_v37, 16  ;;  %v11421_v48 = vshll.u32 %v21767_v15, 16  ;;  %v4661_v17 = vshrl.u32 %v21356_v8, 16 }
 0x2e6   : > { %16434 = vmatmul.mubr.msk.bf16.gmra.mrb[20].mxu1 %vm709_vm4, %v14585_v41  ;;  %v11390_v26 = vsel %vm18245_vm8, %v11385_v6, %v11389_v62  ;;  %v11408_v28 = vor.u32 %v11407_v34, %v11404_v59  ;;  %v4664_v55 = vshll.u32 %v21356_v8, 16  ;;  %v24088_v3 = vshrl.u32 %v21061_v50, 16 }
 0x2e7   : > { %v11395_v54 = vrot.slane %v11394_v29, 4  ;;  %v11417_v19 = vrot.slane %v23861_v60, 4  ;;  %v11423_v5 = vrot.slane %v11421_v48, 5  ;;  %v4663_v12 = vrot.slane %v4661_v17, 5 }
 0x2e8   : > { %v4669_v23 = vrot.slane %v24088_v3, 5  ;;  %v11409_v10 = vrot.slane %v11408_v28, 4  ;;  %v4666_v22 = vrot.slane %v4664_v55, 6  ;;  %v24089_v11 = vshll.u32 %v21061_v50, 16 }
 0x2e9   : > { %v4675_v21 = vshrl.u32 %v21779_v24, 16  ;;  %v11400_v8 = vsel %vm18245_vm8, %v11395_v54, %v11399_v9  ;;  %v11418_v51 = vor.u32 %v11417_v19, %v11413_v42  ;;  %v4678_v13 = vshll.u32 %v21779_v24, 16  ;;  %v21816_v54 = vld [vmem:[%s18170_s29 + $0x7c] sm:$0xf] }
 0x2ea   : > { %v4670_v61 = vrot.slane %v24089_v11, 6  ;;  %v4684_v62 = vshrl.u32 %v21371_v49, 16  ;;  %v15439_v58 = vcombine.low %v11390_v26, %v11400_v8  ;;  %v11414_v7 = vsel %vm18245_vm8, %v11409_v10, %v11413_v42  ;;  %v15404_v42 = vld [vmem:[%s18170_s29 + $0x78] sm:$0xf]  ;;  %v21821_v10 = vld [vmem:[%s18170_s29 + $0x80] sm:$0x1] }
 0x2eb   : > { %v4667_v39 = vor.u32 %v4666_v22, %v4663_v12  ;;  %v11419_v50 = vrot.slane %v11418_v51, 4  ;;  %v4677_v2 = vrot.slane %v4675_v21, 5  ;;  %v4680_v35 = vrot.slane %v4678_v13, 6  ;;  %v15407_v8 = vld [vmem:[%s18170_s29 + $0x84] sm:$0xf] }
 0x2ec   : > { %v4671_v46 = vor.u32 %v4670_v61, %v4669_v23  ;;  %v4686_v1 = vrot.slane %v4684_v62, 5  ;;  %16863 = vmatprep.mubr.msk.bf16.mxu0 %vm709_vm4, %v15439_v58  ;;  %v4687_v41 = vshll.u32 %v21371_v49, 16  ;;  %v24090_v6 = vshrl.u32 %v21079_v31, 16 }
 0x2ed   : > { %v4668_v9 = vrot.slane %v4667_v39, 4  ;;  %v11424_v29 = vsel %vm18245_vm8, %v11419_v50, %v11423_v5  ;;  %v4681_v48 = vor.u32 %v4680_v35, %v4677_v2  ;;  %v24091_v17 = vshll.u32 %v21079_v31, 16  ;;  %v21830_v2 = vld [vmem:[%s18170_s29 + $0x88] sm:$0xf] }
 0x2ee   : > { %v4673_v59 = vrot.slane %v4671_v46, 4  ;;  %v4692_v34 = vrot.slane %v24090_v6, 5  ;;  %v4698_v28 = vshrl.u32 %v21800_v44, 16  ;;  %v15440_v55 = vcombine.low %v11414_v7, %v11424_v29 }
 0x2ef   : > { %v4693_v26 = vrot.slane %v24091_v17, 6  ;;  %v4672_v3 = vsel %vm18447_vm11, %v4668_v9, %v4671_v46  ;;  %v4689_v23 = vrot.slane %v4687_v41, 6  ;;  %v4701_v49 = vshll.u32 %v21800_v44, 16  ;;  %v21837_v9 = vld [vmem:[%s18170_s29 + $0x8c] sm:$0x1] }
 0x2f0   : > { %v4682_v19 = vsel %vm18447_vm11, %v4673_v59, %v4681_v48  ;;  %v4700_v12 = vrot.slane %v4698_v28, 5  ;;  %v11426_v31 = vshrl.u32 %v15404_v42, 16  ;;  %16864 = vmatmul.mubr.msk.bf16.gmra.mrb[8].mxu0 %vm709_vm4, %v15440_v55  ;;  %v11429_v21 = vshll.u32 %v15404_v42, 16 }
 0x2f1   : > { %v4694_v5 = vor.u32 %v4693_v26, %v4692_v34  ;;  %v14586_v22 = vcombine.low %v4672_v3, %v4682_v19  ;;  %v4690_v11 = vor.u32 %v4689_v23, %v4686_v1  ;;  %v4703_v61 = vrot.slane %v4701_v49, 6 }
 0x2f2   : > { %v11428_v13 = vrot.slane %v11426_v31, 4  ;;  %v23855_v62 = vshll.u32 %v21816_v54, 16  ;;  %v23857_v58 = vshrl.u32 %v21816_v54, 16  ;;  %v11431_v46 = vrot.slane %v11429_v21, 5 }
 0x2f3   : > { %v4696_v51 = vrot.slane %v4694_v5, 4  ;;  %16437 = vmatprep.mubr.msk.bf16.mxu1 %vm709_vm4, %v14586_v22  ;;  %v4691_v7 = vrot.slane %v4690_v11, 4  ;;  %v4704_v39 = vor.u32 %v4703_v61, %v4700_v12  ;;  %v11445_v50 = vshll.u32 %v21821_v10, 16  ;;  %v17994_v12 = vld [vmem:[%s18170_s29 + $0xb4] sm:$0xe] }
 0x2f4   : > { %v11437_v35 = vrot.slane %v23855_v62, 5  ;;  %v11441_v1 = vrot.slane %v23857_v58, 4  ;;  %v11450_v59 = vshrl.u32 %v15407_v8, 16  ;;  %v11453_v41 = vshll.u32 %v15407_v8, 16  ;;  %v18000_v62 = vld [vmem:[%s18170_s29 + $0x28] sm:$0xf] }
 0x2f5   : > { %v4695_v6 = vsel %vm18447_vm11, %v4691_v7, %v4694_v5  ;;  %v4705_v34 = vsel %vm18447_vm11, %v4696_v51, %v4704_v39  ;;  %v11432_v42 = vor.u32 %v11431_v46, %v11428_v13  ;;  %v11447_v29 = vrot.slane %v11445_v50, 5  ;;  %v21855_v51 = vld [vmem:[%s18170_s29 + $0xbc] sm:$0x3]  ;;  %v18001_v58 = vld [vmem:[%s18170_s29 + $0x2c] sm:$0x3] }
 0x2f6   : > { %v14587_v48 = vcombine.low %v4695_v6, %v4705_v34  ;;  %v11442_v17 = vor.u32 %v11441_v1, %v11437_v35  ;;  %v11452_v26 = vrot.slane %v11450_v59, 4  ;;  %v11455_v28 = vrot.slane %v11453_v41, 5 }
 0x2f7   : > { %v11433_v55 = vrot.slane %v11432_v42, 4  ;;  %v23852_v3 = vshll.u32 %v21830_v2, 16  ;;  %v23853_v23 = vshrl.u32 %v21830_v2, 16  ;;  %v11469_v49 = vshll.u32 %v21837_v9, 16 }
 0x2f8   : > { %16438 = vmatmul.mubr.msk.bf16.gmra.mrb[24].mxu1 %vm709_vm4, %v14587_v48  ;;  %v11443_v19 = vrot.slane %v11442_v17, 4  ;;  %v11456_v5 = vor.u32 %v11455_v28, %v11452_v26  ;;  %v4707_v31 = vshrl.u32 %v17994_v12, 16  ;;  %v4710_v22 = vshll.u32 %v17994_v12, 16  ;;  %v21869_v28 = vld [vmem:[%s18170_s29 + $0xc8] sm:$0x3] }
 0x2f9   : > { %v11438_v11 = vsel %vm18245_vm8, %v11433_v55, %v11437_v35  ;;  %v11461_v61 = vrot.slane %v23852_v3, 5  ;;  %v11465_v21 = vrot.slane %v23853_v23, 4  ;;  %v11471_v8 = vrot.slane %v11469_v49, 5  ;;  %v17995_v55 = vld [vmem:[%s18170_s29 + $0xc0] sm:$0xe] }
 0x2fa   : > { %v11448_v13 = vsel %vm18245_vm8, %v11443_v19, %v11447_v29  ;;  %v11457_v7 = vrot.slane %v11456_v5, 4  ;;  %v4709_v39 = vrot.slane %v4707_v31, 5  ;;  %v4712_v46 = vrot.slane %v4710_v22, 6  ;;  %v24094_v31 = vld [vmem:[#allocation40_spill] sm:$0xff] }
 0x2fb   : > { %v15441_v50 = vcombine.low %v11438_v11, %v11448_v13  ;;  %v11466_v1 = vor.u32 %v11465_v21, %v11461_v61  ;;  %v24092_v35 = vshrl.u32 %v21115_v36, 16  ;;  %v24093_v41 = vshll.u32 %v21115_v36, 16 }
 0x2fc   : > { %v11462_v34 = vsel %vm18245_vm8, %v11457_v7, %v11461_v61  ;;  %v4713_v42 = vor.u32 %v4712_v46, %v4709_v39  ;;  %v4721_v48 = vshrl.u32 %v21855_v51, 16  ;;  %v4724_v29 = vshll.u32 %v21855_v51, 16  ;;  %v15410_v61 = vld [vmem:[%s18170_s29 + $0x90] sm:$0xf]  ;;  %v21878_v46 = vld [vmem:[%s18170_s29 + $0x94] sm:$0xf] }
 0x2fd   : > { %v4715_v59 = vrot.slane %v24092_v35, 5  ;;  %v4716_v6 = vrot.slane %v24093_v41, 6  ;;  %16867 = vmatprep.mubr.msk.bf16.mxu0 %vm709_vm4, %v15441_v50  ;;  %v11467_v17 = vrot.slane %v11466_v1, 4  ;;  %v4730_v49 = vshrl.u32 %v17995_v55, 16 }
 0x2fe   : > { %v4733_v36 = vshll.u32 %v17995_v55, 16  ;;  %v4714_v19 = vrot.slane %v4713_v42, 4  ;;  %v4723_v5 = vrot.slane %v4721_v48, 5  ;;  %v4726_v12 = vrot.slane %v4724_v29, 6 }
 0x2ff   : > { %v4717_v26 = vor.u32 %v4716_v6, %v4715_v59  ;;  %v24095_v22 = vshrl.u32 %v24094_v31, 16  ;;  %v11472_v21 = vsel %vm18245_vm8, %v11467_v17, %v11471_v8  ;;  %v4732_v7 = vrot.slane %v4730_v49, 5  ;;  %v21890_v17 = vld [vmem:[%s18170_s29 + $0x98] sm:$0x1]  ;;  %v15413_v49 = vld [vmem:[%s18170_s29 + $0x9c] sm:$0xf] }
 0x300   : > { %v4735_v39 = vrot.slane %v4733_v36, 6  ;;  %v15442_v50 = vcombine.low %v11462_v34, %v11472_v21  ;;  %v4727_v35 = vor.u32 %v4726_v12, %v4723_v5  ;;  %v24096_v59 = vshll.u32 %v24094_v31, 16  ;;  %v21895_v31 = vld [vmem:[%s18170_s29 + $0xa0] sm:$0xf] }
 0x301   : > { %v4738_v11 = vrot.slane %v24095_v22, 5  ;;  %v4719_v13 = vrot.slane %v4717_v26, 4  ;;  %v4718_v1 = vsel %vm18447_vm11, %v4714_v19, %v4717_v26  ;;  %v4744_v42 = vshrl.u32 %v21869_v28, 16 }
 0x302   : > { %v4739_v41 = vrot.slane %v24096_v59, 6  ;;  %v4736_v6 = vor.u32 %v4735_v39, %v4732_v7  ;;  %v4747_v8 = vshll.u32 %v21869_v28, 16  ;;  %v11474_v48 = vshrl.u32 %v15410_v61, 16  ;;  %16868 = vmatmul.mubr.msk.bf16.gmra.mrb[12].mxu0 %vm709_vm4, %v15442_v50 }
 0x303   : > { %v4728_v29 = vsel %vm18447_vm11, %v4719_v13, %v4727_v35  ;;  %v11477_v26 = vshll.u32 %v15410_v61, 16  ;;  %v23850_v55 = vshll.u32 %v21878_v46, 16  ;;  %v4746_v5 = vrot.slane %v4744_v42, 5  ;;  %v21905_v35 = vld [vmem:[%s18170_s29 + $0xa4] sm:$0x1] }
 0x304   : > { %v4740_v34 = vor.u32 %v4739_v41, %v4738_v11  ;;  %v14588_v36 = vcombine.low %v4718_v1, %v4728_v29  ;;  %v4737_v19 = vrot.slane %v4736_v6, 4  ;;  %v4749_v12 = vrot.slane %v4747_v8, 6 }
 0x305   : > { %v11476_v21 = vrot.slane %v11474_v48, 4  ;;  %v11479_v7 = vrot.slane %v11477_v26, 5  ;;  %v11485_v11 = vrot.slane %v23850_v55, 5  ;;  %v23851_v39 = vshrl.u32 %v21878_v46, 16 }
 0x306   : > { %v4742_v22 = vrot.slane %v4740_v34, 4  ;;  %16441 = vmatprep.mubr.msk.bf16.mxu1 %vm709_vm4, %v14588_v36  ;;  %v4741_v61 = vsel %vm18447_vm11, %v4737_v19, %v4740_v34  ;;  %v4750_v13 = vor.u32 %v4749_v12, %v4746_v5  ;;  %v11493_v50 = vshll.u32 %v21890_v17, 16  ;;  %v14606_v34 = vld [vmem:[%s18170_s29 + $0xc] sm:$0xc] }
 0x307   : > { %v11480_v1 = vor.u32 %v11479_v7, %v11476_v21  ;;  %v11498_v59 = vshrl.u32 %v15413_v49, 16  ;;  %v11501_v41 = vshll.u32 %v15413_v49, 16  ;;  %v23848_v6 = vshll.u32 %v21895_v31, 16  ;;  %v14703_v7 = vld [vmem:[%s23647_s1 + $0x14] sm:$0x3] }
 0x308   : > { %v4751_v42 = vsel %vm18447_vm11, %v4742_v22, %v4750_v13  ;;  %v11489_v8 = vrot.slane %v23851_v39, 4  ;;  %v11495_v48 = vrot.slane %v11493_v50, 5  ;;  %v23849_v29 = vshrl.u32 %v21895_v31, 16 }
 0x309   : > { %v14589_v26 = vcombine.low %v4741_v61, %v4751_v42  ;;  %v11481_v36 = vrot.slane %v11480_v1, 4  ;;  %v11500_v19 = vrot.slane %v11498_v59, 4  ;;  %v11503_v5 = vrot.slane %v11501_v41, 5  ;;  %v17996_v1 = vld [vmem:[%s18170_s29 + $0x10] sm:$0xf] }
 0x30a   : > { %v11490_v49 = vor.u32 %v11489_v8, %v11485_v11  ;;  %v11509_v12 = vrot.slane %v23848_v6, 5  ;;  %v11513_v22 = vrot.slane %v23849_v29, 4  ;;  %v11517_v21 = vshll.u32 %v21905_v35, 16  ;;  %v14607_v41 = vld [vmem:[%s18170_s29 + $0x18] sm:$0xc] }
 0x30b   : > { %16442 = vmatmul.mubr.msk.bf16.gmra.mrb[28].mxu1 %vm709_vm4, %v14589_v26  ;;  %v11486_v61 = vsel %vm18245_vm8, %v11481_v36, %v11485_v11  ;;  %v11504_v13 = vor.u32 %v11503_v5, %v11500_v19  ;;  %v14622_v50 = vrot.slane %v14606_v34, 10  ;;  %v5096_v59 = vrot.slane %v17996_v1, 6  ;;  %v17997_v29 = vld [vmem:[%s18170_s29 + $0x14] sm:$0x3]  ;;  %v15416_v34 = vld [vmem:[%s18170_s29 + $0xa8] sm:$0xf] }
 0x30c   : > { %v11491_v42 = vrot.slane %v11490_v49, 4  ;;  %v11514_v8 = vor.u32 %v11513_v22, %v11509_v12  ;;  %v11519_v6 = vrot.slane %v11517_v21, 5  ;;  %v5099_v55 = vrot.slane %v17997_v29, 6  ;;  %v17998_v49 = vld [vmem:[%s18170_s29 + $0x1c] sm:$0xf] }
 0x30d   : > { %v11505_v39 = vrot.slane %v11504_v13, 4  ;;  %v5097_v26 = vsel %vm18920_vm13, %v14622_v50, %v5096_v59  ;;  %v5098_v23 = vrot.slane %v5096_v59, 4  ;;  %v5664_v11 = vand.u32 %v14703_v7, %v18141_v4  ;;  %v21936_v21 = vld [vmem:[%s18170_s29 + $0xac] sm:$0xf]  ;;  %v17999_v7 = vld [vmem:[%s18170_s29 + $0x20] sm:$0x3] }
 0x30e   : > { %v11496_v36 = vsel %vm18245_vm8, %v11491_v42, %v11495_v48  ;;  %v11515_v19 = vrot.slane %v11514_v8, 4  ;;  %v14623_v5 = vrot.slane %v14607_v41, 10  ;;  %v5103_v22 = vrot.slane %v17998_v49, 6  ;;  %v21944_v59 = vld [vmem:[%s18170_s29 + $0xb0] sm:$0x1] }
 0x30f   : > { %v15443_v29 = vcombine.low %v11486_v61, %v11496_v36  ;;  %v11510_v13 = vsel %vm18245_vm8, %v11505_v39, %v11509_v12  ;;  %v5100_v50 = vsel %vm18920_vm13, %v5098_v23, %v5099_v55  ;;  %16479 = vmatprep.subr.bf16.mxu1 %v5664_v11  ;;  %v5106_v1 = vrot.slane %v17999_v7, 6  ;;  %v15419_v48 = vld [vmem:[%s18170_s29 + $0xb4] sm:$0xf]  ;;  %v21954_v36 = vld [vmem:[%s18170_s29 + $0xb8] sm:$0xf] }
 0x310   : > { %v11520_v41 = vsel %vm18245_vm8, %v11515_v19, %v11519_v6  ;;  %v14639_v42 = vcombine.low %v5097_v26, %v5100_v50  ;;  %v5104_v61 = vsel %vm18920_vm13, %v14623_v5, %v5103_v22  ;;  %v5105_v8 = vrot.slane %v5103_v22, 4  ;;  %v21962_v5 = vld [vmem:[%s18170_s29 + $0xbc] sm:$0x1]  ;;  %v14608_v50 = vld [vmem:[%s18170_s29 + $0x24] sm:$0xc] }
 0x311   : > { %16871 = vmatprep.mubr.msk.bf16.mxu0 %vm709_vm4, %v15443_v29  ;;  %v15444_v39 = vcombine.low %v11510_v13, %v11520_v41  ;;  %v11522_v23 = vshrl.u32 %v15416_v34, 16  ;;  %v11525_v55 = vshll.u32 %v15416_v34, 16  ;;  %v23854_v12 = vshll.u32 %v21936_v21, 16 }
 0x312   : > { %16447 = vmatprep.mubr.msk.bf16.mxu1 %vm709_vm4, %v14639_v42  ;;  %v5107_v6 = vsel %vm18920_vm13, %v5105_v8, %v5106_v1  ;;  %v23856_v26 = vshrl.u32 %v21936_v21, 16  ;;  %v11541_v19 = vshll.u32 %v21944_v59, 16  ;;  %v11546_v49 = vshrl.u32 %v15419_v48, 16 }
 0x313   : > { %16872 = vmatmul.mubr.msk.bf16.gmra.mrb[16].mxu0 %vm709_vm4, %v15444_v39  ;;  %v14640_v22 = vcombine.low %v5104_v61, %v5107_v6  ;;  %v11524_v34 = vrot.slane %v11522_v23, 4  ;;  %v11527_v29 = vrot.slane %v11525_v55, 5  ;;  %v11533_v13 = vrot.slane %v23854_v12, 5 }
 0x314   : > { %v11537_v7 = vrot.slane %v23856_v26, 4  ;;  %v11543_v1 = vrot.slane %v11541_v19, 5  ;;  %v11548_v41 = vrot.slane %v11546_v49, 4  ;;  %v11549_v42 = vshll.u32 %v15419_v48, 16  ;;  %v14609_v19 = vld [vmem:[%s18170_s29 + $0x30] sm:$0xc] }
 0x315   : > { %16448 = vmatmul.mubr.msk.bf16.vlgmr.msra.gmra.mrb[0].mxu1 %vm709_vm4, %v14640_v22  ;;  %v11528_v8 = vor.u32 %v11527_v29, %v11524_v34  ;;  %v23858_v39 = vshll.u32 %v21954_v36, 16  ;;  %v23860_v61 = vshrl.u32 %v21954_v36, 16  ;;  %v11565_v23 = vshll.u32 %v21962_v5, 16 }
 0x316   : > { %16480 = vmatpush3.bf16.msra.mxu1 %v5664_v11  ;;  %v11538_v55 = vor.u32 %v11537_v7, %v11533_v13  ;;  %v11551_v6 = vrot.slane %v11549_v42, 5  ;;  %v14624_v12 = vrot.slane %v14608_v50, 10  ;;  %v5110_v26 = vrot.slane %v18000_v62, 6  ;;  %v15422_v42 = vld [vmem:[%s18170_s29 + $0xc0] sm:$0xf] }
 0x317   : > { %v11529_v49 = vrot.slane %v11528_v8, 4  ;;  %v11557_v48 = vrot.slane %v23858_v39, 5  ;;  %v11561_v22 = vrot.slane %v23860_v61, 4  ;;  %v11567_v34 = vrot.slane %v11565_v23, 5 }
 0x318   : > { %v11539_v29 = vrot.slane %v11538_v55, 4  ;;  %v11552_v11 = vor.u32 %v11551_v6, %v11548_v41  ;;  %v5111_v7 = vsel %vm18920_vm13, %v14624_v12, %v5110_v26  ;;  %v5112_v50 = vrot.slane %v5110_v26, 4  ;;  %v18002_v55 = vld [vmem:[%s18170_s29 + $0x34] sm:$0xf]  ;;  %v18003_v6 = vld [vmem:[%s18170_s29 + $0x38] sm:$0x3] }
 0x319   : > { %v11534_v62 = vsel %vm18245_vm8, %v11529_v49, %v11533_v13  ;;  %v11562_v8 = vor.u32 %v11561_v22, %v11557_v48  ;;  %v5113_v39 = vrot.slane %v18001_v58, 6  ;;  %v14625_v53 = vrot.slane %v14609_v19, 10  ;;  %v21991_v12 = vld [vmem:[%s18170_s29 + $0xc4] sm:$0xf]  ;;  %v21996_v49 = vld [vmem:[%s18170_s29 + $0xc8] sm:$0x1] }
 0x31a   : > { %v11544_v61 = vsel %vm18245_vm8, %v11539_v29, %v11543_v1  ;;  %v11553_v23 = vrot.slane %v11552_v11, 4  ;;  %v5117_v41 = vrot.slane %v18002_v55, 6  ;;  %v5120_v60 = vrot.slane %v18003_v6, 6  ;;  %v15425_v11 = vld [vmem:[%s18170_s29 + $0xcc] sm:$0xf] }
 0x31b   : > { %v15445_v26 = vcombine.low %v11534_v62, %v11544_v61  ;;  %v11563_v56 = vrot.slane %v11562_v8, 4  ;;  %v5114_v13 = vsel %vm18920_vm13, %v5112_v50, %v5113_v39  ;;  %v11570_v58 = vshrl.u32 %v15422_v42, 16  ;;  %v22008_v8 = vld [vmem:[%s18170_s29 + $0xd0] sm:$0xf]  ;;  %v22016_v55 = vld [vmem:[%s18170_s29 + $0xd4] sm:$0x1] }
 0x31c   : > { %v11558_v1 = vsel %vm18245_vm8, %v11553_v23, %v11557_v48  ;;  %v14641_v19 = vcombine.low %v5111_v7, %v5114_v13  ;;  %v5118_v22 = vsel %vm18920_vm13, %v14625_v53, %v5117_v41  ;;  %v5119_v29 = vrot.slane %v5117_v41, 4  ;;  %v14610_v6 = vld [vmem:[%s18170_s29 + $0x3c] sm:$0xc] }
 0x31d   : > { %16875 = vmatprep.mubr.msk.bf16.mxu0 %vm709_vm4, %v15445_v26  ;;  %v11568_v61 = vsel %vm18245_vm8, %v11563_v56, %v11567_v34  ;;  %v11572_v39 = vrot.slane %v11570_v58, 4  ;;  %v11573_v50 = vshll.u32 %v15422_v42, 16  ;;  %v23863_v62 = vshll.u32 %v21991_v12, 16 }
 0x31e   : > { %v15446_v48 = vcombine.low %v11558_v1, %v11568_v61  ;;  %16451 = vmatprep.mubr.msk.bf16.mxu1 %vm709_vm4, %v14641_v19  ;;  %v5121_v53 = vsel %vm18920_vm13, %v5119_v29, %v5120_v60  ;;  %v23864_v7 = vshrl.u32 %v21991_v12, 16  ;;  %v11589_v23 = vshll.u32 %v21996_v49, 16  ;;  %v14611_v61 = vld [vmem:[%s18170_s29 + $0x48] sm:$0xc] }
 0x31f   : > { %v14642_v56 = vcombine.low %v5118_v22, %v5121_v53  ;;  %v11575_v34 = vrot.slane %v11573_v50, 5  ;;  %v11581_v42 = vrot.slane %v23863_v62, 5  ;;  %v11594_v41 = vshrl.u32 %v15425_v11, 16 }
 0x320   : > { %16876 = vmatmul.mubr.msk.bf16.gmra.mrb[20].mxu0 %vm709_vm4, %v15446_v48  ;;  %v11585_v26 = vrot.slane %v23864_v7, 4  ;;  %v11591_v60 = vrot.slane %v11589_v23, 5  ;;  %v11597_v13 = vshll.u32 %v15425_v11, 16  ;;  %v23867_v58 = vshll.u32 %v22008_v8, 16 }
 0x321   : > { %16452 = vmatmul.mubr.msk.bf16.gmra.mrb[4].mxu1 %vm709_vm4, %v14642_v56  ;;  %v11576_v1 = vor.u32 %v11575_v34, %v11572_v39  ;;  %v11596_v19 = vrot.slane %v11594_v41, 4  ;;  %v23868_v22 = vshrl.u32 %v22008_v8, 16  ;;  %v11613_v29 = vshll.u32 %v22016_v55, 16  ;;  %v18004_v56 = vld [vmem:[%s18170_s29 + $0x40] sm:$0xf] }
 0x322   : > { %v11586_v50 = vor.u32 %v11585_v26, %v11581_v42  ;;  %v11599_v48 = vrot.slane %v11597_v13, 5  ;;  %v11605_v53 = vrot.slane %v23867_v58, 5  ;;  %v14626_v23 = vrot.slane %v14610_v6, 10  ;;  %v15428_v13 = vld [vmem:[%s18170_s29 + $0xd8] sm:$0xf] }
 0x323   : > { %v11577_v11 = vrot.slane %v11576_v1, 4  ;;  %v11609_v62 = vrot.slane %v23868_v22, 4  ;;  %v11615_v39 = vrot.slane %v11613_v29, 5  ;;  %v5124_v34 = vrot.slane %v18004_v56, 6  ;;  %v18006_v56 = vld [vmem:[%s18170_s29 + $0x4c] sm:$0xf] }
 0x324   : > { %v11587_v41 = vrot.slane %v11586_v50, 4  ;;  %v11600_v7 = vor.u32 %v11599_v48, %v11596_v19  ;;  %v5127_v43 = vrot.slane %v18005_v52, 6  ;;  %v14627_v26 = vrot.slane %v14611_v61, 10  ;;  %v18007_v48 = vld [vmem:[%s18170_s29 + $0x50] sm:$0x3] }
 0x325   : > { %v11582_v6 = vsel %vm18245_vm8, %v11577_v11, %v11581_v42  ;;  %v11610_v1 = vor.u32 %v11609_v62, %v11605_v53  ;;  %v5125_v58 = vsel %vm18920_vm13, %v14626_v23, %v5124_v34  ;;  %v5126_v22 = vrot.slane %v5124_v34, 4  ;;  %v22045_v61 = vld [vmem:[%s18170_s29 + $0xdc] sm:$0xf]  ;;  %v22050_v42 = vld [vmem:[%s18170_s29 + $0xe0] sm:$0x1] }
 0x326   : > { %v11592_v29 = vsel %vm18245_vm8, %v11587_v41, %v11591_v60  ;;  %v11601_v50 = vrot.slane %v11600_v7, 4  ;;  %v5131_v19 = vrot.slane %v18006_v56, 6  ;;  %v5134_v52 = vrot.slane %v18007_v48, 6  ;;  %v15431_v41 = vld [vmem:[%s18170_s29 + $0xe4] sm:$0xf] }
 0x327   : > { %v15447_v20 = vcombine.low %v11582_v6, %v11592_v29  ;;  %v11611_v40 = vrot.slane %v11610_v1, 4  ;;  %v5128_v62 = vsel %vm18920_vm13, %v5126_v22, %v5127_v43  ;;  %v11618_v23 = vshrl.u32 %v15428_v13, 16  ;;  %v22062_v29 = vld [vmem:[%s18170_s29 + $0xe8] sm:$0xf] }
 0x328   : > { %v11606_v60 = vsel %vm18245_vm8, %v11601_v50, %v11605_v53  ;;  %v14643_v7 = vcombine.low %v5125_v58, %v5128_v62  ;;  %v5132_v11 = vsel %vm18920_vm13, %v14627_v26, %v5131_v19  ;;  %v5133_v34 = vrot.slane %v5131_v19, 4  ;;  %24098 = vst [vmem:[#allocation43_spill] sm:$0xff] %v22062_v29  ;;  %v22070_v50 = vld [vmem:[%s18170_s29 + $0xec] sm:$0x1]  ;;  %v14612_v19 = vld [vmem:[%s18170_s29 + $0x54] sm:$0xc] }
 0x329   : > { %16879 = vmatprep.mubr.msk.bf16.mxu0 %vm709_vm4, %v15447_v20  ;;  %v11616_v6 = vsel %vm18245_vm8, %v11611_v40, %v11615_v39  ;;  %v11620_v43 = vrot.slane %v11618_v23, 4  ;;  %v11621_v22 = vshll.u32 %v15428_v13, 16  ;;  %v23871_v1 = vshll.u32 %v22045_v61, 16 }
 0x32a   : > { %v15448_v53 = vcombine.low %v11606_v60, %v11616_v6  ;;  %16455 = vmatprep.mubr.msk.bf16.mxu1 %vm709_vm4, %v14643_v7  ;;  %v5135_v58 = vsel %vm18920_vm13, %v5133_v34, %v5134_v52  ;;  %v23872_v26 = vshrl.u32 %v22045_v61, 16  ;;  %v11637_v20 = vshll.u32 %v22050_v42, 16  ;;  %v14613_v6 = vld [vmem:[%s18170_s29 + $0x60] sm:$0xc] }
 0x32b   : > { %v14644_v40 = vcombine.low %v5132_v11, %v5135_v58  ;;  %v11623_v39 = vrot.slane %v11621_v22, 5  ;;  %v11629_v13 = vrot.slane %v23871_v1, 5  ;;  %v11642_v56 = vshrl.u32 %v15431_v41, 16 }
 0x32c   : > { %16880 = vmatmul.mubr.msk.bf16.gmra.mrb[24].mxu0 %vm709_vm4, %v15448_v53  ;;  %v11633_v48 = vrot.slane %v23872_v26, 4  ;;  %v11639_v52 = vrot.slane %v11637_v20, 5  ;;  %v11645_v62 = vshll.u32 %v15431_v41, 16  ;;  %v23875_v23 = vshll.u32 %v22062_v29, 16 }
 0x32d   : > { %16456 = vmatmul.mubr.msk.bf16.gmra.mrb[8].mxu1 %vm709_vm4, %v14644_v40  ;;  %v11624_v60 = vor.u32 %v11623_v39, %v11620_v43  ;;  %v11644_v7 = vrot.slane %v11642_v56, 4  ;;  %v23876_v11 = vshrl.u32 %v22062_v29, 16  ;;  %v11661_v34 = vshll.u32 %v22070_v50, 16  ;;  %v18008_v40 = vld [vmem:[%s18170_s29 + $0x58] sm:$0xf] }
 0x32e   : > { %v11634_v22 = vor.u32 %v11633_v48, %v11629_v13  ;;  %v11647_v53 = vrot.slane %v11645_v62, 5  ;;  %v11653_v58 = vrot.slane %v23875_v23, 5  ;;  %v14628_v20 = vrot.slane %v14612_v19, 10  ;;  %v22090_v62 = vld [vmem:[%s18170_s29 + $0x30] sm:$0xe] }
 0x32f   : > { %v11625_v41 = vrot.slane %v11624_v60, 4  ;;  %v11657_v1 = vrot.slane %v23876_v11, 4  ;;  %v11663_v43 = vrot.slane %v11661_v34, 5  ;;  %v5138_v39 = vrot.slane %v18008_v40, 6  ;;  %v18010_v40 = vld [vmem:[%s18170_s29 + $0x64] sm:$0xf] }
 0x330   : > { %v11635_v56 = vrot.slane %v11634_v22, 4  ;;  %v11648_v26 = vor.u32 %v11647_v53, %v11644_v7  ;;  %v5141_v38 = vrot.slane %v18009_v30, 6  ;;  %v14629_v48 = vrot.slane %v14613_v6, 10  ;;  %v18011_v30 = vld [vmem:[%s18170_s29 + $0x68] sm:$0x3] }
 0x331   : > { %v11630_v19 = vsel %vm18245_vm8, %v11625_v41, %v11629_v13  ;;  %v11658_v60 = vor.u32 %v11657_v1, %v11653_v58  ;;  %v5139_v23 = vsel %vm18920_vm13, %v14628_v20, %v5138_v39  ;;  %v5140_v11 = vrot.slane %v5138_v39, 4  ;;  %v22101_v53 = vld [vmem:[%s18170_s29 + $0x3c] sm:$0xe] }
 0x332   : > { %v11640_v34 = vsel %vm18245_vm8, %v11635_v56, %v11639_v52  ;;  %v11649_v22 = vrot.slane %v11648_v26, 4  ;;  %v5145_v7 = vrot.slane %v18010_v40, 6  ;;  %v5148_v6 = vrot.slane %v18011_v30, 6  ;;  %v14614_v56 = vld [vmem:[%s18170_s29 + $0x6c] sm:$0xc] }
 0x333   : > { %v15449_v45 = vcombine.low %v11630_v19, %v11640_v34  ;;  %v11659_v13 = vrot.slane %v11658_v60, 4  ;;  %v5142_v1 = vsel %vm18920_vm13, %v5140_v11, %v5141_v38  ;;  %v15483_v20 = vrot.slane %v22090_v62, 9  ;;  %v18012_v38 = vld [vmem:[%s18170_s29 + $0x34] sm:$0xf]  ;;  %v18013_v60 = vld [vmem:[%s18170_s29 + $0x38] sm:$0x1] }
 0x334   : > { %v11654_v52 = vsel %vm18245_vm8, %v11649_v22, %v11653_v58  ;;  %v14645_v26 = vcombine.low %v5139_v23, %v5142_v1  ;;  %v5146_v41 = vsel %vm18920_vm13, %v14629_v48, %v5145_v7  ;;  %v5147_v39 = vrot.slane %v5145_v7, 4  ;;  %v18014_v48 = vld [vmem:[%s18170_s29 + $0x40] sm:$0xf]  ;;  %v14615_v30 = vld [vmem:[%s18170_s29 + $0x78] sm:$0xc] }
 0x335   : > { %16883 = vmatprep.mubr.msk.bf16.mxu0 %vm709_vm4, %v15449_v45  ;;  %v11664_v19 = vsel %vm18245_vm8, %v11659_v13, %v11663_v43  ;;  %v12025_v11 = vrot.slane %v18012_v38, 5  ;;  %v12028_v34 = vrot.slane %v18013_v60, 5  ;;  %v15484_v40 = vrot.slane %v22101_v53, 9  ;;  %v18015_v45 = vld [vmem:[%s18170_s29 + $0x44] sm:$0x1] }
 0x336   : > { %v15450_v58 = vcombine.low %v11654_v52, %v11664_v19  ;;  %16459 = vmatprep.mubr.msk.bf16.mxu1 %vm709_vm4, %v14645_v26  ;;  %v5149_v23 = vsel %vm18920_vm13, %v5147_v39, %v5148_v6  ;;  %v12032_v22 = vrot.slane %v18014_v48, 5  ;;  %v12035_v7 = vrot.slane %v18015_v45, 5  ;;  %v15548_v43 = vld [vmem:[%s23647_s1 + $0x2e] sm:$0x3]  ;;  %v18016_v38 = vld [vmem:[%s18170_s29 + $0x70] sm:$0xf] }
 0x337   : > { %v14646_v13 = vcombine.low %v5146_v41, %v5149_v23  ;;  %v12026_v52 = vsel %vm18182_vm5, %v15483_v20, %v12025_v11  ;;  %v12027_v26 = vrot.slane %v12025_v11, 4  ;;  %v14630_v19 = vrot.slane %v14614_v56, 10  ;;  %v18017_v48 = vld [vmem:[%s18170_s29 + $0x74] sm:$0x3]  ;;  %v18018_v11 = vld [vmem:[%s18170_s29 + $0x7c] sm:$0xf] }
 0x338   : > { %16884 = vmatmul.mubr.msk.bf16.gmra.mrb[28].mxu0 %vm709_vm4, %v15450_v58  ;;  %v12033_v6 = vsel %vm18182_vm5, %v15484_v40, %v12032_v22  ;;  %v12034_v39 = vrot.slane %v12032_v22, 4  ;;  %v5152_v60 = vrot.slane %v18016_v38, 6  ;;  %v5155_v45 = vrot.slane %v18017_v48, 6  ;;  %v22139_v23 = vld [vmem:[%s18170_s29 + $0x48] sm:$0xe] }
 0x339   : > { %16460 = vmatmul.mubr.msk.bf16.gmra.mrb[12].mxu1 %vm709_vm4, %v14646_v13  ;;  %v12029_v20 = vsel %vm18182_vm5, %v12027_v26, %v12028_v34  ;;  %v12912_v41 = vand.u32 %v15548_v43, %v18141_v4  ;;  %v14631_v56 = vrot.slane %v14615_v30, 10  ;;  %v5159_v58 = vrot.slane %v18018_v11, 6  ;;  %v22146_v48 = vld [vmem:[%s18170_s29 + $0x54] sm:$0xe]  ;;  %v14616_v11 = vld [vmem:[%s18170_s29 + $0x84] sm:$0xc] }
 0x33a   : > { %v15500_v40 = vcombine.low %v12026_v52, %v12029_v20  ;;  %v12036_v22 = vsel %vm18182_vm5, %v12034_v39, %v12035_v7  ;;  %v5153_v13 = vsel %vm18920_vm13, %v14630_v19, %v5152_v60  ;;  %v5154_v38 = vrot.slane %v5152_v60, 4  ;;  %v18019_v52 = vld [vmem:[%s18170_s29 + $0x80] sm:$0x3]  ;;  %v18020_v39 = vld [vmem:[%s18170_s29 + $0x4c] sm:$0xf] }
 0x33b   : > { %v15501_v34 = vcombine.low %v12033_v6, %v12036_v22  ;;  %16921 = vmatprep.subr.bf16.mxu0 %v12912_v41  ;;  %v5160_v43 = vsel %vm18920_vm13, %v14631_v56, %v5159_v58  ;;  %v5161_v30 = vrot.slane %v5159_v58, 4  ;;  %v5162_v26 = vrot.slane %v18019_v52, 6  ;;  %v18021_v6 = vld [vmem:[%s18170_s29 + $0x50] sm:$0x1]  ;;  %v18022_v52 = vld [vmem:[%s18170_s29 + $0x58] sm:$0xf] }
 0x33c   : > { %16889 = vmatprep.mubr.msk.bf16.mxu0 %vm709_vm4, %v15500_v40  ;;  %v5156_v7 = vsel %vm18920_vm13, %v5154_v38, %v5155_v45  ;;  %v15485_v19 = vrot.slane %v22139_v23, 9  ;;  %v12039_v60 = vrot.slane %v18020_v39, 5  ;;  %v12042_v20 = vrot.slane %v18021_v6, 5  ;;  %v18023_v6 = vld [vmem:[%s18170_s29 + $0x5c] sm:$0x1] }
 0x33d   : > { %v14647_v22 = vcombine.low %v5153_v13, %v5156_v7  ;;  %v5163_v56 = vsel %vm18920_vm13, %v5161_v30, %v5162_v26  ;;  %v15486_v58 = vrot.slane %v22146_v48, 9  ;;  %v12046_v40 = vrot.slane %v18022_v52, 5  ;;  %v18024_v7 = vld [vmem:[%s18170_s29 + $0x88] sm:$0xf] }
 0x33e   : > { %v14648_v45 = vcombine.low %v5160_v43, %v5163_v56  ;;  %v12040_v38 = vsel %vm18182_vm5, %v15485_v19, %v12039_v60  ;;  %v12041_v39 = vrot.slane %v12039_v60, 4  ;;  %v12049_v14 = vrot.slane %v18023_v6, 5  ;;  %v18025_v19 = vld [vmem:[%s18170_s29 + $0x8c] sm:$0x3] }
 0x33f   : > { %16463 = vmatprep.mubr.msk.bf16.mxu1 %vm709_vm4, %v14647_v22  ;;  %v12047_v13 = vsel %vm18182_vm5, %v15486_v58, %v12046_v40  ;;  %v12048_v30 = vrot.slane %v12046_v40, 4  ;;  %v14632_v26 = vrot.slane %v14616_v11, 10  ;;  %v5166_v52 = vrot.slane %v18024_v7, 6 }
 0x340   : > { %16890 = vmatmul.mubr.msk.bf16.vlgmr.msra.gmra.mrb[0].mxu0 %vm709_vm4, %v15501_v34  ;;  %v12043_v43 = vsel %vm18182_vm5, %v12041_v39, %v12042_v20  ;;  %v5169_v60 = vrot.slane %v18025_v19, 6  ;;  %v14633_v56 = vrot.slane %v14617_v27, 10  ;;  %v5173_v6 = vrot.slane %v18026_v33, 6  ;;  %v22184_v20 = vld [vmem:[%s18170_s29 + $0x6c] sm:$0xe] }
 0x341   : > { %16464 = vmatmul.mubr.msk.bf16.gmra.mrb[16].mxu1 %vm709_vm4, %v14648_v45  ;;  %16922 = vmatpush3.bf16.msra.mxu0 %v12912_v41  ;;  %v15502_v11 = vcombine.low %v12040_v38, %v12043_v43  ;;  %v12050_v22 = vsel %vm18182_vm5, %v12048_v30, %v12049_v14  ;;  %v5167_v34 = vsel %vm18920_vm13, %v14632_v26, %v5166_v52  ;;  %v5168_v58 = vrot.slane %v5166_v52, 4  ;;  %v14618_v30 = vld [vmem:[%s18170_s29 + $0x9c] sm:$0xc]  ;;  %v14619_v52 = vld [vmem:[%s18170_s29 + $0xa8] sm:$0xc] }
 0x342   : > { %v15503_v27 = vcombine.low %v12047_v13, %v12050_v22  ;;  %v5174_v33 = vsel %vm18920_vm13, %v14633_v56, %v5173_v6  ;;  %v5175_v40 = vrot.slane %v5173_v6, 4  ;;  %v5176_v45 = vrot.slane %v21728_v47, 6  ;;  %v18027_v22 = vld [vmem:[%s18170_s29 + $0xa0] sm:$0xf] }
 0x343   : > { %16893 = vmatprep.mubr.msk.bf16.mxu0 %vm709_vm4, %v15502_v11  ;;  %v5170_v41 = vsel %vm18920_vm13, %v5168_v58, %v5169_v60  ;;  %v15487_v14 = vrot.slane %v22176_v18, 9  ;;  %v12053_v38 = vrot.slane %v21741_v16, 5  ;;  %v12056_v39 = vrot.slane %v21752_v0, 5 }
 0x344   : > { %v14649_v13 = vcombine.low %v5167_v34, %v5170_v41  ;;  %v5177_v26 = vsel %vm18920_vm13, %v5175_v40, %v5176_v45  ;;  %v15488_v7 = vrot.slane %v22184_v20, 9  ;;  %v12060_v47 = vrot.slane %v21757_v37, 5  ;;  %v18028_v45 = vld [vmem:[%s18170_s29 + $0xac] sm:$0xf] }
 0x345   : > { %v14650_v43 = vcombine.low %v5174_v33, %v5177_v26  ;;  %v12054_v19 = vsel %vm18182_vm5, %v15487_v14, %v12053_v38  ;;  %v12055_v60 = vrot.slane %v12053_v38, 4  ;;  %v12063_v56 = vrot.slane %v21767_v15, 5  ;;  %v22213_v14 = vld [vmem:[%s18170_s29 + $0x78] sm:$0xe]  ;;  %v22221_v26 = vld [vmem:[%s18170_s29 + $0x84] sm:$0xe] }
 0x346   : > { %16467 = vmatprep.mubr.msk.bf16.mxu1 %vm709_vm4, %v14649_v13  ;;  %v12061_v0 = vsel %vm18182_vm5, %v15488_v7, %v12060_v47  ;;  %v12062_v6 = vrot.slane %v12060_v47, 4  ;;  %v14634_v11 = vrot.slane %v14618_v30, 10  ;;  %v5180_v34 = vrot.slane %v18027_v22, 6 }
 0x347   : > { %v12057_v58 = vsel %vm18182_vm5, %v12055_v60, %v12056_v39  ;;  %v5183_v33 = vrot.slane %v21779_v24, 6  ;;  %v14635_v40 = vrot.slane %v14619_v52, 10  ;;  %v5187_v41 = vrot.slane %v18028_v45, 6 }
 0x348   : > { %16894 = vmatmul.mubr.msk.bf16.gmra.mrb[4].mxu0 %vm709_vm4, %v15503_v27  ;;  %v15504_v15 = vcombine.low %v12054_v19, %v12057_v58  ;;  %v12064_v38 = vsel %vm18182_vm5, %v12062_v6, %v12063_v56  ;;  %v5181_v30 = vsel %vm18920_vm13, %v14634_v11, %v5180_v34  ;;  %v5182_v13 = vrot.slane %v5180_v34, 4  ;;  %v14621_v11 = vld [vmem:[%s18170_s29 + $0xc0] sm:$0xc] }
 0x349   : > { %16468 = vmatmul.mubr.msk.bf16.gmra.mrb[20].mxu1 %vm709_vm4, %v14650_v43  ;;  %v15505_v24 = vcombine.low %v12061_v0, %v12064_v38  ;;  %v5188_v39 = vsel %vm18920_vm13, %v14635_v40, %v5187_v41  ;;  %v5189_v7 = vrot.slane %v5187_v41, 4  ;;  %v5190_v27 = vrot.slane %v21800_v44, 6  ;;  %v14620_v43 = vld [vmem:[%s18170_s29 + $0xb4] sm:$0xc]  ;;  %v18029_v41 = vld [vmem:[%s18170_s29 + $0xb8] sm:$0xf] }
 0x34a   : > { %16897 = vmatprep.mubr.msk.bf16.mxu0 %vm709_vm4, %v15504_v15  ;;  %v5184_v47 = vsel %vm18920_vm13, %v5182_v13, %v5183_v33  ;;  %v15489_v52 = vrot.slane %v22213_v14, 9  ;;  %v12067_v19 = vrot.slane %v21816_v54, 5  ;;  %v12070_v60 = vrot.slane %v21821_v10, 5 }
 0x34b   : > { %v14651_v56 = vcombine.low %v5181_v30, %v5184_v47  ;;  %v5191_v0 = vsel %vm18920_vm13, %v5189_v7, %v5190_v27  ;;  %v15490_v6 = vrot.slane %v22221_v26, 9  ;;  %v12074_v44 = vrot.slane %v21830_v2, 5  ;;  %v22251_v27 = vld [vmem:[%s18170_s29 + $0x90] sm:$0xe] }
 0x34c   : > { %v14652_v22 = vcombine.low %v5188_v39, %v5191_v0  ;;  %v12068_v34 = vsel %vm18182_vm5, %v15489_v52, %v12067_v19  ;;  %v12069_v58 = vrot.slane %v12067_v19, 4  ;;  %v12077_v33 = vrot.slane %v21837_v9, 5  ;;  %v18030_v39 = vld [vmem:[%s18170_s29 + $0xc4] sm:$0xf] }
 0x34d   : > { %16471 = vmatprep.mubr.msk.bf16.mxu1 %vm709_vm4, %v14651_v56  ;;  %v12075_v10 = vsel %vm18182_vm5, %v15490_v6, %v12074_v44  ;;  %v12076_v40 = vrot.slane %v12074_v44, 4  ;;  %v14636_v45 = vrot.slane %v14620_v43, 10  ;;  %v5194_v15 = vrot.slane %v18029_v41, 6  ;;  %v22258_v43 = vld [vmem:[%s18170_s29 + $0x9c] sm:$0xe] }
 0x34e   : > { %v12071_v38 = vsel %vm18182_vm5, %v12069_v58, %v12070_v60  ;;  %v5197_v30 = vrot.slane %v21855_v51, 6  ;;  %v14637_v13 = vrot.slane %v14621_v11, 10  ;;  %v5201_v7 = vrot.slane %v18030_v39, 6  ;;  %v14784_v6 = vld [vmem:[%s23647_s1 + $0x16] sm:$0x3] }
 0x34f   : > { %v15506_v9 = vcombine.low %v12068_v34, %v12071_v38  ;;  %v12078_v47 = vsel %vm18182_vm5, %v12076_v40, %v12077_v33  ;;  %v5195_v52 = vsel %vm18920_vm13, %v14636_v45, %v5194_v15  ;;  %v5196_v19 = vrot.slane %v5194_v15, 4  ;;  %v22275_v58 = vld [vmem:[%s18170_s29 + $0xa8] sm:$0xe]  ;;  %v22282_v40 = vld [vmem:[%s18170_s29 + $0xb4] sm:$0xe] }
 0x350   : > { %16898 = vmatmul.mubr.msk.bf16.gmra.mrb[8].mxu0 %vm709_vm4, %v15505_v24  ;;  %v15507_v60 = vcombine.low %v12075_v10, %v12078_v47  ;;  %v5202_v51 = vsel %vm18920_vm13, %v14637_v13, %v5201_v7  ;;  %v5203_v56 = vrot.slane %v5201_v7, 4  ;;  %v5204_v0 = vrot.slane %v21869_v28, 6  ;;  %v22295_v7 = vld [vmem:[%s18170_s29 + $0xc0] sm:$0xe] }
 0x351   : > { %16472 = vmatmul.mubr.msk.bf16.gmra.mrb[24].mxu1 %vm709_vm4, %v14652_v22  ;;  %16901 = vmatprep.mubr.msk.bf16.mxu0 %vm709_vm4, %v15506_v9  ;;  %v5198_v44 = vsel %vm18920_vm13, %v5196_v19, %v5197_v30  ;;  %v15491_v24 = vrot.slane %v22251_v27, 9  ;;  %v12081_v11 = vrot.slane %v21878_v46, 5  ;;  %v12084_v34 = vrot.slane %v21890_v17, 5 }
 0x352   : > { %v14653_v28 = vcombine.low %v5195_v52, %v5198_v44  ;;  %v5205_v33 = vsel %vm18920_vm13, %v5203_v56, %v5204_v0  ;;  %v15492_v22 = vrot.slane %v22258_v43, 9  ;;  %v12088_v10 = vrot.slane %v21895_v31, 5  ;;  %v17849_v56 = vld [vmem:[%s18170_s29 + $0x18] sm:$0xff]   ;;  %v22309_v44 = vld [vmem:[%s18170_s29 + $0xcc] sm:$0xe] }
 0x353   : > { %v14654_v45 = vcombine.low %v5202_v51, %v5205_v33  ;;  %v12082_v41 = vsel %vm18182_vm5, %v15491_v24, %v12081_v11  ;;  %v12083_v15 = vrot.slane %v12081_v11, 4  ;;  %v12091_v17 = vrot.slane %v21905_v35, 5 }
 0x354   : > { %16475 = vmatprep.mubr.msk.bf16.mxu1 %vm709_vm4, %v14653_v28  ;;  %v12089_v38 = vsel %vm18182_vm5, %v15492_v22, %v12088_v10  ;;  %v12090_v30 = vrot.slane %v12088_v10, 4  ;;  %v22291_v13 = vand.u32 %v14784_v6, %v18141_v4  ;;  %v15493_v39 = vrot.slane %v22275_v58, 9  ;;  %v22322_v10 = vld [vmem:[%s18170_s29 + $0xd8] sm:$0xe] }
 0x355   : > { %v12085_v9 = vsel %vm18182_vm5, %v12083_v15, %v12084_v34  ;;  %v12095_v47 = vrot.slane %v21936_v21, 5  ;;  %v12098_v35 = vrot.slane %v21944_v59, 5  ;;  %v15494_v52 = vrot.slane %v22282_v40, 9 }
 0x356   : > { %v15508_v19 = vcombine.low %v12082_v41, %v12085_v9  ;;  %v12092_v51 = vsel %vm18182_vm5, %v12090_v30, %v12091_v17  ;;  %16513 = vmatprep.subr.bf16.mxu1 %v22291_v13  ;;  %v12102_v0 = vrot.slane %v21954_v36, 5  ;;  %v12105_v6 = vrot.slane %v21962_v5, 5 }
 0x357   : > { %v15509_v24 = vcombine.low %v12089_v38, %v12092_v51  ;;  %v12096_v59 = vsel %vm18182_vm5, %v15493_v39, %v12095_v47  ;;  %v12097_v11 = vrot.slane %v12095_v47, 4  ;;  %v15495_v34 = vrot.slane %v22295_v7, 9  ;;  %v22332_v38 = vld [vmem:[%s18170_s29 + $0xe4] sm:$0xe] }
 0x358   : > { %16902 = vmatmul.mubr.msk.bf16.gmra.mrb[12].mxu0 %vm709_vm4, %v15507_v60  ;;  %v22317_v28 = vsel %vm18182_vm5, %v15494_v52, %v12102_v0  ;;  %v12104_v33 = vrot.slane %v12102_v0, 4  ;;  %v12109_v22 = vrot.slane %v21991_v12, 5  ;;  %v12112_v5 = vrot.slane %v21996_v49, 5  ;;  %v17850_v0 = vld [vmem:[%s18170_s29 + $0x24] sm:$0xff]  }
 0x359   : > { %16476 = vmatmul.mubr.msk.bf16.gmra.mrb[28].mxu1 %vm709_vm4, %v14654_v45  ;;  %16905 = vmatprep.mubr.msk.bf16.mxu0 %vm709_vm4, %v15508_v19  ;;  %v12099_v41 = vsel %vm18182_vm5, %v12097_v11, %v12098_v35  ;;  %v15496_v60 = vrot.slane %v22309_v44, 9  ;;  %v12116_v15 = vrot.slane %v22008_v8, 5  ;;  %v12119_v17 = vrot.slane %v22016_v55, 5 }
 0x35a   : > { %16481 = vmatprep.mubr.msk.bf16.mxu1 %vm709_vm4, %v17849_v56  ;;  %v15510_v49 = vcombine.low %v12096_v59, %v12099_v41  ;;  %v22337_v45 = vsel %vm18182_vm5, %v12104_v33, %v12105_v6  ;;  %v22341_v30 = vsel %vm18182_vm5, %v15495_v34, %v12109_v22  ;;  %v12111_v39 = vrot.slane %v12109_v22, 4  ;;  %v22367_v33 = vld [vmem:[%s18170_s29 + $0x38] sm:$0x3]  ;;  %v17851_v22 = vld [vmem:[%s18170_s29 + $0x30] sm:$0xff]  }
 0x35b   : > { %v22347_v55 = vsel %vm18182_vm5, %v15496_v60, %v12116_v15  ;;  %v12118_v47 = vrot.slane %v12116_v15, 4  ;;  %v15497_v35 = vrot.slane %v22322_v10, 9  ;;  %v12123_v19 = vrot.slane %v22045_v61, 5  ;;  %24100 = vst [vmem:[#allocation9_spill] sm:$0xff] %v22367_v33 }
 0x35c   : > { %v22352_v52 = vsel %vm18182_vm5, %v12111_v39, %v12112_v5  ;;  %v12126_v51 = vrot.slane %v22050_v42, 5  ;;  %v15498_v56 = vrot.slane %v22332_v38, 9  ;;  %v12130_v11 = vrot.slane %v22062_v29, 5 }
 0x35d   : > { %v22362_v59 = vsel %vm18182_vm5, %v12118_v47, %v12119_v17  ;;  %v12133_v34 = vrot.slane %v22070_v50, 5  ;;  %v22374_v5 = vsel %vm18182_vm5, %v15497_v35, %v12123_v19  ;;  %v12125_v41 = vrot.slane %v12123_v19, 4 }
 0x35e   : > { %v12446_v60 = vshrl.u32 %v22090_v62, 16  ;;  %v22379_v15 = vsel %vm18182_vm5, %v15498_v56, %v12130_v11  ;;  %v12132_v17 = vrot.slane %v12130_v11, 4  ;;  %v12449_v50 = vshll.u32 %v22090_v62, 16  ;;  %v22402_v11 = vld [vmem:[%s18170_s29 + $0x44] sm:$0x3]  ;;  %v17853_v62 = vld [vmem:[%s18170_s29 + $0x48] sm:$0xff]  }
 0x35f   : > { %v24101_v39 = vshrl.u32 %v21592_v57, 16  ;;  %v22387_v35 = vsel %vm18182_vm5, %v12125_v41, %v12126_v51  ;;  %v24102_v42 = vshll.u32 %v21592_v57, 16  ;;  %v12460_v9 = vshrl.u32 %v22367_v33, 16 }
 0x360   : > { %16906 = vmatmul.mubr.msk.bf16.gmra.mrb[16].mxu0 %vm709_vm4, %v15509_v24  ;;  %v12448_v19 = vrot.slane %v12446_v60, 5  ;;  %v22398_v24 = vsel %vm18182_vm5, %v12132_v17, %v12133_v34  ;;  %v12451_v56 = vrot.slane %v12449_v50, 6  ;;  %v12463_v51 = vshll.u32 %v22367_v33, 16 }
 0x361   : > { %v12454_v47 = vrot.slane %v24101_v39, 5  ;;  %v12455_v6 = vrot.slane %v24102_v42, 6  ;;  %16482 = vmatmul.mubr.msk.bf16.vlgmr.msra.gmra.mrb[0].mxu1 %vm709_vm4, %v17850_v0  ;;  %16909 = vmatprep.mubr.msk.bf16.mxu0 %vm709_vm4, %v15510_v49  ;;  %v12462_v0 = vrot.slane %v12460_v9, 5  ;;  %v12469_v42 = vshrl.u32 %v22101_v53, 16 }
 0x362   : > { %16514 = vmatpush3.bf16.msra.mxu1 %v22291_v13  ;;  %16485 = vmatprep.mubr.msk.bf16.mxu1 %vm709_vm4, %v17851_v22  ;;  %v12452_v34 = vor.u32 %v12451_v56, %v12448_v19  ;;  %v12465_v41 = vrot.slane %v12463_v51, 6  ;;  %v12472_v60 = vshll.u32 %v22101_v53, 16  ;;  %v24103_v17 = vshrl.u32 %v21610_v25, 16  ;;  %v15613_v13 = vld [vmem:[%s23647_s1 + $0x30] sm:$0x3]  ;;  %v24104_v22 = vld [vmem:[#allocation2_spill] sm:$0xff] }
 0x363   : > { %v12456_v49 = vor.u32 %v12455_v6, %v12454_v47  ;;  %16989 = vmatprep.subr.bf16.mxu1 %v24104_v22  ;;  %v12471_v57 = vrot.slane %v12469_v42, 5  ;;  %v24105_v9 = vshll.u32 %v21610_v25, 16  ;;  %v12483_v47 = vshrl.u32 %v22402_v11, 16  ;;  %v17852_v19 = vld [vmem:[%s18170_s29 + $0x3c] sm:$0xff]  }
 0x364   : > { %v12477_v50 = vrot.slane %v24103_v17, 5  ;;  %v12453_v56 = vrot.slane %v12452_v34, 4  ;;  %v12466_v53 = vor.u32 %v12465_v41, %v12462_v0  ;;  %v12474_v51 = vrot.slane %v12472_v60, 6  ;;  %v22431_v0 = vld [vmem:[%s18170_s29 + $0x50] sm:$0x3] }
 0x365   : > { %v12458_v39 = vrot.slane %v12456_v49, 4  ;;  %v12478_v6 = vrot.slane %v24105_v9, 6  ;;  %v12486_v17 = vshll.u32 %v22402_v11, 16  ;;  %v12485_v3 = vrot.slane %v12483_v47, 5 }
 0x366   : > { %v22423_v33 = vand.u32 %v15613_v13, %v18141_v4  ;;  %v12492_v42 = vshrl.u32 %v22139_v23, 16  ;;  %v12457_v25 = vsel %vm18447_vm11, %v12453_v56, %v12456_v49  ;;  %v12475_v29 = vor.u32 %v12474_v51, %v12471_v57 }
 0x367   : > { %v12479_v1 = vor.u32 %v12478_v6, %v12477_v50  ;;  %v12467_v9 = vsel %vm18447_vm11, %v12458_v39, %v12466_v53  ;;  %v12488_v34 = vrot.slane %v12486_v17, 6  ;;  %v24106_v41 = vcombine.low %v22317_v28, %v22337_v45 }
 0x368   : > { %v22437_v60 = vcombine.low %v12457_v25, %v12467_v9  ;;  %16955 = vmatprep.subr.bf16.mxu0 %v22423_v33  ;;  %v12494_v50 = vrot.slane %v12492_v42, 5  ;;  %v12495_v49 = vshll.u32 %v22139_v23, 16  ;;  %v24107_v57 = vcombine.low %v22341_v30, %v22352_v52  ;;  %v17854_v25 = vld [vmem:[%s18170_s29 + $0x54] sm:$0xff]  }
 0x369   : > { %16910 = vmatmul.mubr.msk.bf16.gmra.mrb[20].mxu0 %vm709_vm4, %v24106_v41  ;;  %v12481_v4 = vrot.slane %v12479_v1, 4  ;;  %16486 = vmatmul.mubr.msk.bf16.gmra.mrb[4].mxu1 %vm709_vm4, %v17852_v19  ;;  %v12476_v13 = vrot.slane %v12475_v29, 4  ;;  %v12489_v28 = vor.u32 %v12488_v34, %v12485_v3  ;;  %v24108_v45 = vshrl.u32 %v21677_v63, 16 }
 0x36a   : > { %16913 = vmatprep.mubr.msk.bf16.mxu0 %vm709_vm4, %v24107_v57  ;;  %v24109_v6 = vshll.u32 %v21677_v63, 16  ;;  %16489 = vmatprep.mubr.msk.bf16.mxu1 %vm709_vm4, %v17853_v62  ;;  %v12497_v56 = vrot.slane %v12495_v49, 6  ;;  %v12506_v23 = vshrl.u32 %v22431_v0, 16  ;;  %v12509_v19 = vshll.u32 %v22431_v0, 16  ;;  %v22459_v63 = vld [vmem:[%s18170_s29 + $0x5c] sm:$0x3] }
 0x36b   : > { %v12500_v39 = vrot.slane %v24108_v45, 5  ;;  %v12515_v30 = vshrl.u32 %v22146_v48, 16  ;;  %v12480_v3 = vsel %vm18447_vm11, %v12476_v13, %v12479_v1  ;;  %v12490_v29 = vsel %vm18447_vm11, %v12481_v4, %v12489_v28  ;;  %v24110_v49 = vld [vmem:[#allocation42_spill] sm:$0xff] }
 0x36c   : > { %v12501_v47 = vrot.slane %v24109_v6, 6  ;;  %v12518_v53 = vshll.u32 %v22146_v48, 16  ;;  %v22462_v62 = vcombine.low %v12480_v3, %v12490_v29  ;;  %v12498_v51 = vor.u32 %v12497_v56, %v12494_v50  ;;  %v17855_v13 = vld [vmem:[%s18170_s29 + $0x60] sm:$0xff]  }
 0x36d   : > { %v12508_v17 = vrot.slane %v12506_v23, 5  ;;  %v12511_v42 = vrot.slane %v12509_v19, 6  ;;  %v12517_v34 = vrot.slane %v12515_v30, 5  ;;  %v24111_v57 = vshrl.u32 %v24110_v49, 16 }
 0x36e   : > { %v12502_v52 = vor.u32 %v12501_v47, %v12500_v39  ;;  %v12520_v41 = vrot.slane %v12518_v53, 6  ;;  %v12499_v4 = vrot.slane %v12498_v51, 4  ;;  %v24112_v45 = vshll.u32 %v24110_v49, 16  ;;  %v22483_v53 = vld [vmem:[%s18170_s29 + $0x68] sm:$0x3] }
 0x36f   : > { %v12523_v1 = vrot.slane %v24111_v57, 5  ;;  %v12512_v28 = vor.u32 %v12511_v42, %v12508_v17  ;;  %v12529_v48 = vshrl.u32 %v22459_v63, 16  ;;  %v12532_v50 = vshll.u32 %v22459_v63, 16 }
 0x370   : > { %v12504_v9 = vrot.slane %v12502_v52, 4  ;;  %v12524_v39 = vrot.slane %v24112_v45, 6  ;;  %v12521_v6 = vor.u32 %v12520_v41, %v12517_v34  ;;  %v12538_v47 = vshrl.u32 %v22176_v18, 16 }
 0x371   : > { %v12541_v56 = vshll.u32 %v22176_v18, 16  ;;  %v24113_v23 = vcombine.low %v22347_v55, %v22362_v59  ;;  %v12503_v19 = vsel %vm18447_vm11, %v12499_v4, %v12502_v52  ;;  %v12531_v29 = vrot.slane %v12529_v48, 5  ;;  %16490 = vmatmul.mubr.msk.bf16.gmra.mrb[8].mxu1 %vm709_vm4, %v17854_v25 }
 0x372   : > { %v12513_v30 = vsel %vm18447_vm11, %v12504_v9, %v12512_v28  ;;  %v12525_v3 = vor.u32 %v12524_v39, %v12523_v1  ;;  %v24114_v18 = vcombine.low %v22374_v5, %v22387_v35  ;;  %v12522_v59 = vrot.slane %v12521_v6, 4  ;;  %16493 = vmatprep.mubr.msk.bf16.mxu1 %vm709_vm4, %v17855_v13  ;;  %v22502_v13 = vld [vmem:[%s18170_s29 + $0x74] sm:$0x3]  ;;  %v17856_v39 = vld [vmem:[%s18170_s29 + $0x6c] sm:$0xff]  }
 0x373   : > { %16914 = vmatmul.mubr.msk.bf16.gmra.mrb[24].mxu0 %vm709_vm4, %v24113_v23  ;;  %v22490_v55 = vcombine.low %v12503_v19, %v12513_v30  ;;  %v12534_v51 = vrot.slane %v12532_v50, 6  ;;  %v12540_v52 = vrot.slane %v12538_v47, 5  ;;  %v12543_v42 = vrot.slane %v12541_v56, 6  ;;  %v17857_v56 = vld [vmem:[%s18170_s29 + $0x78] sm:$0xff]  }
 0x374   : > { %16917 = vmatprep.mubr.msk.bf16.mxu0 %vm709_vm4, %v24114_v18  ;;  %v12527_v17 = vrot.slane %v12525_v3, 4  ;;  %v24115_v9 = vshrl.u32 %v21741_v16, 16  ;;  %v24116_v25 = vshll.u32 %v21741_v16, 16  ;;  %v12526_v35 = vsel %vm18447_vm11, %v12522_v59, %v12525_v3 }
 0x375   : > { %v12535_v41 = vor.u32 %v12534_v51, %v12531_v29  ;;  %v12552_v49 = vshrl.u32 %v22483_v53, 16  ;;  %v12555_v57 = vshll.u32 %v22483_v53, 16  ;;  %v12544_v1 = vor.u32 %v12543_v42, %v12540_v52 }
 0x376   : > { %v12546_v34 = vrot.slane %v24115_v9, 5  ;;  %v12547_v5 = vrot.slane %v24116_v25, 6  ;;  %v12561_v28 = vshrl.u32 %v22184_v20, 16  ;;  %v12564_v45 = vshll.u32 %v22184_v20, 16 }
 0x377   : > { %v12536_v16 = vsel %vm18447_vm11, %v12527_v17, %v12535_v41  ;;  %v12554_v48 = vrot.slane %v12552_v49, 5  ;;  %v12557_v6 = vrot.slane %v12555_v57, 6  ;;  %v24117_v50 = vshrl.u32 %v21757_v37, 16 }
 0x378   : > { %v12548_v4 = vor.u32 %v12547_v5, %v12546_v34  ;;  %v22512_v23 = vcombine.low %v12526_v35, %v12536_v16  ;;  %v12545_v19 = vrot.slane %v12544_v1, 4  ;;  %v12563_v3 = vrot.slane %v12561_v28, 5  ;;  %v15538_v5 = vld [vmem:[%s18170_s29 + $0x80] sm:$0x3] }
 0x379   : > { %v12569_v47 = vrot.slane %v24117_v50, 5  ;;  %v12558_v29 = vor.u32 %v12557_v6, %v12554_v48  ;;  %v12566_v18 = vrot.slane %v12564_v45, 6  ;;  %v24118_v20 = vshll.u32 %v21757_v37, 16  ;;  %16494 = vmatmul.mubr.msk.bf16.gmra.mrb[12].mxu1 %vm709_vm4, %v17856_v39  ;;  %v17858_v50 = vld [vmem:[%s18170_s29 + $0x84] sm:$0xff]  }
 0x37a   : > { %v12550_v30 = vrot.slane %v12548_v4, 4  ;;  %v12575_v51 = vshrl.u32 %v22502_v13, 16  ;;  %v24119_v52 = vcombine.low %v22379_v15, %v22398_v24  ;;  %v12549_v17 = vsel %vm18447_vm11, %v12545_v19, %v12548_v4  ;;  %16497 = vmatprep.mubr.msk.bf16.mxu1 %vm709_vm4, %v17857_v56 }
 0x37b   : > { %v12570_v59 = vrot.slane %v24118_v20, 6  ;;  %v12578_v42 = vshll.u32 %v22502_v13, 16  ;;  %v12584_v9 = vshrl.u32 %v22213_v14, 16  ;;  %v12587_v34 = vshll.u32 %v22213_v14, 16 }
 0x37c   : > { %16918 = vmatmul.mubr.msk.bf16.gmra.mrb[28].mxu0 %vm709_vm4, %v24119_v52  ;;  %v12559_v37 = vsel %vm18447_vm11, %v12550_v30, %v12558_v29  ;;  %v12567_v15 = vor.u32 %v12566_v18, %v12563_v3  ;;  %v12577_v25 = vrot.slane %v12575_v51, 5  ;;  %v24121_v28 = vshll.u32 %v21816_v54, 16  ;;  %v17859_v3 = vld [vmem:[%s18170_s29 + $0x90] sm:$0xff]  }
 0x37d   : > { %16923 = vmatprep.mubr.msk.bf16.mxu0 %vm709_vm4, %v22437_v60  ;;  %v12571_v24 = vor.u32 %v12570_v59, %v12569_v47  ;;  %v22533_v35 = vcombine.low %v12549_v17, %v12559_v37  ;;  %v12580_v41 = vrot.slane %v12578_v42, 6  ;;  %v12586_v14 = vrot.slane %v12584_v9, 5  ;;  %v22548_v59 = vld [vmem:[%s18170_s29 + $0x8c] sm:$0x3] }
 0x37e   : > { %v12589_v49 = vrot.slane %v12587_v34, 6  ;;  %v12568_v57 = vrot.slane %v12567_v15, 4  ;;  %v24120_v60 = vshrl.u32 %v21816_v54, 16  ;;  %v12593_v45 = vrot.slane %v24121_v28, 6 }
 0x37f   : > { %v12573_v1 = vrot.slane %v12571_v24, 4  ;;  %v12581_v39 = vor.u32 %v12580_v41, %v12577_v25  ;;  %v12598_v48 = vshrl.u32 %v15538_v5, 16  ;;  %v12601_v6 = vshll.u32 %v15538_v5, 16 }
 0x380   : > { %v12592_v4 = vrot.slane %v24120_v60, 5  ;;  %v12590_v16 = vor.u32 %v12589_v49, %v12586_v14  ;;  %v12572_v47 = vsel %vm18447_vm11, %v12568_v57, %v12571_v24  ;;  %v12607_v19 = vshrl.u32 %v22221_v26, 16  ;;  %v15540_v49 = vld [vmem:[%s18170_s29 + $0x98] sm:$0x3] }
 0x381   : > { %v12610_v30 = vshll.u32 %v22221_v26, 16  ;;  %v12582_v29 = vsel %vm18447_vm11, %v12573_v1, %v12581_v39  ;;  %v12600_v18 = vrot.slane %v12598_v48, 5  ;;  %v12603_v20 = vrot.slane %v12601_v6, 6  ;;  %16498 = vmatmul.mubr.msk.bf16.gmra.mrb[16].mxu1 %vm709_vm4, %v17858_v50  ;;  %v17860_v50 = vld [vmem:[%s18170_s29 + $0x9c] sm:$0xff]  }
 0x382   : > { %v12594_v56 = vor.u32 %v12593_v45, %v12592_v4  ;;  %v12591_v54 = vrot.slane %v12590_v16, 4  ;;  %v22550_v51 = vcombine.low %v12572_v47, %v12582_v29  ;;  %v12609_v17 = vrot.slane %v12607_v19, 5  ;;  %16501 = vmatprep.mubr.msk.bf16.mxu1 %vm709_vm4, %v17859_v3 }
 0x383   : > { %v12612_v42 = vrot.slane %v12610_v30, 6  ;;  %v12604_v9 = vor.u32 %v12603_v20, %v12600_v18  ;;  %v24122_v34 = vshrl.u32 %v21830_v2, 16  ;;  %v24123_v15 = vshll.u32 %v21830_v2, 16  ;;  %v17861_v30 = vld [vmem:[%s18170_s29 + $0xa8] sm:$0xff]  }
 0x384   : > { %v12596_v52 = vrot.slane %v12594_v56, 4  ;;  %16924 = vmatmul.mubr.msk.bf16.vlgmr.msra.gmra.mrb[0].mxu0 %vm709_vm4, %v22462_v62  ;;  %v12595_v26 = vsel %vm18447_vm11, %v12591_v54, %v12594_v56  ;;  %v12621_v5 = vshrl.u32 %v22548_v59, 16  ;;  %v12624_v41 = vshll.u32 %v22548_v59, 16  ;;  %v15541_v54 = vld [vmem:[%s18170_s29 + $0xa4] sm:$0x3] }
 0x385   : > { %v12615_v37 = vrot.slane %v24122_v34, 5  ;;  %v12616_v24 = vrot.slane %v24123_v15, 6  ;;  %16956 = vmatpush3.bf16.msra.mxu0 %v22423_v33  ;;  %v12613_v25 = vor.u32 %v12612_v42, %v12609_v17  ;;  %v12630_v62 = vshrl.u32 %v22251_v27, 16  ;;  %16927 = vmatprep.mubr.msk.bf16.mxu0 %vm709_vm4, %v22490_v55 }
 0x386   : > { %v12605_v2 = vsel %vm18447_vm11, %v12596_v52, %v12604_v9  ;;  %v12633_v33 = vshll.u32 %v22251_v27, 16  ;;  %v24124_v57 = vshrl.u32 %v21878_v46, 16  ;;  %v12623_v28 = vrot.slane %v12621_v5, 5  ;;  %v14736_v9 = vld [vmem:[%s18170_s29 + $0x18] sm:$0xf] }
 0x387   : > { %v12617_v14 = vor.u32 %v12616_v24, %v12615_v37  ;;  %v22574_v60 = vcombine.low %v12595_v26, %v12605_v2  ;;  %v12614_v4 = vrot.slane %v12613_v25, 4  ;;  %v12626_v45 = vrot.slane %v12624_v41, 6 }
 0x388   : > { %v12638_v1 = vrot.slane %v24124_v57, 5  ;;  %v12632_v39 = vrot.slane %v12630_v62, 5  ;;  %v12635_v16 = vrot.slane %v12633_v33, 6  ;;  %v24125_v48 = vshll.u32 %v21878_v46, 16 }
 0x389   : > { %v12619_v55 = vrot.slane %v12617_v14, 4  ;;  %v12618_v27 = vsel %vm18447_vm11, %v12614_v4, %v12617_v14  ;;  %v12627_v47 = vor.u32 %v12626_v45, %v12623_v28  ;;  %v12644_v56 = vshrl.u32 %v15540_v49, 16  ;;  %16502 = vmatmul.mubr.msk.bf16.gmra.mrb[20].mxu1 %vm709_vm4, %v17860_v50  ;;  %v14739_v4 = vld [vmem:[%s18170_s29 + $0x24] sm:$0xf] }
 0x38a   : > { %v12639_v6 = vrot.slane %v24125_v48, 6  ;;  %v12647_v19 = vshll.u32 %v15540_v49, 16  ;;  %v12636_v3 = vor.u32 %v12635_v16, %v12632_v39  ;;  %v12653_v18 = vshrl.u32 %v22258_v43, 16  ;;  %16505 = vmatprep.mubr.msk.bf16.mxu1 %vm709_vm4, %v17861_v30  ;;  %v17862_v39 = vld [vmem:[%s18170_s29 + $0xb4] sm:$0xff]  }
 0x38b   : > { %v12656_v20 = vshll.u32 %v22258_v43, 16  ;;  %v12628_v46 = vsel %vm18447_vm11, %v12619_v55, %v12627_v47  ;;  %v12646_v52 = vrot.slane %v12644_v56, 5  ;;  %v24126_v42 = vshrl.u32 %v21895_v31, 16 }
 0x38c   : > { %v12640_v29 = vor.u32 %v12639_v6, %v12638_v1  ;;  %v12649_v17 = vrot.slane %v12647_v19, 6  ;;  %16928 = vmatmul.mubr.msk.bf16.gmra.mrb[4].mxu0 %vm709_vm4, %v22512_v23  ;;  %v22592_v34 = vcombine.low %v12618_v27, %v12628_v46  ;;  %v12637_v37 = vrot.slane %v12636_v3, 4  ;;  %v24128_v6 = vld [vmem:[#allocation3_spill] sm:$0xff]  ;;  %v17863_v19 = vld [vmem:[%s18170_s29 + $0xc0] sm:$0xff]   ;;  %v24131_v46 = vld [vmem:[#allocation5_spill] sm:$0xff] }
 0x38d   : > { %v12661_v26 = vrot.slane %v24126_v42, 5  ;;  %v12655_v24 = vrot.slane %v12653_v18, 5  ;;  %16931 = vmatprep.mubr.msk.bf16.mxu0 %vm709_vm4, %v22533_v35  ;;  %v12658_v25 = vrot.slane %v12656_v20, 6  ;;  %v24127_v5 = vshll.u32 %v21895_v31, 16 }
 0x38e   : > { %v12642_v15 = vrot.slane %v12640_v29, 4  ;;  %v12650_v43 = vor.u32 %v12649_v17, %v12646_v52  ;;  %v12667_v62 = vshrl.u32 %v15541_v54, 16  ;;  %v12641_v23 = vsel %vm18447_vm11, %v12637_v37, %v12640_v29 }
 0x38f   : > { %v12662_v41 = vrot.slane %v24127_v5, 6  ;;  %v12670_v2 = vshll.u32 %v15541_v54, 16  ;;  %v5908_v14 = vshrl.u32 %v14736_v9, 16  ;;  %v5911_v49 = vshll.u32 %v14736_v9, 16  ;;  %v24133_v5 = vld [vmem:[#allocation7_spill] sm:$0xff] }
 0x390   : > { %v12651_v33 = vsel %vm18447_vm11, %v12642_v15, %v12650_v43  ;;  %v12659_v35 = vor.u32 %v12658_v25, %v12655_v24  ;;  %v12669_v1 = vrot.slane %v12667_v62, 5  ;;  %v24129_v50 = vshll.u32 %v24128_v6, 16  ;;  %v22623_v24 = vld [vmem:[%s18170_s29 + $0xb0] sm:$0x3] }
 0x391   : > { %v12663_v57 = vor.u32 %v12662_v41, %v12661_v26  ;;  %v22605_v31 = vcombine.low %v12641_v23, %v12651_v33  ;;  %v12672_v28 = vrot.slane %v12670_v2, 6  ;;  %v5910_v45 = vrot.slane %v5908_v14, 4  ;;  %16506 = vmatmul.mubr.msk.bf16.gmra.mrb[24].mxu1 %vm709_vm4, %v17862_v39 }
 0x392   : > { %v5913_v55 = vrot.slane %v5911_v49, 5  ;;  %v12660_v16 = vrot.slane %v12659_v35, 4  ;;  %v5919_v27 = vrot.slane %v24129_v50, 5  ;;  %v24130_v47 = vshrl.u32 %v24128_v6, 16  ;;  %16509 = vmatprep.mubr.msk.bf16.mxu1 %vm709_vm4, %v17863_v19  ;;  %v24136_v35 = vld [vmem:[#allocation6_spill] sm:$0xff] }
 0x393   : > { %v12665_v48 = vrot.slane %v12663_v57, 4  ;;  %v12673_v30 = vor.u32 %v12672_v28, %v12669_v1  ;;  %v5932_v29 = vshrl.u32 %v14739_v4, 16  ;;  %v5935_v54 = vshll.u32 %v14739_v4, 16 }
 0x394   : > { %v5923_v56 = vrot.slane %v24130_v47, 4  ;;  %v5914_v3 = vor.u32 %v5913_v55, %v5910_v45  ;;  %v12664_v18 = vsel %vm18447_vm11, %v12660_v16, %v12663_v57  ;;  %v24132_v52 = vshll.u32 %v24131_v46, 16  ;;  %16932 = vmatmul.mubr.msk.bf16.gmra.mrb[8].mxu0 %vm709_vm4, %v22550_v51  ;;  %v17864_v16 = vld [vmem:[%s18170_s29 + $0xcc] sm:$0xff]  }
 0x395   : > { %v12676_v42 = vshrl.u32 %v22275_v58, 16  ;;  %v12674_v26 = vsel %vm18447_vm11, %v12665_v48, %v12673_v30  ;;  %v5934_v37 = vrot.slane %v5932_v29, 4  ;;  %v5937_v15 = vrot.slane %v5935_v54, 5  ;;  %16935 = vmatprep.mubr.msk.bf16.mxu0 %vm709_vm4, %v22574_v60  ;;  %v24138_v48 = vld [vmem:[#allocation8_spill] sm:$0xff]  ;;  %v22652_v30 = vld [vmem:[%s18170_s29 + $0xbc] sm:$0x3] }
 0x396   : > { %v5924_v20 = vor.u32 %v5923_v56, %v5919_v27  ;;  %v5943_v17 = vrot.slane %v24132_v52, 5  ;;  %v5915_v9 = vrot.slane %v5914_v3, 4  ;;  %v22628_v43 = vcombine.low %v12664_v18, %v12674_v26  ;;  %v14742_v29 = vld [vmem:[%s18170_s29 + $0x30] sm:$0xf] }
 0x397   : > { %v12678_v51 = vrot.slane %v12676_v42, 5  ;;  %v5938_v2 = vor.u32 %v5937_v15, %v5934_v37  ;;  %v12679_v14 = vshll.u32 %v22275_v58, 16  ;;  %v24135_v49 = vshrl.u32 %v21936_v21, 16 }
 0x398   : > { %v5925_v25 = vrot.slane %v5924_v20, 4  ;;  %v5948_v41 = vor.u32 %v24133_v5, %v5943_v17  ;;  %v5920_v23 = vsel %vm18245_vm8, %v5915_v9, %v5919_v27  ;;  %v24137_v1 = vshll.u32 %v21936_v21, 16 }
 0x399   : > { %v12684_v33 = vrot.slane %v24135_v49, 5  ;;  %v12690_v28 = vshrl.u32 %v22623_v24, 16  ;;  %v5939_v55 = vrot.slane %v5938_v2, 4  ;;  %v12681_v39 = vrot.slane %v12679_v14, 6  ;;  %16510 = vmatmul.mubr.msk.bf16.gmra.mrb[28].mxu1 %vm709_vm4, %v17864_v16 }
 0x39a   : > { %v5930_v60 = vsel %vm18245_vm8, %v5925_v25, %v24136_v35  ;;  %v5949_v57 = vrot.slane %v5948_v41, 4  ;;  %v12685_v4 = vrot.slane %v24137_v1, 6  ;;  %v12693_v58 = vshll.u32 %v22623_v24, 16 }
 0x39b   : > { %v14785_v45 = vcombine.low %v5920_v23, %v5930_v60  ;;  %v12692_v27 = vrot.slane %v12690_v28, 5  ;;  %v12699_v47 = vshrl.u32 %v22282_v40, 16  ;;  %v5944_v21 = vsel %vm18245_vm8, %v5939_v55, %v5943_v17  ;;  %v14745_v23 = vld [vmem:[%s18170_s29 + $0x3c] sm:$0xf] }
 0x39c   : > { %v5954_v6 = vsel %vm18245_vm8, %v5949_v57, %v24138_v48  ;;  %v12686_v50 = vor.u32 %v12685_v4, %v12684_v33  ;;  %v12682_v56 = vor.u32 %v12681_v39, %v12678_v51  ;;  %v12695_v19 = vrot.slane %v12693_v58, 6  ;;  %16936 = vmatmul.mubr.msk.bf16.gmra.mrb[12].mxu0 %vm709_vm4, %v22592_v34  ;;  %v24141_v57 = vld [vmem:[#allocation12_spill] sm:$0xff]  ;;  %v18031_v39 = vld [vmem:[%s18170_s29 + $0x38] sm:$0x1] }
 0x39d   : > { %v12702_v3 = vshll.u32 %v22282_v40, 16  ;;  %v14786_v54 = vcombine.low %v5944_v21, %v5954_v6  ;;  %v12701_v20 = vrot.slane %v12699_v47, 5  ;;  %v24139_v46 = vshrl.u32 %v21954_v36, 16  ;;  %16939 = vmatprep.mubr.msk.bf16.mxu0 %vm709_vm4, %v22605_v31  ;;  %16515 = vmatprep.mubr.msk.bf16.mxu1 %vm709_vm4, %v14785_v45 }
 0x39e   : > { %v12688_v18 = vrot.slane %v12686_v50, 4  ;;  %v12683_v42 = vrot.slane %v12682_v56, 4  ;;  %v12696_v26 = vor.u32 %v12695_v19, %v12692_v27  ;;  %v24140_v9 = vshll.u32 %v21954_v36, 16  ;;  %v24144_v27 = vld [vmem:[#allocation13_spill] sm:$0xff] }
 0x39f   : > { %v12707_v52 = vrot.slane %v24139_v46, 5  ;;  %v12704_v17 = vrot.slane %v12702_v3, 6  ;;  %v12713_v40 = vshrl.u32 %v22652_v30, 16  ;;  %v12716_v15 = vshll.u32 %v22652_v30, 16 }
 0x3a0   : > { %v12708_v37 = vrot.slane %v24140_v9, 6  ;;  %v5956_v25 = vshrl.u32 %v14742_v29, 16  ;;  %v5959_v5 = vshll.u32 %v14742_v29, 16  ;;  %v12687_v34 = vsel %vm18447_vm11, %v12683_v42, %v12686_v50 }
 0x3a1   : > { %v12697_v36 = vsel %vm18447_vm11, %v12688_v18, %v12696_v26  ;;  %v12705_v41 = vor.u32 %v12704_v17, %v12701_v20  ;;  %v12715_v31 = vrot.slane %v12713_v40, 5  ;;  %v12718_v14 = vrot.slane %v12716_v15, 6  ;;  %16516 = vmatmul.mubr.msk.bf16.vlgmr.msra.gmra.mrb[0].mxu1 %vm709_vm4, %v14786_v54  ;;  %v18032_v17 = vld [vmem:[%s18170_s29 + $0x44] sm:$0x1] }
 0x3a2   : > { %v12709_v51 = vor.u32 %v12708_v37, %v12707_v52  ;;  %v15559_v2 = vcombine.low %v12687_v34, %v12697_v36  ;;  %v5958_v49 = vrot.slane %v5956_v25, 4  ;;  %v5961_v60 = vrot.slane %v5959_v5, 5  ;;  %16990 = vmatpush3.bf16.msra.mxu1 %v24104_v22  ;;  %v22697_v5 = vld [vmem:[%s18170_s29 + $0xc8] sm:$0x3] }
 0x3a3   : > { %v12706_v33 = vrot.slane %v12705_v41, 4  ;;  %v24142_v1 = vshll.u32 %v24141_v57, 16  ;;  %v12719_v28 = vor.u32 %v12718_v14, %v12715_v31  ;;  %v24143_v45 = vshrl.u32 %v24141_v57, 16 }
 0x3a4   : > { %v12711_v35 = vrot.slane %v12709_v51, 4  ;;  %v5975_v58 = vshll.u32 %v18031_v39, 16  ;;  %v5980_v16 = vshrl.u32 %v14745_v23, 16  ;;  %v5962_v6 = vor.u32 %v5961_v60, %v5958_v49  ;;  %16940 = vmatmul.mubr.msk.bf16.gmra.mrb[16].mxu0 %vm709_vm4, %v22628_v43 }
 0x3a5   : > { %v5967_v4 = vrot.slane %v24142_v1, 5  ;;  %v5971_v55 = vrot.slane %v24143_v45, 4  ;;  %v12710_v48 = vsel %vm18447_vm11, %v12706_v33, %v12709_v51  ;;  %v5983_v50 = vshll.u32 %v14745_v23, 16  ;;  %16943 = vmatprep.mubr.msk.bf16.mxu0 %vm709_vm4, %v15559_v2 }
 0x3a6   : > { %v24145_v47 = vshll.u32 %v24144_v27, 16  ;;  %v12720_v56 = vsel %vm18447_vm11, %v12711_v35, %v12719_v28  ;;  %v5977_v3 = vrot.slane %v5975_v58, 5  ;;  %v5982_v29 = vrot.slane %v5980_v16, 4  ;;  %v22714_v28 = vld [vmem:[%s18170_s29 + $0xd4] sm:$0x3] }
 0x3a7   : > { %v5972_v19 = vor.u32 %v5971_v55, %v5967_v4  ;;  %v15560_v18 = vcombine.low %v12710_v48, %v12720_v56  ;;  %v5963_v20 = vrot.slane %v5962_v6, 4  ;;  %v5985_v46 = vrot.slane %v5983_v50, 5  ;;  %v14748_v16 = vld [vmem:[%s18170_s29 + $0x48] sm:$0xf] }
 0x3a8   : > { %v5991_v21 = vrot.slane %v24145_v47, 5  ;;  %v24146_v52 = vshrl.u32 %v24144_v27, 16  ;;  %v5999_v9 = vshll.u32 %v18032_v17, 16  ;;  %v12722_v37 = vshrl.u32 %v22295_v7, 16  ;;  %v24151_v17 = vld [vmem:[#allocation17_spill] sm:$0xff] }
 0x3a9   : > { %v5973_v26 = vrot.slane %v5972_v19, 4  ;;  %v12725_v40 = vshll.u32 %v22295_v7, 16  ;;  %v5968_v43 = vsel %vm18245_vm8, %v5963_v20, %v5967_v4  ;;  %v5986_v15 = vor.u32 %v5985_v46, %v5982_v29 }
 0x3aa   : > { %v5995_v42 = vrot.slane %v24146_v52, 4  ;;  %v24147_v54 = vshrl.u32 %v21991_v12, 16  ;;  %v6001_v41 = vrot.slane %v5999_v9, 5  ;;  %v12724_v51 = vrot.slane %v12722_v37, 5 }
 0x3ab   : > { %v5978_v36 = vsel %vm18245_vm8, %v5973_v26, %v5977_v3  ;;  %v12727_v23 = vrot.slane %v12725_v40, 6  ;;  %v5987_v2 = vrot.slane %v5986_v15, 4  ;;  %v24148_v31 = vshll.u32 %v21991_v12, 16  ;;  %v14751_v40 = vld [vmem:[%s18170_s29 + $0x54] sm:$0xf] }
 0x3ac   : > { %v5996_v25 = vor.u32 %v5995_v42, %v5991_v21  ;;  %v12730_v34 = vrot.slane %v24147_v54, 5  ;;  %v14787_v7 = vcombine.low %v5968_v43, %v5978_v36  ;;  %v12736_v33 = vshrl.u32 %v22697_v5, 16  ;;  %16944 = vmatmul.mubr.msk.bf16.gmra.mrb[20].mxu0 %vm709_vm4, %v15560_v18 }
 0x3ad   : > { %v12731_v14 = vrot.slane %v24148_v31, 6  ;;  %v12728_v49 = vor.u32 %v12727_v23, %v12724_v51  ;;  %v12739_v35 = vshll.u32 %v22697_v5, 16  ;;  %v12745_v60 = vshrl.u32 %v22309_v44, 16  ;;  %v18033_v51 = vld [vmem:[%s18170_s29 + $0x50] sm:$0x1] }
 0x3ae   : > { %v5997_v22 = vrot.slane %v5996_v25, 4  ;;  %16519 = vmatprep.mubr.msk.bf16.mxu1 %vm709_vm4, %v14787_v7  ;;  %v5992_v57 = vsel %vm18245_vm8, %v5987_v2, %v5991_v21  ;;  %v12748_v12 = vshll.u32 %v22309_v44, 16  ;;  %v12738_v39 = vrot.slane %v12736_v33, 5 }
 0x3af   : > { %v12732_v4 = vor.u32 %v12731_v14, %v12730_v34  ;;  %v12729_v55 = vrot.slane %v12728_v49, 4  ;;  %v12741_v58 = vrot.slane %v12739_v35, 6  ;;  %v12747_v6 = vrot.slane %v12745_v60, 5  ;;  %v24154_v35 = vld [vmem:[#allocation18_spill] sm:$0xff] }
 0x3b0   : > { %v6002_v1 = vsel %vm18245_vm8, %v5997_v22, %v6001_v41  ;;  %v12750_v50 = vrot.slane %v12748_v12, 6  ;;  %v24149_v27 = vshrl.u32 %v22008_v8, 16  ;;  %v24150_v56 = vshll.u32 %v22008_v8, 16 }
 0x3b1   : > { %v14788_v45 = vcombine.low %v5992_v57, %v6002_v1  ;;  %v12734_v48 = vrot.slane %v12732_v4, 4  ;;  %v12733_v21 = vsel %vm18447_vm11, %v12729_v55, %v12732_v4  ;;  %v12742_v44 = vor.u32 %v12741_v58, %v12738_v39 }
 0x3b2   : > { %v12753_v47 = vrot.slane %v24149_v27, 5  ;;  %v12754_v19 = vrot.slane %v24150_v56, 6  ;;  %v12759_v3 = vshrl.u32 %v22714_v28, 16  ;;  %v12751_v29 = vor.u32 %v12750_v50, %v12747_v6 }
 0x3b3   : > { %16520 = vmatmul.mubr.msk.bf16.gmra.mrb[4].mxu1 %vm709_vm4, %v14788_v45  ;;  %v12762_v18 = vshll.u32 %v22714_v28, 16  ;;  %v6004_v20 = vshrl.u32 %v14748_v16, 16  ;;  %v6007_v46 = vshll.u32 %v14748_v16, 16  ;;  %v12743_v52 = vsel %vm18447_vm11, %v12734_v48, %v12742_v44  ;;  %v18034_v48 = vld [vmem:[%s18170_s29 + $0x5c] sm:$0x1] }
 0x3b4   : > { %v12755_v42 = vor.u32 %v12754_v19, %v12753_v47  ;;  %v12761_v26 = vrot.slane %v12759_v3, 5  ;;  %v24152_v9 = vshll.u32 %v24151_v17, 16  ;;  %v15561_v43 = vcombine.low %v12733_v21, %v12743_v52  ;;  %v22747_v47 = vld [vmem:[%s18170_s29 + $0xe0] sm:$0x3] }
 0x3b5   : > { %v12752_v8 = vrot.slane %v12751_v29, 4  ;;  %v12764_v15 = vrot.slane %v12762_v18, 6  ;;  %v6006_v25 = vrot.slane %v6004_v20, 4  ;;  %v6009_v34 = vrot.slane %v6007_v46, 5 }
 0x3b6   : > { %v6015_v37 = vrot.slane %v24152_v9, 5  ;;  %v12757_v54 = vrot.slane %v12755_v42, 4  ;;  %v24153_v36 = vshrl.u32 %v24151_v17, 16  ;;  %v6023_v23 = vshll.u32 %v18033_v51, 16  ;;  %16947 = vmatprep.mubr.msk.bf16.mxu0 %vm709_vm4, %v15561_v43 }
 0x3b7   : > { %v12756_v7 = vsel %vm18447_vm11, %v12752_v8, %v12755_v42  ;;  %v12765_v2 = vor.u32 %v12764_v15, %v12761_v26  ;;  %v6028_v22 = vshrl.u32 %v14751_v40, 16  ;;  %v6031_v31 = vshll.u32 %v14751_v40, 16  ;;  %v22768_v8 = vld [vmem:[%s18170_s29 + $0xec] sm:$0x3] }
 0x3b8   : > { %v6019_v41 = vrot.slane %v24153_v36, 4  ;;  %v6010_v14 = vor.u32 %v6009_v34, %v6006_v25  ;;  %v6025_v33 = vrot.slane %v6023_v23, 5  ;;  %v24155_v60 = vshll.u32 %v24154_v35, 16 }
 0x3b9   : > { %v12766_v1 = vsel %vm18447_vm11, %v12757_v54, %v12765_v2  ;;  %v6030_v4 = vrot.slane %v6028_v22, 4  ;;  %v6033_v12 = vrot.slane %v6031_v31, 5  ;;  %v24156_v45 = vshrl.u32 %v24154_v35, 16  ;;  %v24159_v2 = vld [vmem:[#allocation43_spill] sm:$0xff] }
 0x3ba   : > { %v6020_v49 = vor.u32 %v6019_v41, %v6015_v37  ;;  %v6039_v57 = vrot.slane %v24155_v60, 5  ;;  %v15562_v39 = vcombine.low %v12756_v7, %v12766_v1  ;;  %v6011_v58 = vrot.slane %v6010_v14, 4  ;;  %v14754_v41 = vld [vmem:[%s18170_s29 + $0x60] sm:$0xf] }
 0x3bb   : > { %v6043_v55 = vrot.slane %v24156_v45, 4  ;;  %v6047_v6 = vshll.u32 %v18034_v48, 16  ;;  %v6034_v50 = vor.u32 %v6033_v12, %v6030_v4  ;;  %v12768_v21 = vshrl.u32 %v22322_v10, 16 }
 0x3bc   : > { %v6021_v16 = vrot.slane %v6020_v49, 4  ;;  %v12771_v44 = vshll.u32 %v22322_v10, 16  ;;  %16948 = vmatmul.mubr.msk.bf16.gmra.mrb[24].mxu0 %vm709_vm4, %v15562_v39  ;;  %v6016_v56 = vsel %vm18245_vm8, %v6011_v58, %v6015_v37  ;;  %v24157_v29 = vshrl.u32 %v22045_v61, 16 }
 0x3bd   : > { %v6044_v27 = vor.u32 %v6043_v55, %v6039_v57  ;;  %v6049_v3 = vrot.slane %v6047_v6, 5  ;;  %v6035_v46 = vrot.slane %v6034_v50, 4  ;;  %v12770_v42 = vrot.slane %v12768_v21, 5  ;;  %v14757_v50 = vld [vmem:[%s18170_s29 + $0x6c] sm:$0xf] }
 0x3be   : > { %v6026_v19 = vsel %vm18245_vm8, %v6021_v16, %v6025_v33  ;;  %v12776_v18 = vrot.slane %v24157_v29, 5  ;;  %v12773_v26 = vrot.slane %v12771_v44, 6  ;;  %v24158_v10 = vshll.u32 %v22045_v61, 16 }
 0x3bf   : > { %v14789_v20 = vcombine.low %v6016_v56, %v6026_v19  ;;  %v6045_v52 = vrot.slane %v6044_v27, 4  ;;  %v12782_v9 = vshrl.u32 %v22747_v47, 16  ;;  %v12785_v37 = vshll.u32 %v22747_v47, 16  ;;  %v24162_v56 = vld [vmem:[#allocation21_spill] sm:$0xff] }
 0x3c0   : > { %v12777_v17 = vrot.slane %v24158_v10, 6  ;;  %v6040_v40 = vsel %vm18245_vm8, %v6035_v46, %v6039_v57  ;;  %v12791_v15 = vshrl.u32 %v22332_v38, 16  ;;  %v12794_v25 = vshll.u32 %v22332_v38, 16 }
 0x3c1   : > { %16523 = vmatprep.mubr.msk.bf16.mxu1 %vm709_vm4, %v14789_v20  ;;  %v6050_v43 = vsel %vm18245_vm8, %v6045_v52, %v6049_v3  ;;  %v12774_v54 = vor.u32 %v12773_v26, %v12770_v42  ;;  %v12784_v36 = vrot.slane %v12782_v9, 5  ;;  %v12787_v51 = vrot.slane %v12785_v37, 6  ;;  %v18035_v52 = vld [vmem:[%s18170_s29 + $0x68] sm:$0x1]  ;;  %v24165_v9 = vld [vmem:[#allocation22_spill] sm:$0xff] }
 0x3c2   : > { %v14790_v61 = vcombine.low %v6040_v40, %v6050_v43  ;;  %v12778_v34 = vor.u32 %v12777_v17, %v12776_v18  ;;  %v12793_v23 = vrot.slane %v12791_v15, 5  ;;  %v12796_v7 = vrot.slane %v12794_v25, 6  ;;  %v15581_v43 = vld [vmem:[%s18170_s29 + $0x30] sm:$0xc] }
 0x3c3   : > { %v24160_v22 = vshrl.u32 %v24159_v2, 16  ;;  %v12775_v14 = vrot.slane %v12774_v54, 4  ;;  %v24161_v33 = vshll.u32 %v24159_v2, 16  ;;  %v12805_v38 = vshrl.u32 %v22768_v8, 16 }
 0x3c4   : > { %16524 = vmatmul.mubr.msk.bf16.gmra.mrb[8].mxu1 %vm709_vm4, %v14790_v61  ;;  %v12780_v49 = vrot.slane %v12778_v34, 4  ;;  %v12788_v60 = vor.u32 %v12787_v51, %v12784_v36  ;;  %v12797_v57 = vor.u32 %v12796_v7, %v12793_v23  ;;  %v12808_v1 = vshll.u32 %v22768_v8, 16  ;;  %v15582_v7 = vld [vmem:[%s18170_s29 + $0x3c] sm:$0xc] }
 0x3c5   : > { %v12799_v31 = vrot.slane %v24160_v22, 5  ;;  %v12800_v35 = vrot.slane %v24161_v33, 6  ;;  %v6052_v4 = vshrl.u32 %v14754_v41, 16  ;;  %v12779_v12 = vsel %vm18447_vm11, %v12775_v14, %v12778_v34 }
 0x3c6   : > { %v12807_v55 = vrot.slane %v12805_v38, 5  ;;  %v6055_v39 = vshll.u32 %v14754_v41, 16  ;;  %v12789_v58 = vsel %vm18447_vm11, %v12780_v49, %v12788_v60  ;;  %v12798_v16 = vrot.slane %v12797_v57, 4  ;;  %v24168_v60 = vld [vmem:[#allocation9_spill] sm:$0xff] }
 0x3c7   : > { %v12801_v45 = vor.u32 %v12800_v35, %v12799_v31  ;;  %v12810_v48 = vrot.slane %v12808_v1, 6  ;;  %v6054_v6 = vrot.slane %v6052_v4, 4  ;;  %v15563_v27 = vcombine.low %v12779_v12, %v12789_v58  ;;  %v18036_v31 = vld [vmem:[%s18170_s29 + $0x74] sm:$0x1]  ;;  %v14760_v1 = vld [vmem:[%s18170_s29 + $0x78] sm:$0xf] }
 0x3c8   : > { %v6057_v44 = vrot.slane %v6055_v39, 5  ;;  %v24163_v19 = vshll.u32 %v24162_v56, 16  ;;  %v24164_v20 = vshrl.u32 %v24162_v56, 16  ;;  %v6071_v42 = vshll.u32 %v18035_v52, 16  ;;  %v18037_v35 = vld [vmem:[%s18170_s29 + $0x34] sm:$0xf] }
 0x3c9   : > { %v12803_v21 = vrot.slane %v12801_v45, 4  ;;  %v12802_v29 = vsel %vm18447_vm11, %v12798_v16, %v12801_v45  ;;  %v12811_v18 = vor.u32 %v12810_v48, %v12807_v55  ;;  %16951 = vmatprep.mubr.msk.bf16.mxu0 %vm709_vm4, %v15563_v27  ;;  %v6076_v10 = vshrl.u32 %v14757_v50, 16  ;;  %v18038_v27 = vld [vmem:[%s18170_s29 + $0x40] sm:$0xf] }
 0x3ca   : > { %v6063_v3 = vrot.slane %v24163_v19, 5  ;;  %v6067_v46 = vrot.slane %v24164_v20, 4  ;;  %v6058_v26 = vor.u32 %v6057_v44, %v6054_v6  ;;  %v6079_v17 = vshll.u32 %v14757_v50, 16  ;;  %v22817_v56 = vld [vmem:[%s18170_s29 + $0x80] sm:$0x1] }
 0x3cb   : > { %v24166_v37 = vshll.u32 %v24165_v9, 16  ;;  %v12812_v15 = vsel %vm18447_vm11, %v12803_v21, %v12811_v18  ;;  %v6073_v61 = vrot.slane %v6071_v42, 5  ;;  %v24167_v54 = vshrl.u32 %v24165_v9, 16  ;;  %v24170_v20 = vld [vmem:[#allocation30_spill] sm:$0xff] }
 0x3cc   : > { %v6068_v25 = vor.u32 %v6067_v46, %v6063_v3  ;;  %v15564_v36 = vcombine.low %v12802_v29, %v12812_v15  ;;  %v6059_v41 = vrot.slane %v6058_v26, 4  ;;  %v6078_v51 = vrot.slane %v6076_v10, 4  ;;  %v14763_v42 = vld [vmem:[%s18170_s29 + $0x84] sm:$0xf] }
 0x3cd   : > { %v6087_v40 = vrot.slane %v24166_v37, 5  ;;  %v6091_v34 = vrot.slane %v24167_v54, 4  ;;  %v6081_v23 = vrot.slane %v6079_v17, 5  ;;  %v6095_v14 = vshll.u32 %v18036_v31, 16 }
 0x3ce   : > { %v6069_v2 = vrot.slane %v6068_v25, 4  ;;  %v15597_v49 = vrot.slane %v15581_v43, 10  ;;  %16952 = vmatmul.mubr.msk.bf16.gmra.mrb[28].mxu0 %vm709_vm4, %v15564_v36  ;;  %v6064_v32 = vsel %vm18245_vm8, %v6059_v41, %v6063_v3  ;;  %v13157_v38 = vrot.slane %v18037_v35, 6  ;;  %v22833_v25 = vld [vmem:[%s18170_s29 + $0x8c] sm:$0x1] }
 0x3cf   : > { %v6092_v22 = vor.u32 %v6091_v34, %v6087_v40  ;;  %v6082_v33 = vor.u32 %v6081_v23, %v6078_v51  ;;  %v13160_v57 = vrot.slane %v24168_v60, 6  ;;  %v6097_v45 = vrot.slane %v6095_v14, 5  ;;  %v24173_v36 = vld [vmem:[#allocation31_spill] sm:$0xff] }
 0x3d0   : > { %v6074_v4 = vsel %vm18245_vm8, %v6069_v2, %v6073_v61  ;;  %v15598_v55 = vrot.slane %v15582_v7, 10  ;;  %v13158_v48 = vsel %vm18920_vm13, %v15597_v49, %v13157_v38  ;;  %v13159_v6 = vrot.slane %v13157_v38, 4  ;;  %v15583_v23 = vld [vmem:[%s18170_s29 + $0x48] sm:$0xc]  ;;  %v15584_v38 = vld [vmem:[%s18170_s29 + $0x54] sm:$0xc] }
 0x3d1   : > { %v6093_v12 = vrot.slane %v6092_v22, 4  ;;  %v14791_v39 = vcombine.low %v6064_v32, %v6074_v4  ;;  %v6083_v58 = vrot.slane %v6082_v33, 4  ;;  %v13164_v21 = vrot.slane %v18038_v27, 6 }
 0x3d2   : > { %v13167_v44 = vrot.slane %v22402_v11, 6  ;;  %v6100_v19 = vshrl.u32 %v14760_v1, 16  ;;  %v13161_v29 = vsel %vm18920_vm13, %v13159_v6, %v13160_v57  ;;  %v6103_v18 = vshll.u32 %v14760_v1, 16 }
 0x3d3   : > { %v6098_v50 = vsel %vm18245_vm8, %v6093_v12, %v6097_v45  ;;  %16527 = vmatprep.mubr.msk.bf16.mxu1 %vm709_vm4, %v14791_v39  ;;  %v6088_v3 = vsel %vm18245_vm8, %v6083_v58, %v6087_v40  ;;  %v24171_v46 = vshll.u32 %v24170_v20, 16  ;;  %v15614_v11 = vcombine.low %v13158_v48, %v13161_v29  ;;  %v18039_v39 = vld [vmem:[%s18170_s29 + $0x4c] sm:$0xf]  ;;  %v14766_v48 = vld [vmem:[%s18170_s29 + $0x90] sm:$0xf] }
 0x3d4   : > { %v14792_v26 = vcombine.low %v6088_v3, %v6098_v50  ;;  %v13165_v10 = vsel %vm18920_vm13, %v15598_v55, %v13164_v21  ;;  %v13166_v17 = vrot.slane %v13164_v21, 4  ;;  %v6102_v9 = vrot.slane %v6100_v19, 4 }
 0x3d5   : > { %v6111_v52 = vrot.slane %v24171_v46, 5  ;;  %v6105_v37 = vrot.slane %v6103_v18, 5  ;;  %v24172_v43 = vshrl.u32 %v24170_v20, 16  ;;  %v6119_v15 = vshll.u32 %v22817_v56, 16  ;;  %16957 = vmatprep.mubr.msk.bf16.mxu0 %vm709_vm4, %v15614_v11  ;;  %v18040_v20 = vld [vmem:[%s18170_s29 + $0x58] sm:$0xf] }
 0x3d6   : > { %16528 = vmatmul.mubr.msk.bf16.gmra.mrb[12].mxu1 %vm709_vm4, %v14792_v26  ;;  %v13168_v61 = vsel %vm18920_vm13, %v13166_v17, %v13167_v44  ;;  %v6124_v54 = vshrl.u32 %v14763_v42, 16  ;;  %v6127_v34 = vshll.u32 %v14763_v42, 16  ;;  %v24174_v41 = vshll.u32 %v24173_v36, 16  ;;  %v22865_v11 = vld [vmem:[%s18170_s29 + $0x98] sm:$0x1] }
 0x3d7   : > { %v6115_v40 = vrot.slane %v24172_v43, 4  ;;  %v15615_v7 = vcombine.low %v13165_v10, %v13168_v61  ;;  %v6106_v2 = vor.u32 %v6105_v37, %v6102_v9  ;;  %v6121_v31 = vrot.slane %v6119_v15, 5  ;;  %v24176_v17 = vld [vmem:[#allocation33_spill] sm:$0xff] }
 0x3d8   : > { %v6135_v51 = vrot.slane %v24174_v41, 5  ;;  %v6126_v14 = vrot.slane %v6124_v54, 4  ;;  %v6129_v49 = vrot.slane %v6127_v34, 5  ;;  %v24175_v32 = vshrl.u32 %v24173_v36, 16  ;;  %v14769_v43 = vld [vmem:[%s18170_s29 + $0x9c] sm:$0xf] }
 0x3d9   : > { %v6116_v22 = vor.u32 %v6115_v40, %v6111_v52  ;;  %v6143_v35 = vshll.u32 %v22833_v25, 16  ;;  %16958 = vmatmul.mubr.msk.bf16.vlgmr.msra.gmra.mrb[0].mxu0 %vm709_vm4, %v15615_v7  ;;  %v6107_v60 = vrot.slane %v6106_v2, 4  ;;  %v6717_v1 = vrot.slane %v22833_v25, 5 }
 0x3da   : > { %v6139_v33 = vrot.slane %v24175_v32, 4  ;;  %v15599_v4 = vrot.slane %v15583_v23, 10  ;;  %v6130_v12 = vor.u32 %v6129_v49, %v6126_v14  ;;  %v13171_v58 = vrot.slane %v18039_v39, 6  ;;  %v22877_v23 = vld [vmem:[%s18170_s29 + $0xa4] sm:$0x1] }
 0x3db   : > { %v6117_v57 = vrot.slane %v6116_v22, 4  ;;  %v6145_v55 = vrot.slane %v6143_v35, 5  ;;  %v6112_v6 = vsel %vm18245_vm8, %v6107_v60, %v6111_v52  ;;  %v13174_v27 = vrot.slane %v22431_v0, 6  ;;  %v15585_v14 = vld [vmem:[%s18170_s29 + $0x60] sm:$0xc] }
 0x3dc   : > { %v6140_v45 = vor.u32 %v6139_v33, %v6135_v51  ;;  %v15600_v21 = vrot.slane %v15584_v38, 10  ;;  %v6131_v19 = vrot.slane %v6130_v12, 4  ;;  %v13172_v29 = vsel %vm18920_vm13, %v15599_v4, %v13171_v58  ;;  %v24179_v35 = vld [vmem:[#allocation34_spill] sm:$0xff]  ;;  %v15586_v39 = vld [vmem:[%s18170_s29 + $0x6c] sm:$0xc] }
 0x3dd   : > { %v6122_v50 = vsel %vm18245_vm8, %v6117_v57, %v6121_v31  ;;  %v13173_v18 = vrot.slane %v13171_v58, 4  ;;  %v13178_v46 = vrot.slane %v18040_v20, 6  ;;  %v13181_v42 = vrot.slane %v22459_v63, 6 }
 0x3de   : > { %v14793_v44 = vcombine.low %v6112_v6, %v6122_v50  ;;  %v6141_v3 = vrot.slane %v6140_v45, 4  ;;  %v6148_v52 = vshrl.u32 %v14766_v48, 16  ;;  %v6136_v0 = vsel %vm18245_vm8, %v6131_v19, %v6135_v51 }
 0x3df   : > { %v6151_v10 = vshll.u32 %v14766_v48, 16  ;;  %v24177_v9 = vshll.u32 %v24176_v17, 16  ;;  %v13175_v63 = vsel %vm18920_vm13, %v13173_v18, %v13174_v27  ;;  %v13179_v15 = vsel %vm18920_vm13, %v15600_v21, %v13178_v46 }
 0x3e0   : > { %16531 = vmatprep.mubr.msk.bf16.mxu1 %vm709_vm4, %v14793_v44  ;;  %v6146_v26 = vsel %vm18245_vm8, %v6141_v3, %v6145_v55  ;;  %v13180_v61 = vrot.slane %v13178_v46, 4  ;;  %v15616_v54 = vcombine.low %v13172_v29, %v13175_v63  ;;  %v6150_v34 = vrot.slane %v6148_v52, 4  ;;  %v18041_v44 = vld [vmem:[%s18170_s29 + $0x64] sm:$0xf]  ;;  %v14772_v29 = vld [vmem:[%s18170_s29 + $0xa8] sm:$0xf] }
 0x3e1   : > { %v6159_v37 = vrot.slane %v24177_v9, 5  ;;  %v14794_v40 = vcombine.low %v6136_v0, %v6146_v26  ;;  %v6153_v36 = vrot.slane %v6151_v10, 5  ;;  %v24178_v41 = vshrl.u32 %v24176_v17, 16  ;;  %v18042_v9 = vld [vmem:[%s18170_s29 + $0x70] sm:$0xf] }
 0x3e2   : > { %v13182_v7 = vsel %vm18920_vm13, %v13180_v61, %v13181_v42  ;;  %v6167_v2 = vshll.u32 %v22865_v11, 16  ;;  %v6172_v22 = vshrl.u32 %v14769_v43, 16  ;;  %v6175_v31 = vshll.u32 %v14769_v43, 16  ;;  %16961 = vmatprep.mubr.msk.bf16.mxu0 %vm709_vm4, %v15616_v54  ;;  %v24182_v54 = vld [vmem:[#allocation35_spill] sm:$0xff] }
 0x3e3   : > { %v6163_v51 = vrot.slane %v24178_v41, 4  ;;  %16532 = vmatmul.mubr.msk.bf16.gmra.mrb[16].mxu1 %vm709_vm4, %v14794_v40  ;;  %v15617_v49 = vcombine.low %v13179_v15, %v13182_v7  ;;  %v6154_v32 = vor.u32 %v6153_v36, %v6150_v34  ;;  %v24180_v38 = vshll.u32 %v24179_v35, 16  ;;  %v22909_v15 = vld [vmem:[%s18170_s29 + $0xb0] sm:$0x1]  ;;  %v14775_v41 = vld [vmem:[%s18170_s29 + $0xb4] sm:$0xf] }
 0x3e4   : > { %v6169_v57 = vrot.slane %v6167_v2, 5  ;;  %v6174_v4 = vrot.slane %v6172_v22, 4  ;;  %v6177_v12 = vrot.slane %v6175_v31, 5  ;;  %v24181_v45 = vshrl.u32 %v24179_v35, 16 }
 0x3e5   : > { %v6164_v33 = vor.u32 %v6163_v51, %v6159_v37  ;;  %v6183_v60 = vrot.slane %v24180_v38, 5  ;;  %16962 = vmatmul.mubr.msk.bf16.gmra.mrb[4].mxu0 %vm709_vm4, %v15617_v49  ;;  %v6155_v58 = vrot.slane %v6154_v32, 4  ;;  %v6191_v6 = vshll.u32 %v22877_v23, 16 }
 0x3e6   : > { %v6187_v55 = vrot.slane %v24181_v45, 4  ;;  %v15601_v50 = vrot.slane %v15585_v14, 10  ;;  %v6178_v27 = vor.u32 %v6177_v12, %v6174_v4  ;;  %v13185_v19 = vrot.slane %v18041_v44, 6  ;;  %v15587_v4 = vld [vmem:[%s18170_s29 + $0x78] sm:$0xc] }
 0x3e7   : > { %v6165_v48 = vrot.slane %v6164_v33, 4  ;;  %v13188_v3 = vrot.slane %v22483_v53, 6  ;;  %v6160_v18 = vsel %vm18245_vm8, %v6155_v58, %v6159_v37  ;;  %v6193_v46 = vrot.slane %v6191_v6, 5  ;;  %v22921_v33 = vld [vmem:[%s18170_s29 + $0xbc] sm:$0x1] }
 0x3e8   : > { %v6188_v21 = vor.u32 %v6187_v55, %v6183_v60  ;;  %v15602_v42 = vrot.slane %v15586_v39, 10  ;;  %v6179_v0 = vrot.slane %v6178_v27, 4  ;;  %v13186_v10 = vsel %vm18920_vm13, %v15601_v50, %v13185_v19  ;;  %v24185_v39 = vld [vmem:[#allocation36_spill] sm:$0xff] }
 0x3e9   : > { %v6170_v20 = vsel %vm18245_vm8, %v6165_v48, %v6169_v57  ;;  %v13187_v17 = vrot.slane %v13185_v19, 4  ;;  %v13192_v53 = vrot.slane %v18042_v9, 6  ;;  %v13195_v43 = vrot.slane %v22502_v13, 6  ;;  %v15588_v19 = vld [vmem:[%s18170_s29 + $0x84] sm:$0xc] }
 0x3ea   : > { %v14795_v52 = vcombine.low %v6160_v18, %v6170_v20  ;;  %v6189_v26 = vrot.slane %v6188_v21, 4  ;;  %v6196_v40 = vshrl.u32 %v14772_v29, 16  ;;  %v6184_v37 = vsel %vm18245_vm8, %v6179_v0, %v6183_v60 }
 0x3eb   : > { %v6199_v61 = vshll.u32 %v14772_v29, 16  ;;  %v24183_v34 = vshll.u32 %v24182_v54, 16  ;;  %v13189_v13 = vsel %vm18920_vm13, %v13187_v17, %v13188_v3  ;;  %v13193_v7 = vsel %vm18920_vm13, %v15602_v42, %v13192_v53  ;;  %v14778_v17 = vld [vmem:[%s18170_s29 + $0xc0] sm:$0xf] }
 0x3ec   : > { %16535 = vmatprep.mubr.msk.bf16.mxu1 %vm709_vm4, %v14795_v52  ;;  %v6194_v63 = vsel %vm18245_vm8, %v6189_v26, %v6193_v46  ;;  %v13194_v2 = vrot.slane %v13192_v53, 4  ;;  %v15618_v22 = vcombine.low %v13186_v10, %v13189_v13  ;;  %v6198_v31 = vrot.slane %v6196_v40, 4  ;;  %v18043_v52 = vld [vmem:[%s18170_s29 + $0x7c] sm:$0xf]  ;;  %v18044_v26 = vld [vmem:[%s18170_s29 + $0x80] sm:$0x3] }
 0x3ed   : > { %v6207_v36 = vrot.slane %v24183_v34, 5  ;;  %v14796_v51 = vcombine.low %v6184_v37, %v6194_v63  ;;  %v6201_v14 = vrot.slane %v6199_v61, 5  ;;  %v24184_v49 = vshrl.u32 %v24182_v54, 16 }
 0x3ee   : > { %v13196_v35 = vsel %vm18920_vm13, %v13194_v2, %v13195_v43  ;;  %v6215_v38 = vshll.u32 %v22909_v15, 16  ;;  %v6220_v60 = vshrl.u32 %v14775_v41, 16  ;;  %v6223_v57 = vshll.u32 %v14775_v41, 16  ;;  %16965 = vmatprep.mubr.msk.bf16.mxu0 %vm709_vm4, %v15618_v22  ;;  %v18045_v41 = vld [vmem:[%s18170_s29 + $0x88] sm:$0xf] }
 0x3ef   : > { %v6211_v32 = vrot.slane %v24184_v49, 4  ;;  %16536 = vmatmul.mubr.msk.bf16.gmra.mrb[20].mxu1 %vm709_vm4, %v14796_v51  ;;  %v15619_v12 = vcombine.low %v13193_v7, %v13196_v35  ;;  %v6202_v45 = vor.u32 %v6201_v14, %v6198_v31  ;;  %v24186_v58 = vshll.u32 %v24185_v39, 16  ;;  %v22953_v22 = vld [vmem:[%s18170_s29 + $0xc8] sm:$0x1]  ;;  %v24188_v14 = vld [vmem:[#allocation37_spill] sm:$0xff] }
 0x3f0   : > { %v6217_v6 = vrot.slane %v6215_v38, 5  ;;  %v6222_v50 = vrot.slane %v6220_v60, 4  ;;  %v6225_v27 = vrot.slane %v6223_v57, 5  ;;  %v24187_v21 = vshrl.u32 %v24185_v39, 16  ;;  %v14781_v35 = vld [vmem:[%s18170_s29 + $0xcc] sm:$0xf] }
 0x3f1   : > { %v6212_v55 = vor.u32 %v6211_v32, %v6207_v36  ;;  %v6231_v48 = vrot.slane %v24186_v58, 5  ;;  %16966 = vmatmul.mubr.msk.bf16.gmra.mrb[8].mxu0 %vm709_vm4, %v15619_v12  ;;  %v6203_v3 = vrot.slane %v6202_v45, 4  ;;  %v6239_v18 = vshll.u32 %v22921_v33, 16  ;;  %v22965_v58 = vld [vmem:[%s18170_s29 + $0xd4] sm:$0x1] }
 0x3f2   : > { %v6235_v44 = vrot.slane %v24187_v21, 4  ;;  %v15603_v20 = vrot.slane %v15587_v4, 10  ;;  %v6226_v46 = vor.u32 %v6225_v27, %v6222_v50  ;;  %v13199_v0 = vrot.slane %v18043_v52, 6  ;;  %v15589_v21 = vld [vmem:[%s18170_s29 + $0x90] sm:$0xc] }
 0x3f3   : > { %v6213_v29 = vrot.slane %v6212_v55, 4  ;;  %v13202_v10 = vrot.slane %v18044_v26, 6  ;;  %v6208_v9 = vsel %vm18245_vm8, %v6203_v3, %v6207_v36  ;;  %v6241_v43 = vrot.slane %v6239_v18, 5 }
 0x3f4   : > { %v6236_v42 = vor.u32 %v6235_v44, %v6231_v48  ;;  %v15604_v40 = vrot.slane %v15588_v19, 10  ;;  %v6227_v63 = vrot.slane %v6226_v46, 4  ;;  %v13200_v54 = vsel %vm18920_vm13, %v15603_v20, %v13199_v0 }
 0x3f5   : > { %v6218_v53 = vsel %vm18245_vm8, %v6213_v29, %v6217_v6  ;;  %v13201_v34 = vrot.slane %v13199_v0, 4  ;;  %v13206_v51 = vrot.slane %v18045_v41, 6  ;;  %v13209_v13 = vrot.slane %v22548_v59, 6  ;;  %v24191_v29 = vld [vmem:[#allocation38_spill] sm:$0xff] }
 0x3f6   : > { %v14797_v37 = vcombine.low %v6208_v9, %v6218_v53  ;;  %v6237_v61 = vrot.slane %v6236_v42, 4  ;;  %v6244_v7 = vshrl.u32 %v14778_v17, 16  ;;  %v6232_v36 = vsel %vm18245_vm8, %v6227_v63, %v6231_v48  ;;  %v18046_v63 = vld [vmem:[%s18170_s29 + $0x94] sm:$0xf] }
 0x3f7   : > { %v6247_v31 = vshll.u32 %v14778_v17, 16  ;;  %v24189_v49 = vshll.u32 %v24188_v14, 16  ;;  %v13203_v59 = vsel %vm18920_vm13, %v13201_v34, %v13202_v10  ;;  %v13207_v60 = vsel %vm18920_vm13, %v15604_v40, %v13206_v51  ;;  %v15590_v10 = vld [vmem:[%s18170_s29 + $0x9c] sm:$0xc] }
 0x3f8   : > { %16539 = vmatprep.mubr.msk.bf16.mxu1 %vm709_vm4, %v14797_v37  ;;  %v6242_v2 = vsel %vm18245_vm8, %v6237_v61, %v6241_v43  ;;  %v13208_v57 = vrot.slane %v13206_v51, 4  ;;  %v15620_v4 = vcombine.low %v13200_v54, %v13203_v59  ;;  %v6246_v12 = vrot.slane %v6244_v7, 4  ;;  %v18047_v54 = vld [vmem:[%s18170_s29 + $0x98] sm:$0x3]  ;;  %v18049_v59 = vld [vmem:[%s18170_s29 + $0xa4] sm:$0x3] }
 0x3f9   : > { %v6255_v32 = vrot.slane %v24189_v49, 5  ;;  %v14798_v38 = vcombine.low %v6232_v36, %v6242_v2  ;;  %v6249_v45 = vrot.slane %v6247_v31, 5  ;;  %v24190_v55 = vshrl.u32 %v24188_v14, 16 }
 0x3fa   : > { %v13210_v48 = vsel %vm18920_vm13, %v13208_v57, %v13209_v13  ;;  %v6263_v6 = vshll.u32 %v22953_v22, 16  ;;  %v6268_v50 = vshrl.u32 %v14781_v35, 16  ;;  %v6271_v27 = vshll.u32 %v14781_v35, 16  ;;  %16969 = vmatprep.mubr.msk.bf16.mxu0 %vm709_vm4, %v15620_v4  ;;  %v18048_v35 = vld [vmem:[%s18170_s29 + $0xa0] sm:$0xf] }
 0x3fb   : > { %v6259_v39 = vrot.slane %v24190_v55, 4  ;;  %16540 = vmatmul.mubr.msk.bf16.gmra.mrb[24].mxu1 %vm709_vm4, %v14798_v38  ;;  %v15621_v44 = vcombine.low %v13207_v60, %v13210_v48  ;;  %v6250_v19 = vor.u32 %v6249_v45, %v6246_v12  ;;  %v24192_v18 = vshll.u32 %v24191_v29, 16  ;;  %v18050_v57 = vld [vmem:[%s18170_s29 + $0x78] sm:$0xe]  ;;  %v18051_v45 = vld [vmem:[%s18170_s29 + $0x7c] sm:$0xf] }
 0x3fc   : > { %v6265_v46 = vrot.slane %v6263_v6, 5  ;;  %v6270_v42 = vrot.slane %v6268_v50, 4  ;;  %v6273_v52 = vrot.slane %v6271_v27, 5  ;;  %v24193_v0 = vshrl.u32 %v24191_v29, 16  ;;  %v15591_v48 = vld [vmem:[%s18170_s29 + $0xa8] sm:$0xc] }
 0x3fd   : > { %v6260_v3 = vor.u32 %v6259_v39, %v6255_v32  ;;  %v6279_v20 = vrot.slane %v24192_v18, 5  ;;  %16970 = vmatmul.mubr.msk.bf16.gmra.mrb[12].mxu0 %vm709_vm4, %v15621_v44  ;;  %v6251_v17 = vrot.slane %v6250_v19, 4  ;;  %v6287_v53 = vshll.u32 %v22965_v58, 16  ;;  %v18052_v29 = vld [vmem:[%s18170_s29 + $0x88] sm:$0xf] }
 0x3fe   : > { %v6283_v26 = vrot.slane %v24193_v0, 4  ;;  %v15605_v43 = vrot.slane %v15589_v21, 10  ;;  %v6274_v40 = vor.u32 %v6273_v52, %v6270_v42  ;;  %v13213_v61 = vrot.slane %v18046_v63, 6  ;;  %v18053_v42 = vld [vmem:[%s18170_s29 + $0xac] sm:$0xf] }
 0x3ff   : > { %v6261_v9 = vrot.slane %v6260_v3, 4  ;;  %v13216_v34 = vrot.slane %v18047_v54, 6  ;;  %v6256_v41 = vsel %vm18245_vm8, %v6251_v17, %v6255_v32  ;;  %v6289_v13 = vrot.slane %v6287_v53, 5  ;;  %v24195_v17 = vld [vmem:[#allocation32_spill] sm:$0xff]  ;;  %v18054_v54 = vld [vmem:[%s18170_s29 + $0xb8] sm:$0xf] }
 0x400   : > { %v6284_v37 = vor.u32 %v6283_v26, %v6279_v20  ;;  %v15606_v7 = vrot.slane %v15590_v10, 10  ;;  %v6275_v2 = vrot.slane %v6274_v40, 4  ;;  %v13214_v14 = vsel %vm18920_vm13, %v15605_v43, %v13213_v61 }
 0x401   : > { %v6266_v51 = vsel %vm18245_vm8, %v6261_v9, %v6265_v46  ;;  %v13215_v49 = vrot.slane %v13213_v61, 4  ;;  %v13220_v38 = vrot.slane %v18048_v35, 6  ;;  %v13223_v60 = vrot.slane %v18049_v59, 6  ;;  %v18057_v35 = vld [vmem:[%s18170_s29 + $0x9c] sm:$0xe] }
 0x402   : > { %v14799_v36 = vcombine.low %v6256_v41, %v6266_v51  ;;  %v6285_v31 = vrot.slane %v6284_v37, 4  ;;  %v14841_v32 = vrot.slane %v18050_v57, 9  ;;  %v6280_v4 = vsel %vm18245_vm8, %v6275_v2, %v6279_v20  ;;  %v15592_v20 = vld [vmem:[%s18170_s29 + $0xb4] sm:$0xc]  ;;  %v18055_v51 = vld [vmem:[%s18170_s29 + $0x90] sm:$0xe] }
 0x403   : > { %v6707_v55 = vrot.slane %v18051_v45, 5  ;;  %v6710_v39 = vrot.slane %v22817_v56, 5  ;;  %v13217_v50 = vsel %vm18920_vm13, %v13215_v49, %v13216_v34  ;;  %v13221_v27 = vsel %vm18920_vm13, %v15606_v7, %v13220_v38  ;;  %v18056_v2 = vld [vmem:[%s18170_s29 + $0x94] sm:$0xf]  ;;  %v18058_v57 = vld [vmem:[%s18170_s29 + $0xa0] sm:$0xf] }
 0x404   : > { %16543 = vmatprep.mubr.msk.bf16.mxu1 %vm709_vm4, %v14799_v36  ;;  %v6290_v12 = vsel %vm18245_vm8, %v6285_v31, %v6289_v13  ;;  %v13222_v21 = vrot.slane %v13220_v38, 4  ;;  %v15622_v44 = vcombine.low %v13214_v14, %v13217_v50  ;;  %v6714_v18 = vrot.slane %v18052_v29, 5  ;;  %v18060_v29 = vld [vmem:[%s18170_s29 + $0xd0] sm:$0xf] }
 0x405   : > { %v14800_v6 = vcombine.low %v6280_v4, %v6290_v12  ;;  %v6708_v3 = vsel %vm18182_vm5, %v14841_v32, %v6707_v55  ;;  %v6709_v62 = vrot.slane %v6707_v55, 4  ;;  %v15607_v46 = vrot.slane %v15591_v48, 10  ;;  %v15594_v12 = vld [vmem:[%s18170_s29 + $0xcc] sm:$0xc]  ;;  %v18059_v55 = vld [vmem:[%s18170_s29 + $0xc4] sm:$0xf] }
 0x406   : > { %v13224_v56 = vsel %vm18920_vm13, %v13222_v21, %v13223_v60  ;;  %v13227_v52 = vrot.slane %v18053_v42, 6  ;;  %v13230_v0 = vrot.slane %v22623_v24, 6  ;;  %16973 = vmatprep.mubr.msk.bf16.mxu0 %vm709_vm4, %v15622_v44  ;;  %v24196_v9 = vrot.slane %v24195_v17, 9  ;;  %v15595_v17 = vld [vmem:[%s18170_s29 + $0xd8] sm:$0xc] }
 0x407   : > { %16544 = vmatmul.mubr.msk.bf16.gmra.mrb[28].mxu1 %vm709_vm4, %v14800_v6  ;;  %v15623_v26 = vcombine.low %v13221_v27, %v13224_v56  ;;  %v6711_v10 = vsel %vm18182_vm5, %v6709_v62, %v6710_v39  ;;  %v6716_v43 = vrot.slane %v6714_v18, 4  ;;  %v15608_v24 = vrot.slane %v15592_v20, 10  ;;  %v18061_v56 = vld [vmem:[%s18170_s29 + $0xa8] sm:$0xe] }
 0x408   : > { %v6715_v53 = vsel %vm18182_vm5, %v24196_v9, %v6714_v18  ;;  %v14858_v40 = vcombine.low %v6708_v3, %v6711_v10  ;;  %v13228_v37 = vsel %vm18920_vm13, %v15607_v46, %v13227_v52  ;;  %v13229_v63 = vrot.slane %v13227_v52, 4 }
 0x409   : > { %16974 = vmatmul.mubr.msk.bf16.gmra.mrb[16].mxu0 %vm709_vm4, %v15623_v26  ;;  %v6718_v61 = vsel %vm18182_vm5, %v6716_v43, %v6717_v1  ;;  %v13234_v34 = vrot.slane %v18054_v54, 6  ;;  %v13237_v41 = vrot.slane %v22652_v30, 6  ;;  %v14843_v13 = vrot.slane %v18055_v51, 9  ;;  %v15593_v1 = vld [vmem:[%s18170_s29 + $0xc0] sm:$0xc] }
 0x40a   : > { %16565 = vmatprep.mubr.msk.bf16.mxu1 %vm709_vm4, %v14858_v40  ;;  %v14859_v7 = vcombine.low %v6715_v53, %v6718_v61  ;;  %v13231_v36 = vsel %vm18920_vm13, %v13229_v63, %v13230_v0  ;;  %v6721_v25 = vrot.slane %v18056_v2, 5  ;;  %v6724_v31 = vrot.slane %v22865_v11, 5  ;;  %v18062_v0 = vld [vmem:[%s18170_s29 + $0xac] sm:$0xf]  ;;  %v18063_v43 = vld [vmem:[%s18170_s29 + $0xb4] sm:$0xe] }
 0x40b   : > { %v15624_v14 = vcombine.low %v13228_v37, %v13231_v36  ;;  %v13235_v30 = vsel %vm18920_vm13, %v15608_v24, %v13234_v34  ;;  %v13236_v49 = vrot.slane %v13234_v34, 4  ;;  %v14844_v38 = vrot.slane %v18057_v35, 9  ;;  %v18064_v24 = vld [vmem:[%s18170_s29 + $0xb8] sm:$0xf]  ;;  %v15596_v34 = vld [vmem:[%s18170_s29 + $0xe4] sm:$0xc] }
 0x40c   : > { %v6722_v59 = vsel %vm18182_vm5, %v14843_v13, %v6721_v25  ;;  %v6723_v60 = vrot.slane %v6721_v25, 4  ;;  %v6728_v32 = vrot.slane %v18058_v57, 5  ;;  %v6731_v4 = vrot.slane %v22877_v23, 5  ;;  %v18065_v51 = vld [vmem:[%s18170_s29 + $0xdc] sm:$0xf] }
 0x40d   : > { %16977 = vmatprep.mubr.msk.bf16.mxu0 %vm709_vm4, %v15624_v14  ;;  %v13238_v11 = vsel %vm18920_vm13, %v13236_v49, %v13237_v41  ;;  %v15609_v45 = vrot.slane %v15593_v1, 10  ;;  %v13241_v39 = vrot.slane %v18059_v55, 6  ;;  %v13244_v48 = vrot.slane %v22697_v5, 6  ;;  %v18066_v49 = vld [vmem:[%s18170_s29 + $0xe8] sm:$0xf] }
 0x40e   : > { %v15625_v6 = vcombine.low %v13235_v30, %v13238_v11  ;;  %v6725_v50 = vsel %vm18182_vm5, %v6723_v60, %v6724_v31  ;;  %v6729_v23 = vsel %vm18182_vm5, %v14844_v38, %v6728_v32  ;;  %v6730_v27 = vrot.slane %v6728_v32, 4  ;;  %v18068_v32 = vld [vmem:[%s18170_s29 + $0xc4] sm:$0xf] }
 0x40f   : > { %16566 = vmatmul.mubr.msk.bf16.vlgmr.msra.gmra.mrb[16].mxu1 %vm709_vm4, %v14859_v7  ;;  %v14860_v21 = vcombine.low %v6722_v59, %v6725_v50  ;;  %v13242_v44 = vsel %vm18920_vm13, %v15609_v45, %v13241_v39  ;;  %v13243_v3 = vrot.slane %v13241_v39, 4  ;;  %v15610_v62 = vrot.slane %v15594_v12, 10  ;;  %v18067_v59 = vld [vmem:[%s18170_s29 + $0xc0] sm:$0xe] }
 0x410   : > { %v6732_v5 = vsel %vm18182_vm5, %v6730_v27, %v6731_v4  ;;  %v13248_v18 = vrot.slane %v18060_v29, 6  ;;  %v13251_v20 = vrot.slane %v22714_v28, 6  ;;  %v14845_v46 = vrot.slane %v18061_v56, 9 }
 0x411   : > { %16978 = vmatmul.mubr.msk.bf16.gmra.mrb[20].mxu0 %vm709_vm4, %v15625_v6  ;;  %16569 = vmatprep.mubr.msk.bf16.mxu1 %vm709_vm4, %v14860_v21  ;;  %v14861_v42 = vcombine.low %v6729_v23, %v6732_v5  ;;  %v13245_v52 = vsel %vm18920_vm13, %v13243_v3, %v13244_v48  ;;  %v6735_v26 = vrot.slane %v18062_v0, 5  ;;  %v6738_v10 = vrot.slane %v22909_v15, 5  ;;  %v18069_v6 = vld [vmem:[%s18170_s29 + $0xd0] sm:$0xf] }
 0x412   : > { %v15626_v9 = vcombine.low %v13242_v44, %v13245_v52  ;;  %v13249_v28 = vsel %vm18920_vm13, %v15610_v62, %v13248_v18  ;;  %v13250_v53 = vrot.slane %v13248_v18, 4  ;;  %v14846_v40 = vrot.slane %v18063_v43, 9 }
 0x413   : > { %v6736_v37 = vsel %vm18182_vm5, %v14845_v46, %v6735_v26  ;;  %v6737_v63 = vrot.slane %v6735_v26, 4  ;;  %v6742_v61 = vrot.slane %v18064_v24, 5  ;;  %v6745_v54 = vrot.slane %v22921_v33, 5  ;;  %v23137_v24 = vld [vmem:[%s23648_s2] ss:$0 sm:$0xff] }
 0x414   : > { %16981 = vmatprep.mubr.msk.bf16.mxu0 %vm709_vm4, %v15626_v9  ;;  %v13252_v15 = vsel %vm18920_vm13, %v13250_v53, %v13251_v20  ;;  %v15611_v41 = vrot.slane %v15595_v17, 10  ;;  %v13255_v13 = vrot.slane %v18065_v51, 6  ;;  %v13258_v7 = vrot.slane %v22747_v47, 6 }
 0x415   : > { %v15627_v36 = vcombine.low %v13249_v28, %v13252_v15  ;;  %v6739_v2 = vsel %vm18182_vm5, %v6737_v63, %v6738_v10  ;;  %v6743_v33 = vsel %vm18182_vm5, %v14846_v40, %v6742_v61  ;;  %v6744_v25 = vrot.slane %v6742_v61, 4 }
 0x416   : > { %v14862_v31 = vcombine.low %v6736_v37, %v6739_v2  ;;  %v13256_v1 = vsel %vm18920_vm13, %v15611_v41, %v13255_v13  ;;  %v13257_v14 = vrot.slane %v13255_v13, 4  ;;  %v15612_v30 = vrot.slane %v15596_v34, 10 }
 0x417   : > { %16570 = vmatmul.mubr.msk.bf16.gmra.mrb[20].mxu1 %vm709_vm4, %v14861_v42  ;;  %v6746_v47 = vsel %vm18182_vm5, %v6744_v25, %v6745_v54  ;;  %v13262_v35 = vrot.slane %v18066_v49, 6  ;;  %v13265_v38 = vrot.slane %v22768_v8, 6  ;;  %v14847_v60 = vrot.slane %v18067_v59, 9 }
 0x418   : > { %16573 = vmatprep.mubr.msk.bf16.mxu1 %vm709_vm4, %v14862_v31  ;;  %v13259_v57 = vsel %vm18920_vm13, %v13257_v14, %v13258_v7  ;;  %v6749_v4 = vrot.slane %v18068_v32, 5  ;;  %v6752_v12 = vrot.slane %v22953_v22, 5  ;;  %v14863_v11 = vcombine.low %v6743_v33, %v6746_v47  ;;  %v18070_v22 = vld [vmem:[%s18170_s29 + $0xcc] sm:$0xe] }
 0x419   : > { %16982 = vmatmul.mubr.msk.bf16.gmra.mrb[24].mxu0 %vm709_vm4, %v15627_v36  ;;  %v15628_v45 = vcombine.low %v13256_v1, %v13259_v57  ;;  %v13264_v55 = vrot.slane %v13262_v35, 4  ;;  %v13263_v8 = vsel %vm18920_vm13, %v15612_v30, %v13262_v35  ;;  %v6756_v50 = vrot.slane %v18069_v6, 5 }
 0x41a   : > { %v6750_v39 = vsel %vm18182_vm5, %v14847_v60, %v6749_v4  ;;  %v6751_v48 = vrot.slane %v6749_v4, 4  ;;  %v14848_v27 = vrot.slane %v18070_v22, 9  ;;  %v6759_v21 = vrot.slane %v22965_v58, 5 }
 0x41b   : > { %16985 = vmatprep.mubr.msk.bf16.mxu0 %vm709_vm4, %v15628_v45  ;;  %v13266_v23 = vsel %vm18920_vm13, %v13264_v55, %v13265_v38  ;;  %v6758_v3 = vrot.slane %v6756_v50, 4  ;;  %vm13600_vm14 = vcmask 523264   ;;  %vm14002_vm15 = vcmask 519168  }
 0x41c   : > { %v6753_v44 = vsel %vm18182_vm5, %v6751_v48, %v6752_v12  ;;  %v15629_v62 = vcombine.low %v13263_v8, %v13266_v23  ;;  %v6757_v29 = vsel %vm18182_vm5, %v14848_v27, %v6756_v50 }
 0x41d   : > { %v14864_v5 = vcombine.low %v6750_v39, %v6753_v44  ;;  %v6760_v16 = vsel %vm18182_vm5, %v6758_v3, %v6759_v21 }
 0x41e   : > { %v14865_v18 = vcombine.low %v6757_v29, %v6760_v16 }
 0x41f   : > { %16574 = vmatmul.mubr.msk.bf16.gmra.mrb[24].mxu1 %vm709_vm4, %v14863_v11 }
 0x420   : > { %16577 = vmatprep.mubr.msk.bf16.mxu1 %vm709_vm4, %v14864_v5 }
 0x421   : > { %16986 = vmatmul.mubr.msk.bf16.gmra.mrb[28].mxu0 %vm709_vm4, %v15629_v62 }
 0x427   : > { %16578 = vmatmul.mubr.msk.bf16.gmra.mrb[28].mxu1 %vm709_vm4, %v14865_v18 }
 0x474   : > { %v16517_v58 = vpop.f32.mrb[0].mxu1 }
 0x475   : > { %v6426_v20 = vpop.f32.mrb[1].mxu1 }
 0x476   : > { %v16518_v56 = vpop.f32.mrb[2].mxu1 }
 0x477   : > { %v6429_v46 = vpop.f32.mrb[3].mxu1 }
 0x486   : > { %v16521_v42 = vpop.f32.mrb[4].mxu1 }
 0x487   : > { %v6442_v52 = vpop.f32.mrb[5].mxu1 }
 0x488   : > { %v16522_v0 = vpop.f32.mrb[6].mxu1 }
 0x489   : > { %v6445_v26 = vpop.f32.mrb[7].mxu1 }
 0x497   : > { %v23118_v10 = vpop.f32.mrb[8].mxu1 }
 0x498   : > { %v23120_v17 = vpop.f32.mrb[9].mxu1 }
 0x499   : > { %v23122_v9 = vpop.f32.mrb[10].mxu1 }
 0x49a   : > { %v23124_v19 = vpop.f32.mrb[11].mxu1 }
 0x4a9   : > { %v23126_v28 = vpop.f32.mrb[12].mxu1 }
 0x4aa   : > { %v23128_v53 = vpop.f32.mrb[13].mxu1 }
 0x4ab   : > { %v23130_v43 = vpop.f32.mrb[14].mxu1 }
 0x4ac   : > { %v23132_v40 = vpop.f32.mrb[15].mxu1  ;;  %v16959_v37 = vpop.f32.mrb[0].mxu0 }
 0x4ad   : > { %v16991_v63 = vadd.f32 %v16959_v37, %v16517_v58  ;;  %v13402_v61 = vpop.f32.mrb[1].mxu0 }
 0x4ae   : > { %v16992_v54 = vadd.f32 %v13402_v61, %v6426_v20  ;;  %v16960_v34 = vpop.f32.mrb[2].mxu0 }
 0x4af   : > { %v16993_v15 = vadd.f32 %v16960_v34, %v16518_v56  ;;  %v13405_v41 = vpop.f32.mrb[3].mxu0  ;;  %v23140_v51 = vadd.f32 %v16991_v63, %v23137_v24 }
 0x4b0   : > { %v23143_v13 = vadd.f32 %v16992_v54, %v23137_v24  ;;  %v16994_v7 = vadd.f32 %v13405_v41, %v6429_v46 }
 0x4b1   : > { %v23151_v33 = vadd.f32 %v16993_v15, %v23137_v24  ;;  %v13673_v25 = vmul.f32 %v23140_v51, %v23140_v51  ;;  %v13604_v47 = vsel %vm13600_vm14, %v23140_v51, 0.0 }
 0x4b2   : > { %v13671_v36 = vmul.f32 %v23143_v13, %v23143_v13  ;;  %v23148_v2 = vadd.f32 %v16994_v7, %v23137_v24  ;;  %v13601_v31 = vsel %vm13600_vm14, %v23143_v13, 0.0 }
 0x4b3   : > { %v13674_v38 = vmul.f32 %v23151_v33, %v23151_v33  ;;  %v13706_v32 = vsel %vm13600_vm14, %v13673_v25, 0.0  ;;  %v13606_v11 = vsel %vm13600_vm14, %v23151_v33, 0.0 }
 0x4b4   : > { %v13602_v1 = vsel %vm13600_vm14, %v23148_v2, 0.0  ;;  %v13672_v14 = vmul.f32 %v23148_v2, %v23148_v2  ;;  %v13703_v49 = vsel %vm13600_vm14, %v13671_v36, 0.0 }
 0x4b5   : > { %v13603_v30 = vadd.f32 %v13602_v1, %v13601_v31  ;;  %v13708_v50 = vsel %vm13600_vm14, %v13674_v38, 0.0 }
 0x4b6   : > { %v13704_v35 = vsel %vm13600_vm14, %v13672_v14, 0.0 }
 0x4b7   : > { %v13605_v59 = vadd.f32 %v13604_v47, %v13603_v30  ;;  %v13705_v60 = vadd.f32 %v13704_v35, %v13703_v49 }
 0x4b8   : > { %v16963_v57 = vpop.f32.mrb[4].mxu0 }
 0x4b9   : > { %v16995_v4 = vadd.f32 %v16963_v57, %v16521_v42  ;;  %v13418_v12 = vpop.f32.mrb[5].mxu0  ;;  %v13707_v45 = vadd.f32 %v13706_v32, %v13705_v60  ;;  %v13607_v39 = vadd.f32 %v13606_v11, %v13605_v59 }
 0x4ba   : > { %v16996_v55 = vadd.f32 %v13418_v12, %v6442_v52  ;;  %v16964_v8 = vpop.f32.mrb[6].mxu0 }
 0x4bb   : > { %v16997_v48 = vadd.f32 %v16964_v8, %v16522_v0  ;;  %v13421_v6 = vpop.f32.mrb[7].mxu0  ;;  %v23172_v23 = vadd.f32 %v16995_v4, %v23137_v24  ;;  %v13709_v21 = vadd.f32 %v13708_v50, %v13707_v45 }
 0x4bc   : > { %v23175_v22 = vadd.f32 %v16996_v55, %v23137_v24  ;;  %v16998_v27 = vadd.f32 %v13421_v6, %v6445_v26 }
 0x4bd   : > { %v23185_v29 = vadd.f32 %v16997_v48, %v23137_v24  ;;  %v13677_v16 = vmul.f32 %v23172_v23, %v23172_v23  ;;  %v13612_v42 = vsel %vm13600_vm14, %v23172_v23, 0.0 }
 0x4be   : > { %v13608_v44 = vsel %vm13600_vm14, %v23175_v22, 0.0  ;;  %v13675_v3 = vmul.f32 %v23175_v22, %v23175_v22  ;;  %v23182_v62 = vadd.f32 %v16998_v27, %v23137_v24 }
 0x4bf   : > { %v13609_v5 = vadd.f32 %v13608_v44, %v13607_v39  ;;  %v13678_v0 = vmul.f32 %v23185_v29, %v23185_v29  ;;  %v13714_v61 = vsel %vm13600_vm14, %v13677_v16, 0.0  ;;  %v13614_v15 = vsel %vm13600_vm14, %v23185_v29, 0.0 }
 0x4c0   : > { %v13710_v18 = vsel %vm13600_vm14, %v13675_v3, 0.0  ;;  %v13610_v58 = vsel %vm13600_vm14, %v23182_v62, 0.0  ;;  %v13676_v20 = vmul.f32 %v23182_v62, %v23182_v62 }
 0x4c1   : > { %v13711_v56 = vadd.f32 %v13710_v18, %v13709_v21  ;;  %v13611_v46 = vadd.f32 %v13610_v58, %v13609_v5  ;;  %v13716_v14 = vsel %vm13600_vm14, %v13678_v0, 0.0 }
 0x4c2   : > { %v13712_v52 = vsel %vm13600_vm14, %v13676_v20, 0.0 }
 0x4c3   : > { %v13613_v26 = vadd.f32 %v13612_v42, %v13611_v46  ;;  %v13713_v37 = vadd.f32 %v13712_v52, %v13711_v56 }
 0x4c4   : > { %v16967_v63 = vpop.f32.mrb[8].mxu0 }
 0x4c5   : > { %v16999_v54 = vadd.f32 %v16967_v63, %v23118_v10  ;;  %v13434_v34 = vpop.f32.mrb[9].mxu0  ;;  %v13715_v41 = vadd.f32 %v13714_v61, %v13713_v37  ;;  %v13615_v25 = vadd.f32 %v13614_v15, %v13613_v26 }
 0x4c6   : > { %v17000_v7 = vadd.f32 %v13434_v34, %v23120_v17  ;;  %v16968_v36 = vpop.f32.mrb[10].mxu0 }
 0x4c7   : > { %v17001_v31 = vadd.f32 %v16968_v36, %v23122_v9  ;;  %v13437_v1 = vpop.f32.mrb[11].mxu0  ;;  %v23211_v10 = vadd.f32 %v16999_v54, %v23137_v24  ;;  %v13717_v49 = vadd.f32 %v13716_v14, %v13715_v41 }
 0x4c8   : > { %v23207_v30 = vadd.f32 %v17000_v7, %v23137_v24  ;;  %v17002_v47 = vadd.f32 %v13437_v1, %v23124_v19 }
 0x4c9   : > { %v13681_v57 = vmul.f32 %v23211_v10, %v23211_v10  ;;  %v23228_v4 = vadd.f32 %v17001_v31, %v23137_v24  ;;  %v13620_v45 = vsel %vm13600_vm14, %v23211_v10, 0.0 }
 0x4ca   : > { %v13616_v35 = vsel %vm13600_vm14, %v23207_v30, 0.0  ;;  %v13679_v17 = vmul.f32 %v23207_v30, %v23207_v30  ;;  %v23218_v9 = vadd.f32 %v17002_v47, %v23137_v24 }
 0x4cb   : > { %v13617_v38 = vadd.f32 %v13616_v35, %v13615_v25  ;;  %v13722_v50 = vsel %vm13600_vm14, %v13681_v57, 0.0  ;;  %v13682_v27 = vmul.f32 %v23228_v4, %v23228_v4  ;;  %v13622_v18 = vsel %vm13600_vm14, %v23228_v4, 0.0 }
 0x4cc   : > { %v13718_v59 = vsel %vm13600_vm14, %v13679_v17, 0.0  ;;  %v13618_v60 = vsel %vm13600_vm14, %v23218_v9, 0.0  ;;  %v13680_v19 = vmul.f32 %v23218_v9, %v23218_v9 }
 0x4cd   : > { %v13719_v32 = vadd.f32 %v13718_v59, %v13717_v49  ;;  %v13619_v12 = vadd.f32 %v13618_v60, %v13617_v38  ;;  %v13724_v56 = vsel %vm13600_vm14, %v13682_v27, 0.0 }
 0x4ce   : > { %v13720_v11 = vsel %vm13600_vm14, %v13680_v19, 0.0 }
 0x4cf   : > { %v13721_v55 = vadd.f32 %v13720_v11, %v13719_v32  ;;  %v13621_v39 = vadd.f32 %v13620_v45, %v13619_v12 }
 0x4d0   : > { %v16971_v8 = vpop.f32.mrb[12].mxu0 }
 0x4d1   : > { %v17003_v48 = vadd.f32 %v16971_v8, %v23126_v28  ;;  %v13450_v6 = vpop.f32.mrb[13].mxu0  ;;  %v13723_v3 = vadd.f32 %v13722_v50, %v13721_v55  ;;  %v13623_v20 = vadd.f32 %v13622_v18, %v13621_v39 }
 0x4d2   : > { %v17004_v21 = vadd.f32 %v13450_v6, %v23128_v53  ;;  %v16972_v44 = vpop.f32.mrb[14].mxu0 }
 0x4d3   : > { %v17005_v5 = vadd.f32 %v16972_v44, %v23130_v43  ;;  %v13453_v16 = vpop.f32.mrb[15].mxu0  ;;  %v13725_v42 = vadd.f32 %v13724_v56, %v13723_v3 }
 0x4d4   : > { %v23242_v58 = vadd.f32 %v17004_v21, %v23137_v24  ;;  %v17006_v28 = vadd.f32 %v13453_v16, %v23132_v40  ;;  %v23257_v40 = vadd.f32 %v17003_v48, %v23137_v24 }
 0x4d5   : > { %v23263_v15 = vadd.f32 %v17005_v5, %v23137_v24 }
 0x4d6   : > { %v13624_v46 = vsel %vm13600_vm14, %v23242_v58, 0.0  ;;  %v13683_v53 = vmul.f32 %v23242_v58, %v23242_v58  ;;  %v23251_v43 = vadd.f32 %v17006_v28, %v23137_v24  ;;  %v13685_v36 = vmul.f32 %v23257_v40, %v23257_v40 }
 0x4d7   : > { %v13625_v26 = vadd.f32 %v13624_v46, %v13623_v20  ;;  %v13628_v1 = vsel %vm13600_vm14, %v23257_v40, 0.0  ;;  %v13686_v47 = vmul.f32 %v23263_v15, %v23263_v15  ;;  %v13630_v45 = vsel %vm13600_vm14, %v23263_v15, 0.0 }
 0x4d8   : > { %v13726_v52 = vsel %vm13600_vm14, %v13683_v53, 0.0  ;;  %v13684_v0 = vmul.f32 %v23251_v43, %v23251_v43  ;;  %v13626_v37 = vsel %vm13600_vm14, %v23251_v43, 0.0  ;;  %v13730_v38 = vsel %vm13600_vm14, %v13685_v36, 0.0 }
 0x4d9   : > { %v13727_v63 = vadd.f32 %v13726_v52, %v13725_v42  ;;  %v13627_v41 = vadd.f32 %v13626_v37, %v13625_v26  ;;  %v13732_v48 = vsel %vm13600_vm14, %v13686_v47, 0.0 }
 0x4da   : > { %v13728_v54 = vsel %vm13600_vm14, %v13684_v0, 0.0 }
 0x4db   : > { %v13729_v31 = vadd.f32 %v13728_v54, %v13727_v63  ;;  %v13629_v49 = vadd.f32 %v13628_v1, %v13627_v41 }
 0x4dc   : > { %v16975_v61 = vpop.f32.mrb[16].mxu0 }
 0x4dd   : > { %v13466_v34 = vpop.f32.mrb[17].mxu0  ;;  %v13731_v19 = vadd.f32 %v13730_v38, %v13729_v31  ;;  %v13631_v6 = vadd.f32 %v13630_v45, %v13629_v49 }
 0x4de   : > { %v16976_v7 = vpop.f32.mrb[18].mxu0 }
 0x4df   : > { %v13469_v25 = vpop.f32.mrb[19].mxu0  ;;  %v13733_v28 = vadd.f32 %v13732_v48, %v13731_v19 }
 0x4e2   : > { %v16567_v14 = vpop.f32.mrb[16].mxu1 }
 0x4e3   : > { %v17007_v35 = vadd.f32 %v16975_v61, %v16567_v14  ;;  %v6960_v17 = vpop.f32.mrb[17].mxu1 }
 0x4e4   : > { %v17008_v59 = vadd.f32 %v13466_v34, %v6960_v17  ;;  %v16568_v60 = vpop.f32.mrb[18].mxu1  ;;  %v16979_v11 = vpop.f32.mrb[20].mxu0 }
 0x4e5   : > { %v23273_v57 = vadd.f32 %v17007_v35, %v23137_v24  ;;  %v17009_v32 = vadd.f32 %v16976_v7, %v16568_v60  ;;  %v6963_v12 = vpop.f32.mrb[19].mxu1  ;;  %v13482_v39 = vpop.f32.mrb[21].mxu0 }
 0x4e6   : > { %v23278_v55 = vadd.f32 %v17008_v59, %v23137_v24  ;;  %v17010_v8 = vadd.f32 %v13469_v25, %v6963_v12  ;;  %v16980_v50 = vpop.f32.mrb[22].mxu0 }
 0x4e7   : > { %v23286_v44 = vadd.f32 %v17009_v32, %v23137_v24  ;;  %v13485_v5 = vpop.f32.mrb[23].mxu0  ;;  %v13689_v16 = vmul.f32 %v23273_v57, %v23273_v57  ;;  %v13636_v37 = vsel %vm13600_vm14, %v23273_v57, 0.0 }
 0x4e8   : > { %v13632_v27 = vsel %vm13600_vm14, %v23278_v55, 0.0  ;;  %v13687_v21 = vmul.f32 %v23278_v55, %v23278_v55  ;;  %v23289_v3 = vadd.f32 %v17010_v8, %v23137_v24 }
 0x4e9   : > { %v13633_v18 = vadd.f32 %v13632_v27, %v13631_v6  ;;  %v13690_v63 = vmul.f32 %v23286_v44, %v23286_v44  ;;  %v13738_v41 = vsel %vm13600_vm14, %v13689_v16, 0.0  ;;  %v13638_v14 = vsel %vm13600_vm14, %v23286_v44, 0.0 }
 0x4ea   : > { %v13734_v20 = vsel %vm13600_vm14, %v13687_v21, 0.0  ;;  %v13634_v56 = vsel %vm13600_vm14, %v23289_v3, 0.0  ;;  %v13688_v46 = vmul.f32 %v23289_v3, %v23289_v3  ;;  %v16571_v53 = vpop.f32.mrb[20].mxu1 }
 0x4eb   : > { %v13735_v42 = vadd.f32 %v13734_v20, %v13733_v28  ;;  %v13635_v52 = vadd.f32 %v13634_v56, %v13633_v18  ;;  %v17011_v0 = vadd.f32 %v16979_v11, %v16571_v53  ;;  %v6976_v26 = vpop.f32.mrb[21].mxu1  ;;  %v13740_v19 = vsel %vm13600_vm14, %v13690_v63, 0.0 }
 0x4ec   : > { %v13736_v61 = vsel %vm13600_vm14, %v13688_v46, 0.0  ;;  %v17012_v54 = vadd.f32 %v13482_v39, %v6976_v26  ;;  %v16572_v34 = vpop.f32.mrb[22].mxu1  ;;  %v16983_v1 = vpop.f32.mrb[24].mxu0 }
 0x4ed   : > { %v13637_v7 = vadd.f32 %v13636_v37, %v13635_v52  ;;  %v13737_v36 = vadd.f32 %v13736_v61, %v13735_v42  ;;  %v17013_v25 = vadd.f32 %v16980_v50, %v16572_v34  ;;  %v6979_v31 = vpop.f32.mrb[23].mxu1  ;;  %v23307_v47 = vadd.f32 %v17011_v0, %v23137_v24  ;;  %v13498_v17 = vpop.f32.mrb[25].mxu0 }
 0x4ee   : > { %v23310_v49 = vadd.f32 %v17012_v54, %v23137_v24  ;;  %v17014_v35 = vadd.f32 %v13485_v5, %v6979_v31  ;;  %v16984_v60 = vpop.f32.mrb[26].mxu0 }
 0x4ef   : > { %v13739_v38 = vadd.f32 %v13738_v41, %v13737_v36  ;;  %v13639_v59 = vadd.f32 %v13638_v14, %v13637_v7  ;;  %v13501_v45 = vpop.f32.mrb[27].mxu0  ;;  %v23321_v48 = vadd.f32 %v17013_v25, %v23137_v24  ;;  %v13693_v6 = vmul.f32 %v23307_v47, %v23307_v47 }
 0x4f0   : > { %v13640_v32 = vsel %vm13600_vm14, %v23310_v49, 0.0  ;;  %v13691_v12 = vmul.f32 %v23310_v49, %v23310_v49  ;;  %v23318_v11 = vadd.f32 %v17014_v35, %v23137_v24  ;;  %v13644_v56 = vsel %vm13600_vm14, %v23307_v47, 0.0 }
 0x4f1   : > { %v13641_v8 = vadd.f32 %v13640_v32, %v13639_v59  ;;  %v13741_v39 = vadd.f32 %v13740_v19, %v13739_v38  ;;  %v13694_v42 = vmul.f32 %v23321_v48, %v23321_v48  ;;  %v13646_v61 = vsel %vm13600_vm14, %v23321_v48, 0.0 }
 0x4f2   : > { %v13742_v50 = vsel %vm13600_vm14, %v13691_v12, 0.0  ;;  %v13642_v27 = vsel %vm13600_vm14, %v23318_v11, 0.0  ;;  %v16575_v21 = vpop.f32.mrb[24].mxu1  ;;  %v13692_v18 = vmul.f32 %v23318_v11, %v23318_v11  ;;  %v13746_v36 = vsel %vm13600_vm14, %v13693_v6, 0.0 }
 0x4f3   : > { %v13743_v5 = vadd.f32 %v13742_v50, %v13741_v39  ;;  %v13643_v16 = vadd.f32 %v13642_v27, %v13641_v8  ;;  %v17015_v28 = vadd.f32 %v16983_v1, %v16575_v21  ;;  %v6992_v20 = vpop.f32.mrb[25].mxu1 }
 0x4f4   : > { %v17016_v46 = vadd.f32 %v13498_v17, %v6992_v20  ;;  %v16576_v53 = vpop.f32.mrb[26].mxu1  ;;  %v13744_v0 = vsel %vm13600_vm14, %v13692_v18, 0.0  ;;  %v16987_v63 = vpop.f32.mrb[28].mxu0 }
 0x4f5   : > { %v13645_v52 = vadd.f32 %v13644_v56, %v13643_v16  ;;  %v17017_v26 = vadd.f32 %v16984_v60, %v16576_v53  ;;  %v6995_v37 = vpop.f32.mrb[27].mxu1  ;;  %v13745_v54 = vadd.f32 %v13744_v0, %v13743_v5  ;;  %v13514_v7 = vpop.f32.mrb[29].mxu0  ;;  %v23342_v25 = vadd.f32 %v17015_v28, %v23137_v24 }
 0x4f6   : > { %v23338_v34 = vadd.f32 %v17016_v46, %v23137_v24  ;;  %v17018_v41 = vadd.f32 %v13501_v45, %v6995_v37  ;;  %v16988_v1 = vpop.f32.mrb[30].mxu0  ;;  %v13748_v60 = vsel %vm13600_vm14, %v13694_v42, 0.0 }
 0x4f7   : > { %v13647_v31 = vadd.f32 %v13646_v61, %v13645_v52  ;;  %v13747_v14 = vadd.f32 %v13746_v36, %v13745_v54  ;;  %v13517_v59 = vpop.f32.mrb[31].mxu0  ;;  %v23353_v32 = vadd.f32 %v17017_v26, %v23137_v24  ;;  %v13697_v50 = vmul.f32 %v23342_v25, %v23342_v25 }
 0x4f8   : > { %v13648_v35 = vsel %vm13600_vm14, %v23338_v34, 0.0  ;;  %v13695_v17 = vmul.f32 %v23338_v34, %v23338_v34  ;;  %v23349_v38 = vadd.f32 %v17018_v41, %v23137_v24  ;;  %v13652_v16 = vsel %vm13600_vm14, %v23342_v25, 0.0 }
 0x4f9   : > { %v13649_v19 = vadd.f32 %v13648_v35, %v13647_v31  ;;  %v13749_v12 = vadd.f32 %v13748_v60, %v13747_v14  ;;  %v13698_v46 = vmul.f32 %v23353_v32, %v23353_v32  ;;  %v13654_v0 = vsel %vm13600_vm14, %v23353_v32, 0.0 }
 0x4fa   : > { %v13750_v45 = vsel %vm13600_vm14, %v13695_v17, 0.0  ;;  %v13650_v8 = vsel %vm13600_vm14, %v23349_v38, 0.0  ;;  %v13696_v39 = vmul.f32 %v23349_v38, %v23349_v38  ;;  %v16579_v6 = vpop.f32.mrb[28].mxu1  ;;  %v13754_v61 = vsel %vm13600_vm14, %v13697_v50, 0.0 }
 0x4fb   : > { %v13651_v27 = vadd.f32 %v13650_v8, %v13649_v19  ;;  %v17019_v21 = vadd.f32 %v16987_v63, %v16579_v6  ;;  %v7008_v5 = vpop.f32.mrb[29].mxu1  ;;  %v13751_v18 = vadd.f32 %v13750_v45, %v13749_v12  ;;  %v13756_v14 = vsel %vm13600_vm14, %v13698_v46, 0.0 }
 0x4fc   : > { %v13752_v28 = vsel %vm13600_vm14, %v13696_v39, 0.0  ;;  %v17020_v20 = vadd.f32 %v13514_v7, %v7008_v5  ;;  %v16580_v56 = vpop.f32.mrb[30].mxu1 }
 0x4fd   : > { %v13653_v53 = vadd.f32 %v13652_v16, %v13651_v27  ;;  %v17021_v42 = vadd.f32 %v16988_v1, %v16580_v56  ;;  %v7011_v52 = vpop.f32.mrb[31].mxu1  ;;  %v13753_v26 = vadd.f32 %v13752_v28, %v13751_v18  ;;  %v23374_v54 = vadd.f32 %v17019_v21, %v23137_v24 }
 0x4fe   : > { %v23370_v37 = vadd.f32 %v17020_v20, %v23137_v24  ;;  %v17022_v63 = vadd.f32 %v13517_v59, %v7011_v52 }
 0x4ff   : > { %v13655_v41 = vadd.f32 %v13654_v0, %v13653_v53  ;;  %v13755_v7 = vadd.f32 %v13754_v61, %v13753_v26  ;;  %v23385_v17 = vadd.f32 %v17021_v42, %v23137_v24  ;;  %v13701_v45 = vmul.f32 %v23374_v54, %v23374_v54 }
 0x500   : > { %v13656_v36 = vsel %vm13600_vm14, %v23370_v37, 0.0  ;;  %v13699_v31 = vmul.f32 %v23370_v37, %v23370_v37  ;;  %v23381_v1 = vadd.f32 %v17022_v63, %v23137_v24  ;;  %v13660_v39 = vsel %vm13600_vm14, %v23374_v54, 0.0 }
 0x501   : > { %v13657_v35 = vadd.f32 %v13656_v36, %v13655_v41  ;;  %v13757_v59 = vadd.f32 %v13756_v14, %v13755_v7  ;;  %v13702_v50 = vmul.f32 %v23385_v17, %v23385_v17  ;;  %v13662_v21 = vsel %vm13600_vm14, %v23385_v17, 0.0 }
 0x502   : > { %v13758_v60 = vsel %vm13600_vm14, %v13699_v31, 0.0  ;;  %v13658_v19 = vsel %vm13600_vm14, %v23381_v1, 0.0  ;;  %v13700_v12 = vmul.f32 %v23381_v1, %v23381_v1  ;;  %v13762_v16 = vsel %vm13600_vm14, %v13701_v45, 0.0 }
 0x503   : > { %v13659_v8 = vadd.f32 %v13658_v19, %v13657_v35  ;;  %v13759_v6 = vadd.f32 %v13758_v60, %v13757_v59  ;;  %v13764_v20 = vsel %vm13600_vm14, %v13702_v50, 0.0 }
 0x504   : > { %v13760_v24 = vsel %vm13600_vm14, %v13700_v12, 0.0 }
 0x505   : > { %v13661_v27 = vadd.f32 %v13660_v39, %v13659_v8  ;;  %v13761_v5 = vadd.f32 %v13760_v24, %v13759_v6 }
 0x507   : > { %v13663_v18 = vadd.f32 %v13662_v21, %v13661_v27  ;;  %v13763_v28 = vadd.f32 %v13762_v16, %v13761_v5 }
 0x509   : > { %v13664_v56 = vrot.slane %v13663_v18, 4  ;;  %v13765_v46 = vadd.f32 %v13764_v20, %v13763_v28 }
 0x50b   : > { %v13665_v53 = vadd.f32 %v13664_v56, %v13663_v18  ;;  %v13766_v42 = vrot.slane %v13765_v46, 4 }
 0x50d   : > { %v13666_v52 = vrot.slane %v13665_v53, 2  ;;  %v13767_v0 = vadd.f32 %v13766_v42, %v13765_v46 }
 0x50f   : > { %v13667_v26 = vadd.f32 %v13666_v52, %v13665_v53  ;;  %v13768_v63 = vrot.slane %v13767_v0, 2 }
 0x511   : > { %v13668_v61 = vrot.slane %v13667_v26, 1  ;;  %v13769_v41 = vadd.f32 %v13768_v63, %v13767_v0 }
 0x513   : > { %v13669_v7 = vadd.f32 %v13668_v61, %v13667_v26  ;;  %v13770_v36 = vrot.slane %v13769_v41, 1 }
 0x515   : > { %v23403_v31 = vmul.f32 0.00390625, %v13669_v7  ;;  %v13771_v14 = vadd.f32 %v13770_v36, %v13769_v41 }
 0x517   : > { %v13773_v35 = vmul.f32 %v23403_v31, %v23403_v31  ;;  %v13772_v59 = vmul.f32 0.00390625, %v13771_v14  ;;  %v13792_v19 = vsub.f32 %v23278_v55, %v23403_v31  ;;  %v13793_v45 = vsub.f32 %v23289_v3, %v23403_v31 }
 0x518   : > { %v13794_v8 = vsub.f32 %v23273_v57, %v23403_v31  ;;  %v13795_v39 = vsub.f32 %v23286_v44, %v23403_v31  ;;  %v13796_v6 = vsub.f32 %v23310_v49, %v23403_v31  ;;  %v13797_v24 = vsub.f32 %v23318_v11, %v23403_v31 }
 0x519   : > { %v13774_v60 = vsub.f32 %v13772_v59, %v13773_v35  ;;  %v13798_v50 = vsub.f32 %v23307_v47, %v23403_v31  ;;  %v13799_v55 = vsub.f32 %v23321_v48, %v23403_v31  ;;  %v13800_v3 = vsub.f32 %v23338_v34, %v23403_v31 }
 0x51a   : > { %v13801_v57 = vsub.f32 %v23349_v38, %v23403_v31  ;;  %v13802_v44 = vsub.f32 %v23342_v25, %v23403_v31  ;;  %v13803_v49 = vsub.f32 %v23353_v32, %v23403_v31  ;;  %v13804_v11 = vsub.f32 %v23370_v37, %v23403_v31 }
 0x51b   : > { %v13775_v12 = vmax.f32 %v13774_v60, 0.0  ;;  %v13805_v47 = vsub.f32 %v23381_v1, %v23403_v31  ;;  %v13806_v48 = vsub.f32 %v23374_v54, %v23403_v31  ;;  %v13807_v34 = vsub.f32 %v23385_v17, %v23403_v31 }
 0x51c   : > { %v13776_v25 = vsub.f32 %v23143_v13, %v23403_v31  ;;  %v13777_v38 = vsub.f32 %v23148_v2, %v23403_v31  ;;  %v13778_v32 = vsub.f32 %v23140_v51, %v23403_v31  ;;  %v13779_v37 = vsub.f32 %v23151_v33, %v23403_v31 }
 0x51d   : > { %v13808_v27 = vadd.f32 1e-05, %v13775_v12  ;;  %v13780_v54 = vsub.f32 %v23175_v22, %v23403_v31  ;;  %v13781_v1 = vsub.f32 %v23182_v62, %v23403_v31  ;;  %v13782_v17 = vsub.f32 %v23172_v23, %v23403_v31 }
 0x51e   : > { %v13783_v13 = vsub.f32 %v23185_v29, %v23403_v31  ;;  %v13784_v2 = vsub.f32 %v23207_v30, %v23403_v31  ;;  %v13785_v51 = vsub.f32 %v23218_v9, %v23403_v31  ;;  %v13786_v33 = vsub.f32 %v23211_v10, %v23403_v31 }
 0x51f   : > { %17865 = vrsqrt.f32 %v13808_v27  ;;  %v13787_v22 = vsub.f32 %v23228_v4, %v23403_v31  ;;  %v13788_v62 = vsub.f32 %v23242_v58, %v23403_v31  ;;  %v13789_v23 = vsub.f32 %v23251_v43, %v23403_v31 }
 0x520   : > { %v13790_v29 = vsub.f32 %v23257_v40, %v23403_v31  ;;  %v13791_v30 = vsub.f32 %v23263_v15, %v23403_v31 }
 0x529   : > { %v17866_v21 = vpop.eup %17865 }
 0x52a   : > { %v23471_v9 = vmul.f32 %v17866_v21, %v13776_v25  ;;  %v23473_v5 = vmul.f32 %v17866_v21, %v13777_v38  ;;  %v23475_v10 = vmul.f32 %v17866_v21, %v13778_v32  ;;  %v23477_v4 = vmul.f32 %v17866_v21, %v13779_v37 }
 0x52b   : > { %v23479_v16 = vmul.f32 %v17866_v21, %v13780_v54  ;;  %v23481_v58 = vmul.f32 %v17866_v21, %v13781_v1  ;;  %v23483_v18 = vmul.f32 %v17866_v21, %v13782_v17  ;;  %v23485_v43 = vmul.f32 %v17866_v21, %v13783_v13 }
 0x52c   : > { %v23487_v40 = vmul.f32 %v17866_v21, %v13784_v2  ;;  %v23489_v28 = vmul.f32 %v17866_v21, %v13785_v51  ;;  %v23491_v15 = vmul.f32 %v17866_v21, %v13786_v33  ;;  %v23493_v20 = vmul.f32 %v17866_v21, %v13787_v22 }
 0x52d   : > { %v23495_v56 = vmul.f32 %v17866_v21, %v13788_v62  ;;  %v23497_v46 = vmul.f32 %v17866_v21, %v13789_v23  ;;  %v23499_v53 = vmul.f32 %v17866_v21, %v13790_v29  ;;  %v23501_v42 = vmul.f32 %v17866_v21, %v13791_v30 }
 0x52e   : > { %v23503_v52 = vmul.f32 %v17866_v21, %v13792_v19  ;;  %v23505_v0 = vmul.f32 %v17866_v21, %v13793_v45  ;;  %v23507_v26 = vmul.f32 %v17866_v21, %v13794_v8  ;;  %v23509_v63 = vmul.f32 %v17866_v21, %v13795_v39 }
 0x52f   : > { %v23511_v61 = vmul.f32 %v17866_v21, %v13796_v6  ;;  %v23513_v41 = vmul.f32 %v17866_v21, %v13797_v24  ;;  %v23515_v7 = vmul.f32 %v17866_v21, %v13798_v50  ;;  %v23517_v36 = vmul.f32 %v17866_v21, %v13799_v55 }
 0x530   : > { %v23519_v31 = vmul.f32 %v17866_v21, %v13800_v3  ;;  %v23521_v14 = vmul.f32 %v17866_v21, %v13801_v57  ;;  %v23523_v35 = vmul.f32 %v17866_v21, %v13802_v44  ;;  %v23525_v59 = vmul.f32 %v17866_v21, %v13803_v49 }
 0x531   : > { %v23527_v60 = vmul.f32 %v17866_v21, %v13804_v11  ;;  %v23529_v19 = vmul.f32 %v17866_v21, %v13805_v47  ;;  %v23531_v12 = vmul.f32 %v17866_v21, %v13806_v48  ;;  %v23533_v45 = vmul.f32 %v17866_v21, %v13807_v34 }
 0x532   : > { %v13842_v8 = vmax.f32 %v23471_v9, 0.0  ;;  %v13843_v39 = vmax.f32 %v23473_v5, 0.0  ;;  %v13844_v6 = vmax.f32 %v23475_v10, 0.0  ;;  %v13845_v24 = vmax.f32 %v23477_v4, 0.0 }
 0x533   : > { %v13846_v50 = vmax.f32 %v23479_v16, 0.0  ;;  %v13847_v55 = vmax.f32 %v23481_v58, 0.0  ;;  %v13848_v3 = vmax.f32 %v23483_v18, 0.0  ;;  %v13849_v57 = vmax.f32 %v23485_v43, 0.0 }
 0x534   : > { %v13850_v44 = vmax.f32 %v23487_v40, 0.0  ;;  %v13851_v49 = vmax.f32 %v23489_v28, 0.0  ;;  %v13852_v11 = vmax.f32 %v23491_v15, 0.0  ;;  %v13853_v47 = vmax.f32 %v23493_v20, 0.0 }
 0x535   : > { %v13854_v48 = vmax.f32 %v23495_v56, 0.0  ;;  %v13855_v34 = vmax.f32 %v23497_v46, 0.0  ;;  %v13856_v27 = vmax.f32 %v23499_v53, 0.0  ;;  %v13857_v25 = vmax.f32 %v23501_v42, 0.0 }
 0x536   : > { %v13858_v38 = vmax.f32 %v23503_v52, 0.0  ;;  %v13859_v32 = vmax.f32 %v23505_v0, 0.0  ;;  %v13860_v37 = vmax.f32 %v23507_v26, 0.0  ;;  %v13861_v54 = vmax.f32 %v23509_v63, 0.0 }
 0x537   : > { %v13862_v1 = vmax.f32 %v23511_v61, 0.0  ;;  %v13863_v17 = vmax.f32 %v23513_v41, 0.0  ;;  %v13864_v13 = vmax.f32 %v23515_v7, 0.0  ;;  %v13865_v2 = vmax.f32 %v23517_v36, 0.0 }
 0x538   : > { %v13866_v51 = vmax.f32 %v23519_v31, 0.0  ;;  %v13867_v33 = vmax.f32 %v23521_v14, 0.0  ;;  %v13868_v22 = vmax.f32 %v23523_v35, 0.0  ;;  %v13869_v21 = vmax.f32 %v23525_v59, 0.0 }
 0x539   : > { %v13870_v62 = vmax.f32 %v23527_v60, 0.0  ;;  %v13871_v23 = vmax.f32 %v23529_v19, 0.0  ;;  %v13872_v29 = vmax.f32 %v23531_v12, 0.0  ;;  %v13873_v30 = vmax.f32 %v23533_v45, 0.0 }
 0x53a   : > { %v15682_v9 = vpack.c.bf16 %v13842_v8, %v13842_v8  ;;  %v15683_v5 = vpack.c.bf16 %v13843_v39, %v13843_v39  ;;  %v15684_v10 = vpack.c.bf16 %v13844_v6, %v13844_v6  ;;  %v15685_v4 = vpack.c.bf16 %v13845_v24, %v13845_v24 }
 0x53b   : > { %v15686_v16 = vpack.c.bf16 %v13846_v50, %v13846_v50  ;;  %v15687_v58 = vpack.c.bf16 %v13847_v55, %v13847_v55  ;;  %v15688_v18 = vpack.c.bf16 %v13848_v3, %v13848_v3  ;;  %v15689_v43 = vpack.c.bf16 %v13849_v57, %v13849_v57 }
 0x53c   : > { %v15690_v40 = vpack.c.bf16 %v13850_v44, %v13850_v44  ;;  %v15691_v28 = vpack.c.bf16 %v13851_v49, %v13851_v49  ;;  %v15692_v15 = vpack.c.bf16 %v13852_v11, %v13852_v11  ;;  %v15693_v20 = vpack.c.bf16 %v13853_v47, %v13853_v47  ;;  %14003 = vst.msk [vmem:[%s23567_s28] sm:$0xf] %vm14002_vm15, %v15682_v9 }
 0x53d   : > { %14004 = vst.msk [vmem:[%s23567_s28 + $0x4] sm:$0xf] %vm14002_vm15, %v15683_v5  ;;  %14005 = vst.msk [vmem:[%s23567_s28 + $0x8] sm:$0xf] %vm14002_vm15, %v15684_v10  ;;  %v15694_v56 = vpack.c.bf16 %v13854_v48, %v13854_v48  ;;  %v15695_v46 = vpack.c.bf16 %v13855_v34, %v13855_v34  ;;  %v15696_v53 = vpack.c.bf16 %v13856_v27, %v13856_v27 }
 0x53e   : > { %14006 = vst.msk [vmem:[%s23567_s28 + $0xc] sm:$0xf] %vm14002_vm15, %v15685_v4  ;;  %v15697_v42 = vpack.c.bf16 %v13857_v25, %v13857_v25  ;;  %14007 = vst.msk [vmem:[%s23567_s28 + $0x10] sm:$0xf] %vm14002_vm15, %v15686_v16  ;;  %v15698_v52 = vpack.c.bf16 %v13858_v38, %v13858_v38  ;;  %v15699_v0 = vpack.c.bf16 %v13859_v32, %v13859_v32 }
 0x53f   : > { %14008 = vst.msk [vmem:[%s23567_s28 + $0x14] sm:$0xf] %vm14002_vm15, %v15687_v58  ;;  %14009 = vst.msk [vmem:[%s23567_s28 + $0x18] sm:$0xf] %vm14002_vm15, %v15688_v18  ;;  %v15700_v26 = vpack.c.bf16 %v13860_v37, %v13860_v37  ;;  %v15701_v63 = vpack.c.bf16 %v13861_v54, %v13861_v54  ;;  %v15702_v61 = vpack.c.bf16 %v13862_v1, %v13862_v1 }
 0x540   : > { %14010 = vst.msk [vmem:[%s23567_s28 + $0x1c] sm:$0xf] %vm14002_vm15, %v15689_v43  ;;  %14011 = vst.msk [vmem:[%s23567_s28 + $0x20] sm:$0xf] %vm14002_vm15, %v15690_v40  ;;  %v15703_v41 = vpack.c.bf16 %v13863_v17, %v13863_v17  ;;  %v15704_v7 = vpack.c.bf16 %v13864_v13, %v13864_v13  ;;  %v15705_v36 = vpack.c.bf16 %v13865_v2, %v13865_v2 }
 0x541   : > { %14012 = vst.msk [vmem:[%s23567_s28 + $0x24] sm:$0xf] %vm14002_vm15, %v15691_v28  ;;  %14013 = vst.msk [vmem:[%s23567_s28 + $0x28] sm:$0xf] %vm14002_vm15, %v15692_v15  ;;  %v15706_v31 = vpack.c.bf16 %v13866_v51, %v13866_v51  ;;  %v15707_v14 = vpack.c.bf16 %v13867_v33, %v13867_v33  ;;  %v15708_v35 = vpack.c.bf16 %v13868_v22, %v13868_v22 }
 0x542   : > { %14014 = vst.msk [vmem:[%s23567_s28 + $0x2c] sm:$0xf] %vm14002_vm15, %v15693_v20  ;;  %14015 = vst.msk [vmem:[%s23567_s28 + $0x30] sm:$0xf] %vm14002_vm15, %v15694_v56  ;;  %v15709_v59 = vpack.c.bf16 %v13869_v21, %v13869_v21  ;;  %v15710_v60 = vpack.c.bf16 %v13870_v62, %v13870_v62  ;;  %v15711_v19 = vpack.c.bf16 %v13871_v23, %v13871_v23 }
 0x543   : > { %14016 = vst.msk [vmem:[%s23567_s28 + $0x34] sm:$0xf] %vm14002_vm15, %v15695_v46  ;;  %14017 = vst.msk [vmem:[%s23567_s28 + $0x38] sm:$0xf] %vm14002_vm15, %v15696_v53  ;;  %v15712_v12 = vpack.c.bf16 %v13872_v29, %v13872_v29  ;;  %v15713_v45 = vpack.c.bf16 %v13873_v30, %v13873_v30 }
 0x544   : > { %14018 = vst.msk [vmem:[%s23567_s28 + $0x3c] sm:$0xf] %vm14002_vm15, %v15697_v42  ;;  %14019 = vst.msk [vmem:[%s23567_s28 + $0x40] sm:$0xf] %vm14002_vm15, %v15698_v52 }
 0x545   : > { %14020 = vst.msk [vmem:[%s23567_s28 + $0x44] sm:$0xf] %vm14002_vm15, %v15699_v0  ;;  %14021 = vst.msk [vmem:[%s23567_s28 + $0x48] sm:$0xf] %vm14002_vm15, %v15700_v26 }
 0x546   : > { %14022 = vst.msk [vmem:[%s23567_s28 + $0x4c] sm:$0xf] %vm14002_vm15, %v15701_v63  ;;  %14023 = vst.msk [vmem:[%s23567_s28 + $0x50] sm:$0xf] %vm14002_vm15, %v15702_v61 }
 0x547   : > { %14024 = vst.msk [vmem:[%s23567_s28 + $0x54] sm:$0xf] %vm14002_vm15, %v15703_v41  ;;  %14025 = vst.msk [vmem:[%s23567_s28 + $0x58] sm:$0xf] %vm14002_vm15, %v15704_v7 }
 0x548   : > { %14026 = vst.msk [vmem:[%s23567_s28 + $0x5c] sm:$0xf] %vm14002_vm15, %v15705_v36  ;;  %14027 = vst.msk [vmem:[%s23567_s28 + $0x60] sm:$0xf] %vm14002_vm15, %v15706_v31 }
 0x549   : > { %14028 = vst.msk [vmem:[%s23567_s28 + $0x64] sm:$0xf] %vm14002_vm15, %v15707_v14  ;;  %14029 = vst.msk [vmem:[%s23567_s28 + $0x68] sm:$0xf] %vm14002_vm15, %v15708_v35 }
 0x54a   : > { %14030 = vst.msk [vmem:[%s23567_s28 + $0x6c] sm:$0xf] %vm14002_vm15, %v15709_v59  ;;  %14031 = vst.msk [vmem:[%s23567_s28 + $0x70] sm:$0xf] %vm14002_vm15, %v15710_v60 }
 0x54b   : > { %14032 = vst.msk [vmem:[%s23567_s28 + $0x74] sm:$0xf] %vm14002_vm15, %v15711_v19  ;;  %14033 = vst.msk [vmem:[%s23567_s28 + $0x78] sm:$0xf] %vm14002_vm15, %v15712_v12 }
 0x54c   : > { %14034 = vst.msk [vmem:[%s23567_s28 + $0x7c] sm:$0xf] %vm14002_vm15, %v15713_v45 }
 0x54d PF: > { %s13_s14 = sadd.s32 1, %s18093_s14   ;;  %s24197_s12 = smov %s18089_s13 }
 0x54e   : > { %p10_p5 = scmp.ge.s32.totalorder %s13_s14, 4   ;;  %s24198_s13 = smov %s24200_s15 }
 0x550   :  { %12 = sbr.rel (!%p10_p5) target bundleno = 2 (0x2), region = 96 }

// kernel: tpu_custom_call.1
= control target key start
LH: loop header
LB: loop body
LE: loop exit
PB: predicated region body
PF: predicated region fallthrough
CT: control target
= control target key end

     0   :  { %8 = vsyncpa [#allocation3], 0  ;;  %s1429_s0 = inlined_call_operand.vmem [shape: bf16[512,75], index: 0, kind: input, shape index: {}]   ;;  %s1430_s1 = inlined_call_operand.vmem [shape: bf16[75,128], index: 1, kind: input, shape index: {}]   ;;  %s1431_s2 = inlined_call_operand.vmem [shape: f32[1,128], index: 2, kind: input, shape index: {}]   ;;  %s1432_s3 = inlined_call_operand.hbm [shape: bf16[512,128], index: 3, kind: output, shape index: {}]  }
   0x1   :  { %10 = vsyncpa [#allocation3 + $0x1], 0  ;;  %s1218_s12 = smov 0   ;;  %s1220_s13 = smov 0  }
   0x2   :  { %s1222_s14 = smov 0   ;;  %s1224_s15 = smov 0  }
   0x3 LB: > { %s1239_s16 = sadd.s32 4294967295, %s1192_s15   ;;  %s784_s17 = sadd.s32 4294967294, %s1192_s15   ;;  %s1192_s15 = sphi %s1224_s15, %s1438_s15   ;;  %s1188_s14 = sphi %s1222_s14, %s1437_s14   ;;  %s1184_s13 = sphi %s1220_s13, %s1436_s13   ;;  %s1180_s12 = sphi %s1218_s12, %s1435_s12  }
   0x4   : > { %s1243_s18 = sadd.s32 1, %s1192_s15   ;;  %s91_s19 = sadd.s32 1, %s1188_s14 }
   0x5   : > { %s88_s20 = ssub.s32 %s1192_s15, %s1243_s18  ;;  %p101_p0 = scmp.ne.s32.totalorder %s1188_s14, %s1184_s13 }
   0x6   : > { %p89_p1 = scmp.eq.s32.totalorder %s88_s20, 0  ;;  %p102_p2 = scmp.eq.s32.totalorder %s1239_s16, 1 }
   0x7   : > { %p107_p3 = scmp.ne.s32.totalorder %s1184_s13, %s1180_s12  ;;  %p108_p4 = scmp.eq.s32.totalorder %s784_s17, 1 }
   0x8   : > { %s1254_s21 = scalar_select %p89_p1, %s1188_s14, %s91_s19  }
   0x9   : > { %p1256_p5 = por %p102_p2, %p101_p0  ;;  %p1260_p6 = por %p108_p4, %p107_p3 }
   0xa   : > { %p787_p7 = scmp.ge.s32.totalorder %s1192_s15, 1  ;;  %p141_p8 = scmp.lt.s32.totalorder %s1192_s15, 3 }
   0xc   : > { %p142_p9 = pnand %p787_p7, %p141_p8 }
   0xd   : > { %v1109_v0 = vld [vmem:[%s1430_s1] sm:$0xff] (!%p142_p9)   ;;  %v1110_v1 = vld [vmem:[%s1430_s1 + $0x8] sm:$0xff] (!%p142_p9)   ;;  %vm380_vm0 = vcmask (!%p142_p9), 1044480   ;;  %v1111_v2 = vld [vmem:[%s1430_s1 + $0x10] sm:$0xff] (!%p142_p9)   ;;  %s789_s30 = sshll.u32 (!%p142_p9), %s1239_s16, 5  ;;  %vm381_vm1 = vcmask (!%p142_p9), 1045504  }
   0xe   : > { %145 = sbr.rel (%p142_p9) target bundleno = 292 (0x124), region = 32  ;;  %1015 = vmatprep.subr.bf16.mxu0 (!%p142_p9), %v1109_v0  ;;  %1057 = vmatprep.subr.bf16.mxu1 (!%p142_p9), %v1109_v0  ;;  %v1194_v3 = vmov (!%p142_p9), 65535   ;;  %p166_p10 = scmp.lt.s32.totalorder (!%p142_p9), %s789_s30, 63  ;;  %v1112_v5 = vld [vmem:[%s1430_s1 + $0x18] sm:$0xff] (!%p142_p9)   ;;  %v1113_v6 = vld [vmem:[%s1430_s1 + $0x20] sm:$0x3f] (!%p142_p9)  }
   0xf   : > { %1016 = vmatpush3.bf16.msra.mxu0 (!%p142_p9), %v1109_v0  ;;  %1062 = vmatpush3.bf16.msra.mxu1 (!%p142_p9), %v1109_v0  ;;  %v382_v4 = vsel (!%p142_p9), %vm380_vm0, 4294967295, %v1194_v3  ;;  %vm331_vm2 = vcmask (!%p142_p9), 613376   ;;  %s162_s17 = sand.u32 (!%p142_p9), 1, %s1184_s13   ;;  %v1323_v26 = vld [vmem:[%s1431_s2] ss:$0 sm:$0xff] (!%p142_p9)  ;;  %s898_s26 = sshll.u32 (!%p142_p9), %s1239_s16, 11 }
  0x10   : > { %1017 = vmatprep.subr.bf16.mxu0 (!%p142_p9), %v1110_v1  ;;  %1058 = vmatprep.subr.bf16.mxu1 (!%p142_p9), %v1110_v1  ;;  %v383_v7 = vsel (!%p142_p9), %vm381_vm1, %v382_v4, 0  ;;  %s788_s24 = sshll.u32 (!%p142_p9), %s162_s17, 7  ;;  %s1378_s29 = scalar_lea.hbm (!%p142_p9), %s1432_s3, %s898_s26 }
  0x11   : > { %v385_v8 = vand.u32 (!%p142_p9), %v1113_v6, %v383_v7  ;;  %s1335_s25 = scalar_lea.vmem (!%p142_p9), [#allocation2], %s788_s24  ;;  %s1195_s5 = smov (!%p142_p9), [#allocation2]  }
  0x12   : > { %s722_s27 = sshll.u32 (!%p142_p9), %s1335_s25, 4  ;;  %s1134_s6 = sshll.u32 (!%p142_p9), %s1195_s5, 4  ;;  %s1380_s27 = int_to_ptr.vmem [resolvable:$true] %s722_s27  ;;  %s1135_s6 = int_to_ptr.vmem [resolvable:$false] %s1134_s6 }
  0x13   : > { %1018 = vmatpush3.bf16.msra.mxu0 (!%p142_p9), %v1110_v1  ;;  %1063 = vmatpush3.bf16.msra.mxu1 (!%p142_p9), %v1110_v1  ;;  %s1130_s4 = scalar_lea.vmem (!%p142_p9), %s1380_s27, 2048  ;;  %s1136_s7 = scalar_lea.vmem (!%p142_p9), %s1135_s6, 4096 }
  0x14   : > { %1019 = vmatprep.subr.bf16.mxu0 (!%p142_p9), %v1111_v2  ;;  %1059 = vmatprep.subr.bf16.mxu1 (!%p142_p9), %v1111_v2  ;;  %p1131_p11 = scmp.ne.s32.totalorder (!%p142_p9), %s1380_s27, %s1130_s4  ;;  %p1137_p0 = scmp.lt.s32.totalorder (!%p142_p9), %s1380_s27, %s1135_s6 }
  0x15   : > { %s1440_s30 = smov (!%p166_p10, %s789_s30), 63  ;;  %p1138_p1 = scmp.lt.s32.totalorder %s1136_s7, %s1130_s4 }
  0x16   : > { %s790_s8 = sshll.u32 %s1440_s30, 2  ;;  %s1388_s30 = scalar_lea.sflag [#allocation3], %s162_s17 }
  0x17   : > { %1020 = vmatpush3.bf16.msra.mxu0 %v1111_v2  ;;  %1064 = vmatpush3.bf16.msra.mxu1 %v1111_v2  ;;  %s1285_s11 = scalar_lea.vmem %s1429_s0, %s790_s8  ;;  %p1132_p12 = pnand %p1131_p11, %p1256_p5 }
  0x18   : > { %1021 = vmatprep.subr.bf16.mxu0 %v1112_v5  ;;  %1060 = vmatprep.subr.bf16.mxu1 %v1112_v5  ;;  %v1114_v9 = vld [vmem:[%s1285_s11] sm:$0xff]   ;;  %v1116_v11 = vld [vmem:[%s1285_s11 + $0x8] sm:$0xff]   ;;  %v1118_v13 = vld [vmem:[%s1285_s11 + $0x10] sm:$0xff]   ;;  %p1139_p2 = por %p1138_p1, %p1137_p0 }
  0x19   : > { %v1115_v10 = vld [vmem:[%s1285_s11 + $0x40] sm:$0xff]   ;;  %1025 = vmatprep.mubr.msk.bf16.mxu0 %vm331_vm2, %v1114_v9  ;;  %v1117_v12 = vld [vmem:[%s1285_s11 + $0x48] sm:$0xff]   ;;  %v1119_v14 = vld [vmem:[%s1285_s11 + $0x50] sm:$0xff]   ;;  %p1133_p13 = pneg %p1132_p12 }
  0x1a   : > { %1041 = vmatprep.mubr.msk.bf16.mxu1 %vm331_vm2, %v1115_v10  ;;  %v1120_v15 = vld [vmem:[%s1285_s11 + $0x18] sm:$0xff]   ;;  %v1122_v17 = vld [vmem:[%s1285_s11 + $0x20] sm:$0xff]   ;;  %v1124_v19 = vld [vmem:[%s1285_s11 + $0x28] sm:$0xff]  }
  0x1b   : > { %1022 = vmatpush3.bf16.msra.mxu0 %v1112_v5  ;;  %1065 = vmatpush3.bf16.msra.mxu1 %v1112_v5  ;;  %v1121_v16 = vld [vmem:[%s1285_s11 + $0x58] sm:$0xff]   ;;  %v1123_v18 = vld [vmem:[%s1285_s11 + $0x60] sm:$0xff]   ;;  %v1125_v20 = vld [vmem:[%s1285_s11 + $0x68] sm:$0xff]   ;;  %p1140_p3 = pnand %p1139_p2, %p1133_p13 }
  0x1c   : > { %1023 = vmatprep.subr.bf16.mxu0 %v385_v8  ;;  %1061 = vmatprep.subr.bf16.mxu1 %v385_v8  ;;  %v1126_v21 = vld [vmem:[%s1285_s11 + $0x30] sm:$0xff]   ;;  %v1128_v23 = vld [vmem:[%s1285_s11 + $0x38] sm:$0xff]  }
  0x1d   : > { %v1127_v22 = vld [vmem:[%s1285_s11 + $0x70] sm:$0xff]   ;;  %v1129_v24 = vld [vmem:[%s1285_s11 + $0x78] sm:$0xff]  }
  0x1f   : > { %1024 = vmatpush3.bf16.msra.mxu0 %v385_v8  ;;  %1066 = vmatpush3.bf16.msra.mxu1 %v385_v8 }
  0x22   : > { %1026 = vmatmul.mubr.msk.bf16.vlgmr.msra.gmra.mrb[0].mxu0 %vm331_vm2, %v1116_v11  ;;  %1042 = vmatmul.mubr.msk.bf16.vlgmr.msra.gmra.mrb[0].mxu1 %vm331_vm2, %v1117_v12 }
  0x23   : > { %1029 = vmatprep.mubr.msk.bf16.mxu0 %vm331_vm2, %v1118_v13  ;;  %1045 = vmatprep.mubr.msk.bf16.mxu1 %vm331_vm2, %v1119_v14 }
  0x2a   : > { %1030 = vmatmul.mubr.msk.bf16.gmra.mrb[4].mxu0 %vm331_vm2, %v1120_v15  ;;  %1046 = vmatmul.mubr.msk.bf16.gmra.mrb[4].mxu1 %vm331_vm2, %v1121_v16 }
  0x2b   : > { %1033 = vmatprep.mubr.msk.bf16.mxu0 %vm331_vm2, %v1122_v17  ;;  %1049 = vmatprep.mubr.msk.bf16.mxu1 %vm331_vm2, %v1123_v18 }
  0x32   : > { %1034 = vmatmul.mubr.msk.bf16.gmra.mrb[8].mxu0 %vm331_vm2, %v1124_v19  ;;  %1050 = vmatmul.mubr.msk.bf16.gmra.mrb[8].mxu1 %vm331_vm2, %v1125_v20 }
  0x33   : > { %1037 = vmatprep.mubr.msk.bf16.mxu0 %vm331_vm2, %v1126_v21  ;;  %1053 = vmatprep.mubr.msk.bf16.mxu1 %vm331_vm2, %v1127_v22 }
  0x3a   : > { %1038 = vmatmul.mubr.msk.bf16.gmra.mrb[12].mxu0 %vm331_vm2, %v1128_v23  ;;  %1054 = vmatmul.mubr.msk.bf16.gmra.mrb[12].mxu1 %vm331_vm2, %v1129_v24 }
  0xf5   : > { %v1027_v25 = vpop.f32.mrb[0].mxu0  ;;  %v1043_v27 = vpop.f32.mrb[0].mxu1 }
  0xf6   : > { %v421_v28 = vpop.f32.mrb[1].mxu0  ;;  %v485_v29 = vpop.f32.mrb[1].mxu1  ;;  %v430_v32 = vadd.f32 %v1027_v25, %v1323_v26  ;;  %v494_v33 = vadd.f32 %v1043_v27, %v1323_v26 }
  0xf7   : > { %v1028_v30 = vpop.f32.mrb[2].mxu0  ;;  %v1044_v31 = vpop.f32.mrb[2].mxu1  ;;  %v422_v38 = vadd.f32 %v1323_v26, %v421_v28  ;;  %v486_v39 = vadd.f32 %v1323_v26, %v485_v29 }
  0xf8   : > { %v433_v34 = vadd.f32 %v1028_v30, %v1323_v26  ;;  %v497_v35 = vadd.f32 %v1044_v31, %v1323_v26  ;;  %v424_v36 = vpop.f32.mrb[3].mxu0  ;;  %v488_v37 = vpop.f32.mrb[3].mxu1 }
  0xf9   : > { %v425_v40 = vadd.f32 %v1323_v26, %v424_v36  ;;  %v489_v41 = vadd.f32 %v1323_v26, %v488_v37 }
  0xfa   : > { %v907_v42 = vpack.c.bf16 %v433_v34, %v430_v32  ;;  %v947_v43 = vpack.c.bf16 %v497_v35, %v494_v33 }
  0xfb   : > { %v902_v44 = vpack.c.bf16 %v425_v40, %v422_v38  ;;  %v942_v45 = vpack.c.bf16 %v489_v41, %v486_v39 }
  0xfc   : > { %979 = vst [vmem:[%s1335_s25 + $0x8] sm:$0xff] %v907_v42   ;;  %987 = vst [vmem:[%s1335_s25 + $0x48] sm:$0xff] %v947_v43  }
  0xfd   : > { %903 = vst [vmem:[%s1335_s25] sm:$0xff] %v902_v44   ;;  %986 = vst [vmem:[%s1335_s25 + $0x40] sm:$0xff] %v942_v45   ;;  %v1031_v46 = vpop.f32.mrb[4].mxu0  ;;  %v1047_v47 = vpop.f32.mrb[4].mxu1 }
  0xfe   : > { %v437_v48 = vpop.f32.mrb[5].mxu0  ;;  %v501_v49 = vpop.f32.mrb[5].mxu1  ;;  %v446_v52 = vadd.f32 %v1031_v46, %v1323_v26  ;;  %v510_v53 = vadd.f32 %v1047_v47, %v1323_v26 }
  0xff   : > { %v1032_v50 = vpop.f32.mrb[6].mxu0  ;;  %v1048_v51 = vpop.f32.mrb[6].mxu1  ;;  %v438_v58 = vadd.f32 %v1323_v26, %v437_v48  ;;  %v502_v59 = vadd.f32 %v1323_v26, %v501_v49 }
 0x100   : > { %v449_v54 = vadd.f32 %v1032_v50, %v1323_v26  ;;  %v513_v55 = vadd.f32 %v1048_v51, %v1323_v26  ;;  %v440_v56 = vpop.f32.mrb[7].mxu0  ;;  %v504_v57 = vpop.f32.mrb[7].mxu1 }
 0x101   : > { %v441_v60 = vadd.f32 %v1323_v26, %v440_v56  ;;  %v505_v61 = vadd.f32 %v1323_v26, %v504_v57 }
 0x102   : > { %v917_v62 = vpack.c.bf16 %v449_v54, %v446_v52  ;;  %v957_v63 = vpack.c.bf16 %v513_v55, %v510_v53 }
 0x103   : > { %v912_v0 = vpack.c.bf16 %v441_v60, %v438_v58  ;;  %v952_v1 = vpack.c.bf16 %v505_v61, %v502_v59 }
 0x104   : > { %981 = vst [vmem:[%s1335_s25 + $0x18] sm:$0xff] %v917_v62   ;;  %989 = vst [vmem:[%s1335_s25 + $0x58] sm:$0xff] %v957_v63  }
 0x105   : > { %980 = vst [vmem:[%s1335_s25 + $0x10] sm:$0xff] %v912_v0   ;;  %988 = vst [vmem:[%s1335_s25 + $0x50] sm:$0xff] %v952_v1   ;;  %v1035_v2 = vpop.f32.mrb[8].mxu0  ;;  %v1051_v3 = vpop.f32.mrb[8].mxu1 }
 0x106   : > { %v453_v4 = vpop.f32.mrb[9].mxu0  ;;  %v517_v5 = vpop.f32.mrb[9].mxu1  ;;  %v462_v8 = vadd.f32 %v1035_v2, %v1323_v26  ;;  %v526_v9 = vadd.f32 %v1051_v3, %v1323_v26 }
 0x107   : > { %v1036_v6 = vpop.f32.mrb[10].mxu0  ;;  %v1052_v7 = vpop.f32.mrb[10].mxu1  ;;  %v454_v14 = vadd.f32 %v1323_v26, %v453_v4  ;;  %v518_v15 = vadd.f32 %v1323_v26, %v517_v5 }
 0x108   : > { %v465_v10 = vadd.f32 %v1036_v6, %v1323_v26  ;;  %v529_v11 = vadd.f32 %v1052_v7, %v1323_v26  ;;  %v456_v12 = vpop.f32.mrb[11].mxu0  ;;  %v520_v13 = vpop.f32.mrb[11].mxu1 }
 0x109   : > { %v457_v16 = vadd.f32 %v1323_v26, %v456_v12  ;;  %v521_v17 = vadd.f32 %v1323_v26, %v520_v13 }
 0x10a   : > { %v927_v18 = vpack.c.bf16 %v465_v10, %v462_v8  ;;  %v967_v19 = vpack.c.bf16 %v529_v11, %v526_v9 }
 0x10b   : > { %v922_v20 = vpack.c.bf16 %v457_v16, %v454_v14  ;;  %v962_v21 = vpack.c.bf16 %v521_v17, %v518_v15 }
 0x10c   : > { %983 = vst [vmem:[%s1335_s25 + $0x28] sm:$0xff] %v927_v18   ;;  %991 = vst [vmem:[%s1335_s25 + $0x68] sm:$0xff] %v967_v19  }
 0x10d   : > { %982 = vst [vmem:[%s1335_s25 + $0x20] sm:$0xff] %v922_v20   ;;  %990 = vst [vmem:[%s1335_s25 + $0x60] sm:$0xff] %v962_v21   ;;  %v1039_v22 = vpop.f32.mrb[12].mxu0  ;;  %v1055_v23 = vpop.f32.mrb[12].mxu1 }
 0x10e   : > { %v469_v24 = vpop.f32.mrb[13].mxu0  ;;  %v533_v25 = vpop.f32.mrb[13].mxu1  ;;  %v478_v29 = vadd.f32 %v1039_v22, %v1323_v26  ;;  %v542_v30 = vadd.f32 %v1055_v23, %v1323_v26 }
 0x10f   : > { %v1040_v27 = vpop.f32.mrb[14].mxu0  ;;  %v1056_v28 = vpop.f32.mrb[14].mxu1  ;;  %v470_v35 = vadd.f32 %v1323_v26, %v469_v24  ;;  %v534_v36 = vadd.f32 %v1323_v26, %v533_v25 }
 0x110   : > { %v481_v31 = vadd.f32 %v1040_v27, %v1323_v26  ;;  %v545_v32 = vadd.f32 %v1056_v28, %v1323_v26  ;;  %v472_v33 = vpop.f32.mrb[15].mxu0  ;;  %v536_v34 = vpop.f32.mrb[15].mxu1 }
 0x111   : > { %v473_v37 = vadd.f32 %v1323_v26, %v472_v33  ;;  %v537_v38 = vadd.f32 %v1323_v26, %v536_v34 }
 0x112   : > { %v937_v39 = vpack.c.bf16 %v481_v31, %v478_v29  ;;  %v977_v40 = vpack.c.bf16 %v545_v32, %v542_v30 }
 0x113   : > { %v932_v41 = vpack.c.bf16 %v473_v37, %v470_v35  ;;  %v972_v42 = vpack.c.bf16 %v537_v38, %v534_v36 }
 0x114   : > { %985 = vst [vmem:[%s1335_s25 + $0x38] sm:$0xff] %v937_v39   ;;  %993 = vst [vmem:[%s1335_s25 + $0x78] sm:$0xff] %v977_v40  }
 0x115   : > { %984 = vst [vmem:[%s1335_s25 + $0x30] sm:$0xff] %v932_v41   ;;  %992 = vst [vmem:[%s1335_s25 + $0x70] sm:$0xff] %v972_v42  }
 0x116   : > { %1143 = shalt.err (!%p1140_p3)
}
 0x117   : > { %s1144_s8 = scalar_lea.hbm %s1378_s29, 2048  ;;  %s1148_s11 = scalar_lea.hbm %s1432_s3, 4096 }
 0x118   : > { %p1145_p4 = scmp.ne.s32.totalorder %s1378_s29, %s1144_s8  ;;  %p1149_p9 = scmp.lt.u32.totalorder %s1378_s29, %s1432_s3 }
 0x119   : > { %p1150_p10 = scmp.lt.u32.totalorder %s1148_s11, %s1144_s8  ;;  %p1152_p12 = scmp.lt.u32.totalorder %s1144_s8, %s1378_s29 }
 0x11a   : > { %p1146_p7 = pnand %p1145_p4, %p1256_p5 }
 0x11b   : > { %p1151_p11 = por %p1150_p10, %p1149_p9 }
 0x11c   : > { %p1147_p8 = pneg %p1146_p7 }
 0x11d   : > { %p1153_p13 = por %p1152_p12, %p1151_p11 }
 0x11f   : > { %p1154_p0 = pnand %p1153_p13, %p1147_p8 }
 0x121   : > { %1157 = shalt.err (!%p1154_p0)
}
 0x122   : > { %s1196_s20 = smov 64   ;;  %s1197_s24 = smov 4  }
 0x123   : > { %1067 = dma.vmem_to_hbm [thread:$0]  (%p1256_p5), %s1380_s27, 2048, %s1378_s29, %s1388_s30, %s1196_s20, %s1196_s20, %s1197_s24  }
 0x124 PF: > { %p1073_p1 = scmp.ge.s32.totalorder %s1192_s15, 2  ;;  %s737_s25 = sand.u32 1, %s1180_s12  }
 0x125   : > { %s738_s26 = scalar_lea.sflag [#allocation3], %s737_s25 }
 0x126   : > { %p1070_p2 = pnand %p1073_p1, %p1260_p6 }
 0x128   : > { %1175 = dma.done.wait (!%p1070_p2), %s738_s26, 2048  }
 0x129   : > { %1177 = vsyncadd (!%p1070_p2), %s738_s26, 4294965248  ;;  %p13_p3 = scmp.ge.s32.totalorder %s1243_s18, 4   ;;  %s1435_s12 = smov %s1184_s13 }
 0x12a   : > { %s1436_s13 = smov %s1188_s14  ;;  %s1437_s14 = smov %s1254_s21 }
 0x12b   : > { %s1438_s15 = smov %s1243_s18  ;;  %15 = sbr.rel (!%p13_p3) target bundleno = 3 (0x3), region = 67 }
 0x132   :  { %743 = vsyncpa [#allocation3], 1 }
 0x133   :  { %745 = vsyncpa [#allocation3 + $0x1], 1 }

</bundles_post_ra>
